<compile_context>
chip_gen: v5e
topology: v5e:2x2
jax: 0.10.0
libtpu: 0.0.40
codegen_flags: <defaults>
</compile_context>

<pallas_src>
import functools

import jax
import jax.numpy as jnp
from jax.experimental import pallas as pl
from jax.experimental.pallas import tpu as pltpu


_MAX_TT = 32   # timesteps per grid step (fully unrolled in-kernel)


# ----------------------------------------------------------------------------
# Helpers
# ----------------------------------------------------------------------------
def _round_up(n, m):
    return ((n + m - 1) // m) * m


def _cdiv(a, b):
    return -(-a // b)


def _probe_kernel(x_ref, o_ref):
    o_ref[...] = x_ref[...] + 1.0


@functools.lru_cache(maxsize=None)
def _single_buffer_supported():
    """Probe (once, eagerly) whether pipeline_mode=pl.Buffered(1) works here.

    Grid-invariant operands (the resident weights) do not need double
    buffering; single-buffering halves their VMEM footprint (matters for
    v7x's 64 MiB VMEM at large H).  Fall back silently if unsupported.
    """
    try:
        fn = pl.pallas_call(
            _probe_kernel,
            out_shape=jax.ShapeDtypeStruct((16, 128), jnp.float32),
            grid=(2,),
            in_specs=[pl.BlockSpec((8, 128), lambda i: (0, 0),
                                   pipeline_mode=pl.Buffered(1))],
            out_specs=pl.BlockSpec((8, 128), lambda i: (i, 0)),
        )
        jax.block_until_ready(fn(jnp.zeros((8, 128), jnp.float32)))
        return True
    except Exception:      # any failure -> default (double) buffering
        return False


# ----------------------------------------------------------------------------
# Fused kernel: per-chunk layer-0 projection + multi-layer recurrence + FC
# ----------------------------------------------------------------------------
def _make_fused_kernel(num_layers, tt, bt, d, hp, t_valid, guard_tail):
    multi = num_layers > 1
    hp4 = 4 * hp

    def kernel(*refs):
        if multi:
            (x_ref, wih0_ref, b0_ref, whh0_ref, wstk_ref, brest_ref,
             wfc_ref, bfc_ref, o_ref, h_scr, c_scr) = refs
        else:
            (x_ref, wih0_ref, b0_ref, whh0_ref,
             wfc_ref, bfc_ref, o_ref, h_scr, c_scr) = refs

        tc = pl.program_id(1)                      # time-chunk index (inner axis)

        @pl.when(tc == 0)
        def _():
            h_scr[...] = jnp.zeros_like(h_scr)
            c_scr[...] = jnp.zeros_like(c_scr)

        # ---- layer-0 input projection for the whole chunk: ONE MXU matmul
        #      (no gx HBM round-trip; bias folded in once, broadcast hoisted)
        xc = x_ref[...].reshape(tt * bt, d).astype(jnp.bfloat16)
        gx = (jnp.dot(xc, wih0_ref[...], preferred_element_type=jnp.float32)
              + b0_ref[...])                                     # (tt*bt, 4Hp)

        # ---- hoist layer>=1 bias broadcasts out of the timestep loop ----
        if multi:
            b_rest = [jnp.broadcast_to(brest_ref[l], (bt, hp4))
                      for l in range(num_layers - 1)]

        def cell(gates, c_prev):
            # lane-dense gate slices (hp is a multiple of 128); all math in f32
            i_g = jax.nn.sigmoid(gates[:, 0 * hp:1 * hp])
            f_g = jax.nn.sigmoid(gates[:, 1 * hp:2 * hp])
            g_g = jnp.tanh(gates[:, 2 * hp:3 * hp])
            o_g = jax.nn.sigmoid(gates[:, 3 * hp:4 * hp])
            c_new = f_g * c_prev + i_g * g_g
            return o_g * jnp.tanh(c_new), c_new

        def timestep(ti):
            # layer 0: hoisted input projection + recurrent matmul (bf16 in, f32 acc)
            gates0 = gx[ti * bt:(ti + 1) * bt] + jnp.dot(
                h_scr[0].astype(jnp.bfloat16), whh0_ref[...],
                preferred_element_type=jnp.float32)
            h_new, c_new = cell(gates0, c_scr[0])
            h_scr[0] = h_new
            c_scr[0] = c_new
            # layers >= 1: single fused matmul [h_below, h_prev] @ [W_ih; W_hh]
            for l in range(1, num_layers):
                hh = jnp.concatenate([h_new.astype(jnp.bfloat16),
                                      h_scr[l].astype(jnp.bfloat16)], axis=-1)
                gates = (jnp.dot(hh, wstk_ref[l - 1],
                                 preferred_element_type=jnp.float32)
                         + b_rest[l - 1])
                h_new, c_new = cell(gates, c_scr[l])
                h_scr[l] = h_new
                c_scr[l] = c_new

        # Fully unrolled timestep loop (tt small & static); the tail guard is
        # only emitted when T is not a multiple of tt.
        for ti in range(tt):
            if guard_tail:
                pl.when(tc * tt + ti < t_valid)(functools.partial(timestep, ti))
            else:
                timestep(ti)

        # Fused final FC, written once on the last time chunk (only the final
        # hidden state is ever consumed -> no (T,B,H) HBM writeback).
        @pl.when(tc == pl.num_programs(1) - 1)
        def _():
            o_ref[...] = (
                jnp.dot(h_scr[num_layers - 1].astype(jnp.bfloat16), wfc_ref[...],
                        preferred_element_type=jnp.float32)
                + bfc_ref[...]
            )

    return kernel


def _fused_recurrence(x_pad, prep, *, num_layers, tt, t_valid, bt):
    """x_pad: (Tpad, Bp, D) f32 time-major.  Returns (Bp, Op) f32."""
    Tpad, Bp, D = x_pad.shape
    Hp4 = prep["w_ih0_t"].shape[1]
    Hp = Hp4 // 4
    Op = prep["fc_w_t"].shape[1]
    L = num_layers
    nchunks = Tpad // tt
    n_btiles = Bp // bt
    guard_tail = (t_valid != Tpad)

    kernel = _make_fused_kernel(L, tt, bt, D, Hp, t_valid, guard_tail)

    use_single_buf = _single_buffer_supported()   # warmed eagerly in prepare_params

    def resident(shape):
        ndim = len(shape)
        idx = lambda b, c, _n=ndim: (0,) * _n            # grid-invariant block
        if use_single_buf:
            return pl.BlockSpec(shape, idx, pipeline_mode=pl.Buffered(1))
        return pl.BlockSpec(shape, idx)

    in_specs = [pl.BlockSpec((tt, bt, D), lambda b, c: (c, b, 0))]   # streamed x
    operands = [x_pad]
    for key in ("w_ih0_t", "b0", "w_hh0_t"):
        in_specs.append(resident(prep[key].shape))
        operands.append(prep[key])
    if L > 1:
        for key in ("w_stack_t", "b_rest"):
            in_specs.append(resident(prep[key].shape))
            operands.append(prep[key])
    for key in ("fc_w_t", "fc_b"):
        in_specs.append(resident(prep[key].shape))
        operands.append(prep[key])

    # Explicit VMEM budget: resident weights (+buffering), streamed x/out
    # double buffers, h/c scratch, and headroom for the chunk intermediates.
    wbytes = sum(int(o.size) * o.dtype.itemsize for o in operands[1:])
    est = (2 * tt * bt * D * 4
           + wbytes * (1 if use_single_buf else 2)
           + 2 * bt * Op * 4
           + 2 * L * bt * Hp * 4
           + 6 * tt * bt * Hp4 * 4)
    vmem_limit = int(min(100 << 20, max(32 << 20, 2 * est)))

    return pl.pallas_call(
        kernel,
        out_shape=jax.ShapeDtypeStruct((Bp, Op), jnp.float32),
        grid_spec=pltpu.PrefetchScalarGridSpec(
            num_scalar_prefetch=0,
            grid=(n_btiles, nchunks),          # (parallel batch tiles, time)
            in_specs=in_specs,
            out_specs=pl.BlockSpec((bt, Op), lambda b, c: (b, 0)),
            scratch_shapes=[pltpu.VMEM((L, bt, Hp), jnp.float32),   # h state
                            pltpu.VMEM((L, bt, Hp), jnp.float32)],  # c state
        ),
        compiler_params=pltpu.CompilerParams(
            dimension_semantics=("parallel", "arbitrary"),
            vmem_limit_bytes=vmem_limit),
    )(*operands)


# ----------------------------------------------------------------------------
# One-time parameter preparation (transpose, stacking, lane padding, bf16 cast)
# ----------------------------------------------------------------------------
def prepare_params(params, hidden_dim):
    _single_buffer_supported()     # run the probe eagerly (outside any jit trace)

    H = hidden_dim
    Hp = _round_up(H, 128)

    def f32(a):
        return jnp.asarray(a, jnp.float32)

    def pad_gates_T(w):
        # (4H, Din) -> (Din, 4Hp): transpose + per-gate zero-padding H -> Hp
        d_in = w.shape[1]
        w4 = w.reshape(4, H, d_in)
        w4 = jnp.pad(w4, ((0, 0), (0, Hp - H), (0, 0)))
        return jnp.transpose(w4, (2, 0, 1)).reshape(d_in, 4 * Hp)

    def pad_rows(w_t):
        # (H, 4Hp) -> (Hp, 4Hp): zero rows for the (zero) padded-h inputs
        return jnp.pad(w_t, ((0, Hp - w_t.shape[0]), (0, 0)))

    def pad_bias(b_ih, b_hh):
        b = (f32(b_ih) + f32(b_hh)).reshape(4, H)
        return jnp.pad(b, ((0, 0), (0, Hp - H))).reshape(1, 4 * Hp)

    lstm = params["lstm"]
    L = len(lstm)

    prep = {
        # layer 0: input projection weight (streamed x side) + recurrent weight
        "w_ih0_t": pad_gates_T(f32(lstm[0]["w_ih"])).astype(jnp.bfloat16),
        "b0": pad_bias(lstm[0]["b_ih"], lstm[0]["b_hh"]),
        "w_hh0_t": pad_rows(pad_gates_T(f32(lstm[0]["w_hh"]))).astype(jnp.bfloat16),
    }
    if L > 1:
        # layers >= 1: stacked [W_ih; W_hh] so the kernel does ONE matmul on
        # concat([h_below, h_prev]) per layer per timestep
        prep["w_stack_t"] = jnp.stack([
            jnp.concatenate([pad_rows(pad_gates_T(f32(lp["w_ih"]))),
                             pad_rows(pad_gates_T(f32(lp["w_hh"])))], axis=0)
            for lp in lstm[1:]]).astype(jnp.bfloat16)                # (L-1, 2Hp, 4Hp)
        prep["b_rest"] = jnp.stack([pad_bias(lp["b_ih"], lp["b_hh"])
                                    for lp in lstm[1:]])             # (L-1, 1, 4Hp)

    O = params["fc_w"].shape[0]
    Op = _round_up(O, 128)
    fc_w_t = jnp.zeros((Hp, Op), jnp.float32).at[:H, :O].set(f32(params["fc_w"]).T)
    prep["fc_w_t"] = fc_w_t.astype(jnp.bfloat16)
    prep["fc_b"] = jnp.zeros((1, Op), jnp.float32).at[0, :O].set(f32(params["fc_b"]))
    return prep


# ----------------------------------------------------------------------------
# Forward pass (equivalent of LSTM.forward)
# ----------------------------------------------------------------------------
@functools.partial(jax.jit, static_argnames=("output_dim",))
def lstm_forward(x_btd, prep, *, output_dim):
    """x: (B, T, D) batch-first -> (B, output_dim)."""
    B, T, _ = x_btd.shape
    num_layers = 1 + (prep["w_stack_t"].shape[0] if "w_stack_t" in prep else 0)

    tt = min(T, _MAX_TT)
    Tpad = _cdiv(T, tt) * tt
    Bp = _round_up(B, 8)                     # sublane-aligned batch
    # Split batch over two "parallel" tiles (v7x megacore) when it stays aligned.
    bt = Bp // 2 if (Bp >= 16 and Bp % 16 == 0) else Bp

    x = jnp.transpose(x_btd.astype(jnp.float32), (1, 0, 2))          # time-major
    x = jnp.pad(x, ((0, Tpad - T), (0, Bp - B), (0, 0)))             # inert zeros

    out_pad = _fused_recurrence(x, prep, num_layers=num_layers, tt=tt,
                                t_valid=T, bt=bt)
    return out_pad[:B, :output_dim]


# ----------------------------------------------------------------------------
# Deterministic parameter init (PyTorch-style uniform(-1/sqrt(H), 1/sqrt(H)))
# ----------------------------------------------------------------------------
def init_params(key, input_dim, hidden_dim, num_layers, output_dim):
    params = {"lstm": []}
    k = 1.0 / jnp.sqrt(hidden_dim)
    for layer in range(num_layers):
        d_in = input_dim if layer == 0 else hidden_dim
        key, k1, k2, k3, k4 = jax.random.split(key, 5)
        params["lstm"].append({
            "w_ih": jax.random.uniform(k1, (4 * hidden_dim, d_in), jnp.float32, -k, k),
            "w_hh": jax.random.uniform(k2, (4 * hidden_dim, hidden_dim), jnp.float32, -k, k),
            "b_ih": jax.random.uniform(k3, (4 * hidden_dim,), jnp.float32, -k, k),
            "b_hh": jax.random.uniform(k4, (4 * hidden_dim,), jnp.float32, -k, k),
        })
    key, k1, k2 = jax.random.split(key, 3)
    params["fc_w"] = jax.random.uniform(k1, (output_dim, hidden_dim), jnp.float32, -k, k)
    params["fc_b"] = jax.random.uniform(k2, (output_dim,), jnp.float32, -k, k)
    return params


# Pure-JAX reference (f32 everywhere) for a sanity check of the kernel math.
def _reference(x_btd, params):
    x = jnp.transpose(x_btd, (1, 0, 2))
    for lp in params["lstm"]:
        T, B, _ = x.shape
        H = lp["w_hh"].shape[1]
        h = jnp.zeros((B, H), jnp.float32)
        c = jnp.zeros((B, H), jnp.float32)
        outs = []
        for t in range(T):
            g = x[t] @ lp["w_ih"].T + h @ lp["w_hh"].T + lp["b_ih"] + lp["b_hh"]
            i = jax.nn.sigmoid(g[:, 0 * H:1 * H])
            f = jax.nn.sigmoid(g[:, 1 * H:2 * H])
            gg = jnp.tanh(g[:, 2 * H:3 * H])
            o = jax.nn.sigmoid(g[:, 3 * H:4 * H])
            c = f * c + i * gg
            h = o * jnp.tanh(c)
            outs.append(h)
        x = jnp.stack(outs, axis=0)
    return x[-1] @ params["fc_w"].T + params["fc_b"]


if __name__ == "__main__":
    B, T = 2, 8
    input_dim, hidden_dim, num_layers, output_dim = 16, 32, 2, 4

    key = jax.random.PRNGKey(0)
    key, kx = jax.random.split(key)
    x = jax.random.normal(kx, (B, T, input_dim), jnp.float32)

    params = init_params(key, input_dim, hidden_dim, num_layers, output_dim)
    prep = prepare_params(params, hidden_dim)          # one-time weight prep

    out = lstm_forward(x, prep, output_dim=output_dim)
    out = jax.block_until_ready(out)

    ref = _reference(x, params)
    assert out.shape == (B, output_dim)
    # bf16 weights on the MXU path -> looser tolerance than the f32 reference.
    assert jnp.allclose(out, ref, atol=5e-2, rtol=5e-2)

    print("KERNEL_OK")
</pallas_src>

<mosaic_0001>
module attributes {stable_mosaic.version = 11 : i64} {
  func.func @_probe_kernel(%arg0: i32, %arg1: memref<8x128xf32, #tpu.memory_space<vmem>>, %arg2: memref<8x128xf32, #tpu.memory_space<vmem>>) attributes {dimension_semantics = [#tpu.dimension_semantics<arbitrary>], iteration_bounds = array<i64: 2>, scalar_prefetch = 0 : i64, scratch_operands = 0 : i64, tpu.core_type = #tpu.core_type<tc>, window_params = [{pipeline_mode = #tpu.pipeline_mode<synchronous>, transform_indices = @transform_0, window_bounds = array<i64: 8, 128>}, {transform_indices = @transform_1, window_bounds = array<i64: 8, 128>}]} {
    %c0 = arith.constant 0 : index
    %c0_0 = arith.constant 0 : index
    %0 = vector.load %arg1[%c0, %c0_0] : memref<8x128xf32, #tpu.memory_space<vmem>>, vector<8x128xf32>
    %cst = arith.constant 1.000000e+00 : f32
    %1 = vector.broadcast %cst : f32 to vector<8x128xf32>
    %2 = arith.addf %0, %1 : vector<8x128xf32>
    %c0_1 = arith.constant 0 : index
    %c0_2 = arith.constant 0 : index
    %3 = vector.load %arg2[%c0_1, %c0_2] : memref<8x128xf32, #tpu.memory_space<vmem>>, vector<8x128xf32>
    tpu.vector_store %arg2[%c0_1, %c0_2], %2 {strides = array<i32>} : memref<8x128xf32, #tpu.memory_space<vmem>>, vector<8x128xf32>,
    return
  }
  func.func @transform_0(%arg0: i32) -> (i32, i32) {
    %c0_i32 = arith.constant 0 : i32
    %c0_i32_0 = arith.constant 0 : i32
    %c0_i32_1 = arith.constant 0 : i32
    return %c0_i32, %c0_i32_0 : i32, i32
  }
  func.func @transform_1(%arg0: i32) -> (i32, i32) {
    %c0_i32 = arith.constant 0 : i32
    %c0_i32_0 = arith.constant 0 : i32
    return %arg0, %c0_i32 : i32, i32
  }
}

module attributes {stable_mosaic.version = 11 : i64} {
  func.func @kernel(%arg0: i32, %arg1: i32, %arg2: memref<8x8x16xf32, #tpu.memory_space<vmem>>, %arg3: memref<16x512xbf16, #tpu.memory_space<vmem>>, %arg4: memref<1x512xf32, #tpu.memory_space<vmem>>, %arg5: memref<128x512xbf16, #tpu.memory_space<vmem>>, %arg6: memref<1x256x512xbf16, #tpu.memory_space<vmem>>, %arg7: memref<1x1x512xf32, #tpu.memory_space<vmem>>, %arg8: memref<128x128xbf16, #tpu.memory_space<vmem>>, %arg9: memref<1x128xf32, #tpu.memory_space<vmem>>, %arg10: memref<8x128xf32, #tpu.memory_space<vmem>>, %arg11: memref<2x8x128xf32, #tpu.memory_space<vmem>>, %arg12: memref<2x8x128xf32, #tpu.memory_space<vmem>>) attributes {dimension_semantics = [#tpu.dimension_semantics<parallel>, #tpu.dimension_semantics<arbitrary>], iteration_bounds = array<i64: 1, 1>, scalar_prefetch = 0 : i64, scratch_operands = 2 : i64, tpu.core_type = #tpu.core_type<tc>, window_params = [{transform_indices = @transform_0, window_bounds = array<i64: 8, 8, 16>}, {pipeline_mode = #tpu.pipeline_mode<synchronous>, transform_indices = @transform_1, window_bounds = array<i64: 16, 512>}, {pipeline_mode = #tpu.pipeline_mode<synchronous>, transform_indices = @transform_2, window_bounds = array<i64: 1, 512>}, {pipeline_mode = #tpu.pipeline_mode<synchronous>, transform_indices = @transform_3, window_bounds = array<i64: 128, 512>}, {pipeline_mode = #tpu.pipeline_mode<synchronous>, transform_indices = @transform_4, window_bounds = array<i64: 1, 256, 512>}, {pipeline_mode = #tpu.pipeline_mode<synchronous>, transform_indices = @transform_5, window_bounds = array<i64: 1, 1, 512>}, {pipeline_mode = #tpu.pipeline_mode<synchronous>, transform_indices = @transform_6, window_bounds = array<i64: 128, 128>}, {pipeline_mode = #tpu.pipeline_mode<synchronous>, transform_indices = @transform_7, window_bounds = array<i64: 1, 128>}, {transform_indices = @transform_8, window_bounds = array<i64: 8, 128>}]} {
    %c0_i32 = arith.constant 0 : i32
    %0 = arith.cmpi eq, %arg1, %c0_i32 : i32
    %1 = arith.extui %0 : i1 to i32
    %c0_i32_0 = arith.constant 0 : i32
    %2 = arith.cmpi ne, %1, %c0_i32_0 : i32
    scf.if %2 {
      %cst_307 = arith.constant 0.000000e+00 : f32
      %674 = vector.broadcast %cst_307 : f32 to vector<2x8x128xf32>
      %c0_308 = arith.constant 0 : index
      %c0_309 = arith.constant 0 : index
      %c0_310 = arith.constant 0 : index
      %675 = vector.load %arg11[%c0_308, %c0_309, %c0_310] : memref<2x8x128xf32, #tpu.memory_space<vmem>>, vector<2x8x128xf32>
      tpu.vector_store %arg11[%c0_308, %c0_309, %c0_310], %674 {strides = array<i32>} : memref<2x8x128xf32, #tpu.memory_space<vmem>>, vector<2x8x128xf32>,
      %cst_311 = arith.constant 0.000000e+00 : f32
      %676 = vector.broadcast %cst_311 : f32 to vector<2x8x128xf32>
      %c0_312 = arith.constant 0 : index
      %c0_313 = arith.constant 0 : index
      %c0_314 = arith.constant 0 : index
      %677 = vector.load %arg12[%c0_312, %c0_313, %c0_314] : memref<2x8x128xf32, #tpu.memory_space<vmem>>, vector<2x8x128xf32>
      tpu.vector_store %arg12[%c0_312, %c0_313, %c0_314], %676 {strides = array<i32>} : memref<2x8x128xf32, #tpu.memory_space<vmem>>, vector<2x8x128xf32>,
    } else {
    }
    %c0 = arith.constant 0 : index
    %c0_1 = arith.constant 0 : index
    %c0_2 = arith.constant 0 : index
    %3 = vector.load %arg2[%c0, %c0_1, %c0_2] : memref<8x8x16xf32, #tpu.memory_space<vmem>>, vector<8x8x16xf32>
    %4 = vector.shape_cast %3 : vector<8x8x16xf32> to vector<64x16xf32>
    %5 = arith.truncf %4 : vector<64x16xf32> to vector<64x16xbf16>
    %c0_3 = arith.constant 0 : index
    %c0_4 = arith.constant 0 : index
    %6 = vector.load %arg3[%c0_3, %c0_4] : memref<16x512xbf16, #tpu.memory_space<vmem>>, vector<16x512xbf16>
    %cst = arith.constant dense<0.000000e+00> : vector<64x512xf32>
    %7 = tpu.matmul %5, %6, %cst {dimension_numbers = #tpu.dot_dimension_numbers<[1], [0], [0], [1], [0, 0, 1, 1], [], []>} : vector<64x16xbf16>, vector<16x512xbf16>, vector<64x512xf32> -> vector<64x512xf32>
    %c0_5 = arith.constant 0 : index
    %c0_6 = arith.constant 0 : index
    %8 = vector.load %arg4[%c0_5, %c0_6] : memref<1x512xf32, #tpu.memory_space<vmem>>, vector<1x512xf32>
    %9 = vector.broadcast %8 : vector<1x512xf32> to vector<64x512xf32>
    %10 = arith.addf %7, %9 : vector<64x512xf32>
    %c0_7 = arith.constant 0 : index
    %c0_8 = arith.constant 0 : index
    %c0_9 = arith.constant 0 : index
    %11 = vector.load %arg7[%c0_7, %c0_8, %c0_9] : memref<1x1x512xf32, #tpu.memory_space<vmem>>, vector<1x1x512xf32>
    %12 = vector.shape_cast %11 : vector<1x1x512xf32> to vector<1x512xf32>
    %13 = vector.shape_cast %12 : vector<1x512xf32> to vector<1x512xf32>
    %14 = vector.broadcast %13 : vector<1x512xf32> to vector<8x512xf32>
    %15 = vector.extract_strided_slice %10 {offsets = [0, 0], sizes = [8, 512], strides = [1, 1]} : vector<64x512xf32> to vector<8x512xf32>
    %c0_10 = arith.constant 0 : index
    %c0_11 = arith.constant 0 : index
    %c0_12 = arith.constant 0 : index
    %16 = vector.load %arg11[%c0_10, %c0_11, %c0_12] : memref<2x8x128xf32, #tpu.memory_space<vmem>>, vector<1x8x128xf32>
    %17 = vector.shape_cast %16 : vector<1x8x128xf32> to vector<8x128xf32>
    %18 = arith.truncf %17 : vector<8x128xf32> to vector<8x128xbf16>
    %c0_13 = arith.constant 0 : index
    %c0_14 = arith.constant 0 : index
    %19 = vector.load %arg5[%c0_13, %c0_14] : memref<128x512xbf16, #tpu.memory_space<vmem>>, vector<128x512xbf16>
    %cst_15 = arith.constant dense<0.000000e+00> : vector<8x512xf32>
    %20 = tpu.matmul %18, %19, %cst_15 {dimension_numbers = #tpu.dot_dimension_numbers<[1], [0], [0], [1], [0, 0, 1, 1], [], []>} : vector<8x128xbf16>, vector<128x512xbf16>, vector<8x512xf32> -> vector<8x512xf32>
    %21 = arith.addf %15, %20 : vector<8x512xf32>
    %c0_16 = arith.constant 0 : index
    %c0_17 = arith.constant 0 : index
    %c0_18 = arith.constant 0 : index
    %22 = vector.load %arg12[%c0_16, %c0_17, %c0_18] : memref<2x8x128xf32, #tpu.memory_space<vmem>>, vector<1x8x128xf32>
    %23 = vector.shape_cast %22 : vector<1x8x128xf32> to vector<8x128xf32>
    %24 = vector.extract_strided_slice %21 {offsets = [0, 0], sizes = [8, 128], strides = [1, 1]} : vector<8x512xf32> to vector<8x128xf32>
    %25 = arith.negf %24 : vector<8x128xf32>
    %26 = math.exp %25 : vector<8x128xf32>
    %cst_19 = arith.constant 1.000000e+00 : f32
    %27 = vector.broadcast %cst_19 : f32 to vector<8x128xf32>
    %28 = arith.addf %27, %26 : vector<8x128xf32>
    %29 = arith.divf %27, %28 : vector<8x128xf32>
    %30 = vector.extract_strided_slice %21 {offsets = [0, 128], sizes = [8, 128], strides = [1, 1]} : vector<8x512xf32> to vector<8x128xf32>
    %31 = arith.negf %30 : vector<8x128xf32>
    %32 = math.exp %31 : vector<8x128xf32>
    %cst_20 = arith.constant 1.000000e+00 : f32
    %33 = vector.broadcast %cst_20 : f32 to vector<8x128xf32>
    %34 = arith.addf %33, %32 : vector<8x128xf32>
    %35 = arith.divf %33, %34 : vector<8x128xf32>
    %36 = vector.extract_strided_slice %21 {offsets = [0, 256], sizes = [8, 128], strides = [1, 1]} : vector<8x512xf32> to vector<8x128xf32>
    %37 = math.tanh %36 : vector<8x128xf32>
    %38 = vector.extract_strided_slice %21 {offsets = [0, 384], sizes = [8, 128], strides = [1, 1]} : vector<8x512xf32> to vector<8x128xf32>
    %39 = arith.negf %38 : vector<8x128xf32>
    %40 = math.exp %39 : vector<8x128xf32>
    %cst_21 = arith.constant 1.000000e+00 : f32
    %41 = vector.broadcast %cst_21 : f32 to vector<8x128xf32>
    %42 = arith.addf %41, %40 : vector<8x128xf32>
    %43 = arith.divf %41, %42 : vector<8x128xf32>
    %44 = arith.mulf %35, %23 : vector<8x128xf32>
    %45 = arith.mulf %29, %37 : vector<8x128xf32>
    %46 = arith.addf %44, %45 : vector<8x128xf32>
    %47 = math.tanh %46 : vector<8x128xf32>
    %48 = arith.mulf %43, %47 : vector<8x128xf32>
    %c0_22 = arith.constant 0 : index
    %c0_23 = arith.constant 0 : index
    %c0_24 = arith.constant 0 : index
    %49 = vector.load %arg11[%c0_22, %c0_23, %c0_24] : memref<2x8x128xf32, #tpu.memory_space<vmem>>, vector<1x8x128xf32>
    %50 = vector.shape_cast %49 : vector<1x8x128xf32> to vector<8x128xf32>
    %51 = vector.shape_cast %48 : vector<8x128xf32> to vector<1x8x128xf32>
    tpu.vector_store %arg11[%c0_22, %c0_23, %c0_24], %51 {strides = array<i32>} : memref<2x8x128xf32, #tpu.memory_space<vmem>>, vector<1x8x128xf32>,
    %c0_25 = arith.constant 0 : index
    %c0_26 = arith.constant 0 : index
    %c0_27 = arith.constant 0 : index
    %52 = vector.load %arg12[%c0_25, %c0_26, %c0_27] : memref<2x8x128xf32, #tpu.memory_space<vmem>>, vector<1x8x128xf32>
    %53 = vector.shape_cast %52 : vector<1x8x128xf32> to vector<8x128xf32>
    %54 = vector.shape_cast %46 : vector<8x128xf32> to vector<1x8x128xf32>
    tpu.vector_store %arg12[%c0_25, %c0_26, %c0_27], %54 {strides = array<i32>} : memref<2x8x128xf32, #tpu.memory_space<vmem>>, vector<1x8x128xf32>,
    %55 = arith.truncf %48 : vector<8x128xf32> to vector<8x128xbf16>
    %c1 = arith.constant 1 : index
    %c0_28 = arith.constant 0 : index
    %c0_29 = arith.constant 0 : index
    %56 = vector.load %arg11[%c1, %c0_28, %c0_29] : memref<2x8x128xf32, #tpu.memory_space<vmem>>, vector<1x8x128xf32>
    %57 = vector.shape_cast %56 : vector<1x8x128xf32> to vector<8x128xf32>
    %58 = arith.truncf %57 : vector<8x128xf32> to vector<8x128xbf16>
    %59 = tpu.concatenate %55, %58 in 1 : vector<8x128xbf16>, vector<8x128xbf16> -> vector<8x256xbf16>
    %c0_30 = arith.constant 0 : index
    %c0_31 = arith.constant 0 : index
    %c0_32 = arith.constant 0 : index
    %60 = vector.load %arg6[%c0_30, %c0_31, %c0_32] : memref<1x256x512xbf16, #tpu.memory_space<vmem>>, vector<1x256x512xbf16>
    %61 = vector.shape_cast %60 : vector<1x256x512xbf16> to vector<256x512xbf16>
    %cst_33 = arith.constant dense<0.000000e+00> : vector<8x512xf32>
    %62 = tpu.matmul %59, %61, %cst_33 {dimension_numbers = #tpu.dot_dimension_numbers<[1], [0], [0], [1], [0, 0, 1, 1], [], []>} : vector<8x256xbf16>, vector<256x512xbf16>, vector<8x512xf32> -> vector<8x512xf32>
    %63 = arith.addf %62, %14 : vector<8x512xf32>
    %c1_34 = arith.constant 1 : index
    %c0_35 = arith.constant 0 : index
    %c0_36 = arith.constant 0 : index
    %64 = vector.load %arg12[%c1_34, %c0_35, %c0_36] : memref<2x8x128xf32, #tpu.memory_space<vmem>>, vector<1x8x128xf32>
    %65 = vector.shape_cast %64 : vector<1x8x128xf32> to vector<8x128xf32>
    %66 = vector.extract_strided_slice %63 {offsets = [0, 0], sizes = [8, 128], strides = [1, 1]} : vector<8x512xf32> to vector<8x128xf32>
    %67 = arith.negf %66 : vector<8x128xf32>
    %68 = math.exp %67 : vector<8x128xf32>
    %cst_37 = arith.constant 1.000000e+00 : f32
    %69 = vector.broadcast %cst_37 : f32 to vector<8x128xf32>
    %70 = arith.addf %69, %68 : vector<8x128xf32>
    %71 = arith.divf %69, %70 : vector<8x128xf32>
    %72 = vector.extract_strided_slice %63 {offsets = [0, 128], sizes = [8, 128], strides = [1, 1]} : vector<8x512xf32> to vector<8x128xf32>
    %73 = arith.negf %72 : vector<8x128xf32>
    %74 = math.exp %73 : vector<8x128xf32>
    %cst_38 = arith.constant 1.000000e+00 : f32
    %75 = vector.broadcast %cst_38 : f32 to vector<8x128xf32>
    %76 = arith.addf %75, %74 : vector<8x128xf32>
    %77 = arith.divf %75, %76 : vector<8x128xf32>
    %78 = vector.extract_strided_slice %63 {offsets = [0, 256], sizes = [8, 128], strides = [1, 1]} : vector<8x512xf32> to vector<8x128xf32>
    %79 = math.tanh %78 : vector<8x128xf32>
    %80 = vector.extract_strided_slice %63 {offsets = [0, 384], sizes = [8, 128], strides = [1, 1]} : vector<8x512xf32> to vector<8x128xf32>
    %81 = arith.negf %80 : vector<8x128xf32>
    %82 = math.exp %81 : vector<8x128xf32>
    %cst_39 = arith.constant 1.000000e+00 : f32
    %83 = vector.broadcast %cst_39 : f32 to vector<8x128xf32>
    %84 = arith.addf %83, %82 : vector<8x128xf32>
    %85 = arith.divf %83, %84 : vector<8x128xf32>
    %86 = arith.mulf %77, %65 : vector<8x128xf32>
    %87 = arith.mulf %71, %79 : vector<8x128xf32>
    %88 = arith.addf %86, %87 : vector<8x128xf32>
    %89 = math.tanh %88 : vector<8x128xf32>
    %90 = arith.mulf %85, %89 : vector<8x128xf32>
    %c1_40 = arith.constant 1 : index
    %c0_41 = arith.constant 0 : index
    %c0_42 = arith.constant 0 : index
    %91 = vector.load %arg11[%c1_40, %c0_41, %c0_42] : memref<2x8x128xf32, #tpu.memory_space<vmem>>, vector<1x8x128xf32>
    %92 = vector.shape_cast %91 : vector<1x8x128xf32> to vector<8x128xf32>
    %93 = vector.shape_cast %90 : vector<8x128xf32> to vector<1x8x128xf32>
    tpu.vector_store %arg11[%c1_40, %c0_41, %c0_42], %93 {strides = array<i32>} : memref<2x8x128xf32, #tpu.memory_space<vmem>>, vector<1x8x128xf32>,
    %c1_43 = arith.constant 1 : index
    %c0_44 = arith.constant 0 : index
    %c0_45 = arith.constant 0 : index
    %94 = vector.load %arg12[%c1_43, %c0_44, %c0_45] : memref<2x8x128xf32, #tpu.memory_space<vmem>>, vector<1x8x128xf32>
    %95 = vector.shape_cast %94 : vector<1x8x128xf32> to vector<8x128xf32>
    %96 = vector.shape_cast %88 : vector<8x128xf32> to vector<1x8x128xf32>
    tpu.vector_store %arg12[%c1_43, %c0_44, %c0_45], %96 {strides = array<i32>} : memref<2x8x128xf32, #tpu.memory_space<vmem>>, vector<1x8x128xf32>,
    %97 = vector.extract_strided_slice %10 {offsets = [8, 0], sizes = [8, 512], strides = [1, 1]} : vector<64x512xf32> to vector<8x512xf32>
    %c0_46 = arith.constant 0 : index
    %c0_47 = arith.constant 0 : index
    %c0_48 = arith.constant 0 : index
    %98 = vector.load %arg11[%c0_46, %c0_47, %c0_48] : memref<2x8x128xf32, #tpu.memory_space<vmem>>, vector<1x8x128xf32>
    %99 = vector.shape_cast %98 : vector<1x8x128xf32> to vector<8x128xf32>
    %100 = arith.truncf %99 : vector<8x128xf32> to vector<8x128xbf16>
    %c0_49 = arith.constant 0 : index
    %c0_50 = arith.constant 0 : index
    %101 = vector.load %arg5[%c0_49, %c0_50] : memref<128x512xbf16, #tpu.memory_space<vmem>>, vector<128x512xbf16>
    %cst_51 = arith.constant dense<0.000000e+00> : vector<8x512xf32>
    %102 = tpu.matmul %100, %101, %cst_51 {dimension_numbers = #tpu.dot_dimension_numbers<[1], [0], [0], [1], [0, 0, 1, 1], [], []>} : vector<8x128xbf16>, vector<128x512xbf16>, vector<8x512xf32> -> vector<8x512xf32>
    %103 = arith.addf %97, %102 : vector<8x512xf32>
    %c0_52 = arith.constant 0 : index
    %c0_53 = arith.constant 0 : index
    %c0_54 = arith.constant 0 : index
    %104 = vector.load %arg12[%c0_52, %c0_53, %c0_54] : memref<2x8x128xf32, #tpu.memory_space<vmem>>, vector<1x8x128xf32>
    %105 = vector.shape_cast %104 : vector<1x8x128xf32> to vector<8x128xf32>
    %106 = vector.extract_strided_slice %103 {offsets = [0, 0], sizes = [8, 128], strides = [1, 1]} : vector<8x512xf32> to vector<8x128xf32>
    %107 = arith.negf %106 : vector<8x128xf32>
    %108 = math.exp %107 : vector<8x128xf32>
    %cst_55 = arith.constant 1.000000e+00 : f32
    %109 = vector.broadcast %cst_55 : f32 to vector<8x128xf32>
    %110 = arith.addf %109, %108 : vector<8x128xf32>
    %111 = arith.divf %109, %110 : vector<8x128xf32>
    %112 = vector.extract_strided_slice %103 {offsets = [0, 128], sizes = [8, 128], strides = [1, 1]} : vector<8x512xf32> to vector<8x128xf32>
    %113 = arith.negf %112 : vector<8x128xf32>
    %114 = math.exp %113 : vector<8x128xf32>
    %cst_56 = arith.constant 1.000000e+00 : f32
    %115 = vector.broadcast %cst_56 : f32 to vector<8x128xf32>
    %116 = arith.addf %115, %114 : vector<8x128xf32>
    %117 = arith.divf %115, %116 : vector<8x128xf32>
    %118 = vector.extract_strided_slice %103 {offsets = [0, 256], sizes = [8, 128], strides = [1, 1]} : vector<8x512xf32> to vector<8x128xf32>
    %119 = math.tanh %118 : vector<8x128xf32>
    %120 = vector.extract_strided_slice %103 {offsets = [0, 384], sizes = [8, 128], strides = [1, 1]} : vector<8x512xf32> to vector<8x128xf32>
    %121 = arith.negf %120 : vector<8x128xf32>
    %122 = math.exp %121 : vector<8x128xf32>
    %cst_57 = arith.constant 1.000000e+00 : f32
    %123 = vector.broadcast %cst_57 : f32 to vector<8x128xf32>
    %124 = arith.addf %123, %122 : vector<8x128xf32>
    %125 = arith.divf %123, %124 : vector<8x128xf32>
    %126 = arith.mulf %117, %105 : vector<8x128xf32>
    %127 = arith.mulf %111, %119 : vector<8x128xf32>
    %128 = arith.addf %126, %127 : vector<8x128xf32>
    %129 = math.tanh %128 : vector<8x128xf32>
    %130 = arith.mulf %125, %129 : vector<8x128xf32>
    %c0_58 = arith.constant 0 : index
    %c0_59 = arith.constant 0 : index
    %c0_60 = arith.constant 0 : index
    %131 = vector.load %arg11[%c0_58, %c0_59, %c0_60] : memref<2x8x128xf32, #tpu.memory_space<vmem>>, vector<1x8x128xf32>
    %132 = vector.shape_cast %131 : vector<1x8x128xf32> to vector<8x128xf32>
    %133 = vector.shape_cast %130 : vector<8x128xf32> to vector<1x8x128xf32>
    tpu.vector_store %arg11[%c0_58, %c0_59, %c0_60], %133 {strides = array<i32>} : memref<2x8x128xf32, #tpu.memory_space<vmem>>, vector<1x8x128xf32>,
    %c0_61 = arith.constant 0 : index
    %c0_62 = arith.constant 0 : index
    %c0_63 = arith.constant 0 : index
    %134 = vector.load %arg12[%c0_61, %c0_62, %c0_63] : memref<2x8x128xf32, #tpu.memory_space<vmem>>, vector<1x8x128xf32>
    %135 = vector.shape_cast %134 : vector<1x8x128xf32> to vector<8x128xf32>
    %136 = vector.shape_cast %128 : vector<8x128xf32> to vector<1x8x128xf32>
    tpu.vector_store %arg12[%c0_61, %c0_62, %c0_63], %136 {strides = array<i32>} : memref<2x8x128xf32, #tpu.memory_space<vmem>>, vector<1x8x128xf32>,
    %137 = arith.truncf %130 : vector<8x128xf32> to vector<8x128xbf16>
    %c1_64 = arith.constant 1 : index
    %c0_65 = arith.constant 0 : index
    %c0_66 = arith.constant 0 : index
    %138 = vector.load %arg11[%c1_64, %c0_65, %c0_66] : memref<2x8x128xf32, #tpu.memory_space<vmem>>, vector<1x8x128xf32>
    %139 = vector.shape_cast %138 : vector<1x8x128xf32> to vector<8x128xf32>
    %140 = arith.truncf %139 : vector<8x128xf32> to vector<8x128xbf16>
    %141 = tpu.concatenate %137, %140 in 1 : vector<8x128xbf16>, vector<8x128xbf16> -> vector<8x256xbf16>
    %c0_67 = arith.constant 0 : index
    %c0_68 = arith.constant 0 : index
    %c0_69 = arith.constant 0 : index
    %142 = vector.load %arg6[%c0_67, %c0_68, %c0_69] : memref<1x256x512xbf16, #tpu.memory_space<vmem>>, vector<1x256x512xbf16>
    %143 = vector.shape_cast %142 : vector<1x256x512xbf16> to vector<256x512xbf16>
    %cst_70 = arith.constant dense<0.000000e+00> : vector<8x512xf32>
    %144 = tpu.matmul %141, %143, %cst_70 {dimension_numbers = #tpu.dot_dimension_numbers<[1], [0], [0], [1], [0, 0, 1, 1], [], []>} : vector<8x256xbf16>, vector<256x512xbf16>, vector<8x512xf32> -> vector<8x512xf32>
    %145 = arith.addf %144, %14 : vector<8x512xf32>
    %c1_71 = arith.constant 1 : index
    %c0_72 = arith.constant 0 : index
    %c0_73 = arith.constant 0 : index
    %146 = vector.load %arg12[%c1_71, %c0_72, %c0_73] : memref<2x8x128xf32, #tpu.memory_space<vmem>>, vector<1x8x128xf32>
    %147 = vector.shape_cast %146 : vector<1x8x128xf32> to vector<8x128xf32>
    %148 = vector.extract_strided_slice %145 {offsets = [0, 0], sizes = [8, 128], strides = [1, 1]} : vector<8x512xf32> to vector<8x128xf32>
    %149 = arith.negf %148 : vector<8x128xf32>
    %150 = math.exp %149 : vector<8x128xf32>
    %cst_74 = arith.constant 1.000000e+00 : f32
    %151 = vector.broadcast %cst_74 : f32 to vector<8x128xf32>
    %152 = arith.addf %151, %150 : vector<8x128xf32>
    %153 = arith.divf %151, %152 : vector<8x128xf32>
    %154 = vector.extract_strided_slice %145 {offsets = [0, 128], sizes = [8, 128], strides = [1, 1]} : vector<8x512xf32> to vector<8x128xf32>
    %155 = arith.negf %154 : vector<8x128xf32>
    %156 = math.exp %155 : vector<8x128xf32>
    %cst_75 = arith.constant 1.000000e+00 : f32
    %157 = vector.broadcast %cst_75 : f32 to vector<8x128xf32>
    %158 = arith.addf %157, %156 : vector<8x128xf32>
    %159 = arith.divf %157, %158 : vector<8x128xf32>
    %160 = vector.extract_strided_slice %145 {offsets = [0, 256], sizes = [8, 128], strides = [1, 1]} : vector<8x512xf32> to vector<8x128xf32>
    %161 = math.tanh %160 : vector<8x128xf32>
    %162 = vector.extract_strided_slice %145 {offsets = [0, 384], sizes = [8, 128], strides = [1, 1]} : vector<8x512xf32> to vector<8x128xf32>
    %163 = arith.negf %162 : vector<8x128xf32>
    %164 = math.exp %163 : vector<8x128xf32>
    %cst_76 = arith.constant 1.000000e+00 : f32
    %165 = vector.broadcast %cst_76 : f32 to vector<8x128xf32>
    %166 = arith.addf %165, %164 : vector<8x128xf32>
    %167 = arith.divf %165, %166 : vector<8x128xf32>
    %168 = arith.mulf %159, %147 : vector<8x128xf32>
    %169 = arith.mulf %153, %161 : vector<8x128xf32>
    %170 = arith.addf %168, %169 : vector<8x128xf32>
    %171 = math.tanh %170 : vector<8x128xf32>
    %172 = arith.mulf %167, %171 : vector<8x128xf32>
    %c1_77 = arith.constant 1 : index
    %c0_78 = arith.constant 0 : index
    %c0_79 = arith.constant 0 : index
    %173 = vector.load %arg11[%c1_77, %c0_78, %c0_79] : memref<2x8x128xf32, #tpu.memory_space<vmem>>, vector<1x8x128xf32>
    %174 = vector.shape_cast %173 : vector<1x8x128xf32> to vector<8x128xf32>
    %175 = vector.shape_cast %172 : vector<8x128xf32> to vector<1x8x128xf32>
    tpu.vector_store %arg11[%c1_77, %c0_78, %c0_79], %175 {strides = array<i32>} : memref<2x8x128xf32, #tpu.memory_space<vmem>>, vector<1x8x128xf32>,
    %c1_80 = arith.constant 1 : index
    %c0_81 = arith.constant 0 : index
    %c0_82 = arith.constant 0 : index
    %176 = vector.load %arg12[%c1_80, %c0_81, %c0_82] : memref<2x8x128xf32, #tpu.memory_space<vmem>>, vector<1x8x128xf32>
    %177 = vector.shape_cast %176 : vector<1x8x128xf32> to vector<8x128xf32>
    %178 = vector.shape_cast %170 : vector<8x128xf32> to vector<1x8x128xf32>
    tpu.vector_store %arg12[%c1_80, %c0_81, %c0_82], %178 {strides = array<i32>} : memref<2x8x128xf32, #tpu.memory_space<vmem>>, vector<1x8x128xf32>,
    %179 = vector.extract_strided_slice %10 {offsets = [16, 0], sizes = [8, 512], strides = [1, 1]} : vector<64x512xf32> to vector<8x512xf32>
    %c0_83 = arith.constant 0 : index
    %c0_84 = arith.constant 0 : index
    %c0_85 = arith.constant 0 : index
    %180 = vector.load %arg11[%c0_83, %c0_84, %c0_85] : memref<2x8x128xf32, #tpu.memory_space<vmem>>, vector<1x8x128xf32>
    %181 = vector.shape_cast %180 : vector<1x8x128xf32> to vector<8x128xf32>
    %182 = arith.truncf %181 : vector<8x128xf32> to vector<8x128xbf16>
    %c0_86 = arith.constant 0 : index
    %c0_87 = arith.constant 0 : index
    %183 = vector.load %arg5[%c0_86, %c0_87] : memref<128x512xbf16, #tpu.memory_space<vmem>>, vector<128x512xbf16>
    %cst_88 = arith.constant dense<0.000000e+00> : vector<8x512xf32>
    %184 = tpu.matmul %182, %183, %cst_88 {dimension_numbers = #tpu.dot_dimension_numbers<[1], [0], [0], [1], [0, 0, 1, 1], [], []>} : vector<8x128xbf16>, vector<128x512xbf16>, vector<8x512xf32> -> vector<8x512xf32>
    %185 = arith.addf %179, %184 : vector<8x512xf32>
    %c0_89 = arith.constant 0 : index
    %c0_90 = arith.constant 0 : index
    %c0_91 = arith.constant 0 : index
    %186 = vector.load %arg12[%c0_89, %c0_90, %c0_91] : memref<2x8x128xf32, #tpu.memory_space<vmem>>, vector<1x8x128xf32>
    %187 = vector.shape_cast %186 : vector<1x8x128xf32> to vector<8x128xf32>
    %188 = vector.extract_strided_slice %185 {offsets = [0, 0], sizes = [8, 128], strides = [1, 1]} : vector<8x512xf32> to vector<8x128xf32>
    %189 = arith.negf %188 : vector<8x128xf32>
    %190 = math.exp %189 : vector<8x128xf32>
    %cst_92 = arith.constant 1.000000e+00 : f32
    %191 = vector.broadcast %cst_92 : f32 to vector<8x128xf32>
    %192 = arith.addf %191, %190 : vector<8x128xf32>
    %193 = arith.divf %191, %192 : vector<8x128xf32>
    %194 = vector.extract_strided_slice %185 {offsets = [0, 128], sizes = [8, 128], strides = [1, 1]} : vector<8x512xf32> to vector<8x128xf32>
    %195 = arith.negf %194 : vector<8x128xf32>
    %196 = math.exp %195 : vector<8x128xf32>
    %cst_93 = arith.constant 1.000000e+00 : f32
    %197 = vector.broadcast %cst_93 : f32 to vector<8x128xf32>
    %198 = arith.addf %197, %196 : vector<8x128xf32>
    %199 = arith.divf %197, %198 : vector<8x128xf32>
    %200 = vector.extract_strided_slice %185 {offsets = [0, 256], sizes = [8, 128], strides = [1, 1]} : vector<8x512xf32> to vector<8x128xf32>
    %201 = math.tanh %200 : vector<8x128xf32>
    %202 = vector.extract_strided_slice %185 {offsets = [0, 384], sizes = [8, 128], strides = [1, 1]} : vector<8x512xf32> to vector<8x128xf32>
    %203 = arith.negf %202 : vector<8x128xf32>
    %204 = math.exp %203 : vector<8x128xf32>
    %cst_94 = arith.constant 1.000000e+00 : f32
    %205 = vector.broadcast %cst_94 : f32 to vector<8x128xf32>
    %206 = arith.addf %205, %204 : vector<8x128xf32>
    %207 = arith.divf %205, %206 : vector<8x128xf32>
    %208 = arith.mulf %199, %187 : vector<8x128xf32>
    %209 = arith.mulf %193, %201 : vector<8x128xf32>
    %210 = arith.addf %208, %209 : vector<8x128xf32>
    %211 = math.tanh %210 : vector<8x128xf32>
    %212 = arith.mulf %207, %211 : vector<8x128xf32>
    %c0_95 = arith.constant 0 : index
    %c0_96 = arith.constant 0 : index
    %c0_97 = arith.constant 0 : index
    %213 = vector.load %arg11[%c0_95, %c0_96, %c0_97] : memref<2x8x128xf32, #tpu.memory_space<vmem>>, vector<1x8x128xf32>
    %214 = vector.shape_cast %213 : vector<1x8x128xf32> to vector<8x128xf32>
    %215 = vector.shape_cast %212 : vector<8x128xf32> to vector<1x8x128xf32>
    tpu.vector_store %arg11[%c0_95, %c0_96, %c0_97], %215 {strides = array<i32>} : memref<2x8x128xf32, #tpu.memory_space<vmem>>, vector<1x8x128xf32>,
    %c0_98 = arith.constant 0 : index
    %c0_99 = arith.constant 0 : index
    %c0_100 = arith.constant 0 : index
    %216 = vector.load %arg12[%c0_98, %c0_99, %c0_100] : memref<2x8x128xf32, #tpu.memory_space<vmem>>, vector<1x8x128xf32>
    %217 = vector.shape_cast %216 : vector<1x8x128xf32> to vector<8x128xf32>
    %218 = vector.shape_cast %210 : vector<8x128xf32> to vector<1x8x128xf32>
    tpu.vector_store %arg12[%c0_98, %c0_99, %c0_100], %218 {strides = array<i32>} : memref<2x8x128xf32, #tpu.memory_space<vmem>>, vector<1x8x128xf32>,
    %219 = arith.truncf %212 : vector<8x128xf32> to vector<8x128xbf16>
    %c1_101 = arith.constant 1 : index
    %c0_102 = arith.constant 0 : index
    %c0_103 = arith.constant 0 : index
    %220 = vector.load %arg11[%c1_101, %c0_102, %c0_103] : memref<2x8x128xf32, #tpu.memory_space<vmem>>, vector<1x8x128xf32>
    %221 = vector.shape_cast %220 : vector<1x8x128xf32> to vector<8x128xf32>
    %222 = arith.truncf %221 : vector<8x128xf32> to vector<8x128xbf16>
    %223 = tpu.concatenate %219, %222 in 1 : vector<8x128xbf16>, vector<8x128xbf16> -> vector<8x256xbf16>
    %c0_104 = arith.constant 0 : index
    %c0_105 = arith.constant 0 : index
    %c0_106 = arith.constant 0 : index
    %224 = vector.load %arg6[%c0_104, %c0_105, %c0_106] : memref<1x256x512xbf16, #tpu.memory_space<vmem>>, vector<1x256x512xbf16>
    %225 = vector.shape_cast %224 : vector<1x256x512xbf16> to vector<256x512xbf16>
    %cst_107 = arith.constant dense<0.000000e+00> : vector<8x512xf32>
    %226 = tpu.matmul %223, %225, %cst_107 {dimension_numbers = #tpu.dot_dimension_numbers<[1], [0], [0], [1], [0, 0, 1, 1], [], []>} : vector<8x256xbf16>, vector<256x512xbf16>, vector<8x512xf32> -> vector<8x512xf32>
    %227 = arith.addf %226, %14 : vector<8x512xf32>
    %c1_108 = arith.constant 1 : index
    %c0_109 = arith.constant 0 : index
    %c0_110 = arith.constant 0 : index
    %228 = vector.load %arg12[%c1_108, %c0_109, %c0_110] : memref<2x8x128xf32, #tpu.memory_space<vmem>>, vector<1x8x128xf32>
    %229 = vector.shape_cast %228 : vector<1x8x128xf32> to vector<8x128xf32>
    %230 = vector.extract_strided_slice %227 {offsets = [0, 0], sizes = [8, 128], strides = [1, 1]} : vector<8x512xf32> to vector<8x128xf32>
    %231 = arith.negf %230 : vector<8x128xf32>
    %232 = math.exp %231 : vector<8x128xf32>
    %cst_111 = arith.constant 1.000000e+00 : f32
    %233 = vector.broadcast %cst_111 : f32 to vector<8x128xf32>
    %234 = arith.addf %233, %232 : vector<8x128xf32>
    %235 = arith.divf %233, %234 : vector<8x128xf32>
    %236 = vector.extract_strided_slice %227 {offsets = [0, 128], sizes = [8, 128], strides = [1, 1]} : vector<8x512xf32> to vector<8x128xf32>
    %237 = arith.negf %236 : vector<8x128xf32>
    %238 = math.exp %237 : vector<8x128xf32>
    %cst_112 = arith.constant 1.000000e+00 : f32
    %239 = vector.broadcast %cst_112 : f32 to vector<8x128xf32>
    %240 = arith.addf %239, %238 : vector<8x128xf32>
    %241 = arith.divf %239, %240 : vector<8x128xf32>
    %242 = vector.extract_strided_slice %227 {offsets = [0, 256], sizes = [8, 128], strides = [1, 1]} : vector<8x512xf32> to vector<8x128xf32>
    %243 = math.tanh %242 : vector<8x128xf32>
    %244 = vector.extract_strided_slice %227 {offsets = [0, 384], sizes = [8, 128], strides = [1, 1]} : vector<8x512xf32> to vector<8x128xf32>
    %245 = arith.negf %244 : vector<8x128xf32>
    %246 = math.exp %245 : vector<8x128xf32>
    %cst_113 = arith.constant 1.000000e+00 : f32
    %247 = vector.broadcast %cst_113 : f32 to vector<8x128xf32>
    %248 = arith.addf %247, %246 : vector<8x128xf32>
    %249 = arith.divf %247, %248 : vector<8x128xf32>
    %250 = arith.mulf %241, %229 : vector<8x128xf32>
    %251 = arith.mulf %235, %243 : vector<8x128xf32>
    %252 = arith.addf %250, %251 : vector<8x128xf32>
    %253 = math.tanh %252 : vector<8x128xf32>
    %254 = arith.mulf %249, %253 : vector<8x128xf32>
    %c1_114 = arith.constant 1 : index
    %c0_115 = arith.constant 0 : index
    %c0_116 = arith.constant 0 : index
    %255 = vector.load %arg11[%c1_114, %c0_115, %c0_116] : memref<2x8x128xf32, #tpu.memory_space<vmem>>, vector<1x8x128xf32>
    %256 = vector.shape_cast %255 : vector<1x8x128xf32> to vector<8x128xf32>
    %257 = vector.shape_cast %254 : vector<8x128xf32> to vector<1x8x128xf32>
    tpu.vector_store %arg11[%c1_114, %c0_115, %c0_116], %257 {strides = array<i32>} : memref<2x8x128xf32, #tpu.memory_space<vmem>>, vector<1x8x128xf32>,
    %c1_117 = arith.constant 1 : index
    %c0_118 = arith.constant 0 : index
    %c0_119 = arith.constant 0 : index
    %258 = vector.load %arg12[%c1_117, %c0_118, %c0_119] : memref<2x8x128xf32, #tpu.memory_space<vmem>>, vector<1x8x128xf32>
    %259 = vector.shape_cast %258 : vector<1x8x128xf32> to vector<8x128xf32>
    %260 = vector.shape_cast %252 : vector<8x128xf32> to vector<1x8x128xf32>
    tpu.vector_store %arg12[%c1_117, %c0_118, %c0_119], %260 {strides = array<i32>} : memref<2x8x128xf32, #tpu.memory_space<vmem>>, vector<1x8x128xf32>,
    %261 = vector.extract_strided_slice %10 {offsets = [24, 0], sizes = [8, 512], strides = [1, 1]} : vector<64x512xf32> to vector<8x512xf32>
    %c0_120 = arith.constant 0 : index
    %c0_121 = arith.constant 0 : index
    %c0_122 = arith.constant 0 : index
    %262 = vector.load %arg11[%c0_120, %c0_121, %c0_122] : memref<2x8x128xf32, #tpu.memory_space<vmem>>, vector<1x8x128xf32>
    %263 = vector.shape_cast %262 : vector<1x8x128xf32> to vector<8x128xf32>
    %264 = arith.truncf %263 : vector<8x128xf32> to vector<8x128xbf16>
    %c0_123 = arith.constant 0 : index
    %c0_124 = arith.constant 0 : index
    %265 = vector.load %arg5[%c0_123, %c0_124] : memref<128x512xbf16, #tpu.memory_space<vmem>>, vector<128x512xbf16>
    %cst_125 = arith.constant dense<0.000000e+00> : vector<8x512xf32>
    %266 = tpu.matmul %264, %265, %cst_125 {dimension_numbers = #tpu.dot_dimension_numbers<[1], [0], [0], [1], [0, 0, 1, 1], [], []>} : vector<8x128xbf16>, vector<128x512xbf16>, vector<8x512xf32> -> vector<8x512xf32>
    %267 = arith.addf %261, %266 : vector<8x512xf32>
    %c0_126 = arith.constant 0 : index
    %c0_127 = arith.constant 0 : index
    %c0_128 = arith.constant 0 : index
    %268 = vector.load %arg12[%c0_126, %c0_127, %c0_128] : memref<2x8x128xf32, #tpu.memory_space<vmem>>, vector<1x8x128xf32>
    %269 = vector.shape_cast %268 : vector<1x8x128xf32> to vector<8x128xf32>
    %270 = vector.extract_strided_slice %267 {offsets = [0, 0], sizes = [8, 128], strides = [1, 1]} : vector<8x512xf32> to vector<8x128xf32>
    %271 = arith.negf %270 : vector<8x128xf32>
    %272 = math.exp %271 : vector<8x128xf32>
    %cst_129 = arith.constant 1.000000e+00 : f32
    %273 = vector.broadcast %cst_129 : f32 to vector<8x128xf32>
    %274 = arith.addf %273, %272 : vector<8x128xf32>
    %275 = arith.divf %273, %274 : vector<8x128xf32>
    %276 = vector.extract_strided_slice %267 {offsets = [0, 128], sizes = [8, 128], strides = [1, 1]} : vector<8x512xf32> to vector<8x128xf32>
    %277 = arith.negf %276 : vector<8x128xf32>
    %278 = math.exp %277 : vector<8x128xf32>
    %cst_130 = arith.constant 1.000000e+00 : f32
    %279 = vector.broadcast %cst_130 : f32 to vector<8x128xf32>
    %280 = arith.addf %279, %278 : vector<8x128xf32>
    %281 = arith.divf %279, %280 : vector<8x128xf32>
    %282 = vector.extract_strided_slice %267 {offsets = [0, 256], sizes = [8, 128], strides = [1, 1]} : vector<8x512xf32> to vector<8x128xf32>
    %283 = math.tanh %282 : vector<8x128xf32>
    %284 = vector.extract_strided_slice %267 {offsets = [0, 384], sizes = [8, 128], strides = [1, 1]} : vector<8x512xf32> to vector<8x128xf32>
    %285 = arith.negf %284 : vector<8x128xf32>
    %286 = math.exp %285 : vector<8x128xf32>
    %cst_131 = arith.constant 1.000000e+00 : f32
    %287 = vector.broadcast %cst_131 : f32 to vector<8x128xf32>
    %288 = arith.addf %287, %286 : vector<8x128xf32>
    %289 = arith.divf %287, %288 : vector<8x128xf32>
    %290 = arith.mulf %281, %269 : vector<8x128xf32>
    %291 = arith.mulf %275, %283 : vector<8x128xf32>
    %292 = arith.addf %290, %291 : vector<8x128xf32>
    %293 = math.tanh %292 : vector<8x128xf32>
    %294 = arith.mulf %289, %293 : vector<8x128xf32>
    %c0_132 = arith.constant 0 : index
    %c0_133 = arith.constant 0 : index
    %c0_134 = arith.constant 0 : index
    %295 = vector.load %arg11[%c0_132, %c0_133, %c0_134] : memref<2x8x128xf32, #tpu.memory_space<vmem>>, vector<1x8x128xf32>
    %296 = vector.shape_cast %295 : vector<1x8x128xf32> to vector<8x128xf32>
    %297 = vector.shape_cast %294 : vector<8x128xf32> to vector<1x8x128xf32>
    tpu.vector_store %arg11[%c0_132, %c0_133, %c0_134], %297 {strides = array<i32>} : memref<2x8x128xf32, #tpu.memory_space<vmem>>, vector<1x8x128xf32>,
    %c0_135 = arith.constant 0 : index
    %c0_136 = arith.constant 0 : index
    %c0_137 = arith.constant 0 : index
    %298 = vector.load %arg12[%c0_135, %c0_136, %c0_137] : memref<2x8x128xf32, #tpu.memory_space<vmem>>, vector<1x8x128xf32>
    %299 = vector.shape_cast %298 : vector<1x8x128xf32> to vector<8x128xf32>
    %300 = vector.shape_cast %292 : vector<8x128xf32> to vector<1x8x128xf32>
    tpu.vector_store %arg12[%c0_135, %c0_136, %c0_137], %300 {strides = array<i32>} : memref<2x8x128xf32, #tpu.memory_space<vmem>>, vector<1x8x128xf32>,
    %301 = arith.truncf %294 : vector<8x128xf32> to vector<8x128xbf16>
    %c1_138 = arith.constant 1 : index
    %c0_139 = arith.constant 0 : index
    %c0_140 = arith.constant 0 : index
    %302 = vector.load %arg11[%c1_138, %c0_139, %c0_140] : memref<2x8x128xf32, #tpu.memory_space<vmem>>, vector<1x8x128xf32>
    %303 = vector.shape_cast %302 : vector<1x8x128xf32> to vector<8x128xf32>
    %304 = arith.truncf %303 : vector<8x128xf32> to vector<8x128xbf16>
    %305 = tpu.concatenate %301, %304 in 1 : vector<8x128xbf16>, vector<8x128xbf16> -> vector<8x256xbf16>
    %c0_141 = arith.constant 0 : index
    %c0_142 = arith.constant 0 : index
    %c0_143 = arith.constant 0 : index
    %306 = vector.load %arg6[%c0_141, %c0_142, %c0_143] : memref<1x256x512xbf16, #tpu.memory_space<vmem>>, vector<1x256x512xbf16>
    %307 = vector.shape_cast %306 : vector<1x256x512xbf16> to vector<256x512xbf16>
    %cst_144 = arith.constant dense<0.000000e+00> : vector<8x512xf32>
    %308 = tpu.matmul %305, %307, %cst_144 {dimension_numbers = #tpu.dot_dimension_numbers<[1], [0], [0], [1], [0, 0, 1, 1], [], []>} : vector<8x256xbf16>, vector<256x512xbf16>, vector<8x512xf32> -> vector<8x512xf32>
    %309 = arith.addf %308, %14 : vector<8x512xf32>
    %c1_145 = arith.constant 1 : index
    %c0_146 = arith.constant 0 : index
    %c0_147 = arith.constant 0 : index
    %310 = vector.load %arg12[%c1_145, %c0_146, %c0_147] : memref<2x8x128xf32, #tpu.memory_space<vmem>>, vector<1x8x128xf32>
    %311 = vector.shape_cast %310 : vector<1x8x128xf32> to vector<8x128xf32>
    %312 = vector.extract_strided_slice %309 {offsets = [0, 0], sizes = [8, 128], strides = [1, 1]} : vector<8x512xf32> to vector<8x128xf32>
    %313 = arith.negf %312 : vector<8x128xf32>
    %314 = math.exp %313 : vector<8x128xf32>
    %cst_148 = arith.constant 1.000000e+00 : f32
    %315 = vector.broadcast %cst_148 : f32 to vector<8x128xf32>
    %316 = arith.addf %315, %314 : vector<8x128xf32>
    %317 = arith.divf %315, %316 : vector<8x128xf32>
    %318 = vector.extract_strided_slice %309 {offsets = [0, 128], sizes = [8, 128], strides = [1, 1]} : vector<8x512xf32> to vector<8x128xf32>
    %319 = arith.negf %318 : vector<8x128xf32>
    %320 = math.exp %319 : vector<8x128xf32>
    %cst_149 = arith.constant 1.000000e+00 : f32
    %321 = vector.broadcast %cst_149 : f32 to vector<8x128xf32>
    %322 = arith.addf %321, %320 : vector<8x128xf32>
    %323 = arith.divf %321, %322 : vector<8x128xf32>
    %324 = vector.extract_strided_slice %309 {offsets = [0, 256], sizes = [8, 128], strides = [1, 1]} : vector<8x512xf32> to vector<8x128xf32>
    %325 = math.tanh %324 : vector<8x128xf32>
    %326 = vector.extract_strided_slice %309 {offsets = [0, 384], sizes = [8, 128], strides = [1, 1]} : vector<8x512xf32> to vector<8x128xf32>
    %327 = arith.negf %326 : vector<8x128xf32>
    %328 = math.exp %327 : vector<8x128xf32>
    %cst_150 = arith.constant 1.000000e+00 : f32
    %329 = vector.broadcast %cst_150 : f32 to vector<8x128xf32>
    %330 = arith.addf %329, %328 : vector<8x128xf32>
    %331 = arith.divf %329, %330 : vector<8x128xf32>
    %332 = arith.mulf %323, %311 : vector<8x128xf32>
    %333 = arith.mulf %317, %325 : vector<8x128xf32>
    %334 = arith.addf %332, %333 : vector<8x128xf32>
    %335 = math.tanh %334 : vector<8x128xf32>
    %336 = arith.mulf %331, %335 : vector<8x128xf32>
    %c1_151 = arith.constant 1 : index
    %c0_152 = arith.constant 0 : index
    %c0_153 = arith.constant 0 : index
    %337 = vector.load %arg11[%c1_151, %c0_152, %c0_153] : memref<2x8x128xf32, #tpu.memory_space<vmem>>, vector<1x8x128xf32>
    %338 = vector.shape_cast %337 : vector<1x8x128xf32> to vector<8x128xf32>
    %339 = vector.shape_cast %336 : vector<8x128xf32> to vector<1x8x128xf32>
    tpu.vector_store %arg11[%c1_151, %c0_152, %c0_153], %339 {strides = array<i32>} : memref<2x8x128xf32, #tpu.memory_space<vmem>>, vector<1x8x128xf32>,
    %c1_154 = arith.constant 1 : index
    %c0_155 = arith.constant 0 : index
    %c0_156 = arith.constant 0 : index
    %340 = vector.load %arg12[%c1_154, %c0_155, %c0_156] : memref<2x8x128xf32, #tpu.memory_space<vmem>>, vector<1x8x128xf32>
    %341 = vector.shape_cast %340 : vector<1x8x128xf32> to vector<8x128xf32>
    %342 = vector.shape_cast %334 : vector<8x128xf32> to vector<1x8x128xf32>
    tpu.vector_store %arg12[%c1_154, %c0_155, %c0_156], %342 {strides = array<i32>} : memref<2x8x128xf32, #tpu.memory_space<vmem>>, vector<1x8x128xf32>,
    %343 = vector.extract_strided_slice %10 {offsets = [32, 0], sizes = [8, 512], strides = [1, 1]} : vector<64x512xf32> to vector<8x512xf32>
    %c0_157 = arith.constant 0 : index
    %c0_158 = arith.constant 0 : index
    %c0_159 = arith.constant 0 : index
    %344 = vector.load %arg11[%c0_157, %c0_158, %c0_159] : memref<2x8x128xf32, #tpu.memory_space<vmem>>, vector<1x8x128xf32>
    %345 = vector.shape_cast %344 : vector<1x8x128xf32> to vector<8x128xf32>
    %346 = arith.truncf %345 : vector<8x128xf32> to vector<8x128xbf16>
    %c0_160 = arith.constant 0 : index
    %c0_161 = arith.constant 0 : index
    %347 = vector.load %arg5[%c0_160, %c0_161] : memref<128x512xbf16, #tpu.memory_space<vmem>>, vector<128x512xbf16>
    %cst_162 = arith.constant dense<0.000000e+00> : vector<8x512xf32>
    %348 = tpu.matmul %346, %347, %cst_162 {dimension_numbers = #tpu.dot_dimension_numbers<[1], [0], [0], [1], [0, 0, 1, 1], [], []>} : vector<8x128xbf16>, vector<128x512xbf16>, vector<8x512xf32> -> vector<8x512xf32>
    %349 = arith.addf %343, %348 : vector<8x512xf32>
    %c0_163 = arith.constant 0 : index
    %c0_164 = arith.constant 0 : index
    %c0_165 = arith.constant 0 : index
    %350 = vector.load %arg12[%c0_163, %c0_164, %c0_165] : memref<2x8x128xf32, #tpu.memory_space<vmem>>, vector<1x8x128xf32>
    %351 = vector.shape_cast %350 : vector<1x8x128xf32> to vector<8x128xf32>
    %352 = vector.extract_strided_slice %349 {offsets = [0, 0], sizes = [8, 128], strides = [1, 1]} : vector<8x512xf32> to vector<8x128xf32>
    %353 = arith.negf %352 : vector<8x128xf32>
    %354 = math.exp %353 : vector<8x128xf32>
    %cst_166 = arith.constant 1.000000e+00 : f32
    %355 = vector.broadcast %cst_166 : f32 to vector<8x128xf32>
    %356 = arith.addf %355, %354 : vector<8x128xf32>
    %357 = arith.divf %355, %356 : vector<8x128xf32>
    %358 = vector.extract_strided_slice %349 {offsets = [0, 128], sizes = [8, 128], strides = [1, 1]} : vector<8x512xf32> to vector<8x128xf32>
    %359 = arith.negf %358 : vector<8x128xf32>
    %360 = math.exp %359 : vector<8x128xf32>
    %cst_167 = arith.constant 1.000000e+00 : f32
    %361 = vector.broadcast %cst_167 : f32 to vector<8x128xf32>
    %362 = arith.addf %361, %360 : vector<8x128xf32>
    %363 = arith.divf %361, %362 : vector<8x128xf32>
    %364 = vector.extract_strided_slice %349 {offsets = [0, 256], sizes = [8, 128], strides = [1, 1]} : vector<8x512xf32> to vector<8x128xf32>
    %365 = math.tanh %364 : vector<8x128xf32>
    %366 = vector.extract_strided_slice %349 {offsets = [0, 384], sizes = [8, 128], strides = [1, 1]} : vector<8x512xf32> to vector<8x128xf32>
    %367 = arith.negf %366 : vector<8x128xf32>
    %368 = math.exp %367 : vector<8x128xf32>
    %cst_168 = arith.constant 1.000000e+00 : f32
    %369 = vector.broadcast %cst_168 : f32 to vector<8x128xf32>
    %370 = arith.addf %369, %368 : vector<8x128xf32>
    %371 = arith.divf %369, %370 : vector<8x128xf32>
    %372 = arith.mulf %363, %351 : vector<8x128xf32>
    %373 = arith.mulf %357, %365 : vector<8x128xf32>
    %374 = arith.addf %372, %373 : vector<8x128xf32>
    %375 = math.tanh %374 : vector<8x128xf32>
    %376 = arith.mulf %371, %375 : vector<8x128xf32>
    %c0_169 = arith.constant 0 : index
    %c0_170 = arith.constant 0 : index
    %c0_171 = arith.constant 0 : index
    %377 = vector.load %arg11[%c0_169, %c0_170, %c0_171] : memref<2x8x128xf32, #tpu.memory_space<vmem>>, vector<1x8x128xf32>
    %378 = vector.shape_cast %377 : vector<1x8x128xf32> to vector<8x128xf32>
    %379 = vector.shape_cast %376 : vector<8x128xf32> to vector<1x8x128xf32>
    tpu.vector_store %arg11[%c0_169, %c0_170, %c0_171], %379 {strides = array<i32>} : memref<2x8x128xf32, #tpu.memory_space<vmem>>, vector<1x8x128xf32>,
    %c0_172 = arith.constant 0 : index
    %c0_173 = arith.constant 0 : index
    %c0_174 = arith.constant 0 : index
    %380 = vector.load %arg12[%c0_172, %c0_173, %c0_174] : memref<2x8x128xf32, #tpu.memory_space<vmem>>, vector<1x8x128xf32>
    %381 = vector.shape_cast %380 : vector<1x8x128xf32> to vector<8x128xf32>
    %382 = vector.shape_cast %374 : vector<8x128xf32> to vector<1x8x128xf32>
    tpu.vector_store %arg12[%c0_172, %c0_173, %c0_174], %382 {strides = array<i32>} : memref<2x8x128xf32, #tpu.memory_space<vmem>>, vector<1x8x128xf32>,
    %383 = arith.truncf %376 : vector<8x128xf32> to vector<8x128xbf16>
    %c1_175 = arith.constant 1 : index
    %c0_176 = arith.constant 0 : index
    %c0_177 = arith.constant 0 : index
    %384 = vector.load %arg11[%c1_175, %c0_176, %c0_177] : memref<2x8x128xf32, #tpu.memory_space<vmem>>, vector<1x8x128xf32>
    %385 = vector.shape_cast %384 : vector<1x8x128xf32> to vector<8x128xf32>
    %386 = arith.truncf %385 : vector<8x128xf32> to vector<8x128xbf16>
    %387 = tpu.concatenate %383, %386 in 1 : vector<8x128xbf16>, vector<8x128xbf16> -> vector<8x256xbf16>
    %c0_178 = arith.constant 0 : index
    %c0_179 = arith.constant 0 : index
    %c0_180 = arith.constant 0 : index
    %388 = vector.load %arg6[%c0_178, %c0_179, %c0_180] : memref<1x256x512xbf16, #tpu.memory_space<vmem>>, vector<1x256x512xbf16>
    %389 = vector.shape_cast %388 : vector<1x256x512xbf16> to vector<256x512xbf16>
    %cst_181 = arith.constant dense<0.000000e+00> : vector<8x512xf32>
    %390 = tpu.matmul %387, %389, %cst_181 {dimension_numbers = #tpu.dot_dimension_numbers<[1], [0], [0], [1], [0, 0, 1, 1], [], []>} : vector<8x256xbf16>, vector<256x512xbf16>, vector<8x512xf32> -> vector<8x512xf32>
    %391 = arith.addf %390, %14 : vector<8x512xf32>
    %c1_182 = arith.constant 1 : index
    %c0_183 = arith.constant 0 : index
    %c0_184 = arith.constant 0 : index
    %392 = vector.load %arg12[%c1_182, %c0_183, %c0_184] : memref<2x8x128xf32, #tpu.memory_space<vmem>>, vector<1x8x128xf32>
    %393 = vector.shape_cast %392 : vector<1x8x128xf32> to vector<8x128xf32>
    %394 = vector.extract_strided_slice %391 {offsets = [0, 0], sizes = [8, 128], strides = [1, 1]} : vector<8x512xf32> to vector<8x128xf32>
    %395 = arith.negf %394 : vector<8x128xf32>
    %396 = math.exp %395 : vector<8x128xf32>
    %cst_185 = arith.constant 1.000000e+00 : f32
    %397 = vector.broadcast %cst_185 : f32 to vector<8x128xf32>
    %398 = arith.addf %397, %396 : vector<8x128xf32>
    %399 = arith.divf %397, %398 : vector<8x128xf32>
    %400 = vector.extract_strided_slice %391 {offsets = [0, 128], sizes = [8, 128], strides = [1, 1]} : vector<8x512xf32> to vector<8x128xf32>
    %401 = arith.negf %400 : vector<8x128xf32>
    %402 = math.exp %401 : vector<8x128xf32>
    %cst_186 = arith.constant 1.000000e+00 : f32
    %403 = vector.broadcast %cst_186 : f32 to vector<8x128xf32>
    %404 = arith.addf %403, %402 : vector<8x128xf32>
    %405 = arith.divf %403, %404 : vector<8x128xf32>
    %406 = vector.extract_strided_slice %391 {offsets = [0, 256], sizes = [8, 128], strides = [1, 1]} : vector<8x512xf32> to vector<8x128xf32>
    %407 = math.tanh %406 : vector<8x128xf32>
    %408 = vector.extract_strided_slice %391 {offsets = [0, 384], sizes = [8, 128], strides = [1, 1]} : vector<8x512xf32> to vector<8x128xf32>
    %409 = arith.negf %408 : vector<8x128xf32>
    %410 = math.exp %409 : vector<8x128xf32>
    %cst_187 = arith.constant 1.000000e+00 : f32
    %411 = vector.broadcast %cst_187 : f32 to vector<8x128xf32>
    %412 = arith.addf %411, %410 : vector<8x128xf32>
    %413 = arith.divf %411, %412 : vector<8x128xf32>
    %414 = arith.mulf %405, %393 : vector<8x128xf32>
    %415 = arith.mulf %399, %407 : vector<8x128xf32>
    %416 = arith.addf %414, %415 : vector<8x128xf32>
    %417 = math.tanh %416 : vector<8x128xf32>
    %418 = arith.mulf %413, %417 : vector<8x128xf32>
    %c1_188 = arith.constant 1 : index
    %c0_189 = arith.constant 0 : index
    %c0_190 = arith.constant 0 : index
    %419 = vector.load %arg11[%c1_188, %c0_189, %c0_190] : memref<2x8x128xf32, #tpu.memory_space<vmem>>, vector<1x8x128xf32>
    %420 = vector.shape_cast %419 : vector<1x8x128xf32> to vector<8x128xf32>
    %421 = vector.shape_cast %418 : vector<8x128xf32> to vector<1x8x128xf32>
    tpu.vector_store %arg11[%c1_188, %c0_189, %c0_190], %421 {strides = array<i32>} : memref<2x8x128xf32, #tpu.memory_space<vmem>>, vector<1x8x128xf32>,
    %c1_191 = arith.constant 1 : index
    %c0_192 = arith.constant 0 : index
    %c0_193 = arith.constant 0 : index
    %422 = vector.load %arg12[%c1_191, %c0_192, %c0_193] : memref<2x8x128xf32, #tpu.memory_space<vmem>>, vector<1x8x128xf32>
    %423 = vector.shape_cast %422 : vector<1x8x128xf32> to vector<8x128xf32>
    %424 = vector.shape_cast %416 : vector<8x128xf32> to vector<1x8x128xf32>
    tpu.vector_store %arg12[%c1_191, %c0_192, %c0_193], %424 {strides = array<i32>} : memref<2x8x128xf32, #tpu.memory_space<vmem>>, vector<1x8x128xf32>,
    %425 = vector.extract_strided_slice %10 {offsets = [40, 0], sizes = [8, 512], strides = [1, 1]} : vector<64x512xf32> to vector<8x512xf32>
    %c0_194 = arith.constant 0 : index
    %c0_195 = arith.constant 0 : index
    %c0_196 = arith.constant 0 : index
    %426 = vector.load %arg11[%c0_194, %c0_195, %c0_196] : memref<2x8x128xf32, #tpu.memory_space<vmem>>, vector<1x8x128xf32>
    %427 = vector.shape_cast %426 : vector<1x8x128xf32> to vector<8x128xf32>
    %428 = arith.truncf %427 : vector<8x128xf32> to vector<8x128xbf16>
    %c0_197 = arith.constant 0 : index
    %c0_198 = arith.constant 0 : index
    %429 = vector.load %arg5[%c0_197, %c0_198] : memref<128x512xbf16, #tpu.memory_space<vmem>>, vector<128x512xbf16>
    %cst_199 = arith.constant dense<0.000000e+00> : vector<8x512xf32>
    %430 = tpu.matmul %428, %429, %cst_199 {dimension_numbers = #tpu.dot_dimension_numbers<[1], [0], [0], [1], [0, 0, 1, 1], [], []>} : vector<8x128xbf16>, vector<128x512xbf16>, vector<8x512xf32> -> vector<8x512xf32>
    %431 = arith.addf %425, %430 : vector<8x512xf32>
    %c0_200 = arith.constant 0 : index
    %c0_201 = arith.constant 0 : index
    %c0_202 = arith.constant 0 : index
    %432 = vector.load %arg12[%c0_200, %c0_201, %c0_202] : memref<2x8x128xf32, #tpu.memory_space<vmem>>, vector<1x8x128xf32>
    %433 = vector.shape_cast %432 : vector<1x8x128xf32> to vector<8x128xf32>
    %434 = vector.extract_strided_slice %431 {offsets = [0, 0], sizes = [8, 128], strides = [1, 1]} : vector<8x512xf32> to vector<8x128xf32>
    %435 = arith.negf %434 : vector<8x128xf32>
    %436 = math.exp %435 : vector<8x128xf32>
    %cst_203 = arith.constant 1.000000e+00 : f32
    %437 = vector.broadcast %cst_203 : f32 to vector<8x128xf32>
    %438 = arith.addf %437, %436 : vector<8x128xf32>
    %439 = arith.divf %437, %438 : vector<8x128xf32>
    %440 = vector.extract_strided_slice %431 {offsets = [0, 128], sizes = [8, 128], strides = [1, 1]} : vector<8x512xf32> to vector<8x128xf32>
    %441 = arith.negf %440 : vector<8x128xf32>
    %442 = math.exp %441 : vector<8x128xf32>
    %cst_204 = arith.constant 1.000000e+00 : f32
    %443 = vector.broadcast %cst_204 : f32 to vector<8x128xf32>
    %444 = arith.addf %443, %442 : vector<8x128xf32>
    %445 = arith.divf %443, %444 : vector<8x128xf32>
    %446 = vector.extract_strided_slice %431 {offsets = [0, 256], sizes = [8, 128], strides = [1, 1]} : vector<8x512xf32> to vector<8x128xf32>
    %447 = math.tanh %446 : vector<8x128xf32>
    %448 = vector.extract_strided_slice %431 {offsets = [0, 384], sizes = [8, 128], strides = [1, 1]} : vector<8x512xf32> to vector<8x128xf32>
    %449 = arith.negf %448 : vector<8x128xf32>
    %450 = math.exp %449 : vector<8x128xf32>
    %cst_205 = arith.constant 1.000000e+00 : f32
    %451 = vector.broadcast %cst_205 : f32 to vector<8x128xf32>
    %452 = arith.addf %451, %450 : vector<8x128xf32>
    %453 = arith.divf %451, %452 : vector<8x128xf32>
    %454 = arith.mulf %445, %433 : vector<8x128xf32>
    %455 = arith.mulf %439, %447 : vector<8x128xf32>
    %456 = arith.addf %454, %455 : vector<8x128xf32>
    %457 = math.tanh %456 : vector<8x128xf32>
    %458 = arith.mulf %453, %457 : vector<8x128xf32>
    %c0_206 = arith.constant 0 : index
    %c0_207 = arith.constant 0 : index
    %c0_208 = arith.constant 0 : index
    %459 = vector.load %arg11[%c0_206, %c0_207, %c0_208] : memref<2x8x128xf32, #tpu.memory_space<vmem>>, vector<1x8x128xf32>
    %460 = vector.shape_cast %459 : vector<1x8x128xf32> to vector<8x128xf32>
    %461 = vector.shape_cast %458 : vector<8x128xf32> to vector<1x8x128xf32>
    tpu.vector_store %arg11[%c0_206, %c0_207, %c0_208], %461 {strides = array<i32>} : memref<2x8x128xf32, #tpu.memory_space<vmem>>, vector<1x8x128xf32>,
    %c0_209 = arith.constant 0 : index
    %c0_210 = arith.constant 0 : index
    %c0_211 = arith.constant 0 : index
    %462 = vector.load %arg12[%c0_209, %c0_210, %c0_211] : memref<2x8x128xf32, #tpu.memory_space<vmem>>, vector<1x8x128xf32>
    %463 = vector.shape_cast %462 : vector<1x8x128xf32> to vector<8x128xf32>
    %464 = vector.shape_cast %456 : vector<8x128xf32> to vector<1x8x128xf32>
    tpu.vector_store %arg12[%c0_209, %c0_210, %c0_211], %464 {strides = array<i32>} : memref<2x8x128xf32, #tpu.memory_space<vmem>>, vector<1x8x128xf32>,
    %465 = arith.truncf %458 : vector<8x128xf32> to vector<8x128xbf16>
    %c1_212 = arith.constant 1 : index
    %c0_213 = arith.constant 0 : index
    %c0_214 = arith.constant 0 : index
    %466 = vector.load %arg11[%c1_212, %c0_213, %c0_214] : memref<2x8x128xf32, #tpu.memory_space<vmem>>, vector<1x8x128xf32>
    %467 = vector.shape_cast %466 : vector<1x8x128xf32> to vector<8x128xf32>
    %468 = arith.truncf %467 : vector<8x128xf32> to vector<8x128xbf16>
    %469 = tpu.concatenate %465, %468 in 1 : vector<8x128xbf16>, vector<8x128xbf16> -> vector<8x256xbf16>
    %c0_215 = arith.constant 0 : index
    %c0_216 = arith.constant 0 : index
    %c0_217 = arith.constant 0 : index
    %470 = vector.load %arg6[%c0_215, %c0_216, %c0_217] : memref<1x256x512xbf16, #tpu.memory_space<vmem>>, vector<1x256x512xbf16>
    %471 = vector.shape_cast %470 : vector<1x256x512xbf16> to vector<256x512xbf16>
    %cst_218 = arith.constant dense<0.000000e+00> : vector<8x512xf32>
    %472 = tpu.matmul %469, %471, %cst_218 {dimension_numbers = #tpu.dot_dimension_numbers<[1], [0], [0], [1], [0, 0, 1, 1], [], []>} : vector<8x256xbf16>, vector<256x512xbf16>, vector<8x512xf32> -> vector<8x512xf32>
    %473 = arith.addf %472, %14 : vector<8x512xf32>
    %c1_219 = arith.constant 1 : index
    %c0_220 = arith.constant 0 : index
    %c0_221 = arith.constant 0 : index
    %474 = vector.load %arg12[%c1_219, %c0_220, %c0_221] : memref<2x8x128xf32, #tpu.memory_space<vmem>>, vector<1x8x128xf32>
    %475 = vector.shape_cast %474 : vector<1x8x128xf32> to vector<8x128xf32>
    %476 = vector.extract_strided_slice %473 {offsets = [0, 0], sizes = [8, 128], strides = [1, 1]} : vector<8x512xf32> to vector<8x128xf32>
    %477 = arith.negf %476 : vector<8x128xf32>
    %478 = math.exp %477 : vector<8x128xf32>
    %cst_222 = arith.constant 1.000000e+00 : f32
    %479 = vector.broadcast %cst_222 : f32 to vector<8x128xf32>
    %480 = arith.addf %479, %478 : vector<8x128xf32>
    %481 = arith.divf %479, %480 : vector<8x128xf32>
    %482 = vector.extract_strided_slice %473 {offsets = [0, 128], sizes = [8, 128], strides = [1, 1]} : vector<8x512xf32> to vector<8x128xf32>
    %483 = arith.negf %482 : vector<8x128xf32>
    %484 = math.exp %483 : vector<8x128xf32>
    %cst_223 = arith.constant 1.000000e+00 : f32
    %485 = vector.broadcast %cst_223 : f32 to vector<8x128xf32>
    %486 = arith.addf %485, %484 : vector<8x128xf32>
    %487 = arith.divf %485, %486 : vector<8x128xf32>
    %488 = vector.extract_strided_slice %473 {offsets = [0, 256], sizes = [8, 128], strides = [1, 1]} : vector<8x512xf32> to vector<8x128xf32>
    %489 = math.tanh %488 : vector<8x128xf32>
    %490 = vector.extract_strided_slice %473 {offsets = [0, 384], sizes = [8, 128], strides = [1, 1]} : vector<8x512xf32> to vector<8x128xf32>
    %491 = arith.negf %490 : vector<8x128xf32>
    %492 = math.exp %491 : vector<8x128xf32>
    %cst_224 = arith.constant 1.000000e+00 : f32
    %493 = vector.broadcast %cst_224 : f32 to vector<8x128xf32>
    %494 = arith.addf %493, %492 : vector<8x128xf32>
    %495 = arith.divf %493, %494 : vector<8x128xf32>
    %496 = arith.mulf %487, %475 : vector<8x128xf32>
    %497 = arith.mulf %481, %489 : vector<8x128xf32>
    %498 = arith.addf %496, %497 : vector<8x128xf32>
    %499 = math.tanh %498 : vector<8x128xf32>
    %500 = arith.mulf %495, %499 : vector<8x128xf32>
    %c1_225 = arith.constant 1 : index
    %c0_226 = arith.constant 0 : index
    %c0_227 = arith.constant 0 : index
    %501 = vector.load %arg11[%c1_225, %c0_226, %c0_227] : memref<2x8x128xf32, #tpu.memory_space<vmem>>, vector<1x8x128xf32>
    %502 = vector.shape_cast %501 : vector<1x8x128xf32> to vector<8x128xf32>
    %503 = vector.shape_cast %500 : vector<8x128xf32> to vector<1x8x128xf32>
    tpu.vector_store %arg11[%c1_225, %c0_226, %c0_227], %503 {strides = array<i32>} : memref<2x8x128xf32, #tpu.memory_space<vmem>>, vector<1x8x128xf32>,
    %c1_228 = arith.constant 1 : index
    %c0_229 = arith.constant 0 : index
    %c0_230 = arith.constant 0 : index
    %504 = vector.load %arg12[%c1_228, %c0_229, %c0_230] : memref<2x8x128xf32, #tpu.memory_space<vmem>>, vector<1x8x128xf32>
    %505 = vector.shape_cast %504 : vector<1x8x128xf32> to vector<8x128xf32>
    %506 = vector.shape_cast %498 : vector<8x128xf32> to vector<1x8x128xf32>
    tpu.vector_store %arg12[%c1_228, %c0_229, %c0_230], %506 {strides = array<i32>} : memref<2x8x128xf32, #tpu.memory_space<vmem>>, vector<1x8x128xf32>,
    %507 = vector.extract_strided_slice %10 {offsets = [48, 0], sizes = [8, 512], strides = [1, 1]} : vector<64x512xf32> to vector<8x512xf32>
    %c0_231 = arith.constant 0 : index
    %c0_232 = arith.constant 0 : index
    %c0_233 = arith.constant 0 : index
    %508 = vector.load %arg11[%c0_231, %c0_232, %c0_233] : memref<2x8x128xf32, #tpu.memory_space<vmem>>, vector<1x8x128xf32>
    %509 = vector.shape_cast %508 : vector<1x8x128xf32> to vector<8x128xf32>
    %510 = arith.truncf %509 : vector<8x128xf32> to vector<8x128xbf16>
    %c0_234 = arith.constant 0 : index
    %c0_235 = arith.constant 0 : index
    %511 = vector.load %arg5[%c0_234, %c0_235] : memref<128x512xbf16, #tpu.memory_space<vmem>>, vector<128x512xbf16>
    %cst_236 = arith.constant dense<0.000000e+00> : vector<8x512xf32>
    %512 = tpu.matmul %510, %511, %cst_236 {dimension_numbers = #tpu.dot_dimension_numbers<[1], [0], [0], [1], [0, 0, 1, 1], [], []>} : vector<8x128xbf16>, vector<128x512xbf16>, vector<8x512xf32> -> vector<8x512xf32>
    %513 = arith.addf %507, %512 : vector<8x512xf32>
    %c0_237 = arith.constant 0 : index
    %c0_238 = arith.constant 0 : index
    %c0_239 = arith.constant 0 : index
    %514 = vector.load %arg12[%c0_237, %c0_238, %c0_239] : memref<2x8x128xf32, #tpu.memory_space<vmem>>, vector<1x8x128xf32>
    %515 = vector.shape_cast %514 : vector<1x8x128xf32> to vector<8x128xf32>
    %516 = vector.extract_strided_slice %513 {offsets = [0, 0], sizes = [8, 128], strides = [1, 1]} : vector<8x512xf32> to vector<8x128xf32>
    %517 = arith.negf %516 : vector<8x128xf32>
    %518 = math.exp %517 : vector<8x128xf32>
    %cst_240 = arith.constant 1.000000e+00 : f32
    %519 = vector.broadcast %cst_240 : f32 to vector<8x128xf32>
    %520 = arith.addf %519, %518 : vector<8x128xf32>
    %521 = arith.divf %519, %520 : vector<8x128xf32>
    %522 = vector.extract_strided_slice %513 {offsets = [0, 128], sizes = [8, 128], strides = [1, 1]} : vector<8x512xf32> to vector<8x128xf32>
    %523 = arith.negf %522 : vector<8x128xf32>
    %524 = math.exp %523 : vector<8x128xf32>
    %cst_241 = arith.constant 1.000000e+00 : f32
    %525 = vector.broadcast %cst_241 : f32 to vector<8x128xf32>
    %526 = arith.addf %525, %524 : vector<8x128xf32>
    %527 = arith.divf %525, %526 : vector<8x128xf32>
    %528 = vector.extract_strided_slice %513 {offsets = [0, 256], sizes = [8, 128], strides = [1, 1]} : vector<8x512xf32> to vector<8x128xf32>
    %529 = math.tanh %528 : vector<8x128xf32>
    %530 = vector.extract_strided_slice %513 {offsets = [0, 384], sizes = [8, 128], strides = [1, 1]} : vector<8x512xf32> to vector<8x128xf32>
    %531 = arith.negf %530 : vector<8x128xf32>
    %532 = math.exp %531 : vector<8x128xf32>
    %cst_242 = arith.constant 1.000000e+00 : f32
    %533 = vector.broadcast %cst_242 : f32 to vector<8x128xf32>
    %534 = arith.addf %533, %532 : vector<8x128xf32>
    %535 = arith.divf %533, %534 : vector<8x128xf32>
    %536 = arith.mulf %527, %515 : vector<8x128xf32>
    %537 = arith.mulf %521, %529 : vector<8x128xf32>
    %538 = arith.addf %536, %537 : vector<8x128xf32>
    %539 = math.tanh %538 : vector<8x128xf32>
    %540 = arith.mulf %535, %539 : vector<8x128xf32>
    %c0_243 = arith.constant 0 : index
    %c0_244 = arith.constant 0 : index
    %c0_245 = arith.constant 0 : index
    %541 = vector.load %arg11[%c0_243, %c0_244, %c0_245] : memref<2x8x128xf32, #tpu.memory_space<vmem>>, vector<1x8x128xf32>
    %542 = vector.shape_cast %541 : vector<1x8x128xf32> to vector<8x128xf32>
    %543 = vector.shape_cast %540 : vector<8x128xf32> to vector<1x8x128xf32>
    tpu.vector_store %arg11[%c0_243, %c0_244, %c0_245], %543 {strides = array<i32>} : memref<2x8x128xf32, #tpu.memory_space<vmem>>, vector<1x8x128xf32>,
    %c0_246 = arith.constant 0 : index
    %c0_247 = arith.constant 0 : index
    %c0_248 = arith.constant 0 : index
    %544 = vector.load %arg12[%c0_246, %c0_247, %c0_248] : memref<2x8x128xf32, #tpu.memory_space<vmem>>, vector<1x8x128xf32>
    %545 = vector.shape_cast %544 : vector<1x8x128xf32> to vector<8x128xf32>
    %546 = vector.shape_cast %538 : vector<8x128xf32> to vector<1x8x128xf32>
    tpu.vector_store %arg12[%c0_246, %c0_247, %c0_248], %546 {strides = array<i32>} : memref<2x8x128xf32, #tpu.memory_space<vmem>>, vector<1x8x128xf32>,
    %547 = arith.truncf %540 : vector<8x128xf32> to vector<8x128xbf16>
    %c1_249 = arith.constant 1 : index
    %c0_250 = arith.constant 0 : index
    %c0_251 = arith.constant 0 : index
    %548 = vector.load %arg11[%c1_249, %c0_250, %c0_251] : memref<2x8x128xf32, #tpu.memory_space<vmem>>, vector<1x8x128xf32>
    %549 = vector.shape_cast %548 : vector<1x8x128xf32> to vector<8x128xf32>
    %550 = arith.truncf %549 : vector<8x128xf32> to vector<8x128xbf16>
    %551 = tpu.concatenate %547, %550 in 1 : vector<8x128xbf16>, vector<8x128xbf16> -> vector<8x256xbf16>
    %c0_252 = arith.constant 0 : index
    %c0_253 = arith.constant 0 : index
    %c0_254 = arith.constant 0 : index
    %552 = vector.load %arg6[%c0_252, %c0_253, %c0_254] : memref<1x256x512xbf16, #tpu.memory_space<vmem>>, vector<1x256x512xbf16>
    %553 = vector.shape_cast %552 : vector<1x256x512xbf16> to vector<256x512xbf16>
    %cst_255 = arith.constant dense<0.000000e+00> : vector<8x512xf32>
    %554 = tpu.matmul %551, %553, %cst_255 {dimension_numbers = #tpu.dot_dimension_numbers<[1], [0], [0], [1], [0, 0, 1, 1], [], []>} : vector<8x256xbf16>, vector<256x512xbf16>, vector<8x512xf32> -> vector<8x512xf32>
    %555 = arith.addf %554, %14 : vector<8x512xf32>
    %c1_256 = arith.constant 1 : index
    %c0_257 = arith.constant 0 : index
    %c0_258 = arith.constant 0 : index
    %556 = vector.load %arg12[%c1_256, %c0_257, %c0_258] : memref<2x8x128xf32, #tpu.memory_space<vmem>>, vector<1x8x128xf32>
    %557 = vector.shape_cast %556 : vector<1x8x128xf32> to vector<8x128xf32>
    %558 = vector.extract_strided_slice %555 {offsets = [0, 0], sizes = [8, 128], strides = [1, 1]} : vector<8x512xf32> to vector<8x128xf32>
    %559 = arith.negf %558 : vector<8x128xf32>
    %560 = math.exp %559 : vector<8x128xf32>
    %cst_259 = arith.constant 1.000000e+00 : f32
    %561 = vector.broadcast %cst_259 : f32 to vector<8x128xf32>
    %562 = arith.addf %561, %560 : vector<8x128xf32>
    %563 = arith.divf %561, %562 : vector<8x128xf32>
    %564 = vector.extract_strided_slice %555 {offsets = [0, 128], sizes = [8, 128], strides = [1, 1]} : vector<8x512xf32> to vector<8x128xf32>
    %565 = arith.negf %564 : vector<8x128xf32>
    %566 = math.exp %565 : vector<8x128xf32>
    %cst_260 = arith.constant 1.000000e+00 : f32
    %567 = vector.broadcast %cst_260 : f32 to vector<8x128xf32>
    %568 = arith.addf %567, %566 : vector<8x128xf32>
    %569 = arith.divf %567, %568 : vector<8x128xf32>
    %570 = vector.extract_strided_slice %555 {offsets = [0, 256], sizes = [8, 128], strides = [1, 1]} : vector<8x512xf32> to vector<8x128xf32>
    %571 = math.tanh %570 : vector<8x128xf32>
    %572 = vector.extract_strided_slice %555 {offsets = [0, 384], sizes = [8, 128], strides = [1, 1]} : vector<8x512xf32> to vector<8x128xf32>
    %573 = arith.negf %572 : vector<8x128xf32>
    %574 = math.exp %573 : vector<8x128xf32>
    %cst_261 = arith.constant 1.000000e+00 : f32
    %575 = vector.broadcast %cst_261 : f32 to vector<8x128xf32>
    %576 = arith.addf %575, %574 : vector<8x128xf32>
    %577 = arith.divf %575, %576 : vector<8x128xf32>
    %578 = arith.mulf %569, %557 : vector<8x128xf32>
    %579 = arith.mulf %563, %571 : vector<8x128xf32>
    %580 = arith.addf %578, %579 : vector<8x128xf32>
    %581 = math.tanh %580 : vector<8x128xf32>
    %582 = arith.mulf %577, %581 : vector<8x128xf32>
    %c1_262 = arith.constant 1 : index
    %c0_263 = arith.constant 0 : index
    %c0_264 = arith.constant 0 : index
    %583 = vector.load %arg11[%c1_262, %c0_263, %c0_264] : memref<2x8x128xf32, #tpu.memory_space<vmem>>, vector<1x8x128xf32>
    %584 = vector.shape_cast %583 : vector<1x8x128xf32> to vector<8x128xf32>
    %585 = vector.shape_cast %582 : vector<8x128xf32> to vector<1x8x128xf32>
    tpu.vector_store %arg11[%c1_262, %c0_263, %c0_264], %585 {strides = array<i32>} : memref<2x8x128xf32, #tpu.memory_space<vmem>>, vector<1x8x128xf32>,
    %c1_265 = arith.constant 1 : index
    %c0_266 = arith.constant 0 : index
    %c0_267 = arith.constant 0 : index
    %586 = vector.load %arg12[%c1_265, %c0_266, %c0_267] : memref<2x8x128xf32, #tpu.memory_space<vmem>>, vector<1x8x128xf32>
    %587 = vector.shape_cast %586 : vector<1x8x128xf32> to vector<8x128xf32>
    %588 = vector.shape_cast %580 : vector<8x128xf32> to vector<1x8x128xf32>
    tpu.vector_store %arg12[%c1_265, %c0_266, %c0_267], %588 {strides = array<i32>} : memref<2x8x128xf32, #tpu.memory_space<vmem>>, vector<1x8x128xf32>,
    %589 = vector.extract_strided_slice %10 {offsets = [56, 0], sizes = [8, 512], strides = [1, 1]} : vector<64x512xf32> to vector<8x512xf32>
    %c0_268 = arith.constant 0 : index
    %c0_269 = arith.constant 0 : index
    %c0_270 = arith.constant 0 : index
    %590 = vector.load %arg11[%c0_268, %c0_269, %c0_270] : memref<2x8x128xf32, #tpu.memory_space<vmem>>, vector<1x8x128xf32>
    %591 = vector.shape_cast %590 : vector<1x8x128xf32> to vector<8x128xf32>
    %592 = arith.truncf %591 : vector<8x128xf32> to vector<8x128xbf16>
    %c0_271 = arith.constant 0 : index
    %c0_272 = arith.constant 0 : index
    %593 = vector.load %arg5[%c0_271, %c0_272] : memref<128x512xbf16, #tpu.memory_space<vmem>>, vector<128x512xbf16>
    %cst_273 = arith.constant dense<0.000000e+00> : vector<8x512xf32>
    %594 = tpu.matmul %592, %593, %cst_273 {dimension_numbers = #tpu.dot_dimension_numbers<[1], [0], [0], [1], [0, 0, 1, 1], [], []>} : vector<8x128xbf16>, vector<128x512xbf16>, vector<8x512xf32> -> vector<8x512xf32>
    %595 = arith.addf %589, %594 : vector<8x512xf32>
    %c0_274 = arith.constant 0 : index
    %c0_275 = arith.constant 0 : index
    %c0_276 = arith.constant 0 : index
    %596 = vector.load %arg12[%c0_274, %c0_275, %c0_276] : memref<2x8x128xf32, #tpu.memory_space<vmem>>, vector<1x8x128xf32>
    %597 = vector.shape_cast %596 : vector<1x8x128xf32> to vector<8x128xf32>
    %598 = vector.extract_strided_slice %595 {offsets = [0, 0], sizes = [8, 128], strides = [1, 1]} : vector<8x512xf32> to vector<8x128xf32>
    %599 = arith.negf %598 : vector<8x128xf32>
    %600 = math.exp %599 : vector<8x128xf32>
    %cst_277 = arith.constant 1.000000e+00 : f32
    %601 = vector.broadcast %cst_277 : f32 to vector<8x128xf32>
    %602 = arith.addf %601, %600 : vector<8x128xf32>
    %603 = arith.divf %601, %602 : vector<8x128xf32>
    %604 = vector.extract_strided_slice %595 {offsets = [0, 128], sizes = [8, 128], strides = [1, 1]} : vector<8x512xf32> to vector<8x128xf32>
    %605 = arith.negf %604 : vector<8x128xf32>
    %606 = math.exp %605 : vector<8x128xf32>
    %cst_278 = arith.constant 1.000000e+00 : f32
    %607 = vector.broadcast %cst_278 : f32 to vector<8x128xf32>
    %608 = arith.addf %607, %606 : vector<8x128xf32>
    %609 = arith.divf %607, %608 : vector<8x128xf32>
    %610 = vector.extract_strided_slice %595 {offsets = [0, 256], sizes = [8, 128], strides = [1, 1]} : vector<8x512xf32> to vector<8x128xf32>
    %611 = math.tanh %610 : vector<8x128xf32>
    %612 = vector.extract_strided_slice %595 {offsets = [0, 384], sizes = [8, 128], strides = [1, 1]} : vector<8x512xf32> to vector<8x128xf32>
    %613 = arith.negf %612 : vector<8x128xf32>
    %614 = math.exp %613 : vector<8x128xf32>
    %cst_279 = arith.constant 1.000000e+00 : f32
    %615 = vector.broadcast %cst_279 : f32 to vector<8x128xf32>
    %616 = arith.addf %615, %614 : vector<8x128xf32>
    %617 = arith.divf %615, %616 : vector<8x128xf32>
    %618 = arith.mulf %609, %597 : vector<8x128xf32>
    %619 = arith.mulf %603, %611 : vector<8x128xf32>
    %620 = arith.addf %618, %619 : vector<8x128xf32>
    %621 = math.tanh %620 : vector<8x128xf32>
    %622 = arith.mulf %617, %621 : vector<8x128xf32>
    %c0_280 = arith.constant 0 : index
    %c0_281 = arith.constant 0 : index
    %c0_282 = arith.constant 0 : index
    %623 = vector.load %arg11[%c0_280, %c0_281, %c0_282] : memref<2x8x128xf32, #tpu.memory_space<vmem>>, vector<1x8x128xf32>
    %624 = vector.shape_cast %623 : vector<1x8x128xf32> to vector<8x128xf32>
    %625 = vector.shape_cast %622 : vector<8x128xf32> to vector<1x8x128xf32>
    tpu.vector_store %arg11[%c0_280, %c0_281, %c0_282], %625 {strides = array<i32>} : memref<2x8x128xf32, #tpu.memory_space<vmem>>, vector<1x8x128xf32>,
    %c0_283 = arith.constant 0 : index
    %c0_284 = arith.constant 0 : index
    %c0_285 = arith.constant 0 : index
    %626 = vector.load %arg12[%c0_283, %c0_284, %c0_285] : memref<2x8x128xf32, #tpu.memory_space<vmem>>, vector<1x8x128xf32>
    %627 = vector.shape_cast %626 : vector<1x8x128xf32> to vector<8x128xf32>
    %628 = vector.shape_cast %620 : vector<8x128xf32> to vector<1x8x128xf32>
    tpu.vector_store %arg12[%c0_283, %c0_284, %c0_285], %628 {strides = array<i32>} : memref<2x8x128xf32, #tpu.memory_space<vmem>>, vector<1x8x128xf32>,
    %629 = arith.truncf %622 : vector<8x128xf32> to vector<8x128xbf16>
    %c1_286 = arith.constant 1 : index
    %c0_287 = arith.constant 0 : index
    %c0_288 = arith.constant 0 : index
    %630 = vector.load %arg11[%c1_286, %c0_287, %c0_288] : memref<2x8x128xf32, #tpu.memory_space<vmem>>, vector<1x8x128xf32>
    %631 = vector.shape_cast %630 : vector<1x8x128xf32> to vector<8x128xf32>
    %632 = arith.truncf %631 : vector<8x128xf32> to vector<8x128xbf16>
    %633 = tpu.concatenate %629, %632 in 1 : vector<8x128xbf16>, vector<8x128xbf16> -> vector<8x256xbf16>
    %c0_289 = arith.constant 0 : index
    %c0_290 = arith.constant 0 : index
    %c0_291 = arith.constant 0 : index
    %634 = vector.load %arg6[%c0_289, %c0_290, %c0_291] : memref<1x256x512xbf16, #tpu.memory_space<vmem>>, vector<1x256x512xbf16>
    %635 = vector.shape_cast %634 : vector<1x256x512xbf16> to vector<256x512xbf16>
    %cst_292 = arith.constant dense<0.000000e+00> : vector<8x512xf32>
    %636 = tpu.matmul %633, %635, %cst_292 {dimension_numbers = #tpu.dot_dimension_numbers<[1], [0], [0], [1], [0, 0, 1, 1], [], []>} : vector<8x256xbf16>, vector<256x512xbf16>, vector<8x512xf32> -> vector<8x512xf32>
    %637 = arith.addf %636, %14 : vector<8x512xf32>
    %c1_293 = arith.constant 1 : index
    %c0_294 = arith.constant 0 : index
    %c0_295 = arith.constant 0 : index
    %638 = vector.load %arg12[%c1_293, %c0_294, %c0_295] : memref<2x8x128xf32, #tpu.memory_space<vmem>>, vector<1x8x128xf32>
    %639 = vector.shape_cast %638 : vector<1x8x128xf32> to vector<8x128xf32>
    %640 = vector.extract_strided_slice %637 {offsets = [0, 0], sizes = [8, 128], strides = [1, 1]} : vector<8x512xf32> to vector<8x128xf32>
    %641 = arith.negf %640 : vector<8x128xf32>
    %642 = math.exp %641 : vector<8x128xf32>
    %cst_296 = arith.constant 1.000000e+00 : f32
    %643 = vector.broadcast %cst_296 : f32 to vector<8x128xf32>
    %644 = arith.addf %643, %642 : vector<8x128xf32>
    %645 = arith.divf %643, %644 : vector<8x128xf32>
    %646 = vector.extract_strided_slice %637 {offsets = [0, 128], sizes = [8, 128], strides = [1, 1]} : vector<8x512xf32> to vector<8x128xf32>
    %647 = arith.negf %646 : vector<8x128xf32>
    %648 = math.exp %647 : vector<8x128xf32>
    %cst_297 = arith.constant 1.000000e+00 : f32
    %649 = vector.broadcast %cst_297 : f32 to vector<8x128xf32>
    %650 = arith.addf %649, %648 : vector<8x128xf32>
    %651 = arith.divf %649, %650 : vector<8x128xf32>
    %652 = vector.extract_strided_slice %637 {offsets = [0, 256], sizes = [8, 128], strides = [1, 1]} : vector<8x512xf32> to vector<8x128xf32>
    %653 = math.tanh %652 : vector<8x128xf32>
    %654 = vector.extract_strided_slice %637 {offsets = [0, 384], sizes = [8, 128], strides = [1, 1]} : vector<8x512xf32> to vector<8x128xf32>
    %655 = arith.negf %654 : vector<8x128xf32>
    %656 = math.exp %655 : vector<8x128xf32>
    %cst_298 = arith.constant 1.000000e+00 : f32
    %657 = vector.broadcast %cst_298 : f32 to vector<8x128xf32>
    %658 = arith.addf %657, %656 : vector<8x128xf32>
    %659 = arith.divf %657, %658 : vector<8x128xf32>
    %660 = arith.mulf %651, %639 : vector<8x128xf32>
    %661 = arith.mulf %645, %653 : vector<8x128xf32>
    %662 = arith.addf %660, %661 : vector<8x128xf32>
    %663 = math.tanh %662 : vector<8x128xf32>
    %664 = arith.mulf %659, %663 : vector<8x128xf32>
    %c1_299 = arith.constant 1 : index
    %c0_300 = arith.constant 0 : index
    %c0_301 = arith.constant 0 : index
    %665 = vector.load %arg11[%c1_299, %c0_300, %c0_301] : memref<2x8x128xf32, #tpu.memory_space<vmem>>, vector<1x8x128xf32>
    %666 = vector.shape_cast %665 : vector<1x8x128xf32> to vector<8x128xf32>
    %667 = vector.shape_cast %664 : vector<8x128xf32> to vector<1x8x128xf32>
    tpu.vector_store %arg11[%c1_299, %c0_300, %c0_301], %667 {strides = array<i32>} : memref<2x8x128xf32, #tpu.memory_space<vmem>>, vector<1x8x128xf32>,
    %c1_302 = arith.constant 1 : index
    %c0_303 = arith.constant 0 : index
    %c0_304 = arith.constant 0 : index
    %668 = vector.load %arg12[%c1_302, %c0_303, %c0_304] : memref<2x8x128xf32, #tpu.memory_space<vmem>>, vector<1x8x128xf32>
    %669 = vector.shape_cast %668 : vector<1x8x128xf32> to vector<8x128xf32>
    %670 = vector.shape_cast %662 : vector<8x128xf32> to vector<1x8x128xf32>
    tpu.vector_store %arg12[%c1_302, %c0_303, %c0_304], %670 {strides = array<i32>} : memref<2x8x128xf32, #tpu.memory_space<vmem>>, vector<1x8x128xf32>,
    %c0_i32_305 = arith.constant 0 : i32
    %671 = arith.cmpi eq, %arg1, %c0_i32_305 : i32
    %672 = arith.extui %671 : i1 to i32
    %c0_i32_306 = arith.constant 0 : i32
    %673 = arith.cmpi ne, %672, %c0_i32_306 : i32
    scf.if %673 {
      %c1_307 = arith.constant 1 : index
      %c0_308 = arith.constant 0 : index
      %c0_309 = arith.constant 0 : index
      %674 = vector.load %arg11[%c1_307, %c0_308, %c0_309] : memref<2x8x128xf32, #tpu.memory_space<vmem>>, vector<1x8x128xf32>
      %675 = vector.shape_cast %674 : vector<1x8x128xf32> to vector<8x128xf32>
      %676 = arith.truncf %675 : vector<8x128xf32> to vector<8x128xbf16>
      %c0_310 = arith.constant 0 : index
      %c0_311 = arith.constant 0 : index
      %677 = vector.load %arg8[%c0_310, %c0_311] : memref<128x128xbf16, #tpu.memory_space<vmem>>, vector<128x128xbf16>
      %cst_312 = arith.constant dense<0.000000e+00> : vector<8x128xf32>
      %678 = tpu.matmul %676, %677, %cst_312 {dimension_numbers = #tpu.dot_dimension_numbers<[1], [0], [0], [1], [0, 0, 1, 1], [], []>} : vector<8x128xbf16>, vector<128x128xbf16>, vector<8x128xf32> -> vector<8x128xf32>
      %c0_313 = arith.constant 0 : index
      %c0_314 = arith.constant 0 : index
      %679 = vector.load %arg9[%c0_313, %c0_314] : memref<1x128xf32, #tpu.memory_space<vmem>>, vector<1x128xf32>
      %680 = vector.broadcast %679 : vector<1x128xf32> to vector<8x128xf32>
      %681 = arith.addf %678, %680 : vector<8x128xf32>
      %c0_315 = arith.constant 0 : index
      %c0_316 = arith.constant 0 : index
      %682 = vector.load %arg10[%c0_315, %c0_316] : memref<8x128xf32, #tpu.memory_space<vmem>>, vector<8x128xf32>
      tpu.vector_store %arg10[%c0_315, %c0_316], %681 {strides = array<i32>} : memref<8x128xf32, #tpu.memory_space<vmem>>, vector<8x128xf32>,
    } else {
    }
    return
  }
  func.func @transform_0(%arg0: i32, %arg1: i32) -> (i32, i32, i32) {
    %c0_i32 = arith.constant 0 : i32
    %c0_i32_0 = arith.constant 0 : i32
    return %arg1, %arg0, %c0_i32 : i32, i32, i32
  }
  func.func @transform_1(%arg0: i32, %arg1: i32) -> (i32, i32) {
    %c0_i32 = arith.constant 0 : i32
    %c0_i32_0 = arith.constant 0 : i32
    %c0_i32_1 = arith.constant 0 : i32
    return %c0_i32, %c0_i32_0 : i32, i32
  }
  func.func @transform_2(%arg0: i32, %arg1: i32) -> (i32, i32) {
    %c0_i32 = arith.constant 0 : i32
    %c0_i32_0 = arith.constant 0 : i32
    %c0_i32_1 = arith.constant 0 : i32
    return %c0_i32, %c0_i32_0 : i32, i32
  }
  func.func @transform_3(%arg0: i32, %arg1: i32) -> (i32, i32) {
    %c0_i32 = arith.constant 0 : i32
    %c0_i32_0 = arith.constant 0 : i32
    %c0_i32_1 = arith.constant 0 : i32
    return %c0_i32, %c0_i32_0 : i32, i32
  }
  func.func @transform_4(%arg0: i32, %arg1: i32) -> (i32, i32, i32) {
    %c0_i32 = arith.constant 0 : i32
    %c0_i32_0 = arith.constant 0 : i32
    %c0_i32_1 = arith.constant 0 : i32
    %c0_i32_2 = arith.constant 0 : i32
    return %c0_i32, %c0_i32_0, %c0_i32_1 : i32, i32, i32
  }
  func.func @transform_5(%arg0: i32, %arg1: i32) -> (i32, i32, i32) {
    %c0_i32 = arith.constant 0 : i32
    %c0_i32_0 = arith.constant 0 : i32
    %c0_i32_1 = arith.constant 0 : i32
    %c0_i32_2 = arith.constant 0 : i32
    return %c0_i32, %c0_i32_0, %c0_i32_1 : i32, i32, i32
  }
  func.func @transform_6(%arg0: i32, %arg1: i32) -> (i32, i32) {
    %c0_i32 = arith.constant 0 : i32
    %c0_i32_0 = arith.constant 0 : i32
    %c0_i32_1 = arith.constant 0 : i32
    return %c0_i32, %c0_i32_0 : i32, i32
  }
  func.func @transform_7(%arg0: i32, %arg1: i32) -> (i32, i32) {
    %c0_i32 = arith.constant 0 : i32
    %c0_i32_0 = arith.constant 0 : i32
    %c0_i32_1 = arith.constant 0 : i32
    return %c0_i32, %c0_i32_0 : i32, i32
  }
  func.func @transform_8(%arg0: i32, %arg1: i32) -> (i32, i32) {
    %c0_i32 = arith.constant 0 : i32
    %c0_i32_0 = arith.constant 0 : i32
    return %arg0, %c0_i32 : i32, i32
  }
}

</mosaic_0001>

<bundles_post_ra>
// kernel: tpu_custom_call.1
= control target key start
LH: loop header
LB: loop body
LE: loop exit
PB: predicated region body
PF: predicated region fallthrough
CT: control target
= control target key end

     0   :  { %6 = vsyncpa [#allocation3], 0  ;;  %s441_s0 = inlined_call_operand.hbm [shape: f32[8,128], index: 0, kind: input, shape index: {}]   ;;  %s442_s1 = inlined_call_operand.hbm [shape: f32[16,128], index: 1, kind: output, shape index: {}]  }
   0x1   :  { %7 = vsyncpa [#allocation4], 0 }
   0x2   :  { %9 = vsyncpa [#allocation4 + $0x1], 0  ;;  %s357_s6 = smov 0   ;;  %s359_s7 = smov 0  }
   0x3   :  { %s361_s8 = smov 0   ;;  %s363_s9 = smov 0  }
   0x4 LB: > { %s378_s10 = sadd.s32 4294967295, %s344_s9   ;;  %s188_s11 = sadd.s32 4294967294, %s344_s9   ;;  %s344_s9 = sphi %s363_s9, %s448_s9   ;;  %s340_s8 = sphi %s361_s8, %s447_s8   ;;  %s336_s7 = sphi %s359_s7, %s446_s7   ;;  %s332_s6 = sphi %s357_s6, %s445_s6  }
   0x5   : > { %s382_s12 = sadd.s32 1, %s344_s9   ;;  %s43_s13 = sadd.s32 1, %s340_s8 }
   0x6   : > { %s40_s14 = ssub.s32 %s344_s9, %s382_s12  ;;  %p53_p0 = scmp.ne.s32.totalorder %s340_s8, %s336_s7 }
   0x7   : > { %p41_p1 = scmp.eq.s32.totalorder %s40_s14, 0  ;;  %p54_p2 = scmp.eq.s32.totalorder %s378_s10, 1 }
   0x8   : > { %p59_p3 = scmp.ne.s32.totalorder %s336_s7, %s332_s6  ;;  %p60_p4 = scmp.eq.s32.totalorder %s188_s11, 1 }
   0x9   : > { %s393_s15 = scalar_select %p41_p1, %s340_s8, %s43_s13  }
   0xa   : > { %p395_p5 = por %p54_p2, %p53_p0  ;;  %p399_p6 = por %p60_p4, %p59_p3 }
   0xb   : > { %p189_p7 = scmp.ge.s32.totalorder %s344_s9, 1  ;;  %p67_p8 = scmp.lt.s32.totalorder %s344_s9, 3 }
   0xc   : > { %p212_p9 = scmp.eq.s32.totalorder %s378_s10, 0  ;;  %s79_s20 = sshll.u32 %s441_s0, 4  ;;  %s80_s20 = int_to_ptr.hbm [resolvable:$true] %s79_s20 }
   0xd   : > { %p68_p10 = pnand %p189_p7, %p67_p8  ;;  %s346_s21 = smov [#allocation2]  }
   0xe   : > { %s81_s22 = sshll.u32 %s346_s21, 4  ;;  %s82_s22 = int_to_ptr.vmem [resolvable:$true] %s81_s22 }
   0xf   : > { %p204_p11 = pneg %p68_p10  ;;  %94 = sbr.rel (%p68_p10) target bundleno = 37 (0x25), region = 24 }
  0x11   : > { %p205_p12 = pnand %p212_p9, %p204_p11 }
  0x13   : > { %207 = dma.hbm_to_vmem [thread:$0]  (!%p205_p12), %s80_s20, 128, %s82_s22, [#allocation3]  }
  0x14   : > { %323 = dma.done.wait (%p212_p9), [#allocation3], 128  }
  0x15   : > { %325 = vsyncadd (%p212_p9), [#allocation3], 4294967168  ;;  %s107_s23 = sand.u32 1, %s336_s7   ;;  %s195_s24 = sshll.u32 %s378_s10, 3  ;;  %v110_v0 = vld [vmem:[#allocation2] sm:$0xff] }
  0x16   : > { %s193_s25 = sshll.u32 %s107_s23, 3  ;;  %s124_s28 = scalar_lea.hbm %s442_s1, %s195_s24  ;;  %v111_v1 = vadd.f32 1.0, %v110_v0 }
  0x17   : > { %s109_s29 = scalar_lea.vmem [#allocation5], %s193_s25  ;;  %s128_s2 = sshll.u32 %s124_s28, 4  ;;  %s129_s2 = int_to_ptr.hbm [resolvable:$true] %s128_s2 }
  0x18   : > { %s126_s30 = sshll.u32 %s109_s29, 4  ;;  %112 = vst [vmem:[%s109_s29] sm:$0xff] %v111_v1  ;;  %s114_s3 = scalar_lea.sflag [#allocation4], %s107_s23  ;;  %s127_s30 = int_to_ptr.vmem [resolvable:$true] %s126_s30 }
  0x19   : > { %s292_s4 = sshra.s32 %s129_s2, 4  ;;  %s298_s13 = scalar_lea.hbm %s442_s1, 16  ;;  %s293_s4 = int_to_ptr.hbm [resolvable:$true] %s292_s4 }
  0x1a   : > { %s294_s5 = scalar_lea.hbm %s293_s4, 8  ;;  %p299_p2 = scmp.lt.s32.totalorder %s293_s4, %s442_s1 }
  0x1b   : > { %p295_p13 = scmp.ne.s32.totalorder %s293_s4, %s294_s5  ;;  %p300_p3 = scmp.lt.s32.totalorder %s298_s13, %s294_s5 }
  0x1d   : > { %p296_p0 = pnand %p295_p13, %p395_p5  ;;  %p301_p4 = por %p300_p3, %p299_p2 }
  0x1f   : > { %p297_p1 = pneg %p296_p0 }
  0x21   : > { %p302_p7 = pnand %p301_p4, %p297_p1 }
  0x23   : > { %305 = shalt.err (!%p302_p7)
}
  0x24   : > { %202 = dma.vmem_to_hbm [thread:$0]  (%p395_p5), %s127_s30, 128, %s129_s2, %s114_s3  }
  0x25 PF: > { %p214_p8 = scmp.ge.s32.totalorder %s344_s9, 2  ;;  %s140_s19 = sand.u32 1, %s332_s6  }
  0x26   : > { %s141_s20 = scalar_lea.sflag [#allocation4], %s140_s19 }
  0x27   : > { %p209_p9 = pnand %p214_p8, %p399_p6 }
  0x29   : > { %p210_p10 = pneg %p209_p9 }
  0x2b   : > { %327 = dma.done.wait (%p210_p10), %s141_s20, 128  }
  0x2c   : > { %329 = vsyncadd (%p210_p10), %s141_s20, 4294967168  ;;  %p12_p11 = scmp.ge.s32.totalorder %s382_s12, 4   ;;  %s445_s6 = smov %s336_s7 }
  0x2d   : > { %s446_s7 = smov %s340_s8  ;;  %s447_s8 = smov %s393_s15 }
  0x2e   : > { %s448_s9 = smov %s382_s12  ;;  %14 = sbr.rel (!%p12_p11) target bundleno = 4 (0x4), region = 61 }
  0x33   :  { %147 = vsyncpa [#allocation3], 1 }
  0x34   :  { %149 = vsyncpa [#allocation3 + $0x1], 1 }
  0x35   :  { %150 = vsyncpa [#allocation4], 1 }
  0x36   :  { %152 = vsyncpa [#allocation4 + $0x1], 1 }

// kernel: lstm_forward.1
= control target key start
LH: loop header
LB: loop body
LE: loop exit
PB: predicated region body
PF: predicated region fallthrough
CT: control target
= control target key end

     0   :  { %13 = vsyncpa [#allocation5], 0  ;;  %s12958_s0 = inlined_call_operand.vmem [shape: f32[8,8,16], index: 0, kind: input, shape index: {}]   ;;  %s12959_s1 = inlined_call_operand.vmem [shape: bf16[16,512], index: 1, kind: input, shape index: {}]   ;;  %s12960_s2 = inlined_call_operand.vmem [shape: f32[1,512], index: 2, kind: input, shape index: {}]   ;;  %s12961_s3 = inlined_call_operand.hbm [shape: bf16[128,512], index: 3, kind: input, shape index: {}]   ;;  %s12962_s4 = inlined_call_operand.hbm [shape: bf16[1,256,512], index: 4, kind: input, shape index: {}]   ;;  %s12963_s5 = inlined_call_operand.vmem [shape: f32[1,1,512], index: 5, kind: input, shape index: {}]   ;;  %s12964_s6 = inlined_call_operand.vmem [shape: bf16[128,128], index: 6, kind: input, shape index: {}]   ;;  %s12965_s7 = inlined_call_operand.vmem [shape: f32[1,128], index: 7, kind: input, shape index: {}]   ;;  %s12966_s8 = inlined_call_operand.vmem [shape: f32[8,128], index: 8, kind: output, shape index: {}]  }
   0x1   :  { %s25_s29 = sshll.u32 %s12961_s3, 4  ;;  %s26_s29 = int_to_ptr.hbm [resolvable:$true] %s25_s29 }
   0x2   :  { %14 = vsyncpa [#allocation7], 0  ;;  %s11613_s30 = smov [#allocation4]   ;;  %s38_s12 = sshll.u32 %s12962_s4, 4  ;;  %s39_s12 = int_to_ptr.hbm [resolvable:$true] %s38_s12 }
   0x3   :  { %s27_s9 = sshll.u32 %s11613_s30, 4  ;;  %s11614_s13 = smov 256   ;;  %s28_s9 = int_to_ptr.vmem [resolvable:$true] %s27_s9 }
   0x4   :  { %s11615_s14 = smov 16   ;;  %s11616_s15 = smov [#allocation6]  }
   0x5   :  { %33 = dma.hbm_to_vmem [thread:$0]  %s26_s29, 4096, %s28_s9, [#allocation5], %s11614_s13, %s11614_s13, %s11615_s14  }
   0x6   :  { %s40_s16 = sshll.u32 %s11616_s15, 4  ;;  %s41_s16 = int_to_ptr.vmem [resolvable:$true] %s40_s16 }
   0x7   :  { %46 = dma.hbm_to_vmem [thread:$0]  %s39_s12, 8192, %s41_s16, [#allocation7], %s11614_s13, %s11614_s13, %s11615_s14  }
   0x8   :  { %11609 = dma.done.wait [#allocation5], 4096  }
   0x9   :  { %11610 = vsyncadd [#allocation5], 4294963200 }
   0xa   :  { %11611 = dma.done.wait [#allocation7], 8192  }
   0xb   :  { %11612 = vsyncadd [#allocation7], 4294959104  ;;  %v7336_v0 = vld [vmem:[%s12959_s1] sm:$0xf]  ;;  %v10520_v1 = vld [vmem:[%s12959_s1 + $0xc] sm:$0xf0] }
   0xc   :  { %v7344_v2 = vld [vmem:[%s12959_s1 + $0x8] sm:$0xf]  ;;  %v7337_v3 = vor.u32 %v10520_v1, %v7336_v0  ;;  %v10521_v4 = vld [vmem:[%s12959_s1 + $0x14] sm:$0xf0]  ;;  %v10519_v5 = vld [vmem:[%s12959_s1 + $0xc] sm:$0xf] }
   0xd   :  { %v7346_v6 = vld [vmem:[%s12959_s1 + $0x18] sm:$0xf0]  ;;  %v7345_v7 = vor.u32 %v10521_v4, %v7344_v2  ;;  %v70_v9 = vld [vmem:[%s12958_s0] sm:$0xff]  ;;  %v71_v10 = vld [vmem:[%s12958_s0 + $0x8] sm:$0xff]  ;;  %vm116_vm0 = vcmask 130048  }
   0xe   :  { %v7349_v8 = vor.u32 %v10519_v5, %v7346_v6  ;;  %v76_v11 = vld [vmem:[%s12958_s0 + $0x30] sm:$0xff]  ;;  %136 = vmatpush.bf16.msra.mxu0 %v7337_v3  ;;  %11298 = vmatpush.bf16.msra.mxu1 %v7337_v3  ;;  %v11696_v12 = vpack.c.bf16 %v71_v10, %v70_v9  ;;  %v77_v13 = vld [vmem:[%s12958_s0 + $0x38] sm:$0xff]  ;;  %v10518_v14 = vld [vmem:[%s12959_s1 + $0x4] sm:$0xf] }
   0xf   :  { %v7338_v15 = vld [vmem:[%s12959_s1 + $0x10] sm:$0xf0]  ;;  %194 = vmatpush.bf16.msra.mxu2 %v7345_v7  ;;  %v11707_v16 = vpack.c.bf16 %v77_v13, %v76_v11  ;;  %v10550_v18 = vld [vmem:[#allocation4 + $0xe4] sm:$0xf]  ;;  %v7480_v20 = vld [vmem:[#allocation4 + $0xe0] sm:$0xf] }
  0x10   :  { %223 = vmatpush.bf16.msra.mxu3 %v7349_v8  ;;  %v7341_v17 = vor.u32 %v10518_v14, %v7338_v15  ;;  %v7482_v19 = vld [vmem:[#allocation4 + $0xf0] sm:$0xf0]  ;;  %v10552_v21 = vld [vmem:[#allocation4 + $0xec] sm:$0xf0]  ;;  %v7464_v24 = vld [vmem:[#allocation4 + $0xc0] sm:$0xf] }
  0x11   :  { %7350 = vmatmul.msk.bf16.vlgmr.msra.gmra.mxu0 %vm116_vm0, %v11696_v12  ;;  %7353 = vmatmul.msk.bf16.vlgmr.msra.gmra.mxu1 %vm116_vm0, %v11707_v16  ;;  %v7485_v22 = vor.u32 %v10550_v18, %v7482_v19  ;;  %v7481_v23 = vor.u32 %v10552_v21, %v7480_v20  ;;  %v10548_v25 = vld [vmem:[#allocation4 + $0xcc] sm:$0xf0]  ;;  %v10551_v26 = vld [vmem:[#allocation4 + $0xec] sm:$0xf]  ;;  %v7490_v27 = vld [vmem:[#allocation4 + $0xf8] sm:$0xf0] }
  0x12   :  { %165 = vmatpush.bf16.msrb.mxu1 %v7341_v17  ;;  %7358 = vmatmul.msk.bf16.vlgmr.msra.gmra.mxu2 %vm116_vm0, %v11696_v12  ;;  %v10546_v28 = vld [vmem:[#allocation4 + $0xc4] sm:$0xf]  ;;  %v7466_v29 = vld [vmem:[#allocation4 + $0xd0] sm:$0xf0]  ;;  %v7493_v30 = vor.u32 %v10551_v26, %v7490_v27  ;;  %v7465_v32 = vor.u32 %v10548_v25, %v7464_v24  ;;  %v7448_v33 = vld [vmem:[#allocation4 + $0xa0] sm:$0xf] }
  0x13   :  { %7362 = vmatmul.msk.bf16.vlgmr.msra.gmra.mxu3 %vm116_vm0, %v11696_v12  ;;  %v7469_v31 = vor.u32 %v10546_v28, %v7466_v29  ;;  %449 = vmatpush.bf16.msrb.mxu0 %v7481_v23  ;;  %v10547_v34 = vld [vmem:[#allocation4 + $0xcc] sm:$0xf]  ;;  %v7474_v35 = vld [vmem:[#allocation4 + $0xd8] sm:$0xf0]  ;;  %v10544_v36 = vld [vmem:[#allocation4 + $0xac] sm:$0xf0] }
  0x14   :  { %488 = vmatpush.bf16.msrb.mxu3 %v7493_v30  ;;  %v7477_v37 = vor.u32 %v10547_v34, %v7474_v35  ;;  %v7488_v38 = vld [vmem:[#allocation4 + $0xe8] sm:$0xf]  ;;  %v10553_v39 = vld [vmem:[#allocation4 + $0xf4] sm:$0xf0]  ;;  %v10542_v41 = vld [vmem:[#allocation4 + $0xa4] sm:$0xf]  ;;  %v7449_v45 = vor.u32 %v10544_v36, %v7448_v33 }
  0x15   :  { %v7489_v40 = vor.u32 %v10553_v39, %v7488_v38  ;;  %v7450_v42 = vld [vmem:[#allocation4 + $0xb0] sm:$0xf0]  ;;  %v7432_v43 = vld [vmem:[#allocation4 + $0x80] sm:$0xf]  ;;  %v10540_v46 = vld [vmem:[#allocation4 + $0x8c] sm:$0xf0] }
  0x16   :  { %462 = vmatpush.bf16.msra.mxu1 %v7485_v22  ;;  %v7453_v44 = vor.u32 %v10542_v41, %v7450_v42  ;;  %v7472_v47 = vld [vmem:[#allocation4 + $0xc8] sm:$0xf]  ;;  %v10549_v48 = vld [vmem:[#allocation4 + $0xd4] sm:$0xf0]  ;;  %v10543_v50 = vld [vmem:[#allocation4 + $0xac] sm:$0xf]  ;;  %v7433_v61 = vor.u32 %v10540_v46, %v7432_v43 }
  0x17   :  { %450 = vmatpush.bf16.msrb.mxu0 %v7465_v32  ;;  %475 = vmatpush.bf16.msrb.mxu2 %v7489_v40  ;;  %v7473_v49 = vor.u32 %v10549_v48, %v7472_v47  ;;  %v7458_v51 = vld [vmem:[#allocation4 + $0xb8] sm:$0xf0]  ;;  %v10538_v52 = vld [vmem:[#allocation4 + $0x84] sm:$0xf]  ;;  %v72_v53 = vld [vmem:[%s12958_s0 + $0x10] sm:$0xff] }
  0x18   :  { %489 = vmatpush.bf16.msrb.mxu3 %v7477_v37  ;;  %v73_v54 = vld [vmem:[%s12958_s0 + $0x18] sm:$0xff]  ;;  %v7461_v55 = vor.u32 %v10543_v50, %v7458_v51  ;;  %v7434_v56 = vld [vmem:[#allocation4 + $0x90] sm:$0xf0]  ;;  %v7416_v57 = vld [vmem:[#allocation4 + $0x60] sm:$0xf] }
  0x19   :  { %v7437_v58 = vor.u32 %v10538_v52, %v7434_v56  ;;  %v7456_v59 = vld [vmem:[#allocation4 + $0xa8] sm:$0xf]  ;;  %v10545_v60 = vld [vmem:[#allocation4 + $0xb4] sm:$0xf0]  ;;  %v10536_v62 = vld [vmem:[#allocation4 + $0x6c] sm:$0xf0]  ;;  %v11723_v2 = vpack.c.bf16 %v73_v54, %v72_v53 }
  0x1a   :  { %463 = vmatpush.bf16.msra.mxu1 %v7469_v31  ;;  %v7457_v63 = vor.u32 %v10545_v60, %v7456_v59  ;;  %v7440_v0 = vld [vmem:[#allocation4 + $0x88] sm:$0xf]  ;;  %v10541_v1 = vld [vmem:[#allocation4 + $0x94] sm:$0xf0]  ;;  %v10539_v3 = vld [vmem:[#allocation4 + $0x8c] sm:$0xf]  ;;  %v7417_v6 = vor.u32 %v10536_v62, %v7416_v57 }
  0x1b   :  { %451 = vmatpush.bf16.msrb.mxu0 %v7449_v45  ;;  %476 = vmatpush.bf16.msrb.mxu2 %v7473_v49  ;;  %v7442_v4 = vld [vmem:[#allocation4 + $0x98] sm:$0xf0]  ;;  %v7400_v7 = vld [vmem:[#allocation4 + $0x40] sm:$0xf]  ;;  %v10532_v8 = vld [vmem:[#allocation4 + $0x4c] sm:$0xf0]  ;;  %v7441_v9 = vor.u32 %v10541_v1, %v7440_v0 }
  0x1c   :  { %490 = vmatpush.bf16.msrb.mxu3 %v7461_v55  ;;  %v7445_v5 = vor.u32 %v10539_v3, %v7442_v4  ;;  %v7424_v10 = vld [vmem:[#allocation4 + $0x68] sm:$0xf]  ;;  %v10537_v11 = vld [vmem:[#allocation4 + $0x74] sm:$0xf0]  ;;  %v10535_v13 = vld [vmem:[#allocation4 + $0x6c] sm:$0xf]  ;;  %v7401_v21 = vor.u32 %v10532_v8, %v7400_v7 }
  0x1d   :  { %v7426_v14 = vld [vmem:[#allocation4 + $0x78] sm:$0xf0]  ;;  %v7384_v15 = vld [vmem:[#allocation4 + $0x20] sm:$0xf]  ;;  %v10528_v17 = vld [vmem:[#allocation4 + $0x2c] sm:$0xf0]  ;;  %v7425_v22 = vor.u32 %v10537_v11, %v7424_v10 }
  0x1e   :  { %464 = vmatpush.bf16.msra.mxu1 %v7453_v44  ;;  %v10534_v18 = vld [vmem:[#allocation4 + $0x64] sm:$0xf]  ;;  %v7418_v19 = vld [vmem:[#allocation4 + $0x70] sm:$0xf0]  ;;  %v7429_v20 = vor.u32 %v10535_v13, %v7426_v14  ;;  %v7408_v23 = vld [vmem:[#allocation4 + $0x48] sm:$0xf]  ;;  %v7385_v33 = vor.u32 %v10528_v17, %v7384_v15 }
  0x1f   :  { %452 = vmatpush.bf16.msrb.mxu0 %v7433_v61  ;;  %477 = vmatpush.bf16.msrb.mxu2 %v7457_v63  ;;  %v10531_v24 = vld [vmem:[#allocation4 + $0x4c] sm:$0xf]  ;;  %v7410_v25 = vld [vmem:[#allocation4 + $0x58] sm:$0xf0]  ;;  %v10533_v26 = vld [vmem:[#allocation4 + $0x54] sm:$0xf0] }
  0x20   :  { %491 = vmatpush.bf16.msrb.mxu3 %v7445_v5  ;;  %v10530_v27 = vld [vmem:[#allocation4 + $0x44] sm:$0xf]  ;;  %v7402_v28 = vld [vmem:[#allocation4 + $0x50] sm:$0xf0]  ;;  %v7413_v29 = vor.u32 %v10531_v24, %v7410_v25  ;;  %v10527_v31 = vld [vmem:[#allocation4 + $0x2c] sm:$0xf]  ;;  %v7409_v35 = vor.u32 %v10533_v26, %v7408_v23 }
  0x21   :  { %7351 = vmatmul.msk.bf16.gmra.mxu0 %vm116_vm0, %v11723_v2  ;;  %7354 = vmatmul.msk.bf16.vlgmr.msrb.gmra.mxu1 %vm116_vm0, %v11696_v12  ;;  %v7421_v12 = vor.u32 %v10534_v18, %v7418_v19  ;;  %v7405_v30 = vor.u32 %v10530_v27, %v7402_v28  ;;  %v7394_v32 = vld [vmem:[#allocation4 + $0x38] sm:$0xf0]  ;;  %v7368_v34 = vld [vmem:[#allocation4] sm:$0xf]  ;;  %v10524_v36 = vld [vmem:[#allocation4 + $0xc] sm:$0xf0] }
  0x22   :  { %465 = vmatpush.bf16.msra.mxu1 %v7437_v58  ;;  %7359 = vmatmul.msk.bf16.gmra.mxu2 %vm116_vm0, %v11723_v2  ;;  %v7392_v37 = vld [vmem:[#allocation4 + $0x28] sm:$0xf]  ;;  %v10529_v38 = vld [vmem:[#allocation4 + $0x34] sm:$0xf0]  ;;  %v74_v39 = vld [vmem:[%s12958_s0 + $0x20] sm:$0xff]  ;;  %v7397_v41 = vor.u32 %v10527_v31, %v7394_v32  ;;  %v7369_v44 = vor.u32 %v10524_v36, %v7368_v34  ;;  %v11617_v57 = vmov 0.0|0.0  }
  0x23   :  { %7363 = vmatmul.msk.bf16.gmra.mxu3 %vm116_vm0, %v11723_v2  ;;  %453 = vmatpush.bf16.msrb.mxu0 %v7417_v6  ;;  %v75_v40 = vld [vmem:[%s12958_s0 + $0x28] sm:$0xff]  ;;  %v7378_v43 = vld [vmem:[#allocation4 + $0x18] sm:$0xf0]  ;;  %v7393_v45 = vor.u32 %v10529_v38, %v7392_v37  ;;  %v10525_v48 = vld [vmem:[#allocation4 + $0x14] sm:$0xf0] }
  0x24   :  { %478 = vmatpush.bf16.msrb.mxu2 %v7441_v9  ;;  %492 = vmatpush.bf16.msrb.mxu3 %v7429_v20  ;;  %v10523_v42 = vld [vmem:[#allocation4 + $0xc] sm:$0xf]  ;;  %v80_v46 = vpack.c.bf16 %v75_v40, %v74_v39  ;;  %v7376_v47 = vld [vmem:[#allocation4 + $0x8] sm:$0xf]  ;;  %v10526_v51 = vld [vmem:[#allocation4 + $0x24] sm:$0xf] }
  0x25   :  { %v7381_v49 = vor.u32 %v10523_v42, %v7378_v43  ;;  %v7377_v50 = vor.u32 %v10525_v48, %v7376_v47  ;;  %v7386_v52 = vld [vmem:[#allocation4 + $0x30] sm:$0xf0]  ;;  %v10522_v54 = vld [vmem:[#allocation4 + $0x4] sm:$0xf]  ;;  %v11758_v58 = vld [vmem:[%s12960_s2] sm:$0xf] }
  0x26   :  { %466 = vmatpush.bf16.msra.mxu1 %v7421_v12  ;;  %v7389_v53 = vor.u32 %v10526_v51, %v7386_v52  ;;  %v7370_v55 = vld [vmem:[#allocation4 + $0x10] sm:$0xf0]  ;;  %v11761_v59 = vperm.slane %v11758_v58, 0  ;;  %v10616_v63 = vld [vmem:[#allocation6 + $0x1ec] sm:$0xf0]  ;;  %v11786_v37 = vperm.slane %v11758_v58, 2 }
  0x27   :  { %454 = vmatpush.bf16.msrb.mxu0 %v7401_v21  ;;  %v7373_v56 = vor.u32 %v10522_v54, %v7370_v55  ;;  %v10614_v0 = vld [vmem:[#allocation6 + $0x1e4] sm:$0xf]  ;;  %v7723_v7 = vld [vmem:[#allocation6 + $0x1c0] sm:$0xf]  ;;  %v10612_v8 = vld [vmem:[#allocation6 + $0x1cc] sm:$0xf0] }
  0x28   :  { %479 = vmatpush.bf16.msrb.mxu2 %v7425_v22  ;;  %493 = vmatpush.bf16.msrb.mxu3 %v7413_v29  ;;  %v10610_v9 = vld [vmem:[#allocation6 + $0x1c4] sm:$0xf]  ;;  %v7724_v11 = vor.u32 %v10612_v8, %v7723_v7  ;;  %v7725_v13 = vld [vmem:[#allocation6 + $0x1d0] sm:$0xf0]  ;;  %v7707_v15 = vld [vmem:[#allocation6 + $0x1a0] sm:$0xf] }
  0x29   :  { %v7728_v14 = vor.u32 %v10610_v9, %v7725_v13  ;;  %v10608_v17 = vld [vmem:[#allocation6 + $0x1ac] sm:$0xf0]  ;;  %v10606_v18 = vld [vmem:[#allocation6 + $0x1a4] sm:$0xf]  ;;  %v7709_v20 = vld [vmem:[#allocation6 + $0x1b0] sm:$0xf0] }
  0x2a   :  { %467 = vmatpush.bf16.msra.mxu1 %v7405_v30  ;;  %v7708_v19 = vor.u32 %v10608_v17, %v7707_v15  ;;  %v7712_v21 = vor.u32 %v10606_v18, %v7709_v20  ;;  %v7691_v24 = vld [vmem:[#allocation6 + $0x180] sm:$0xf]  ;;  %v10604_v25 = vld [vmem:[#allocation6 + $0x18c] sm:$0xf0]  ;;  %v10602_v26 = vld [vmem:[#allocation6 + $0x184] sm:$0xf] }
  0x2b   :  { %455 = vmatpush.bf16.msrb.mxu0 %v7385_v33  ;;  %v7692_v29 = vor.u32 %v10604_v25, %v7691_v24  ;;  %v7693_v30 = vld [vmem:[#allocation6 + $0x190] sm:$0xf0]  ;;  %v7675_v32 = vld [vmem:[#allocation6 + $0x160] sm:$0xf]  ;;  %v10600_v33 = vld [vmem:[#allocation6 + $0x16c] sm:$0xf0] }
  0x2c   :  { %480 = vmatpush.bf16.msrb.mxu2 %v7409_v35  ;;  %494 = vmatpush.bf16.msrb.mxu3 %v7397_v41  ;;  %v7696_v31 = vor.u32 %v10602_v26, %v7693_v30  ;;  %v10598_v34 = vld [vmem:[#allocation6 + $0x164] sm:$0xf]  ;;  %v7676_v35 = vor.u32 %v10600_v33, %v7675_v32  ;;  %v7677_v36 = vld [vmem:[#allocation6 + $0x170] sm:$0xf0]  ;;  %v11789_v39 = vperm.slane %v11758_v58, 3 }
  0x2d   :  { %v7680_v38 = vor.u32 %v10598_v34, %v7677_v36  ;;  %v7643_v52 = vld [vmem:[#allocation6 + $0x120] sm:$0xf]  ;;  %v10590_v54 = vld [vmem:[#allocation6 + $0x124] sm:$0xf]  ;;  %v7629_v13 = vld [vmem:[#allocation6 + $0x110] sm:$0xf0] }
  0x2e   :  { %468 = vmatpush.bf16.msra.mxu1 %v7389_v53  ;;  %v10592_v53 = vld [vmem:[#allocation6 + $0x12c] sm:$0xf0]  ;;  %v10586_v7 = vld [vmem:[#allocation6 + $0x104] sm:$0xf]  ;;  %v10617_v15 = vld [vmem:[#allocation6 + $0x1f4] sm:$0xf0] }
  0x2f   :  { %456 = vmatpush.bf16.msrb.mxu0 %v7369_v44  ;;  %v7659_v44 = vld [vmem:[#allocation6 + $0x140] sm:$0xf]  ;;  %v7644_v55 = vor.u32 %v10592_v53, %v7643_v52  ;;  %v7632_v17 = vor.u32 %v10586_v7, %v7629_v13  ;;  %v7749_v20 = vld [vmem:[#allocation6 + $0x1f8] sm:$0xf0]  ;;  %v10584_v24 = vld [vmem:[#allocation6 + $0xec] sm:$0xf0] }
  0x30   :  { %481 = vmatpush.bf16.msrb.mxu2 %v7393_v45  ;;  %495 = vmatpush.bf16.msrb.mxu3 %v7381_v49  ;;  %v10596_v45 = vld [vmem:[#allocation6 + $0x14c] sm:$0xf0]  ;;  %v10582_v25 = vld [vmem:[#allocation6 + $0xe4] sm:$0xf]  ;;  %v7731_v30 = vld [vmem:[#allocation6 + $0x1c8] sm:$0xf] }
  0x31   :  { %7352 = vmatmul.msk.bf16.gmra.mxu0 %vm116_vm0, %v80_v46  ;;  %7355 = vmatmul.msk.bf16.gmra.mxu1 %vm116_vm0, %v11723_v2  ;;  %v7741_v2 = vld [vmem:[#allocation6 + $0x1f0] sm:$0xf0]  ;;  %v7660_v49 = vor.u32 %v10596_v45, %v7659_v44  ;;  %v10611_v34 = vld [vmem:[#allocation6 + $0x1cc] sm:$0xf]  ;;  %v7595_v45 = vld [vmem:[#allocation6 + $0xc0] sm:$0xf] }
  0x32   :  { %7360 = vmatmul.msk.bf16.gmra.mxu2 %vm116_vm0, %v80_v46  ;;  %469 = vmatpush.bf16.msra.mxu1 %v7373_v56  ;;  %v7744_v3 = vor.u32 %v10614_v0, %v7741_v2  ;;  %v7645_v56 = vld [vmem:[#allocation6 + $0x130] sm:$0xf0]  ;;  %v7627_v2 = vld [vmem:[#allocation6 + $0x100] sm:$0xf] }
  0x33   :  { %7364 = vmatmul.msk.bf16.gmra.mxu3 %vm116_vm0, %v80_v46  ;;  %v7597_v53 = vld [vmem:[#allocation6 + $0xd0] sm:$0xf0]  ;;  %v7579_v7 = vld [vmem:[#allocation6 + $0xa0] sm:$0xf] }
  0x34   :  { %482 = vmatpush.bf16.msrb.mxu2 %v7377_v50  ;;  %998 = vmatpush.bf16.msra.mxu3 %v7744_v3  ;;  %v7661_v50 = vld [vmem:[#allocation6 + $0x150] sm:$0xf0]  ;;  %v10588_v3 = vld [vmem:[#allocation6 + $0x10c] sm:$0xf0] }
  0x38   :  { %999 = vmatpush.bf16.msra.mxu3 %v7728_v14  ;;  %v7747_v14 = vld [vmem:[#allocation6 + $0x1e8] sm:$0xf] }
  0x39   :  { %v7748_v18 = vor.u32 %v10617_v15, %v7747_v14  ;;  %v7581_v14 = vld [vmem:[#allocation6 + $0xb0] sm:$0xf0]  ;;  %v7699_v15 = vld [vmem:[#allocation6 + $0x188] sm:$0xf] }
  0x3c   :  { %1000 = vmatpush.bf16.msra.mxu3 %v7712_v21 }
  0x40   :  { %1001 = vmatpush.bf16.msra.mxu3 %v7696_v31  ;;  %v10613_v31 = vld [vmem:[#allocation6 + $0x1d4] sm:$0xf0] }
  0x41   :  { %7356 = vmatmul.msk.bf16.gmra.mxu1 %vm116_vm0, %v80_v46  ;;  %457 = vmatmul.bf16.vlgmr.msrb.gmra.mxu0 %v11617_v57  ;;  %v10594_v46 = vld [vmem:[#allocation6 + $0x144] sm:$0xf]  ;;  %v7732_v33 = vor.u32 %v10613_v31, %v7731_v30  ;;  %v7563_v30 = vld [vmem:[#allocation6 + $0x80] sm:$0xf]  ;;  %v10572_v31 = vld [vmem:[#allocation6 + $0x8c] sm:$0xf0] }
  0x42   :  { %7361 = vmatmul.msk.bf16.gmra.mxu2 %vm116_vm0, %v11707_v16  ;;  %v7664_v51 = vor.u32 %v10594_v46, %v7661_v50  ;;  %v10580_v46 = vld [vmem:[#allocation6 + $0xcc] sm:$0xf0] }
  0x43   :  { %7365 = vmatmul.msk.bf16.gmra.mxu3 %vm116_vm0, %v11707_v16  ;;  %v7596_v52 = vor.u32 %v10580_v46, %v7595_v45 }
  0x44   :  { %1002 = vmatpush.bf16.msra.mxu3 %v7680_v38 }
  0x48   :  { %1003 = vmatpush.bf16.msra.mxu3 %v7664_v51 }
  0x51   :  { %7357 = vmatmul.msk.bf16.gmra.mxu1 %vm116_vm0, %v11707_v16  ;;  %v7739_v16 = vld [vmem:[#allocation6 + $0x1e0] sm:$0xf] }
  0x52   :  { %483 = vmatmul.bf16.vlgmr.msrb.gmra.mxu2 %v11617_v57  ;;  %v7740_v1 = vor.u32 %v10616_v63, %v7739_v16  ;;  %v11802_v16 = vperm.slane %v11758_v58, 1 }
  0x53   :  { %496 = vmatmul.bf16.vlgmr.msrb.gmra.mxu3 %v11617_v57 }
  0x54   :  { %972 = vmatpush.bf16.msrb.mxu1 %v7740_v1 }
  0x58   :  { %973 = vmatpush.bf16.msrb.mxu1 %v7724_v11  ;;  %v7628_v11 = vor.u32 %v10588_v3, %v7627_v2  ;;  %v7717_v2 = vld [vmem:[#allocation6 + $0x1b8] sm:$0xf0] }
  0x5c   :  { %974 = vmatpush.bf16.msrb.mxu1 %v7708_v19  ;;  %v10615_v19 = vld [vmem:[#allocation6 + $0x1ec] sm:$0xf] }
  0x5d   :  { %v7752_v21 = vor.u32 %v10615_v19, %v7749_v20  ;;  %v10603_v20 = vld [vmem:[#allocation6 + $0x18c] sm:$0xf] }
  0x60   :  { %975 = vmatpush.bf16.msrb.mxu1 %v7692_v29  ;;  %v7613_v29 = vld [vmem:[#allocation6 + $0xf0] sm:$0xf0] }
  0x61   :  { %470 = vmatmul.bf16.vlgmr.msra.gmra.mxu1 %v11617_v57  ;;  %v7616_v32 = vor.u32 %v10582_v25, %v7613_v29 }
  0x63   :  { %985 = vmatpush.bf16.msra.mxu2 %v7616_v32  ;;  %v10570_v32 = vld [vmem:[#allocation6 + $0x84] sm:$0xf] }
  0x64   :  { %976 = vmatpush.bf16.msrb.mxu1 %v7676_v35  ;;  %v7733_v35 = vld [vmem:[#allocation6 + $0x1d8] sm:$0xf0] }
  0x65   :  { %v7736_v38 = vor.u32 %v10611_v34, %v7733_v35  ;;  %v7564_v35 = vor.u32 %v10572_v31, %v7563_v30 }
  0x68   :  { %977 = vmatpush.bf16.msrb.mxu1 %v7660_v49  ;;  %v10578_v49 = vld [vmem:[#allocation6 + $0xc4] sm:$0xf] }
  0x6c   :  { %978 = vmatpush.bf16.msrb.mxu1 %v7644_v55  ;;  %v10609_v55 = vld [vmem:[#allocation6 + $0x1b4] sm:$0xf0] }
  0x70   :  { %979 = vmatpush.bf16.msrb.mxu1 %v7628_v11  ;;  %v10574_v11 = vld [vmem:[#allocation6 + $0xa4] sm:$0xf] }
  0x73   :  { %980 = vmatmul.bf16.vlgmr.msrb.gmra.mxu1 %v11617_v57 }
  0x74   :  { %1024 = vmatpush.bf16.msra.mxu1 %v7748_v18  ;;  %v7584_v18 = vor.u32 %v10574_v11, %v7581_v14  ;;  %v7669_v14 = vld [vmem:[#allocation6 + $0x158] sm:$0xf0] }
  0x78   :  { %1025 = vmatpush.bf16.msra.mxu1 %v7732_v33 }
  0x8e   :  { %v11763_v60 = vpop.f32.mrf.mxu0  ;;  %v153_v61 = vpop.f32.mrf.mxu1 }
  0x8f   :  { %v11766_v62 = vadd.f32 %v153_v61, %v11761_v59  ;;  %v7648_v61 = vor.u32 %v10590_v54, %v7645_v56  ;;  %v7715_v54 = vld [vmem:[#allocation6 + $0x1a8] sm:$0xf]  ;;  %v7600_v56 = vor.u32 %v10578_v49, %v7597_v53  ;;  %v10599_v49 = vld [vmem:[#allocation6 + $0x16c] sm:$0xf] }
  0x91   :  { %12967 = vst [vmem:[#allocation10_spill] sm:$0xff] %v11766_v62  ;;  %1004 = vmatpush.bf16.msra.mxu3 %v7648_v61  ;;  %v7716_v61 = vor.u32 %v10609_v55, %v7715_v54  ;;  %986 = vmatpush.bf16.msra.mxu2 %v7600_v56  ;;  %v7547_v55 = vld [vmem:[#allocation6 + $0x60] sm:$0xf]  ;;  %v10568_v56 = vld [vmem:[#allocation6 + $0x6c] sm:$0xf0] }
  0x93   :  { %1026 = vmatpush.bf16.msra.mxu1 %v7716_v61  ;;  %v10566_v61 = vld [vmem:[#allocation6 + $0x64] sm:$0xf] }
  0x95   :  { %v11768_v4 = vpop.f32.mrf.mxu2  ;;  %1005 = vmatpush.bf16.msra.mxu3 %v7632_v17  ;;  %v10605_v17 = vld [vmem:[#allocation6 + $0x194] sm:$0xf0]  ;;  %987 = vmatpush.bf16.msra.mxu2 %v7584_v18 }
  0x96   :  { %v11770_v5 = vpop.f32.mrf.mxu3  ;;  %v11772_v6 = vpop.f32.mrf.mxu0  ;;  %v7700_v19 = vor.u32 %v10605_v17, %v7699_v15 }
  0x97   :  { %v11774_v10 = vpop.f32.mrf.mxu1 }
  0x98   :  { %12968 = vst [vmem:[#allocation11_spill] sm:$0xff] %v11774_v10  ;;  %1006 = vmatmul.bf16.vlgmr.msra.gmra.mxu3 %v11617_v57  ;;  %1027 = vmatpush.bf16.msra.mxu1 %v7700_v19  ;;  %v7995_v10 = vld [vmem:[#allocation6 + $0xd8] sm:$0xf0] }
  0x99   :  { %1050 = vmatpush.bf16.msrb.mxu3 %v7752_v21  ;;  %v7701_v21 = vld [vmem:[#allocation6 + $0x198] sm:$0xf0] }
  0x9a   :  { %v7704_v25 = vor.u32 %v10603_v20, %v7701_v21  ;;  %v7531_v21 = vld [vmem:[#allocation6 + $0x40] sm:$0xf] }
  0x9d   :  { %v11776_v12 = vpop.f32.mrf.mxu2  ;;  %1051 = vmatpush.bf16.msrb.mxu3 %v7736_v38  ;;  %v7683_v38 = vld [vmem:[#allocation6 + $0x168] sm:$0xf] }
  0x9e   :  { %v11778_v22 = vpop.f32.mrf.mxu3  ;;  %v143_v23 = vpop.f32.mrf.mxu0 }
  0x9f   :  { %v11781_v27 = vadd.f32 %v143_v23, %v11761_v59  ;;  %v11783_v28 = vpop.f32.mrf.mxu1  ;;  %v7611_v23 = vld [vmem:[#allocation6 + $0xe0] sm:$0xf] }
  0xa0   :  { %v7612_v26 = vor.u32 %v10584_v24, %v7611_v23  ;;  %v139_v23 = vadd.f32 %v11763_v60, %v11761_v59 }
  0xa2   :  { %959 = vmatpush.bf16.msra.mxu0 %v7612_v26 }
  0xa5   :  { %v201_v40 = vpop.f32.mrf.mxu2 }
  0xa6   :  { %v11792_v41 = vadd.f32 %v201_v40, %v11786_v37  ;;  %v230_v42 = vpop.f32.mrf.mxu3  ;;  %v11794_v43 = vpop.f32.mrf.mxu0  ;;  %960 = vmatpush.bf16.msra.mxu0 %v7596_v52  ;;  %v7685_v52 = vld [vmem:[#allocation6 + $0x178] sm:$0xf0] }
  0xa7   :  { %v11797_v47 = vadd.f32 %v230_v42, %v11789_v39  ;;  %v11799_v48 = vpop.f32.mrf.mxu1  ;;  %v7688_v54 = vor.u32 %v10599_v49, %v7685_v52  ;;  %v7515_v52 = vld [vmem:[#allocation6 + $0x20] sm:$0xf] }
  0xad   :  { %v11804_v63 = vpop.f32.mrf.mxu2 }
  0xae   :  { %v11806_v0 = vpop.f32.mrf.mxu3  ;;  %v148_v1 = vpop.f32.mrf.mxu0 }
  0xaf   :  { %v11809_v8 = vadd.f32 %v148_v1, %v11761_v59  ;;  %v172_v9 = vpop.f32.mrf.mxu1  ;;  %v10607_v1 = vld [vmem:[#allocation6 + $0x1ac] sm:$0xf] }
  0xb0   :  { %v11812_v58 = vadd.f32 %v172_v9, %v11802_v16  ;;  %v7720_v3 = vor.u32 %v10607_v1, %v7717_v2  ;;  %v10576_v9 = vld [vmem:[#allocation6 + $0xac] sm:$0xf0]  ;;  %v7548_v1 = vor.u32 %v10568_v56, %v7547_v55  ;;  %v7549_v2 = vld [vmem:[#allocation6 + $0x70] sm:$0xf0]  ;;  %v10558_v55 = vld [vmem:[#allocation6 + $0x24] sm:$0xf] }
  0xb1   :  { %v7580_v13 = vor.u32 %v10576_v9, %v7579_v7  ;;  %v10597_v7 = vld [vmem:[#allocation6 + $0x154] sm:$0xf0]  ;;  %v7552_v9 = vor.u32 %v10566_v61, %v7549_v2  ;;  %v7517_v56 = vld [vmem:[#allocation6 + $0x30] sm:$0xf0]  ;;  %v7635_v61 = vld [vmem:[#allocation6 + $0x108] sm:$0xf] }
  0xb2   :  { %1052 = vmatpush.bf16.msrb.mxu3 %v7720_v3  ;;  %v7667_v3 = vld [vmem:[#allocation6 + $0x148] sm:$0xf] }
  0xb3   :  { %961 = vmatpush.bf16.msra.mxu0 %v7580_v13  ;;  %v7668_v11 = vor.u32 %v10597_v7, %v7667_v3  ;;  %v10595_v13 = vld [vmem:[#allocation6 + $0x14c] sm:$0xf]  ;;  %v7520_v3 = vor.u32 %v10558_v55, %v7517_v56  ;;  %v10642_v56 = vld [vmem:[#allocation4 + $0xc4] sm:$0xf] }
  0xb4   :  { %v7672_v17 = vor.u32 %v10595_v13, %v7669_v14  ;;  %v10646_v13 = vld [vmem:[#allocation4 + $0xe4] sm:$0xf] }
  0xb5   :  { %v206_v36 = vpop.f32.mrf.mxu2 }
  0xb6   :  { %v11817_v40 = vadd.f32 %v206_v36, %v11786_v37  ;;  %v235_v42 = vpop.f32.mrf.mxu3  ;;  %v11819_v44 = vpop.f32.mrf.mxu0  ;;  %1053 = vmatpush.bf16.msrb.mxu3 %v7704_v25  ;;  %v7565_v36 = vld [vmem:[#allocation6 + $0x90] sm:$0xf0]  ;;  %v10562_v25 = vld [vmem:[#allocation6 + $0x44] sm:$0xf] }
  0xb7   :  { %v11822_v50 = vadd.f32 %v235_v42, %v11789_v39  ;;  %v11824_v51 = vpop.f32.mrf.mxu1  ;;  %v10601_v42 = vld [vmem:[#allocation6 + $0x174] sm:$0xf0]  ;;  %v7568_v45 = vor.u32 %v10570_v32, %v7565_v36  ;;  %962 = vmatpush.bf16.msra.mxu0 %v7564_v35  ;;  %v7533_v32 = vld [vmem:[#allocation6 + $0x50] sm:$0xf0] }
  0xb8   :  { %v7684_v46 = vor.u32 %v10601_v42, %v7683_v38  ;;  %v7536_v35 = vor.u32 %v10562_v25, %v7533_v32  ;;  %v10591_v38 = vld [vmem:[#allocation6 + $0x12c] sm:$0xf]  ;;  %v7653_v42 = vld [vmem:[#allocation6 + $0x138] sm:$0xf0]  ;;  %v7499_v25 = vld [vmem:[#allocation6] sm:$0xf] }
  0xb9   :  { %988 = vmatpush.bf16.msra.mxu2 %v7568_v45 }
  0xba   :  { %1028 = vmatpush.bf16.msra.mxu1 %v7684_v46  ;;  %1054 = vmatpush.bf16.msrb.mxu3 %v7688_v54  ;;  %v7656_v46 = vor.u32 %v10591_v38, %v7653_v42  ;;  %v7619_v38 = vld [vmem:[#allocation6 + $0xe8] sm:$0xf] }
  0xbb   :  { %963 = vmatpush.bf16.msra.mxu0 %v7548_v1  ;;  %v10589_v1 = vld [vmem:[#allocation6 + $0x114] sm:$0xf0] }
  0xbc   :  { %v7636_v7 = vor.u32 %v10589_v1, %v7635_v61  ;;  %v7856_v61 = vld [vmem:[#allocation4 + $0xd0] sm:$0xf0]  ;;  %v10643_v1 = vld [vmem:[#allocation4 + $0xcc] sm:$0xf] }
  0xbd   :  { %v11828_v24 = vpop.f32.mrf.mxu2  ;;  %989 = vmatpush.bf16.msra.mxu2 %v7552_v9  ;;  %v10587_v9 = vld [vmem:[#allocation6 + $0x10c] sm:$0xf] }
  0xbe   :  { %v11830_v26 = vpop.f32.mrf.mxu3  ;;  %v458_v29 = vpop.f32.mrf.mxu0  ;;  %1029 = vmatpush.bf16.msra.mxu1 %v7668_v11  ;;  %1055 = vmatpush.bf16.msrb.mxu3 %v7672_v17  ;;  %v7637_v11 = vld [vmem:[#allocation6 + $0x118] sm:$0xf0]  ;;  %v7872_v17 = vld [vmem:[#allocation4 + $0xf0] sm:$0xf0] }
  0xbf   :  { %v177_v33 = vpop.f32.mrf.mxu1  ;;  %v501_v34 = vadd.f32 %v458_v29, %v139_v23  ;;  %v10564_v23 = vld [vmem:[#allocation6 + $0x4c] sm:$0xf0] }
  0xc0   :  { %v11833_v60 = vadd.f32 %v177_v33, %v11802_v16  ;;  %v7532_v31 = vor.u32 %v10564_v23, %v7531_v21  ;;  %v7651_v33 = vld [vmem:[#allocation6 + $0x128] sm:$0xf]  ;;  %v7875_v21 = vor.u32 %v10646_v13, %v7872_v17  ;;  %v7880_v23 = vld [vmem:[#allocation4 + $0xf8] sm:$0xf0]  ;;  %v10581_v13 = vld [vmem:[#allocation6 + $0xd4] sm:$0xf0] }
  0xc1   :  { %v7494_v53 = vmul.f32 -1.442695, %v501_v34  ;;  %v10593_v34 = vld [vmem:[#allocation6 + $0x134] sm:$0xf0]  ;;  %990 = vmatpush.bf16.msra.mxu2 %v7536_v35  ;;  %v10554_v35 = vld [vmem:[#allocation6 + $0x4] sm:$0xf] }
  0xc2   :  { %v7652_v36 = vor.u32 %v10593_v34, %v7651_v33  ;;  %964 = vmatpush.bf16.msra.mxu0 %v7532_v31  ;;  %1056 = vmatpush.bf16.msrb.mxu3 %v7656_v46  ;;  %v10556_v31 = vld [vmem:[#allocation6 + $0xc] sm:$0xf0]  ;;  %v10583_v46 = vld [vmem:[#allocation6 + $0xec] sm:$0xf] }
  0xc3   :  { %11305 = vpow2.f32 %v7494_v53  ;;  %v10560_v53 = vld [vmem:[#allocation6 + $0x2c] sm:$0xf0]  ;;  %v7500_v34 = vor.u32 %v10556_v31, %v7499_v25  ;;  %v226_v25 = vadd.f32 %v11770_v5, %v11789_v39 }
  0xc4   :  { %1030 = vmatpush.bf16.msra.mxu1 %v7652_v36  ;;  %v7516_v54 = vor.u32 %v10560_v53, %v7515_v52  ;;  %v7501_v36 = vld [vmem:[#allocation6 + $0x10] sm:$0xf0]  ;;  %v7621_v52 = vld [vmem:[#allocation6 + $0xf8] sm:$0xf0] }
  0xc5   :  { %v211_v15 = vpop.f32.mrf.mxu2  ;;  %991 = vmatpush.bf16.msra.mxu2 %v7520_v3  ;;  %v7504_v42 = vor.u32 %v10554_v35, %v7501_v36  ;;  %v7624_v55 = vor.u32 %v10583_v46, %v7621_v52  ;;  %v10638_v35 = vld [vmem:[#allocation4 + $0xa4] sm:$0xf]  ;;  %v7840_v36 = vld [vmem:[#allocation4 + $0xb0] sm:$0xf0]  ;;  %v10639_v46 = vld [vmem:[#allocation4 + $0xac] sm:$0xf] }
  0xc6   :  { %v11836_v18 = vadd.f32 %v211_v15, %v11786_v37  ;;  %v240_v19 = vpop.f32.mrf.mxu3  ;;  %v460_v20 = vpop.f32.mrf.mxu0  ;;  %965 = vmatpush.bf16.msra.mxu0 %v7516_v54  ;;  %v7640_v15 = vor.u32 %v10587_v9, %v7637_v11  ;;  %v7864_v9 = vld [vmem:[#allocation4 + $0xd8] sm:$0xf0]  ;;  %v7603_v11 = vld [vmem:[#allocation6 + $0xc8] sm:$0xf] }
  0xc7   :  { %v11839_v29 = vadd.f32 %v240_v19, %v11789_v39  ;;  %v11841_v30 = vpop.f32.mrf.mxu1  ;;  %v10647_v19 = vld [vmem:[#allocation4 + $0xec] sm:$0xf]  ;;  %v7848_v52 = vld [vmem:[#allocation4 + $0xb8] sm:$0xf0] }
  0xc8   :  { %12969 = vst [vmem:[#allocation12_spill] sm:$0xff] %v11836_v18  ;;  %1031 = vmatpush.bf16.msra.mxu1 %v7636_v7  ;;  %1057 = vmatpush.bf16.msrb.mxu3 %v7640_v15  ;;  %v7883_v33 = vor.u32 %v10647_v19, %v7880_v23  ;;  %v7859_v7 = vor.u32 %v10642_v56, %v7856_v61  ;;  %v7605_v23 = vld [vmem:[#allocation6 + $0xd8] sm:$0xf0]  ;;  %v7587_v61 = vld [vmem:[#allocation6 + $0xa8] sm:$0xf] }
  0xc9   :  { %v11306_v45 = vpop.eup %11305  ;;  %992 = vmatpush.bf16.msra.mxu2 %v7504_v42  ;;  %v197_v15 = vadd.f32 %v11768_v4, %v11786_v37  ;;  %v7867_v19 = vor.u32 %v10643_v1, %v7864_v9  ;;  %v7851_v56 = vor.u32 %v10639_v46, %v7848_v52  ;;  %v10577_v1 = vld [vmem:[#allocation6 + $0xb4] sm:$0xf0]  ;;  %v10634_v9 = vld [vmem:[#allocation4 + $0x84] sm:$0xf]  ;;  %v7808_v46 = vld [vmem:[#allocation4 + $0x70] sm:$0xf0] }
  0xca   :  { %v11843_v49 = vadd.f32 1.0, %v11306_v45  ;;  %v10585_v45 = vld [vmem:[#allocation6 + $0xf4] sm:$0xf0]  ;;  %966 = vmatpush.bf16.msra.mxu0 %v7500_v34 }
  0xcb   :  { %v7620_v54 = vor.u32 %v10585_v45, %v7619_v38  ;;  %1032 = vmatmul.bf16.vlgmr.msra.gmra.mxu1 %v11617_v57  ;;  %1058 = vmatmul.bf16.vlgmr.msrb.gmra.mxu3 %v11617_v57  ;;  %v7843_v45 = vor.u32 %v10638_v35, %v7840_v36  ;;  %v7588_v57 = vor.u32 %v10577_v1, %v7587_v61  ;;  %v10573_v35 = vld [vmem:[#allocation6 + $0x94] sm:$0xf0]  ;;  %v10571_v36 = vld [vmem:[#allocation6 + $0x8c] sm:$0xf] }
  0xcc   :  { %11307 = vrcp.f32 %v11843_v49  ;;  %1337 = vmatpush.bf16.msrb.mxu1 %v7875_v21  ;;  %1363 = vmatpush.bf16.msra.mxu3 %v7883_v33  ;;  %v519_v17 = vand.u32 2147483647, %v11843_v49  ;;  %v10579_v21 = vld [vmem:[#allocation6 + $0xcc] sm:$0xf]  ;;  %v521_v38 = vand.u32 2147483648, %v11843_v49  ;;  %vm515_vm2 = vweird.f32 %v11843_v49 }
  0xcd   :  { %v11846_v2 = vpop.f32.mrf.mxu2  ;;  %1037 = vmatpush.bf16.msrb.mxu2 %v7624_v55  ;;  %v7608_v34 = vor.u32 %v10579_v21, %v7605_v23  ;;  %v10635_v21 = vld [vmem:[#allocation4 + $0x8c] sm:$0xf]  ;;  %v7832_v23 = vld [vmem:[#allocation4 + $0x98] sm:$0xf0]  ;;  %v10689_v18 = vld [vmem:[#allocation6 + $0x134] sm:$0xf0] }
  0xce   :  { %12970 = vst [vmem:[#allocation13_spill] sm:$0xff] %v11846_v2  ;;  %v11848_v14 = vpop.f32.mrf.mxu3  ;;  %1011 = vmatpush.bf16.msrb.mxu0 %v7620_v54  ;;  %vm520_vm4 = vcmp.eq.f32.partialorder %v519_v17, 8.507059e+37  ;;  %v10675_v2 = vld [vmem:[#allocation6 + $0xcc] sm:$0xf] }
  0xcf   :  { %12971 = vst [vmem:[#allocation14_spill] sm:$0xff] %v11848_v14  ;;  %v182_v20 = vpop.f32.mrf.mxu1 }
  0xd0   :  { %v11851_v32 = vadd.f32 %v182_v20, %v11802_v16  ;;  %v7604_v20 = vor.u32 %v10581_v13, %v7603_v11  ;;  %1338 = vmatpush.bf16.msrb.mxu1 %v7859_v7  ;;  %1364 = vmatpush.bf16.msra.mxu3 %v7867_v19  ;;  %v7589_v7 = vld [vmem:[#allocation6 + $0xb8] sm:$0xf0]  ;;  %v7824_v11 = vld [vmem:[#allocation4 + $0x90] sm:$0xf0] }
  0xd1   :  { %1038 = vmatpush.bf16.msrb.mxu2 %v7608_v34  ;;  %v7827_v19 = vor.u32 %v10634_v9, %v7824_v11  ;;  %v7571_v34 = vld [vmem:[#allocation6 + $0x88] sm:$0xf]  ;;  %v10569_v9 = vld [vmem:[#allocation6 + $0x74] sm:$0xf0]  ;;  %v10567_v11 = vld [vmem:[#allocation6 + $0x6c] sm:$0xf] }
  0xd2   :  { %v11853_v53 = vpop.eup %11307  ;;  %1012 = vmatpush.bf16.msrb.mxu0 %v7604_v20 }
  0xd3   :  { %v511_v3 = vmul.f32 %v11853_v53, %v11843_v49  ;;  %vm516_vm1 = vweird.f32 %v11853_v53  ;;  %v7572_v49 = vor.u32 %v10573_v35, %v7571_v34 }
  0xd4   :  { %1339 = vmatpush.bf16.msrb.mxu1 %v7843_v45  ;;  %vm517_vm3 = vmor %vm515_vm2, %vm516_vm1  ;;  %1365 = vmatpush.bf16.msra.mxu3 %v7851_v56  ;;  %v10630_v45 = vld [vmem:[#allocation4 + $0x64] sm:$0xf] }
  0xd5   :  { %v512_v31 = vsub.f32 1.0, %v511_v3  ;;  %v484_v33 = vpop.f32.mrf.mxu2  ;;  %v10575_v3 = vld [vmem:[#allocation6 + $0xac] sm:$0xf]  ;;  %v7811_v17 = vor.u32 %v10630_v45, %v7808_v46  ;;  %v10622_v46 = vld [vmem:[#allocation4 + $0x24] sm:$0xf] }
  0xd6   :  { %v503_v4 = vadd.f32 %v484_v33, %v197_v15  ;;  %v497_v42 = vpop.f32.mrf.mxu3  ;;  %v7592_v15 = vor.u32 %v10575_v3, %v7589_v7  ;;  %1013 = vmatpush.bf16.msrb.mxu0 %v7588_v57  ;;  %v7555_v7 = vld [vmem:[#allocation6 + $0x68] sm:$0xf] }
  0xd7   :  { %v513_v54 = vmul.f32 %v11853_v53, %v512_v31  ;;  %v504_v5 = vadd.f32 %v497_v42, %v226_v25  ;;  %v11867_v55 = vpop.f32.mrf.mxu1  ;;  %v522_v25 = vor.u32 1.1754944e-38, %v521_v38  ;;  %v7835_v31 = vor.u32 %v10635_v21, %v7832_v23  ;;  %v7573_v42 = vld [vmem:[#allocation6 + $0x98] sm:$0xf0]  ;;  %v10631_v38 = vld [vmem:[#allocation4 + $0x6c] sm:$0xf] }
  0xd8   :  { %12972 = vst [vmem:[#allocation15_spill] sm:$0xff] %v11867_v55  ;;  %11309 = vtanh.f32 %v503_v4  ;;  %1039 = vmatpush.bf16.msrb.mxu2 %v7592_v15  ;;  %1340 = vmatpush.bf16.msrb.mxu1 %v7827_v19  ;;  %v7556_v15 = vor.u32 %v10569_v9, %v7555_v7  ;;  %v7557_v19 = vld [vmem:[#allocation6 + $0x78] sm:$0xf0]  ;;  %v10626_v21 = vld [vmem:[#allocation4 + $0x44] sm:$0xf] }
  0xd9   :  { %v514_v13 = vadd.f32 %v11853_v53, %v513_v54  ;;  %v7496_v20 = vmul.f32 -1.442695, %v504_v5  ;;  %v7576_v54 = vor.u32 %v10571_v36, %v7573_v42  ;;  %v7816_v5 = vld [vmem:[#allocation4 + $0x78] sm:$0xf0]  ;;  %1366 = vmatpush.bf16.msra.mxu3 %v7835_v31  ;;  %v7792_v23 = vld [vmem:[#allocation4 + $0x50] sm:$0xf0] }
  0xda   :  { %v7819_v1 = vor.u32 %v10631_v38, %v7816_v5  ;;  %1014 = vmatpush.bf16.msrb.mxu0 %v7572_v49  ;;  %v7800_v31 = vld [vmem:[#allocation4 + $0x58] sm:$0xf0]  ;;  %v7539_v36 = vld [vmem:[#allocation6 + $0x48] sm:$0xf]  ;;  %v10563_v42 = vld [vmem:[#allocation6 + $0x4c] sm:$0xf] }
  0xdb   :  { %v518_v33 = vsel %vm517_vm3, %v11853_v53, %v514_v13  ;;  %v168_v53 = vadd.f32 %v11783_v28, %v11802_v16  ;;  %11311 = vpow2.f32 %v7496_v20  ;;  %v7795_v28 = vor.u32 %v10626_v21, %v7792_v23  ;;  %v7541_v20 = vld [vmem:[#allocation6 + $0x58] sm:$0xf0]  ;;  %v10619_v23 = vld [vmem:[#allocation4 + $0xc] sm:$0xf]  ;;  %v8041_v55 = vld [vmem:[#allocation6 + $0x128] sm:$0xf] }
  0xdc   :  { %v523_v4 = vsel %vm520_vm4, %v522_v25, %v518_v33  ;;  %1040 = vmatpush.bf16.msrb.mxu2 %v7576_v54  ;;  %1341 = vmatpush.bf16.msrb.mxu1 %v7811_v17  ;;  %v7560_v25 = vor.u32 %v10567_v11, %v7557_v19  ;;  %v10627_v33 = vld [vmem:[#allocation4 + $0x4c] sm:$0xf]  ;;  %v7544_v45 = vor.u32 %v10563_v42, %v7541_v20  ;;  %v7784_v5 = vld [vmem:[#allocation4 + $0x38] sm:$0xf0]  ;;  %v10618_v11 = vld [vmem:[#allocation4 + $0x4] sm:$0xf] }
  0xdd   :  { %v486_v52 = vpop.f32.mrf.mxu2  ;;  %1367 = vmatpush.bf16.msra.mxu3 %v7819_v1  ;;  %v7803_v35 = vor.u32 %v10627_v33, %v7800_v31  ;;  %v10623_v54 = vld [vmem:[#allocation4 + $0x2c] sm:$0xf]  ;;  %v10561_v1 = vld [vmem:[#allocation6 + $0x34] sm:$0xf0]  ;;  %v7525_v9 = vld [vmem:[#allocation6 + $0x38] sm:$0xf0] }
  0xde   :  { %v11310_v56 = vpop.eup %11309  ;;  %v499_v61 = vpop.f32.mrf.mxu3  ;;  %1015 = vmatpush.bf16.msrb.mxu0 %v7556_v15  ;;  %v7776_v52 = vld [vmem:[#allocation4 + $0x30] sm:$0xf0]  ;;  %v7507_v31 = vld [vmem:[#allocation6 + $0x8] sm:$0xf]  ;;  %v7509_v42 = vld [vmem:[#allocation6 + $0x18] sm:$0xf0] }
  0xdf   :  { %v11876_v3 = vmul.f32 %v11310_v56, %v523_v4  ;;  %v471_v57 = vpop.f32.mrf.mxu1  ;;  %v10565_v4 = vld [vmem:[#allocation6 + $0x54] sm:$0xf0]  ;;  %v7779_v38 = vor.u32 %v10622_v46, %v7776_v52  ;;  %v7523_v61 = vld [vmem:[#allocation6 + $0x28] sm:$0xf] }
  0xe0   :  { %v502_v13 = vadd.f32 %v471_v57, %v168_v53  ;;  %1041 = vmatpush.bf16.msrb.mxu2 %v7560_v25  ;;  %1342 = vmatpush.bf16.msrb.mxu1 %v7795_v28  ;;  %v7540_v49 = vor.u32 %v10565_v4, %v7539_v36  ;;  %v7787_v53 = vor.u32 %v10623_v54, %v7784_v5  ;;  %v10559_v57 = vld [vmem:[#allocation6 + $0x2c] sm:$0xf]  ;;  %v7768_v25 = vld [vmem:[#allocation4 + $0x18] sm:$0xf0] }
  0xe1   :  { %v11312_v17 = vpop.eup %11311  ;;  %1368 = vmatpush.bf16.msra.mxu3 %v7803_v35  ;;  %v7524_v7 = vor.u32 %v10561_v1, %v7523_v61  ;;  %v7528_v19 = vor.u32 %v10559_v57, %v7525_v9  ;;  %v7771_v28 = vor.u32 %v10619_v23, %v7768_v25  ;;  %v10555_v35 = vld [vmem:[#allocation6 + $0xc] sm:$0xf] }
  0xe2   :  { %v7495_v34 = vmul.f32 -1.442695, %v502_v13  ;;  %1016 = vmatpush.bf16.msrb.mxu0 %v7540_v49  ;;  %v7760_v13 = vld [vmem:[#allocation4 + $0x10] sm:$0xf0]  ;;  %v548_v15 = vadd.f32 1.0, %v11312_v17  ;;  %v7512_v20 = vor.u32 %v10555_v35, %v7509_v42 }
  0xe3   :  { %v7763_v21 = vor.u32 %v10618_v11, %v7760_v13  ;;  %v7878_v35 = vld [vmem:[#allocation4 + $0xe8] sm:$0xf] }
  0xe4   :  { %11313 = vpow2.f32 %v7495_v34  ;;  %1042 = vmatpush.bf16.msrb.mxu2 %v7544_v45  ;;  %1343 = vmatpush.bf16.msrb.mxu1 %v7779_v38  ;;  %v10557_v34 = vld [vmem:[#allocation6 + $0x14] sm:$0xf0]  ;;  %vm554_vm10 = vweird.f32 %v548_v15 }
  0xe5   :  { %1369 = vmatpush.bf16.msra.mxu3 %v7787_v53  ;;  %v7508_v4 = vor.u32 %v10557_v34, %v7507_v31  ;;  %11315 = vrcp.f32 %v548_v15  ;;  %v10648_v34 = vld [vmem:[#allocation4 + $0xec] sm:$0xf0] }
  0xe6   :  { %1017 = vmatpush.bf16.msrb.mxu0 %v7524_v7 }
  0xe7   :  { %v473_v56 = vpop.f32.mrf.mxu1 }
  0xe8   :  { %1043 = vmatpush.bf16.msrb.mxu2 %v7528_v19  ;;  %1344 = vmatpush.bf16.msrb.mxu1 %v7763_v21  ;;  %v560_v19 = vand.u32 2147483648, %v548_v15  ;;  %v558_v21 = vand.u32 2147483647, %v548_v15 }
  0xe9   :  { %1370 = vmatpush.bf16.msra.mxu3 %v7771_v28  ;;  %v7870_v28 = vld [vmem:[#allocation4 + $0xe0] sm:$0xf] }
  0xea   :  { %v11314_v33 = vpop.eup %11313  ;;  %1018 = vmatpush.bf16.msrb.mxu0 %v7508_v4  ;;  %v561_v25 = vor.u32 1.1754944e-38, %v560_v19  ;;  %vm559_vm12 = vcmp.eq.f32.partialorder %v558_v21, 8.507059e+37  ;;  %v7871_v42 = vor.u32 %v10648_v34, %v7870_v28  ;;  %v7806_v21 = vld [vmem:[#allocation4 + $0x60] sm:$0xf]  ;;  %v10633_v28 = vld [vmem:[#allocation4 + $0x74] sm:$0xf0] }
  0xeb   :  { %v528_v36 = vadd.f32 1.0, %v11314_v33  ;;  %v11316_v49 = vpop.eup %11315  ;;  %v7790_v34 = vld [vmem:[#allocation4 + $0x40] sm:$0xf] }
  0xec   :  { %1044 = vmatpush.bf16.msrb.mxu2 %v7512_v20  ;;  %v550_v52 = vmul.f32 %v11316_v49, %v548_v15  ;;  %vm555_vm9 = vweird.f32 %v11316_v49 }
  0xed   :  { %11317 = vrcp.f32 %v528_v36  ;;  %v540_v17 = vand.u32 2147483648, %v528_v36  ;;  %v538_v5 = vand.u32 2147483647, %v528_v36  ;;  %vm534_vm6 = vweird.f32 %v528_v36  ;;  %vm556_vm11 = vmor %vm554_vm10, %vm555_vm9 }
  0xee   :  { %v551_v56 = vsub.f32 1.0, %v550_v52  ;;  %v7862_v52 = vld [vmem:[#allocation4 + $0xc8] sm:$0xf] }
  0xef   :  { %v541_v61 = vor.u32 1.1754944e-38, %v540_v17  ;;  %vm539_vm8 = vcmp.eq.f32.partialorder %v538_v5, 8.507059e+37  ;;  %v7838_v17 = vld [vmem:[#allocation4 + $0xa0] sm:$0xf]  ;;  %v7846_v5 = vld [vmem:[#allocation4 + $0xa8] sm:$0xf] }
  0xf0   :  { %v552_v57 = vmul.f32 %v11316_v49, %v551_v56  ;;  %v10641_v56 = vld [vmem:[#allocation4 + $0xb4] sm:$0xf0] }
  0xf2   :  { %v553_v13 = vadd.f32 %v11316_v49, %v552_v57  ;;  %v10636_v57 = vld [vmem:[#allocation4 + $0x8c] sm:$0xf0] }
  0xf3   :  { %v11318_v45 = vpop.eup %11317 }
  0xf4   :  { %v530_v46 = vmul.f32 %v11318_v45, %v528_v36  ;;  %vm535_vm5 = vweird.f32 %v11318_v45  ;;  %v557_v23 = vsel %vm556_vm11, %v11316_v49, %v553_v13  ;;  %v10649_v36 = vld [vmem:[#allocation4 + $0xf4] sm:$0xf0] }
  0xf5   :  { %vm536_vm7 = vmor %vm534_vm6, %vm535_vm5  ;;  %v562_v31 = vsel %vm559_vm12, %v561_v25, %v557_v23  ;;  %v7879_v20 = vor.u32 %v10649_v36, %v7878_v35  ;;  %v10632_v23 = vld [vmem:[#allocation4 + $0x6c] sm:$0xf0]  ;;  %v7814_v25 = vld [vmem:[#allocation4 + $0x68] sm:$0xf] }
  0xf6   :  { %v531_v54 = vsub.f32 1.0, %v530_v46  ;;  %v10644_v46 = vld [vmem:[#allocation4 + $0xcc] sm:$0xf0]  ;;  %v7798_v36 = vld [vmem:[#allocation4 + $0x48] sm:$0xf] }
  0xf7   :  { %v10628_v35 = vld [vmem:[#allocation4 + $0x4c] sm:$0xf0] }
  0xf8   :  { %v532_v38 = vmul.f32 %v11318_v45, %v531_v54  ;;  %v10645_v54 = vld [vmem:[#allocation4 + $0xd4] sm:$0xf0] }
  0xf9   :  { %v7863_v49 = vor.u32 %v10645_v54, %v7862_v52  ;;  %v7782_v52 = vld [vmem:[#allocation4 + $0x28] sm:$0xf]  ;;  %v10625_v54 = vld [vmem:[#allocation4 + $0x34] sm:$0xf0] }
  0xfa   :  { %v533_v53 = vadd.f32 %v11318_v45, %v532_v38  ;;  %v10640_v38 = vld [vmem:[#allocation4 + $0xac] sm:$0xf0] }
  0xfc   :  { %v537_v1 = vsel %vm536_vm7, %v11318_v45, %v533_v53  ;;  %v7854_v45 = vld [vmem:[#allocation4 + $0xc0] sm:$0xf]  ;;  %v7839_v53 = vor.u32 %v10640_v38, %v7838_v17  ;;  %v10620_v38 = vld [vmem:[#allocation4 + $0xc] sm:$0xf0] }
  0xfd   :  { %v542_v7 = vsel %vm539_vm8, %v541_v61, %v537_v1  ;;  %v7855_v15 = vor.u32 %v10644_v46, %v7854_v45  ;;  %v7847_v61 = vor.u32 %v10641_v56, %v7846_v5  ;;  %v7822_v1 = vld [vmem:[#allocation4 + $0x80] sm:$0xf]  ;;  %v10624_v46 = vld [vmem:[#allocation4 + $0x2c] sm:$0xf0]  ;;  %v7766_v5 = vld [vmem:[#allocation4 + $0x8] sm:$0xf] }
  0xfe   :  { %v564_v9 = vmul.f32 0.0, %v542_v7  ;;  %v7830_v7 = vld [vmem:[#allocation4 + $0x88] sm:$0xf]  ;;  %v7823_v13 = vor.u32 %v10636_v57, %v7822_v1  ;;  %v7774_v45 = vld [vmem:[#allocation4 + $0x20] sm:$0xf]  ;;  %v11892_v1 = vpop.f32.mrf.mxu1 }
  0xff   :  { %v7758_v17 = vld [vmem:[#allocation4] sm:$0xf]  ;;  %v10621_v56 = vld [vmem:[#allocation4 + $0x14] sm:$0xf0] }
 0x100   :  { %v11879_v11 = vadd.f32 %v11876_v3, %v564_v9  ;;  %v10637_v9 = vld [vmem:[#allocation4 + $0x94] sm:$0xf0] }
 0x101   :  { %v7831_v19 = vor.u32 %v10637_v9, %v7830_v7 }
 0x102   :  { %11319 = vtanh.f32 %v11879_v11 }
 0x106   :  { %v983_v7 = vpop.f32.mrf.mxu1 }
 0x108   :  { %v11320_v33 = vpop.eup %11319 }
 0x109   :  { %v568_v4 = vmul.f32 %v11320_v33, %v562_v31  ;;  %v7807_v33 = vor.u32 %v10632_v23, %v7806_v21  ;;  %v7815_v31 = vor.u32 %v10633_v28, %v7814_v25  ;;  %v8129_v25 = vld [vmem:[#allocation6 + $0x1e0] sm:$0xf]  ;;  %v10712_v28 = vld [vmem:[#allocation6 + $0x1ec] sm:$0xf0] }
 0x10b   :  { %v11882_v3 = vpack.c.bf16 %v568_v4, %v568_v4  ;;  %v10629_v4 = vld [vmem:[#allocation4 + $0x54] sm:$0xf0] }
 0x10d   :  { %967 = vmatmul.bf16.vlgmr.msra.gmra.mxu0 %v11882_v3  ;;  %993 = vmatmul.bf16.vlgmr.msra.gmra.mxu2 %v11882_v3 }
 0x10e   :  { %1345 = vmatmul.bf16.vlgmr.msrb.gmra.mxu1 %v11882_v3  ;;  %1371 = vmatmul.bf16.vlgmr.msra.gmra.mxu3 %v11882_v3 }
 0x10f   :  { %1324 = vmatpush.bf16.msra.mxu0 %v7871_v42  ;;  %1350 = vmatpush.bf16.msra.mxu2 %v7879_v20  ;;  %v7791_v42 = vor.u32 %v10628_v35, %v7790_v34  ;;  %v7799_v20 = vor.u32 %v10629_v4, %v7798_v36  ;;  %v8131_v34 = vld [vmem:[#allocation6 + $0x1f0] sm:$0xf0]  ;;  %v10708_v36 = vld [vmem:[#allocation6 + $0x1cc] sm:$0xf0]  ;;  %v10706_v4 = vld [vmem:[#allocation6 + $0x1c4] sm:$0xf] }
 0x113   :  { %1325 = vmatpush.bf16.msra.mxu0 %v7855_v15  ;;  %1351 = vmatpush.bf16.msra.mxu2 %v7863_v49  ;;  %v7775_v15 = vor.u32 %v10624_v46, %v7774_v45  ;;  %v7783_v49 = vor.u32 %v10625_v54, %v7782_v52  ;;  %v8097_v46 = vld [vmem:[#allocation6 + $0x1a0] sm:$0xf]  ;;  %v10704_v52 = vld [vmem:[#allocation6 + $0x1ac] sm:$0xf0]  ;;  %v10702_v54 = vld [vmem:[#allocation6 + $0x1a4] sm:$0xf] }
 0x117   :  { %1326 = vmatpush.bf16.msra.mxu0 %v7839_v53  ;;  %1352 = vmatpush.bf16.msra.mxu2 %v7847_v61  ;;  %v7759_v53 = vor.u32 %v10620_v38, %v7758_v17  ;;  %v7767_v61 = vor.u32 %v10621_v56, %v7766_v5  ;;  %v8081_v38 = vld [vmem:[#allocation6 + $0x180] sm:$0xf]  ;;  %v10700_v5 = vld [vmem:[#allocation6 + $0x18c] sm:$0xf0]  ;;  %v10698_v56 = vld [vmem:[#allocation6 + $0x184] sm:$0xf] }
 0x11b   :  { %1327 = vmatpush.bf16.msra.mxu0 %v7823_v13  ;;  %1353 = vmatpush.bf16.msra.mxu2 %v7831_v19  ;;  %v11894_v57 = vpop.f32.mrf.mxu3 }
 0x11d   :  { %1019 = vmatmul.bf16.vlgmr.msrb.gmra.mxu0 %v11882_v3  ;;  %1045 = vmatmul.bf16.vlgmr.msrb.gmra.mxu2 %v11882_v3 }
 0x11f   :  { %1328 = vmatpush.bf16.msra.mxu0 %v7807_v33  ;;  %1354 = vmatpush.bf16.msra.mxu2 %v7815_v31  ;;  %v10710_v33 = vld [vmem:[#allocation6 + $0x1e4] sm:$0xf]  ;;  %v8130_v31 = vor.u32 %v10712_v28, %v8129_v25  ;;  %v8067_v28 = vld [vmem:[#allocation6 + $0x170] sm:$0xf0] }
 0x120   :  { %v8134_v35 = vor.u32 %v10710_v33, %v8131_v34  ;;  %v10680_v34 = vld [vmem:[#allocation6 + $0xec] sm:$0xf0] }
 0x121   :  { %1846 = vmatpush.bf16.msra.mxu1 %v8130_v31  ;;  %v8001_v31 = vld [vmem:[#allocation6 + $0xe0] sm:$0xf] }
 0x122   :  { %1872 = vmatpush.bf16.msrb.mxu3 %v8134_v35  ;;  %v10678_v35 = vld [vmem:[#allocation6 + $0xe4] sm:$0xf] }
 0x123   :  { %1329 = vmatpush.bf16.msra.mxu0 %v7791_v42  ;;  %1355 = vmatpush.bf16.msra.mxu2 %v7799_v20  ;;  %v1009_v9 = vpop.f32.mrf.mxu3  ;;  %v8115_v20 = vld [vmem:[#allocation6 + $0x1d0] sm:$0xf0] }
 0x124   :  { %v8118_v45 = vor.u32 %v10706_v4, %v8115_v20  ;;  %v8065_v9 = vld [vmem:[#allocation6 + $0x160] sm:$0xf] }
 0x125   :  { %v8049_v4 = vld [vmem:[#allocation6 + $0x140] sm:$0xf] }
 0x126   :  { %1873 = vmatpush.bf16.msrb.mxu3 %v8118_v45 }
 0x127   :  { %1330 = vmatpush.bf16.msra.mxu0 %v7775_v15  ;;  %1356 = vmatpush.bf16.msra.mxu2 %v7783_v49  ;;  %v8098_v15 = vor.u32 %v10704_v52, %v8097_v46  ;;  %v8099_v49 = vld [vmem:[#allocation6 + $0x1b0] sm:$0xf0]  ;;  %v10690_v46 = vld [vmem:[#allocation6 + $0x144] sm:$0xf] }
 0x128   :  { %v8102_v17 = vor.u32 %v10702_v54, %v8099_v49  ;;  %v8051_v52 = vld [vmem:[#allocation6 + $0x150] sm:$0xf0]  ;;  %v11903_v54 = vld [vmem:[%s12963_s5] sm:$0xf] }
 0x129   :  { %v7985_v49 = vld [vmem:[#allocation6 + $0xc0] sm:$0xf] }
 0x12a   :  { %1874 = vmatpush.bf16.msrb.mxu3 %v8102_v17  ;;  %v10676_v17 = vld [vmem:[#allocation6 + $0xcc] sm:$0xf0] }
 0x12b   :  { %1331 = vmatpush.bf16.msra.mxu0 %v7759_v53  ;;  %1357 = vmatpush.bf16.msra.mxu2 %v7767_v61  ;;  %v8082_v53 = vor.u32 %v10700_v5, %v8081_v38  ;;  %v8083_v61 = vld [vmem:[#allocation6 + $0x190] sm:$0xf0]  ;;  %v10674_v38 = vld [vmem:[#allocation6 + $0xc4] sm:$0xf]  ;;  %v7986_v5 = vor.u32 %v10676_v17, %v7985_v49  ;;  %v10713_v17 = vld [vmem:[#allocation6 + $0x1f4] sm:$0xf0] }
 0x12c   :  { %v8086_v7 = vor.u32 %v10698_v56, %v8083_v61  ;;  %v7987_v56 = vld [vmem:[#allocation6 + $0xd0] sm:$0xf0]  ;;  %v10688_v61 = vld [vmem:[#allocation6 + $0x12c] sm:$0xf0] }
 0x12e   :  { %1332 = vmatmul.bf16.vlgmr.msra.gmra.mxu0 %v11882_v3  ;;  %1358 = vmatmul.bf16.vlgmr.msra.gmra.mxu2 %v11882_v3  ;;  %v8113_v3 = vld [vmem:[#allocation6 + $0x1c0] sm:$0xf] }
 0x12f   :  { %v8114_v42 = vor.u32 %v10708_v36, %v8113_v3  ;;  %1875 = vmatpush.bf16.msrb.mxu3 %v8086_v7  ;;  %v8002_v3 = vor.u32 %v10680_v34, %v8001_v31  ;;  %v8003_v36 = vld [vmem:[#allocation6 + $0xf0] sm:$0xf0]  ;;  %v7990_v7 = vor.u32 %v10674_v38, %v7987_v56  ;;  %v10672_v31 = vld [vmem:[#allocation6 + $0xac] sm:$0xf0]  ;;  %v10670_v34 = vld [vmem:[#allocation6 + $0xa4] sm:$0xf] }
 0x130   :  { %v8006_v20 = vor.u32 %v10678_v35, %v8003_v36  ;;  %v8017_v36 = vld [vmem:[#allocation6 + $0x100] sm:$0xf]  ;;  %v10711_v38 = vld [vmem:[#allocation6 + $0x1ec] sm:$0xf] }
 0x131   :  { %1847 = vmatpush.bf16.msra.mxu1 %v8114_v42  ;;  %v10692_v42 = vld [vmem:[#allocation6 + $0x14c] sm:$0xf0]  ;;  %1833 = vmatpush.bf16.msrb.mxu0 %v8002_v3  ;;  %v7971_v3 = vld [vmem:[#allocation6 + $0xb0] sm:$0xf0] }
 0x132   :  { %v8050_v45 = vor.u32 %v10692_v42, %v8049_v4  ;;  %1859 = vmatpush.bf16.msrb.mxu2 %v8006_v20  ;;  %v10684_v4 = vld [vmem:[#allocation6 + $0x10c] sm:$0xf0]  ;;  %v7974_v42 = vor.u32 %v10670_v34, %v7971_v3  ;;  %v8121_v3 = vld [vmem:[#allocation6 + $0x1c8] sm:$0xf] }
 0x133   :  { %v8018_v20 = vor.u32 %v10684_v4, %v8017_v36  ;;  %v10709_v36 = vld [vmem:[#allocation6 + $0x1d4] sm:$0xf0]  ;;  %v10707_v4 = vld [vmem:[#allocation6 + $0x1cc] sm:$0xf] }
 0x135   :  { %1848 = vmatpush.bf16.msra.mxu1 %v8098_v15  ;;  %v8054_v15 = vor.u32 %v10690_v46, %v8051_v52  ;;  %1834 = vmatpush.bf16.msrb.mxu0 %v7986_v5  ;;  %v8019_v46 = vld [vmem:[#allocation6 + $0x110] sm:$0xf0]  ;;  %v8137_v52 = vld [vmem:[#allocation6 + $0x1e8] sm:$0xf]  ;;  %v8139_v5 = vld [vmem:[#allocation6 + $0x1f8] sm:$0xf0] }
 0x136   :  { %1860 = vmatpush.bf16.msrb.mxu2 %v7990_v7  ;;  %v8142_v7 = vor.u32 %v10711_v38, %v8139_v5  ;;  %v10662_v38 = vld [vmem:[#allocation6 + $0x64] sm:$0xf]  ;;  %v7939_v5 = vld [vmem:[#allocation6 + $0x70] sm:$0xf0] }
 0x139   :  { %1849 = vmatpush.bf16.msra.mxu1 %v8082_v53  ;;  %v8033_v53 = vld [vmem:[#allocation6 + $0x120] sm:$0xf] }
 0x13a   :  { %1861 = vmatpush.bf16.msrb.mxu2 %v7974_v42  ;;  %v8122_v42 = vor.u32 %v10709_v36, %v8121_v3 }
 0x148   :  { %v11896_v13 = vpop.f32.mrf.mxu1 }
 0x14e   :  { %v11898_v19 = vpop.f32.mrf.mxu3 }
 0x150   :  { %v1035_v21 = vpop.f32.mrf.mxu1 }
 0x151   :  { %v10696_v21 = vld [vmem:[#allocation6 + $0x16c] sm:$0xf0] }
 0x152   :  { %v8066_v25 = vor.u32 %v10696_v21, %v8065_v9  ;;  %v8034_v9 = vor.u32 %v10688_v61, %v8033_v53  ;;  %v10686_v21 = vld [vmem:[#allocation6 + $0x124] sm:$0xf]  ;;  %v8138_v61 = vor.u32 %v10713_v17, %v8137_v52  ;;  %v7937_v52 = vld [vmem:[#allocation6 + $0x60] sm:$0xf] }
 0x154   :  { %1850 = vmatpush.bf16.msra.mxu1 %v8066_v25  ;;  %v11906_v25 = vperm.slane %v11903_v54, 0 }
 0x156   :  { %v1061_v23 = vpop.f32.mrf.mxu3 }
 0x157   :  { %v10694_v23 = vld [vmem:[#allocation6 + $0x164] sm:$0xf] }
 0x158   :  { %v8070_v33 = vor.u32 %v10694_v23, %v8067_v28  ;;  %1851 = vmatpush.bf16.msra.mxu1 %v8050_v45  ;;  %v8035_v23 = vld [vmem:[#allocation6 + $0x130] sm:$0xf0]  ;;  %v10682_v45 = vld [vmem:[#allocation6 + $0x104] sm:$0xf] }
 0x159   :  { %v8038_v28 = vor.u32 %v10686_v21, %v8035_v23  ;;  %v8022_v49 = vor.u32 %v10682_v45, %v8019_v46  ;;  %v10668_v21 = vld [vmem:[#allocation6 + $0x8c] sm:$0xf0]  ;;  %v10666_v23 = vld [vmem:[#allocation6 + $0x84] sm:$0xf] }
 0x15a   :  { %1876 = vmatpush.bf16.msrb.mxu3 %v8070_v33  ;;  %v7969_v33 = vld [vmem:[#allocation6 + $0xa0] sm:$0xf] }
 0x15b   :  { %v7970_v35 = vor.u32 %v10672_v31, %v7969_v33  ;;  %v7955_v31 = vld [vmem:[#allocation6 + $0x90] sm:$0xf0] }
 0x15c   :  { %1852 = vmatpush.bf16.msra.mxu1 %v8034_v9  ;;  %v7953_v9 = vld [vmem:[#allocation6 + $0x80] sm:$0xf] }
 0x15d   :  { %1835 = vmatpush.bf16.msrb.mxu0 %v7970_v35  ;;  %v7954_v33 = vor.u32 %v10668_v21, %v7953_v9  ;;  %v7958_v35 = vor.u32 %v10666_v23, %v7955_v31  ;;  %v8105_v9 = vld [vmem:[#allocation6 + $0x1a8] sm:$0xf]  ;;  %v10705_v21 = vld [vmem:[#allocation6 + $0x1b4] sm:$0xf0]  ;;  %v10703_v23 = vld [vmem:[#allocation6 + $0x1ac] sm:$0xf] }
 0x15e   :  { %1877 = vmatpush.bf16.msrb.mxu3 %v8054_v15  ;;  %v8106_v31 = vor.u32 %v10705_v21, %v8105_v9  ;;  %v10656_v9 = vld [vmem:[#allocation6 + $0x2c] sm:$0xf0] }
 0x15f   :  { %1862 = vmatpush.bf16.msrb.mxu2 %v7958_v35 }
 0x160   :  { %1853 = vmatpush.bf16.msra.mxu1 %v8018_v20  ;;  %v8123_v20 = vld [vmem:[#allocation6 + $0x1d8] sm:$0xf0] }
 0x161   :  { %1836 = vmatpush.bf16.msrb.mxu0 %v7954_v33  ;;  %v8126_v46 = vor.u32 %v10707_v4, %v8123_v20  ;;  %v7921_v4 = vld [vmem:[#allocation6 + $0x40] sm:$0xf]  ;;  %v10660_v20 = vld [vmem:[#allocation6 + $0x4c] sm:$0xf0] }
 0x162   :  { %1878 = vmatpush.bf16.msrb.mxu3 %v8038_v28  ;;  %v11910_v28 = vperm.slane %v11903_v54, 1 }
 0x164   :  { %1898 = vmatpush.bf16.msrb.mxu1 %v8138_v61 }
 0x166   :  { %1879 = vmatpush.bf16.msrb.mxu3 %v8022_v49 }
 0x168   :  { %1899 = vmatpush.bf16.msrb.mxu1 %v8122_v42  ;;  %v7923_v42 = vld [vmem:[#allocation6 + $0x50] sm:$0xf0] }
 0x16a   :  { %1924 = vmatpush.bf16.msra.mxu3 %v8142_v7  ;;  %v7942_v7 = vor.u32 %v10662_v38, %v7939_v5  ;;  %v10701_v38 = vld [vmem:[#allocation6 + $0x194] sm:$0xf0]  ;;  %v10699_v5 = vld [vmem:[#allocation6 + $0x18c] sm:$0xf] }
 0x16c   :  { %1863 = vmatpush.bf16.msrb.mxu2 %v7942_v7  ;;  %1900 = vmatpush.bf16.msrb.mxu1 %v8106_v31  ;;  %v7905_v7 = vld [vmem:[#allocation6 + $0x20] sm:$0xf]  ;;  %v10654_v31 = vld [vmem:[#allocation6 + $0x24] sm:$0xf] }
 0x16e   :  { %1925 = vmatpush.bf16.msra.mxu3 %v8126_v46 }
 0x18a   :  { %v968_v15 = vpop.f32.mrf.mxu0 }
 0x18b   :  { %v969_v56 = vadd.f32 %v968_v15, %v11906_v25  ;;  %v1346_v53 = vpop.f32.mrf.mxu1  ;;  %v10664_v15 = vld [vmem:[#allocation6 + $0x6c] sm:$0xf0] }
 0x18c   :  { %v7938_v49 = vor.u32 %v10664_v15, %v7937_v52  ;;  %v7922_v52 = vor.u32 %v10660_v20, %v7921_v4  ;;  %v10695_v20 = vld [vmem:[#allocation6 + $0x16c] sm:$0xf] }
 0x18d   :  { %v982_v34 = vadd.f32 %v11892_v1, %v969_v56  ;;  %v170_v1 = vadd.f32 %v11799_v48, %v11802_v16 }
 0x18e   :  { %1837 = vmatpush.bf16.msrb.mxu0 %v7938_v49 }
 0x18f   :  { %v7753_v45 = vmul.f32 -1.442695, %v982_v34  ;;  %v8107_v34 = vld [vmem:[#allocation6 + $0x1b8] sm:$0xf0]  ;;  %v1377_v35 = vadd.f32 %v1346_v53, %v170_v1 }
 0x190   :  { %v994_v17 = vpop.f32.mrf.mxu2  ;;  %v8110_v48 = vor.u32 %v10703_v23, %v8107_v34  ;;  %v8091_v53 = vld [vmem:[#allocation6 + $0x198] sm:$0xf0]  ;;  %v7907_v34 = vld [vmem:[#allocation6 + $0x30] sm:$0xf0] }
 0x191   :  { %11321 = vpow2.f32 %v7753_v45  ;;  %v995_v56 = vadd.f32 %v994_v17, %v11910_v28  ;;  %v11916_v61 = vpop.f32.mrf.mxu3  ;;  %v10658_v45 = vld [vmem:[#allocation6 + $0x44] sm:$0xf]  ;;  %v8089_v17 = vld [vmem:[#allocation6 + $0x188] sm:$0xf]  ;;  %v7910_v4 = vor.u32 %v10654_v31, %v7907_v34  ;;  %v10679_v31 = vld [vmem:[#allocation6 + $0xec] sm:$0xf] }
 0x192   :  { %v970_v33 = vpop.f32.mrf.mxu0  ;;  %1926 = vmatpush.bf16.msra.mxu3 %v8110_v48  ;;  %v7926_v15 = vor.u32 %v10658_v45, %v7923_v42  ;;  %1838 = vmatpush.bf16.msrb.mxu0 %v7922_v52  ;;  %v8090_v49 = vor.u32 %v10701_v38, %v8089_v17  ;;  %v8075_v45 = vld [vmem:[#allocation6 + $0x178] sm:$0xf0]  ;;  %v228_v38 = vadd.f32 %v11778_v22, %v11789_v39 }
 0x193   :  { %v1008_v3 = vadd.f32 %v11894_v57, %v995_v56  ;;  %v1348_v36 = vpop.f32.mrf.mxu1  ;;  %v7885_v57 = vmul.f32 -1.442695, %v1377_v35  ;;  %v8094_v56 = vor.u32 %v10699_v5, %v8091_v53  ;;  %v7906_v33 = vor.u32 %v10656_v9, %v7905_v7  ;;  %v10697_v35 = vld [vmem:[#allocation6 + $0x174] sm:$0xf0]  ;;  %v10650_v5 = vld [vmem:[#allocation6 + $0x4] sm:$0xf] }
 0x194   :  { %1864 = vmatpush.bf16.msrb.mxu2 %v7926_v15  ;;  %1901 = vmatpush.bf16.msrb.mxu1 %v8090_v49  ;;  %v8073_v36 = vld [vmem:[#allocation6 + $0x168] sm:$0xf]  ;;  %v8078_v42 = vor.u32 %v10695_v20, %v8075_v45  ;;  %v10652_v15 = vld [vmem:[#allocation6 + $0xc] sm:$0xf0]  ;;  %v7891_v53 = vld [vmem:[#allocation6 + $0x10] sm:$0xf0] }
 0x195   :  { %v7754_v46 = vmul.f32 -1.442695, %v1008_v3  ;;  %v8074_v52 = vor.u32 %v10697_v35, %v8073_v36  ;;  %v11928_v7 = vperm.slane %v11903_v54, 3  ;;  %v8011_v36 = vld [vmem:[#allocation6 + $0xf8] sm:$0xf0] }
 0x196   :  { %1927 = vmatpush.bf16.msra.mxu3 %v8094_v56  ;;  %1839 = vmatpush.bf16.msrb.mxu0 %v7906_v33  ;;  %v1379_v56 = vadd.f32 %v11916_v61, %v228_v38  ;;  %v10681_v33 = vld [vmem:[#allocation6 + $0xf4] sm:$0xf0]  ;;  %v8057_v35 = vld [vmem:[#allocation6 + $0x148] sm:$0xf]  ;;  %v10691_v45 = vld [vmem:[#allocation6 + $0x14c] sm:$0xf] }
 0x197   :  { %v11322_v1 = vpop.eup %11321  ;;  %11323 = vpow2.f32 %v7754_v46  ;;  %v7889_v46 = vld [vmem:[#allocation6] sm:$0xf]  ;;  %v10693_v61 = vld [vmem:[#allocation6 + $0x154] sm:$0xf0] }
 0x198   :  { %v11919_v21 = vadd.f32 1.0, %v11322_v1  ;;  %v996_v23 = vpop.f32.mrf.mxu2  ;;  %1865 = vmatpush.bf16.msrb.mxu2 %v7910_v4  ;;  %v7890_v49 = vor.u32 %v10652_v15, %v7889_v46  ;;  %1902 = vmatpush.bf16.msrb.mxu1 %v8074_v52  ;;  %v11936_v4 = vperm.slane %v11903_v54, 2  ;;  %v8059_v52 = vld [vmem:[#allocation6 + $0x158] sm:$0xf0]  ;;  %v10677_v38 = vld [vmem:[#allocation6 + $0xd4] sm:$0xf0] }
 0x199   :  { %v1374_v3 = vpop.f32.mrf.mxu3  ;;  %v8009_v23 = vld [vmem:[#allocation6 + $0xe8] sm:$0xf]  ;;  %v8062_v54 = vor.u32 %v10691_v45, %v8059_v52  ;;  %v8042_v45 = vor.u32 %v10689_v18, %v8041_v55 }
 0x19a   :  { %11325 = vrcp.f32 %v11919_v21  ;;  %v1020_v48 = vpop.f32.mrf.mxu0  ;;  %1928 = vmatpush.bf16.msra.mxu3 %v8078_v42  ;;  %1840 = vmatpush.bf16.msrb.mxu0 %v7890_v49  ;;  %v7886_v42 = vmul.f32 -1.442695, %v1379_v56  ;;  %v8010_v15 = vor.u32 %v10681_v33, %v8009_v23  ;;  %v10687_v56 = vld [vmem:[#allocation6 + $0x12c] sm:$0xf]  ;;  %v1078_v23 = vand.u32 2147483647, %v11919_v21 }
 0x19b   :  { %11327 = vpow2.f32 %v7885_v57  ;;  %v7894_v57 = vor.u32 %v10650_v5, %v7891_v53  ;;  %v8014_v53 = vor.u32 %v10679_v31, %v8011_v36  ;;  %v7998_v33 = vor.u32 %v10675_v2, %v7995_v10  ;;  %v8043_v31 = vld [vmem:[#allocation6 + $0x138] sm:$0xf0]  ;;  %v10673_v36 = vld [vmem:[#allocation6 + $0xb4] sm:$0xf0] }
 0x19c   :  { %v8046_v52 = vor.u32 %v10687_v56, %v8043_v31  ;;  %v10685_v10 = vld [vmem:[#allocation6 + $0x114] sm:$0xf0]  ;;  %v141_v2 = vadd.f32 %v11772_v6, %v11761_v59  ;;  %vm1074_vm0 = vweird.f32 %v11919_v21  ;;  %vm1079_vm4 = vcmp.eq.f32.partialorder %v1078_v23, 8.507059e+37 }
 0x19d   :  { %v11324_v17 = vpop.eup %11323  ;;  %1866 = vmatpush.bf16.msrb.mxu2 %v7894_v57  ;;  %v8058_v57 = vor.u32 %v10693_v61, %v8057_v35  ;;  %v10671_v35 = vld [vmem:[#allocation6 + $0xac] sm:$0xf] }
 0x19e   :  { %v11924_v1 = vadd.f32 1.0, %v11324_v17  ;;  %v7993_v17 = vld [vmem:[#allocation6 + $0xc8] sm:$0xf]  ;;  %1885 = vmatpush.bf16.msra.mxu0 %v8010_v15  ;;  %1929 = vmatpush.bf16.msra.mxu3 %v8062_v54 }
 0x19f   :  { %1903 = vmatpush.bf16.msrb.mxu1 %v8058_v57  ;;  %v8025_v15 = vld [vmem:[#allocation6 + $0x108] sm:$0xf] }
 0x1a0   :  { %v11930_v9 = vpop.eup %11325  ;;  %11329 = vrcp.f32 %v11924_v1  ;;  %v1046_v22 = vpop.f32.mrf.mxu2  ;;  %v1097_v18 = vand.u32 2147483647, %v11924_v1  ;;  %v7961_v54 = vld [vmem:[#allocation6 + $0x88] sm:$0xf]  ;;  %vm1093_vm15 = vweird.f32 %v11924_v1 }
 0x1a1   :  { %v11328_v34 = vpop.eup %11327  ;;  %v1070_v3 = vmul.f32 %v11930_v9, %v11919_v21  ;;  %v1047_v46 = vadd.f32 %v1046_v22, %v11928_v7  ;;  %v1021_v22 = vadd.f32 %v1020_v48, %v11936_v4  ;;  %1911 = vmatpush.bf16.msra.mxu2 %v8014_v53  ;;  %11331 = vpow2.f32 %v7886_v42  ;;  %v8027_v42 = vld [vmem:[#allocation6 + $0x118] sm:$0xf0] }
 0x1a2   :  { %v1022_v20 = vpop.f32.mrf.mxu0  ;;  %v11939_v5 = vadd.f32 1.0, %v11328_v34  ;;  %v7977_v34 = vld [vmem:[#allocation6 + $0xa8] sm:$0xf]  ;;  %vm1075_vm13 = vweird.f32 %v11930_v9  ;;  %1930 = vmatpush.bf16.msra.mxu3 %v8046_v52  ;;  %vm1098_vm3 = vcmp.eq.f32.partialorder %v1097_v18, 8.507059e+37  ;;  %v10661_v18 = vld [vmem:[#allocation6 + $0x54] sm:$0xf0] }
 0x1a3   :  { %v1071_v49 = vsub.f32 1.0, %v1070_v3  ;;  %v1060_v14 = vadd.f32 %v11898_v19, %v1047_v46  ;;  %v7994_v20 = vor.u32 %v10677_v38, %v7993_v17  ;;  %v7979_v46 = vld [vmem:[#allocation6 + $0xb8] sm:$0xf0]  ;;  %v1099_v38 = vand.u32 2147483648, %v11924_v1  ;;  %1904 = vmatpush.bf16.msrb.mxu1 %v8042_v45  ;;  %vm11973_vm2 = vmor %vm1074_vm0, %vm1075_vm13 }
 0x1a4   :  { %11333 = vrcp.f32 %v11939_v5  ;;  %v1034_v53 = vadd.f32 %v11896_v13, %v1021_v22  ;;  %v7982_v57 = vor.u32 %v10671_v35, %v7979_v46  ;;  %v8026_v13 = vor.u32 %v10685_v10, %v8025_v15  ;;  %v10665_v46 = vld [vmem:[#allocation6 + $0x74] sm:$0xf0] }
 0x1a5   :  { %v7755_v3 = vmul.f32 -1.442695, %v1060_v14  ;;  %v1072_v61 = vmul.f32 %v11930_v9, %v1071_v49  ;;  %1886 = vmatpush.bf16.msra.mxu0 %v7994_v20  ;;  %v10683_v14 = vld [vmem:[#allocation6 + $0x10c] sm:$0xf]  ;;  %1912 = vmatpush.bf16.msra.mxu2 %v7998_v33  ;;  %v7978_v49 = vor.u32 %v10673_v36, %v7977_v34  ;;  %v10669_v20 = vld [vmem:[#allocation6 + $0x94] sm:$0xf0]  ;;  %vm1409_vm8 = vweird.f32 %v11939_v5 }
 0x1a6   :  { %v11942_v62 = vpop.eup %11329  ;;  %v8030_v22 = vor.u32 %v10683_v14, %v8027_v42  ;;  %v1080_v33 = vand.u32 2147483648, %v11919_v21  ;;  %v7962_v52 = vor.u32 %v10669_v20, %v7961_v54  ;;  %v1100_v10 = vor.u32 1.1754944e-38, %v1099_v38  ;;  %v10663_v14 = vld [vmem:[#allocation6 + $0x6c] sm:$0xf]  ;;  %v7947_v42 = vld [vmem:[#allocation6 + $0x78] sm:$0xf0] }
 0x1a7   :  { %v1089_v19 = vmul.f32 %v11942_v62, %v11924_v1  ;;  %11335 = vpow2.f32 %v7755_v3  ;;  %vm1094_vm14 = vweird.f32 %v11942_v62  ;;  %v1073_v56 = vadd.f32 %v11930_v9, %v1072_v61  ;;  %v7963_v3 = vld [vmem:[#allocation6 + $0x98] sm:$0xf0]  ;;  %1905 = vmatpush.bf16.msrb.mxu1 %v8026_v13  ;;  %v7945_v61 = vld [vmem:[#allocation6 + $0x68] sm:$0xf]  ;;  %v10659_v13 = vld [vmem:[#allocation6 + $0x4c] sm:$0xf] }
 0x1a8   :  { %v1048_v48 = vpop.f32.mrf.mxu2  ;;  %vm11967_vm1 = vmor %vm1093_vm15, %vm1094_vm14  ;;  %11337 = vtanh.f32 %v1034_v53  ;;  %1931 = vmatpush.bf16.msra.mxu3 %v8030_v22  ;;  %v7946_v20 = vor.u32 %v10665_v46, %v7945_v61  ;;  %v7929_v53 = vld [vmem:[#allocation6 + $0x48] sm:$0xf]  ;;  %v7931_v22 = vld [vmem:[#allocation6 + $0x58] sm:$0xf0] }
 0x1a9   :  { %v1090_v17 = vsub.f32 1.0, %v1089_v19  ;;  %v10667_v19 = vld [vmem:[#allocation6 + $0x8c] sm:$0xf]  ;;  %v11332_v48 = vpop.eup %11331  ;;  %1887 = vmatpush.bf16.msra.mxu0 %v7978_v49  ;;  %1913 = vmatpush.bf16.msra.mxu2 %v7982_v57  ;;  %v1081_v49 = vor.u32 1.1754944e-38, %v1080_v33  ;;  %v7934_v23 = vor.u32 %v10659_v13, %v7931_v22  ;;  %v10657_v36 = vld [vmem:[#allocation6 + $0x34] sm:$0xf0] }
 0x1aa   :  { %v11962_v34 = vpop.eup %11333  ;;  %v7966_v1 = vor.u32 %v10667_v19, %v7963_v3  ;;  %v7915_v61 = vld [vmem:[#allocation6 + $0x38] sm:$0xf0] }
 0x1ab   :  { %v1091_v55 = vmul.f32 %v11942_v62, %v1090_v17  ;;  %v1333_v6 = vpop.f32.mrf.mxu0  ;;  %vm1410_vm6 = vweird.f32 %v11962_v34 }
 0x1ac   :  { %v1376_v31 = vadd.f32 %v1333_v6, %v141_v2  ;;  %v11985_v6 = vadd.f32 1.0, %v11332_v48  ;;  %v7930_v48 = vor.u32 %v10661_v18, %v7929_v53  ;;  %v199_v53 = vadd.f32 %v11776_v12, %v11786_v37  ;;  %vm12023_vm10 = vmor %vm1409_vm8, %vm1410_vm6 }
 0x1ad   :  { %v1092_v45 = vadd.f32 %v11942_v62, %v1091_v55  ;;  %v11336_v15 = vpop.eup %11335  ;;  %v1077_v55 = vsel %vm11973_vm2, %v11930_v9, %v1073_v56  ;;  %1888 = vmatpush.bf16.msra.mxu0 %v7962_v52  ;;  %1914 = vmatpush.bf16.msra.mxu2 %v7966_v1  ;;  %v7950_v9 = vor.u32 %v10663_v14, %v7947_v42  ;;  %v7913_v52 = vld [vmem:[#allocation6 + $0x28] sm:$0xf]  ;;  %v10655_v1 = vld [vmem:[#allocation6 + $0x2c] sm:$0xf]  ;;  %v1415_v18 = vand.u32 2147483648, %v11939_v5 }
 0x1ae   :  { %v7884_v35 = vmul.f32 -1.442695, %v1376_v31  ;;  %v11983_v38 = vadd.f32 1.0, %v11336_v15  ;;  %v1082_v56 = vsel %vm1079_vm4, %v1081_v49, %v1077_v55  ;;  %v11338_v3 = vpop.eup %11337  ;;  %v7918_v42 = vor.u32 %v10655_v1, %v7915_v61  ;;  %v7897_v55 = vld [vmem:[#allocation6 + $0x8] sm:$0xf] }
 0x1af   :  { %v1096_v17 = vsel %vm11967_vm1, %v11942_v62, %v1092_v45  ;;  %v1405_v62 = vmul.f32 %v11962_v34, %v11939_v5  ;;  %v1124_v21 = vmul.f32 %v11338_v3, %v1082_v56  ;;  %v10653_v49 = vld [vmem:[#allocation6 + $0x14] sm:$0xf0]  ;;  %v10742_v1 = vld [vmem:[#allocation4 + $0xe4] sm:$0xf]  ;;  %v8262_v61 = vld [vmem:[#allocation4 + $0xf0] sm:$0xf0]  ;;  %vm1429_vm2 = vweird.f32 %v11985_v6 }
 0x1b0   :  { %11339 = vpow2.f32 %v7884_v35  ;;  %v1101_v57 = vsel %vm1098_vm3, %v1100_v10, %v1096_v17  ;;  %v7914_v17 = vor.u32 %v10657_v36, %v7913_v52  ;;  %v1119_v56 = vand.u32 2147483648, %v11983_v38  ;;  %v10734_v52 = vld [vmem:[#allocation4 + $0xa4] sm:$0xf] }
 0x1b1   :  { %v1359_v54 = vpop.f32.mrf.mxu2  ;;  %11341 = vrcp.f32 %v11983_v38  ;;  %v1123_v19 = vmul.f32 0.0, %v1101_v57  ;;  %1889 = vmatpush.bf16.msra.mxu0 %v7946_v20  ;;  %v1406_v45 = vsub.f32 1.0, %v1405_v62  ;;  %1915 = vmatpush.bf16.msra.mxu2 %v7950_v9  ;;  %v10651_v62 = vld [vmem:[#allocation6 + $0xc] sm:$0xf]  ;;  %v7899_v9 = vld [vmem:[#allocation6 + $0x18] sm:$0xf0]  ;;  %v7898_v22 = vor.u32 %v10653_v49, %v7897_v55 }
 0x1b2   :  { %11343 = vrcp.f32 %v11985_v6  ;;  %v1117_v13 = vand.u32 2147483647, %v11983_v38  ;;  %v7902_v12 = vor.u32 %v10651_v62, %v7899_v9  ;;  %vm1113_vm7 = vweird.f32 %v11983_v38 }
 0x1b3   :  { %v1335_v31 = vpop.f32.mrf.mxu0  ;;  %v11995_v15 = vadd.f32 %v1124_v21, %v1123_v19  ;;  %v1407_v14 = vmul.f32 %v11962_v34, %v1406_v45  ;;  %v1413_v45 = vand.u32 2147483647, %v11939_v5  ;;  %v1120_v36 = vor.u32 1.1754944e-38, %v1119_v56  ;;  %v10738_v56 = vld [vmem:[#allocation4 + $0xc4] sm:$0xf] }
 0x1b4   :  { %vm1118_vm11 = vcmp.eq.f32.partialorder %v1117_v13, 8.507059e+37  ;;  %v8265_v9 = vor.u32 %v10742_v1, %v8262_v61  ;;  %v8246_v13 = vld [vmem:[#allocation4 + $0xd0] sm:$0xf0] }
 0x1b5   :  { %1890 = vmatpush.bf16.msra.mxu0 %v7930_v48  ;;  %1916 = vmatpush.bf16.msra.mxu2 %v7934_v23  ;;  %v1408_v3 = vadd.f32 %v11962_v34, %v1407_v14  ;;  %vm1414_vm14 = vcmp.eq.f32.partialorder %v1413_v45, 8.507059e+37  ;;  %v10735_v45 = vld [vmem:[#allocation4 + $0xac] sm:$0xf] }
 0x1b6   :  { %v11340_v33 = vpop.eup %11339 }
 0x1b7   :  { %v11993_v35 = vadd.f32 1.0, %v11340_v33  ;;  %v11342_v46 = vpop.eup %11341  ;;  %v1378_v33 = vadd.f32 %v1359_v54, %v199_v53  ;;  %v1412_v55 = vsel %vm12023_vm10, %v11962_v34, %v1408_v3  ;;  %v8238_v54 = vld [vmem:[#allocation4 + $0xb8] sm:$0xf0] }
 0x1b8   :  { %v1109_v10 = vmul.f32 %v11342_v46, %v11983_v38  ;;  %v12000_v57 = vpop.eup %11343  ;;  %vm1114_vm5 = vweird.f32 %v11342_v46  ;;  %v10743_v38 = vld [vmem:[#allocation4 + $0xec] sm:$0xf] }
 0x1b9   :  { %11345 = vrcp.f32 %v11993_v35  ;;  %v1361_v2 = vpop.f32.mrf.mxu2  ;;  %1891 = vmatpush.bf16.msra.mxu0 %v7914_v17  ;;  %v1425_v19 = vmul.f32 %v12000_v57, %v11985_v6  ;;  %1917 = vmatpush.bf16.msra.mxu2 %v7918_v42  ;;  %vm12017_vm9 = vmor %vm1113_vm7, %vm1114_vm5  ;;  %vm1390_vm13 = vweird.f32 %v11993_v35  ;;  %vm1430_vm1 = vweird.f32 %v12000_v57 }
 0x1ba   :  { %v1110_v20 = vsub.f32 1.0, %v1109_v10  ;;  %11347 = vtanh.f32 %v11995_v15  ;;  %v1416_v10 = vor.u32 1.1754944e-38, %v1415_v18  ;;  %v8270_v2 = vld [vmem:[#allocation4 + $0xf8] sm:$0xf0]  ;;  %vm12049_vm3 = vmor %vm1429_vm2, %vm1430_vm1 }
 0x1bb   :  { %v1426_v14 = vsub.f32 1.0, %v1425_v19  ;;  %11349 = vtanh.f32 %v1378_v33  ;;  %v8273_v18 = vor.u32 %v10743_v38, %v8270_v2  ;;  %v8254_v19 = vld [vmem:[#allocation4 + $0xd8] sm:$0xf0]  ;;  %v8249_v33 = vor.u32 %v10738_v56, %v8246_v13  ;;  %v8198_v56 = vld [vmem:[#allocation4 + $0x70] sm:$0xf0] }
 0x1bc   :  { %v1111_v31 = vmul.f32 %v11342_v46, %v1110_v20  ;;  %v1396_v20 = vand.u32 2147483648, %v11993_v35  ;;  %v1417_v3 = vsel %vm1414_vm14, %v1416_v10, %v1412_v55  ;;  %v8241_v2 = vor.u32 %v10735_v45, %v8238_v54  ;;  %v8214_v55 = vld [vmem:[#allocation4 + $0x90] sm:$0xf0]  ;;  %v10727_v13 = vld [vmem:[#allocation4 + $0x6c] sm:$0xf] }
 0x1bd   :  { %1892 = vmatpush.bf16.msra.mxu0 %v7898_v22  ;;  %1918 = vmatpush.bf16.msra.mxu2 %v7902_v12  ;;  %v10739_v22 = vld [vmem:[#allocation4 + $0xcc] sm:$0xf]  ;;  %v1427_v1 = vmul.f32 %v12000_v57, %v1426_v14  ;;  %v1439_v10 = vmul.f32 %v1417_v3, %v11879_v11  ;;  %v10745_v3 = vld [vmem:[#allocation4 + $0xf4] sm:$0xf0] }
 0x1be   :  { %v1112_v21 = vadd.f32 %v11342_v46, %v1111_v31  ;;  %v1397_v34 = vor.u32 1.1754944e-38, %v1396_v20  ;;  %v10731_v14 = vld [vmem:[#allocation4 + $0x8c] sm:$0xf]  ;;  %v1433_v20 = vand.u32 2147483647, %v11985_v6 }
 0x1bf   :  { %v11346_v48 = vpop.eup %11345 }
 0x1c0   :  { %v1386_v23 = vmul.f32 %v11346_v48, %v11993_v35  ;;  %v1116_v5 = vsel %vm12017_vm9, %v11342_v46, %v1112_v21  ;;  %v11348_v17 = vpop.eup %11347  ;;  %vm1391_vm12 = vweird.f32 %v11346_v48  ;;  %v1394_v46 = vand.u32 2147483647, %v11993_v35  ;;  %v8230_v35 = vld [vmem:[#allocation4 + $0xb0] sm:$0xf0] }
 0x1c1   :  { %v1121_v49 = vsel %vm1118_vm11, %v1120_v36, %v1116_v5  ;;  %vm1392_vm15 = vmor %vm1390_vm13, %vm1391_vm12  ;;  %v11350_v36 = vpop.eup %11349  ;;  %vm1434_vm4 = vcmp.eq.f32.partialorder %v1433_v20, 8.507059e+37  ;;  %v10719_v20 = vld [vmem:[#allocation4 + $0x2c] sm:$0xf] }
 0x1c2   :  { %v1387_v42 = vsub.f32 1.0, %v1386_v23  ;;  %v1127_v62 = vmul.f32 %v11348_v17, %v1121_v49  ;;  %vm1395_vm0 = vcmp.eq.f32.partialorder %v1394_v46, 8.507059e+37  ;;  %v8257_v23 = vor.u32 %v10739_v22, %v8254_v19  ;;  %v10730_v17 = vld [vmem:[#allocation4 + $0x84] sm:$0xf]  ;;  %v8222_v49 = vld [vmem:[#allocation4 + $0x98] sm:$0xf0] }
 0x1c3   :  { %v10726_v46 = vld [vmem:[#allocation4 + $0x64] sm:$0xf]  ;;  %v8206_v22 = vld [vmem:[#allocation4 + $0x78] sm:$0xf0] }
 0x1c4   :  { %v1388_v53 = vmul.f32 %v11346_v48, %v1387_v42  ;;  %v12034_v31 = vpack.c.bf16 %v1127_v62, %v1127_v62  ;;  %v1428_v42 = vadd.f32 %v12000_v57, %v1427_v1  ;;  %v1435_v62 = vand.u32 2147483648, %v11985_v6  ;;  %v10744_v6 = vld [vmem:[#allocation4 + $0xec] sm:$0xf0] }
 0x1c6   :  { %v1389_v21 = vadd.f32 %v11346_v48, %v1388_v53  ;;  %1854 = vmatmul.bf16.vlgmr.msra.gmra.mxu1 %v12034_v31  ;;  %1880 = vmatmul.bf16.vlgmr.msrb.gmra.mxu3 %v12034_v31  ;;  %v8225_v53 = vor.u32 %v10731_v14, %v8222_v49  ;;  %v1436_v19 = vor.u32 1.1754944e-38, %v1435_v62  ;;  %v10718_v14 = vld [vmem:[#allocation4 + $0x24] sm:$0xf]  ;;  %v8166_v49 = vld [vmem:[#allocation4 + $0x30] sm:$0xf0] }
 0x1c7   :  { %2210 = vmatpush.bf16.msra.mxu1 %v8265_v9  ;;  %2236 = vmatpush.bf16.msrb.mxu3 %v8273_v18  ;;  %v8217_v9 = vor.u32 %v10730_v17, %v8214_v55  ;;  %v1432_v18 = vsel %vm12049_vm3, %v12000_v57, %v1428_v42  ;;  %v8190_v57 = vld [vmem:[#allocation4 + $0x58] sm:$0xf0]  ;;  %v10741_v17 = vld [vmem:[#allocation4 + $0xd4] sm:$0xf0] }
 0x1c8   :  { %v1393_v12 = vsel %vm1392_vm15, %v11346_v48, %v1389_v21  ;;  %v8233_v48 = vor.u32 %v10734_v52, %v8230_v35  ;;  %v8260_v21 = vld [vmem:[#allocation4 + $0xe0] sm:$0xf]  ;;  %v8209_v52 = vor.u32 %v10727_v13, %v8206_v22  ;;  %v10723_v35 = vld [vmem:[#allocation4 + $0x4c] sm:$0xf]  ;;  %v8174_v62 = vld [vmem:[#allocation4 + $0x38] sm:$0xf0] }
 0x1c9   :  { %v1398_v61 = vsel %vm1395_vm0, %v1397_v34, %v1393_v12  ;;  %v8268_v34 = vld [vmem:[#allocation4 + $0xe8] sm:$0xf]  ;;  %v8261_v45 = vor.u32 %v10744_v6, %v8260_v21  ;;  %v8193_v55 = vor.u32 %v10723_v35, %v8190_v57  ;;  %v8177_v13 = vor.u32 %v10719_v20, %v8174_v62  ;;  %v10714_v22 = vld [vmem:[#allocation4 + $0x4] sm:$0xf]  ;;  %v10715_v21 = vld [vmem:[#allocation4 + $0xc] sm:$0xf] }
 0x1ca   :  { %v1440_v5 = vmul.f32 %v11350_v36, %v1398_v61  ;;  %v10722_v36 = vld [vmem:[#allocation4 + $0x44] sm:$0xf]  ;;  %v8182_v61 = vld [vmem:[#allocation4 + $0x50] sm:$0xf0]  ;;  %v8269_v54 = vor.u32 %v10745_v3, %v8268_v34  ;;  %v8158_v6 = vld [vmem:[#allocation4 + $0x18] sm:$0xf0] }
 0x1cb   :  { %2211 = vmatpush.bf16.msra.mxu1 %v8249_v33  ;;  %2237 = vmatpush.bf16.msrb.mxu3 %v8257_v23  ;;  %v1437_v33 = vsel %vm1434_vm4, %v1436_v19, %v1432_v18  ;;  %v8201_v23 = vor.u32 %v10726_v46, %v8198_v56  ;;  %v8185_v42 = vor.u32 %v10722_v36, %v8182_v61  ;;  %v8236_v46 = vld [vmem:[#allocation4 + $0xa8] sm:$0xf]  ;;  %v10737_v18 = vld [vmem:[#allocation4 + $0xb4] sm:$0xf0]  ;;  %v8150_v19 = vld [vmem:[#allocation4 + $0x10] sm:$0xf0] }
 0x1cc   :  { %v12041_v38 = vadd.f32 %v1440_v5, %v1439_v10  ;;  %v8244_v10 = vld [vmem:[#allocation4 + $0xc0] sm:$0xf]  ;;  %v8169_v56 = vor.u32 %v10718_v14, %v8166_v49  ;;  %v8237_v3 = vor.u32 %v10737_v18, %v8236_v46  ;;  %v8153_v36 = vor.u32 %v10714_v22, %v8150_v19  ;;  %v10725_v14 = vld [vmem:[#allocation4 + $0x54] sm:$0xf0] }
 0x1cd   :  { %v8196_v57 = vld [vmem:[#allocation4 + $0x60] sm:$0xf]  ;;  %v10717_v22 = vld [vmem:[#allocation4 + $0x14] sm:$0xf0] }
 0x1ce   :  { %11351 = vtanh.f32 %v12041_v38  ;;  %v8164_v62 = vld [vmem:[#allocation4 + $0x20] sm:$0xf] }
 0x1cf   :  { %2212 = vmatpush.bf16.msra.mxu1 %v8233_v48  ;;  %2238 = vmatpush.bf16.msrb.mxu3 %v8241_v2  ;;  %v10740_v48 = vld [vmem:[#allocation4 + $0xcc] sm:$0xf0]  ;;  %v8252_v2 = vld [vmem:[#allocation4 + $0xc8] sm:$0xf]  ;;  %v8148_v18 = vld [vmem:[#allocation4] sm:$0xf] }
 0x1d0   :  { %v8245_v11 = vor.u32 %v10740_v48, %v8244_v10  ;;  %v10729_v10 = vld [vmem:[#allocation4 + $0x74] sm:$0xf0] }
 0x1d3   :  { %2213 = vmatpush.bf16.msra.mxu1 %v8217_v9  ;;  %2239 = vmatpush.bf16.msrb.mxu3 %v8225_v53  ;;  %v8253_v9 = vor.u32 %v10741_v17, %v8252_v2  ;;  %v10736_v53 = vld [vmem:[#allocation4 + $0xac] sm:$0xf0]  ;;  %v8180_v17 = vld [vmem:[#allocation4 + $0x40] sm:$0xf] }
 0x1d4   :  { %v11352_v12 = vpop.eup %11351 }
 0x1d5   :  { %v1443_v1 = vmul.f32 %v11352_v12, %v1437_v33  ;;  %v8212_v12 = vld [vmem:[#allocation4 + $0x80] sm:$0xf]  ;;  %v10732_v33 = vld [vmem:[#allocation4 + $0x8c] sm:$0xf0] }
 0x1d6   :  { %1906 = vmatmul.bf16.vlgmr.msrb.gmra.mxu1 %v12034_v31  ;;  %1932 = vmatmul.bf16.vlgmr.msra.gmra.mxu3 %v12034_v31  ;;  %v8228_v31 = vld [vmem:[#allocation4 + $0xa0] sm:$0xf]  ;;  %v8213_v61 = vor.u32 %v10732_v33, %v8212_v12  ;;  %v8521_v33 = vld [vmem:[#allocation6 + $0x1f0] sm:$0xf0] }
 0x1d7   :  { %v12056_v5 = vpack.c.bf16 %v1443_v1, %v1443_v1  ;;  %2214 = vmatpush.bf16.msra.mxu1 %v8201_v23  ;;  %2240 = vmatpush.bf16.msrb.mxu3 %v8209_v52  ;;  %v8229_v34 = vor.u32 %v10736_v53, %v8228_v31  ;;  %v8220_v23 = vld [vmem:[#allocation4 + $0x88] sm:$0xf]  ;;  %v10733_v52 = vld [vmem:[#allocation4 + $0x94] sm:$0xf0]  ;;  %v8161_v1 = vor.u32 %v10715_v21, %v8158_v6  ;;  %v8519_v6 = vld [vmem:[#allocation6 + $0x1e0] sm:$0xf] }
 0x1d8   :  { %v8221_v35 = vor.u32 %v10733_v52, %v8220_v23  ;;  %v10721_v31 = vld [vmem:[#allocation4 + $0x34] sm:$0xf0]  ;;  %v8503_v52 = vld [vmem:[#allocation6 + $0x1c0] sm:$0xf] }
 0x1d9   :  { %1841 = vmatmul.bf16.vlgmr.msrb.gmra.mxu0 %v12056_v5  ;;  %1867 = vmatmul.bf16.vlgmr.msrb.gmra.mxu2 %v12056_v5 }
 0x1da   :  { %2197 = vmatpush.bf16.msrb.mxu0 %v8261_v45  ;;  %2223 = vmatpush.bf16.msrb.mxu2 %v8269_v54  ;;  %v10728_v45 = vld [vmem:[#allocation4 + $0x6c] sm:$0xf0]  ;;  %v8204_v54 = vld [vmem:[#allocation4 + $0x68] sm:$0xf] }
 0x1db   :  { %2215 = vmatpush.bf16.msra.mxu1 %v8185_v42  ;;  %2241 = vmatpush.bf16.msrb.mxu3 %v8193_v55  ;;  %v8197_v48 = vor.u32 %v10728_v45, %v8196_v57  ;;  %v8205_v2 = vor.u32 %v10729_v10, %v8204_v54  ;;  %v10724_v42 = vld [vmem:[#allocation4 + $0x4c] sm:$0xf0]  ;;  %v8188_v55 = vld [vmem:[#allocation4 + $0x48] sm:$0xf]  ;;  %v8487_v45 = vld [vmem:[#allocation6 + $0x1a0] sm:$0xf] }
 0x1dc   :  { %v8181_v49 = vor.u32 %v10724_v42, %v8180_v17  ;;  %v8189_v20 = vor.u32 %v10725_v14, %v8188_v55  ;;  %v10800_v54 = vld [vmem:[#allocation6 + $0x1ac] sm:$0xf0]  ;;  %v10798_v10 = vld [vmem:[#allocation6 + $0x1a4] sm:$0xf]  ;;  %v8471_v17 = vld [vmem:[#allocation6 + $0x180] sm:$0xf] }
 0x1dd   :  { %v10796_v42 = vld [vmem:[#allocation6 + $0x18c] sm:$0xf0]  ;;  %v10794_v55 = vld [vmem:[#allocation6 + $0x184] sm:$0xf] }
 0x1de   :  { %2198 = vmatpush.bf16.msrb.mxu0 %v8245_v11  ;;  %2224 = vmatpush.bf16.msrb.mxu2 %v8253_v9  ;;  %v10720_v11 = vld [vmem:[#allocation4 + $0x2c] sm:$0xf0]  ;;  %v8172_v9 = vld [vmem:[#allocation4 + $0x28] sm:$0xf] }
 0x1df   :  { %2216 = vmatpush.bf16.msra.mxu1 %v8169_v56  ;;  %2242 = vmatpush.bf16.msrb.mxu3 %v8177_v13  ;;  %v8165_v53 = vor.u32 %v10720_v11, %v8164_v62  ;;  %v8173_v46 = vor.u32 %v10721_v31, %v8172_v9  ;;  %v10716_v56 = vld [vmem:[#allocation4 + $0xc] sm:$0xf0]  ;;  %v8156_v13 = vld [vmem:[#allocation4 + $0x8] sm:$0xf]  ;;  %v8455_v11 = vld [vmem:[#allocation6 + $0x160] sm:$0xf] }
 0x1e0   :  { %v8149_v19 = vor.u32 %v10716_v56, %v8148_v18  ;;  %v8157_v21 = vor.u32 %v10717_v22, %v8156_v13  ;;  %v10792_v9 = vld [vmem:[#allocation6 + $0x16c] sm:$0xf0]  ;;  %v10790_v31 = vld [vmem:[#allocation6 + $0x164] sm:$0xf]  ;;  %v8391_v13 = vld [vmem:[#allocation6 + $0xe0] sm:$0xf] }
 0x1e1   :  { %v10776_v22 = vld [vmem:[#allocation6 + $0xec] sm:$0xf0] }
 0x1e2   :  { %2199 = vmatpush.bf16.msrb.mxu0 %v8229_v34  ;;  %2225 = vmatpush.bf16.msrb.mxu2 %v8237_v3  ;;  %v10808_v34 = vld [vmem:[#allocation6 + $0x1ec] sm:$0xf0]  ;;  %v10806_v3 = vld [vmem:[#allocation6 + $0x1e4] sm:$0xf] }
 0x1e3   :  { %2217 = vmatpush.bf16.msra.mxu1 %v8153_v36  ;;  %2243 = vmatpush.bf16.msrb.mxu3 %v8161_v1  ;;  %v8520_v12 = vor.u32 %v10808_v34, %v8519_v6  ;;  %v8524_v23 = vor.u32 %v10806_v3, %v8521_v33  ;;  %v10804_v36 = vld [vmem:[#allocation6 + $0x1cc] sm:$0xf0]  ;;  %v10802_v1 = vld [vmem:[#allocation6 + $0x1c4] sm:$0xf]  ;;  %v8393_v6 = vld [vmem:[#allocation6 + $0xf0] sm:$0xf0] }
 0x1e4   :  { %v8439_v34 = vld [vmem:[#allocation6 + $0x140] sm:$0xf]  ;;  %v10788_v3 = vld [vmem:[#allocation6 + $0x14c] sm:$0xf0] }
 0x1e6   :  { %2200 = vmatpush.bf16.msrb.mxu0 %v8213_v61  ;;  %2226 = vmatpush.bf16.msrb.mxu2 %v8221_v35  ;;  %v8504_v61 = vor.u32 %v10804_v36, %v8503_v52  ;;  %v8505_v35 = vld [vmem:[#allocation6 + $0x1d0] sm:$0xf0]  ;;  %v10786_v52 = vld [vmem:[#allocation6 + $0x144] sm:$0xf] }
 0x1e7   :  { %2218 = vmatmul.bf16.vlgmr.msra.gmra.mxu1 %v12056_v5  ;;  %2244 = vmatmul.bf16.vlgmr.msrb.gmra.mxu3 %v12056_v5  ;;  %v8508_v57 = vor.u32 %v10802_v1, %v8505_v35  ;;  %v8441_v36 = vld [vmem:[#allocation6 + $0x150] sm:$0xf0]  ;;  %v10772_v35 = vld [vmem:[#allocation6 + $0xcc] sm:$0xf0] }
 0x1e8   :  { %2719 = vmatpush.bf16.msrb.mxu1 %v8520_v12  ;;  %2745 = vmatpush.bf16.msra.mxu3 %v8524_v23  ;;  %v8440_v23 = vor.u32 %v10788_v3, %v8439_v34  ;;  %v8444_v1 = vor.u32 %v10786_v52, %v8441_v36  ;;  %v10809_v3 = vld [vmem:[#allocation6 + $0x1f4] sm:$0xf0] }
 0x1e9   :  { %1893 = vmatmul.bf16.vlgmr.msra.gmra.mxu0 %v12056_v5  ;;  %1919 = vmatmul.bf16.vlgmr.msra.gmra.mxu2 %v12056_v5 }
 0x1ea   :  { %2201 = vmatpush.bf16.msrb.mxu0 %v8197_v48  ;;  %2227 = vmatpush.bf16.msrb.mxu2 %v8205_v2  ;;  %v8489_v48 = vld [vmem:[#allocation6 + $0x1b0] sm:$0xf0] }
 0x1eb   :  { %v8492_v2 = vor.u32 %v10798_v10, %v8489_v48  ;;  %v8423_v10 = vld [vmem:[#allocation6 + $0x120] sm:$0xf] }
 0x1ec   :  { %2720 = vmatpush.bf16.msrb.mxu1 %v8504_v61  ;;  %2746 = vmatpush.bf16.msra.mxu3 %v8508_v57  ;;  %v8375_v61 = vld [vmem:[#allocation6 + $0xc0] sm:$0xf]  ;;  %v10770_v57 = vld [vmem:[#allocation6 + $0xc4] sm:$0xf] }
 0x1ee   :  { %2202 = vmatpush.bf16.msrb.mxu0 %v8181_v49  ;;  %2228 = vmatpush.bf16.msrb.mxu2 %v8189_v20  ;;  %v8472_v49 = vor.u32 %v10796_v42, %v8471_v17  ;;  %v8473_v20 = vld [vmem:[#allocation6 + $0x190] sm:$0xf0]  ;;  %v10782_v17 = vld [vmem:[#allocation6 + $0x124] sm:$0xf] }
 0x1ef   :  { %v8476_v62 = vor.u32 %v10794_v55, %v8473_v20  ;;  %v8425_v42 = vld [vmem:[#allocation6 + $0x130] sm:$0xf0]  ;;  %v8359_v20 = vld [vmem:[#allocation6 + $0xa0] sm:$0xf] }
 0x1f0   :  { %2747 = vmatpush.bf16.msra.mxu3 %v8492_v2  ;;  %v8428_v55 = vor.u32 %v10782_v17, %v8425_v42 }
 0x1f2   :  { %2203 = vmatpush.bf16.msrb.mxu0 %v8165_v53  ;;  %2229 = vmatpush.bf16.msrb.mxu2 %v8173_v46  ;;  %v8456_v53 = vor.u32 %v10792_v9, %v8455_v11  ;;  %v8457_v46 = vld [vmem:[#allocation6 + $0x170] sm:$0xf0]  ;;  %v10766_v11 = vld [vmem:[#allocation6 + $0xa4] sm:$0xf] }
 0x1f3   :  { %v8460_v18 = vor.u32 %v10790_v31, %v8457_v46  ;;  %v8361_v31 = vld [vmem:[#allocation6 + $0xb0] sm:$0xf0]  ;;  %v10780_v46 = vld [vmem:[#allocation6 + $0x10c] sm:$0xf0] }
 0x1f4   :  { %2748 = vmatpush.bf16.msra.mxu3 %v8476_v62  ;;  %v10768_v62 = vld [vmem:[#allocation6 + $0xac] sm:$0xf0] }
 0x1f5   :  { %v8360_v9 = vor.u32 %v10768_v62, %v8359_v20  ;;  %v8327_v62 = vld [vmem:[#allocation6 + $0x60] sm:$0xf] }
 0x1f6   :  { %2204 = vmatpush.bf16.msrb.mxu0 %v8149_v19  ;;  %2230 = vmatpush.bf16.msrb.mxu2 %v8157_v21  ;;  %v10774_v19 = vld [vmem:[#allocation6 + $0xe4] sm:$0xf]  ;;  %v8392_v21 = vor.u32 %v10776_v22, %v8391_v13  ;;  %v8364_v13 = vor.u32 %v10766_v11, %v8361_v31  ;;  %v10760_v11 = vld [vmem:[#allocation6 + $0x6c] sm:$0xf0] }
 0x1f7   :  { %v8396_v33 = vor.u32 %v10774_v19, %v8393_v6  ;;  %v10778_v19 = vld [vmem:[#allocation6 + $0x104] sm:$0xf]  ;;  %v8527_v6 = vld [vmem:[#allocation6 + $0x1e8] sm:$0xf] }
 0x1f8   :  { %2749 = vmatpush.bf16.msra.mxu3 %v8460_v18  ;;  %v8528_v52 = vor.u32 %v10809_v3, %v8527_v6  ;;  %v10799_v6 = vld [vmem:[#allocation6 + $0x1ac] sm:$0xf] }
 0x1f9   :  { %2205 = vmatmul.bf16.vlgmr.msrb.gmra.mxu0 %v12056_v5  ;;  %2231 = vmatmul.bf16.vlgmr.msrb.gmra.mxu2 %v12056_v5  ;;  %v8488_v5 = vor.u32 %v10800_v54, %v8487_v45  ;;  %v8376_v45 = vor.u32 %v10772_v35, %v8375_v61  ;;  %v8377_v54 = vld [vmem:[#allocation6 + $0xd0] sm:$0xf0]  ;;  %v10764_v61 = vld [vmem:[#allocation6 + $0x8c] sm:$0xf0]  ;;  %v10762_v35 = vld [vmem:[#allocation6 + $0x84] sm:$0xf] }
 0x1fa   :  { %2706 = vmatpush.bf16.msra.mxu0 %v8392_v21  ;;  %2732 = vmatpush.bf16.msra.mxu2 %v8396_v33  ;;  %v8380_v48 = vor.u32 %v10770_v57, %v8377_v54  ;;  %v8409_v21 = vld [vmem:[#allocation6 + $0x110] sm:$0xf0]  ;;  %v8529_v33 = vld [vmem:[#allocation6 + $0x1f8] sm:$0xf0] }
 0x1fb   :  { %2721 = vmatpush.bf16.msrb.mxu1 %v8488_v5  ;;  %v10784_v5 = vld [vmem:[#allocation6 + $0x12c] sm:$0xf0]  ;;  %v8412_v34 = vor.u32 %v10778_v19, %v8409_v21  ;;  %v8345_v54 = vld [vmem:[#allocation6 + $0x90] sm:$0xf0]  ;;  %v8495_v21 = vld [vmem:[#allocation6 + $0x1a8] sm:$0xf] }
 0x1fc   :  { %2750 = vmatpush.bf16.msra.mxu3 %v8444_v1  ;;  %v8424_v2 = vor.u32 %v10784_v5, %v8423_v10  ;;  %v8343_v1 = vld [vmem:[#allocation6 + $0x80] sm:$0xf]  ;;  %v8348_v10 = vor.u32 %v10762_v35, %v8345_v54  ;;  %v8511_v5 = vld [vmem:[#allocation6 + $0x1c8] sm:$0xf] }
 0x1fd   :  { %v8479_v54 = vld [vmem:[#allocation6 + $0x188] sm:$0xf] }
 0x1fe   :  { %2707 = vmatpush.bf16.msra.mxu0 %v8376_v45  ;;  %2733 = vmatpush.bf16.msra.mxu2 %v8380_v48  ;;  %v8344_v45 = vor.u32 %v10764_v61, %v8343_v1  ;;  %v10805_v48 = vld [vmem:[#allocation6 + $0x1d4] sm:$0xf0]  ;;  %v10754_v1 = vld [vmem:[#allocation6 + $0x44] sm:$0xf] }
 0x1ff   :  { %2722 = vmatpush.bf16.msrb.mxu1 %v8472_v49  ;;  %v8512_v42 = vor.u32 %v10805_v48, %v8511_v5  ;;  %v10795_v5 = vld [vmem:[#allocation6 + $0x18c] sm:$0xf] }
 0x200   :  { %2751 = vmatpush.bf16.msra.mxu3 %v8428_v55  ;;  %v8513_v55 = vld [vmem:[#allocation6 + $0x1d8] sm:$0xf0] }
 0x202   :  { %2708 = vmatpush.bf16.msra.mxu0 %v8360_v9  ;;  %2734 = vmatpush.bf16.msra.mxu2 %v8364_v13  ;;  %v10758_v9 = vld [vmem:[#allocation6 + $0x64] sm:$0xf] }
 0x203   :  { %2723 = vmatpush.bf16.msrb.mxu1 %v8456_v53  ;;  %v8407_v53 = vld [vmem:[#allocation6 + $0x100] sm:$0xf] }
 0x204   :  { %v8408_v22 = vor.u32 %v10780_v46, %v8407_v53  ;;  %2752 = vmatpush.bf16.msra.mxu3 %v8412_v34  ;;  %v8328_v53 = vor.u32 %v10760_v11, %v8327_v62  ;;  %v8329_v46 = vld [vmem:[#allocation6 + $0x70] sm:$0xf0]  ;;  %v10752_v62 = vld [vmem:[#allocation6 + $0x2c] sm:$0xf0]  ;;  %v10750_v11 = vld [vmem:[#allocation6 + $0x24] sm:$0xf] }
 0x205   :  { %v8332_v19 = vor.u32 %v10758_v9, %v8329_v46 }
 0x206   :  { %2709 = vmatpush.bf16.msra.mxu0 %v8344_v45  ;;  %2735 = vmatpush.bf16.msra.mxu2 %v8348_v10  ;;  %v10797_v10 = vld [vmem:[#allocation6 + $0x194] sm:$0xf0] }
 0x207   :  { %2724 = vmatpush.bf16.msrb.mxu1 %v8440_v23 }
 0x20a   :  { %2710 = vmatpush.bf16.msra.mxu0 %v8328_v53  ;;  %2736 = vmatpush.bf16.msra.mxu2 %v8332_v19  ;;  %v8463_v19 = vld [vmem:[#allocation6 + $0x168] sm:$0xf] }
 0x20b   :  { %2725 = vmatpush.bf16.msrb.mxu1 %v8424_v2  ;;  %v10803_v2 = vld [vmem:[#allocation6 + $0x1cc] sm:$0xf] }
 0x20c   :  { %v8516_v20 = vor.u32 %v10803_v2, %v8513_v55  ;;  %v8480_v2 = vor.u32 %v10797_v10, %v8479_v54  ;;  %v10777_v54 = vld [vmem:[#allocation6 + $0xf4] sm:$0xf0]  ;;  %v10775_v10 = vld [vmem:[#allocation6 + $0xec] sm:$0xf] }
 0x20f   :  { %2726 = vmatpush.bf16.msrb.mxu1 %v8408_v22 }
 0x213   :  { %2771 = vmatpush.bf16.msra.mxu1 %v8528_v52  ;;  %v8311_v52 = vld [vmem:[#allocation6 + $0x40] sm:$0xf] }
 0x217   :  { %2772 = vmatpush.bf16.msra.mxu1 %v8512_v42 }
 0x243   :  { %v12068_v14 = vpop.f32.mrf.mxu1 }
 0x249   :  { %v12070_v56 = vpop.f32.mrf.mxu3 }
 0x24b   :  { %v1857_v12 = vpop.f32.mrf.mxu1 }
 0x24c   :  { %v10807_v12 = vld [vmem:[#allocation6 + $0x1ec] sm:$0xf] }
 0x24d   :  { %v8532_v36 = vor.u32 %v10807_v12, %v8529_v33  ;;  %v8497_v12 = vld [vmem:[#allocation6 + $0x1b8] sm:$0xf0] }
 0x24f   :  { %2797 = vmatpush.bf16.msrb.mxu3 %v8532_v36  ;;  %v10756_v36 = vld [vmem:[#allocation6 + $0x4c] sm:$0xf0] }
 0x250   :  { %v8312_v35 = vor.u32 %v10756_v36, %v8311_v52  ;;  %v10748_v36 = vld [vmem:[#allocation6 + $0xc] sm:$0xf0] }
 0x251   :  { %v1883_v49 = vpop.f32.mrf.mxu3 }
 0x252   :  { %2711 = vmatpush.bf16.msra.mxu0 %v8312_v35  ;;  %v8281_v35 = vld [vmem:[#allocation6 + $0x10] sm:$0xf0] }
 0x253   :  { %v12072_v18 = vpop.f32.mrf.mxu1  ;;  %2798 = vmatpush.bf16.msrb.mxu3 %v8516_v20  ;;  %v8295_v20 = vld [vmem:[#allocation6 + $0x20] sm:$0xf] }
 0x256   :  { %v1842_v23 = vpop.f32.mrf.mxu0 }
 0x257   :  { %v1843_v57 = vadd.f32 %v1842_v23, %v11906_v25  ;;  %v8500_v23 = vor.u32 %v10799_v6, %v8497_v12 }
 0x259   :  { %v1856_v17 = vadd.f32 %v12068_v14, %v1843_v57  ;;  %v12076_v49 = vpop.f32.mrf.mxu3  ;;  %v10801_v14 = vld [vmem:[#allocation6 + $0x1b4] sm:$0xf0]  ;;  %v8313_v57 = vld [vmem:[#allocation6 + $0x50] sm:$0xf0]  ;;  %2799 = vmatpush.bf16.msrb.mxu3 %v8500_v23 }
 0x25a   :  { %v8496_v3 = vor.u32 %v10801_v14, %v8495_v21  ;;  %v8316_v45 = vor.u32 %v10754_v1, %v8313_v57  ;;  %v10793_v21 = vld [vmem:[#allocation6 + $0x174] sm:$0xf0]  ;;  %v10746_v1 = vld [vmem:[#allocation6 + $0x4] sm:$0xf]  ;;  %v8399_v57 = vld [vmem:[#allocation6 + $0xe8] sm:$0xf] }
 0x25b   :  { %v8143_v31 = vmul.f32 -1.442695, %v1856_v17  ;;  %v1909_v13 = vpop.f32.mrf.mxu1  ;;  %v8481_v17 = vld [vmem:[#allocation6 + $0x198] sm:$0xf0]  ;;  %v8464_v6 = vor.u32 %v10793_v21, %v8463_v19  ;;  %v10773_v19 = vld [vmem:[#allocation6 + $0xd4] sm:$0xf0] }
 0x25c   :  { %v1868_v22 = vpop.f32.mrf.mxu2  ;;  %2773 = vmatpush.bf16.msra.mxu1 %v8496_v3  ;;  %2737 = vmatpush.bf16.msra.mxu2 %v8316_v45  ;;  %v8484_v55 = vor.u32 %v10795_v5, %v8481_v17  ;;  %v8465_v3 = vld [vmem:[#allocation6 + $0x178] sm:$0xf0]  ;;  %v8400_v17 = vor.u32 %v10777_v54, %v8399_v57 }
 0x25d   :  { %11353 = vpow2.f32 %v8143_v31  ;;  %v1869_v34 = vadd.f32 %v1868_v22, %v11910_v28  ;;  %v8297_v31 = vld [vmem:[#allocation6 + $0x30] sm:$0xf0]  ;;  %v8401_v5 = vld [vmem:[#allocation6 + $0xf8] sm:$0xf0] }
 0x25e   :  { %v1844_v33 = vpop.f32.mrf.mxu0  ;;  %2800 = vmatpush.bf16.msrb.mxu3 %v8484_v55  ;;  %v8300_v22 = vor.u32 %v10750_v11, %v8297_v31  ;;  %v8447_v55 = vld [vmem:[#allocation6 + $0x148] sm:$0xf] }
 0x25f   :  { %v1882_v61 = vadd.f32 %v12070_v56, %v1869_v34  ;;  %v8296_v56 = vor.u32 %v10752_v62, %v8295_v20  ;;  %v10791_v34 = vld [vmem:[#allocation6 + $0x16c] sm:$0xf]  ;;  %v8279_v33 = vld [vmem:[#allocation6] sm:$0xf]  ;;  %v10789_v20 = vld [vmem:[#allocation6 + $0x154] sm:$0xf0] }
 0x260   :  { %2774 = vmatpush.bf16.msra.mxu1 %v8480_v2  ;;  %2738 = vmatpush.bf16.msra.mxu2 %v8300_v22  ;;  %v8468_v52 = vor.u32 %v10791_v34, %v8465_v3  ;;  %v8448_v11 = vor.u32 %v10789_v20, %v8447_v55  ;;  %v8383_v31 = vld [vmem:[#allocation6 + $0xc8] sm:$0xf] }
 0x261   :  { %v8144_v48 = vmul.f32 -1.442695, %v1882_v61  ;;  %v1935_v42 = vpop.f32.mrf.mxu3  ;;  %2712 = vmatpush.bf16.msra.mxu0 %v8296_v56  ;;  %v8280_v61 = vor.u32 %v10748_v36, %v8279_v33  ;;  %v8449_v56 = vld [vmem:[#allocation6 + $0x158] sm:$0xf0]  ;;  %v10785_v36 = vld [vmem:[#allocation6 + $0x134] sm:$0xf0] }
 0x262   :  { %2801 = vmatpush.bf16.msrb.mxu3 %v8468_v52  ;;  %v8404_v42 = vor.u32 %v10775_v10, %v8401_v5  ;;  %v8431_v52 = vld [vmem:[#allocation6 + $0x128] sm:$0xf] }
 0x263   :  { %v11354_v9 = vpop.eup %11353  ;;  %11355 = vpow2.f32 %v8144_v48  ;;  %v8432_v5 = vor.u32 %v10785_v36, %v8431_v52 }
 0x264   :  { %v12080_v53 = vadd.f32 1.0, %v11354_v9  ;;  %v2219_v46 = vpop.f32.mrf.mxu1  ;;  %v1870_v13 = vpop.f32.mrf.mxu2  ;;  %2775 = vmatpush.bf16.msra.mxu1 %v8464_v6  ;;  %v10787_v9 = vld [vmem:[#allocation6 + $0x14c] sm:$0xf]  ;;  %v8385_v6 = vld [vmem:[#allocation6 + $0xd8] sm:$0xf0] }
 0x265   :  { %v2250_v14 = vadd.f32 %v2219_v46, %v11812_v58  ;;  %v8284_v58 = vor.u32 %v10746_v1, %v8281_v35  ;;  %2713 = vmatpush.bf16.msra.mxu0 %v8280_v61  ;;  %v8452_v33 = vor.u32 %v10787_v9, %v8449_v56 }
 0x266   :  { %11357 = vrcp.f32 %v12080_v53  ;;  %v1894_v12 = vpop.f32.mrf.mxu0  ;;  %v1953_v56 = vand.u32 2147483648, %v12080_v53  ;;  %vm1947_vm7 = vweird.f32 %v12080_v53 }
 0x267   :  { %v8275_v23 = vmul.f32 -1.442695, %v2250_v14  ;;  %2739 = vmatpush.bf16.msra.mxu2 %v8284_v58  ;;  %v8433_v58 = vld [vmem:[#allocation6 + $0x138] sm:$0xf0]  ;;  %v1895_v10 = vadd.f32 %v1894_v12, %v11936_v4  ;;  %2802 = vmatpush.bf16.msrb.mxu3 %v8452_v33  ;;  %v8415_v12 = vld [vmem:[#allocation6 + $0x108] sm:$0xf] }
 0x268   :  { %2776 = vmatpush.bf16.msra.mxu1 %v8448_v11  ;;  %v8369_v11 = vld [vmem:[#allocation6 + $0xb8] sm:$0xf0] }
 0x269   :  { %v11356_v45 = vpop.eup %11355  ;;  %11359 = vpow2.f32 %v8275_v23  ;;  %2758 = vmatpush.bf16.msrb.mxu0 %v8400_v17  ;;  %v8384_v23 = vor.u32 %v10773_v19, %v8383_v31  ;;  %v8367_v17 = vld [vmem:[#allocation6 + $0xa8] sm:$0xf]  ;;  %v10779_v19 = vld [vmem:[#allocation6 + $0x10c] sm:$0xf] }
 0x26a   :  { %v12084_v48 = vadd.f32 1.0, %v11356_v45  ;;  %v2245_v2 = vpop.f32.mrf.mxu3  ;;  %v10783_v45 = vld [vmem:[#allocation6 + $0x12c] sm:$0xf] }
 0x26b   :  { %v2252_v62 = vadd.f32 %v2245_v2, %v11797_v47  ;;  %2784 = vmatpush.bf16.msrb.mxu2 %v8404_v42  ;;  %v10771_v47 = vld [vmem:[#allocation6 + $0xcc] sm:$0xf]  ;;  %v8436_v2 = vor.u32 %v10783_v45, %v8433_v58  ;;  %v10769_v42 = vld [vmem:[#allocation6 + $0xb4] sm:$0xf0] }
 0x26c   :  { %v12087_v46 = vpop.eup %11357  ;;  %11361 = vrcp.f32 %v12084_v48  ;;  %v2221_v13 = vpop.f32.mrf.mxu1  ;;  %v8388_v57 = vor.u32 %v10771_v47, %v8385_v6  ;;  %v8368_v20 = vor.u32 %v10769_v42, %v8367_v17  ;;  %2777 = vmatpush.bf16.msra.mxu1 %v8432_v5  ;;  %v10763_v58 = vld [vmem:[#allocation6 + $0x8c] sm:$0xf]  ;;  %v1951_v5 = vand.u32 2147483647, %v12080_v53 }
 0x26d   :  { %v1920_v22 = vpop.f32.mrf.mxu2  ;;  %v1943_v21 = vmul.f32 %v12087_v46, %v12080_v53  ;;  %v8276_v34 = vmul.f32 -1.442695, %v2252_v62  ;;  %2759 = vmatpush.bf16.msrb.mxu0 %v8384_v23  ;;  %v10767_v62 = vld [vmem:[#allocation6 + $0xac] sm:$0xf]  ;;  %2803 = vmatpush.bf16.msrb.mxu3 %v8436_v2  ;;  %v1972_v23 = vand.u32 2147483648, %v12084_v48  ;;  %vm1948_vm5 = vweird.f32 %v12087_v46 }
 0x26e   :  { %v1921_v14 = vadd.f32 %v1920_v22, %v11928_v7  ;;  %v1896_v3 = vpop.f32.mrf.mxu0  ;;  %v10781_v22 = vld [vmem:[#allocation6 + $0x114] sm:$0xf0]  ;;  %v8372_v6 = vor.u32 %v10767_v62, %v8369_v11  ;;  %v1954_v2 = vor.u32 1.1754944e-38, %v1953_v56  ;;  %vm1966_vm8 = vweird.f32 %v12084_v48  ;;  %vm12117_vm9 = vmor %vm1947_vm7, %vm1948_vm5 }
 0x26f   :  { %v11360_v1 = vpop.eup %11359  ;;  %v1944_v61 = vsub.f32 1.0, %v1943_v21  ;;  %2785 = vmatpush.bf16.msrb.mxu2 %v8388_v57  ;;  %v8417_v21 = vld [vmem:[#allocation6 + $0x118] sm:$0xf0]  ;;  %v8416_v3 = vor.u32 %v10781_v22, %v8415_v12  ;;  %v1973_v42 = vor.u32 1.1754944e-38, %v1972_v23  ;;  %v10761_v12 = vld [vmem:[#allocation6 + $0x74] sm:$0xf0] }
 0x270   :  { %v1934_v35 = vadd.f32 %v12076_v49, %v1921_v14  ;;  %v12094_v54 = vadd.f32 1.0, %v11360_v1  ;;  %v1908_v14 = vadd.f32 %v12072_v18, %v1895_v10  ;;  %v8420_v52 = vor.u32 %v10779_v19, %v8417_v21  ;;  %v8351_v18 = vld [vmem:[#allocation6 + $0x88] sm:$0xf]  ;;  %v8353_v10 = vld [vmem:[#allocation6 + $0x98] sm:$0xf0] }
 0x271   :  { %v1945_v49 = vmul.f32 %v12087_v46, %v1944_v61  ;;  %2760 = vmatpush.bf16.msrb.mxu0 %v8368_v20  ;;  %v1970_v1 = vand.u32 2147483647, %v12084_v48  ;;  %2778 = vmatpush.bf16.msra.mxu1 %v8416_v3  ;;  %v8356_v11 = vor.u32 %v10763_v58, %v8353_v10  ;;  %vm1952_vm12 = vcmp.eq.f32.partialorder %v1951_v5, 8.507059e+37  ;;  %v8337_v21 = vld [vmem:[#allocation6 + $0x78] sm:$0xf0] }
 0x272   :  { %v8145_v55 = vmul.f32 -1.442695, %v1934_v35  ;;  %v12097_v9 = vpop.eup %11361  ;;  %v2247_v31 = vpop.f32.mrf.mxu3  ;;  %2804 = vmatpush.bf16.msrb.mxu3 %v8420_v52  ;;  %v8319_v52 = vld [vmem:[#allocation6 + $0x48] sm:$0xf]  ;;  %vm2282_vm2 = vweird.f32 %v12094_v54 }
 0x273   :  { %v1962_v13 = vmul.f32 %v12097_v9, %v12084_v48  ;;  %v1946_v36 = vadd.f32 %v12087_v46, %v1945_v49  ;;  %2786 = vmatpush.bf16.msrb.mxu2 %v8372_v6  ;;  %vm1967_vm6 = vweird.f32 %v12097_v9  ;;  %vm1971_vm11 = vcmp.eq.f32.partialorder %v1970_v1, 8.507059e+37  ;;  %v8335_v31 = vld [vmem:[#allocation6 + $0x68] sm:$0xf]  ;;  %v10755_v1 = vld [vmem:[#allocation6 + $0x4c] sm:$0xf] }
 0x274   :  { %11363 = vpow2.f32 %v8145_v55  ;;  %vm1968_vm10 = vmor %vm1966_vm8, %vm1967_vm6  ;;  %v8305_v55 = vld [vmem:[#allocation6 + $0x38] sm:$0xf0] }
 0x275   :  { %11365 = vpow2.f32 %v8276_v34  ;;  %v1922_v47 = vpop.f32.mrf.mxu2  ;;  %v1963_v33 = vsub.f32 1.0, %v1962_v13  ;;  %v10765_v34 = vld [vmem:[#allocation6 + $0x94] sm:$0xf0]  ;;  %v1950_v53 = vsel %vm12117_vm9, %v12087_v46, %v1946_v36  ;;  %v10759_v13 = vld [vmem:[#allocation6 + $0x6c] sm:$0xf] }
 0x276   :  { %11367 = vrcp.f32 %v12094_v54  ;;  %v2206_v61 = vpop.f32.mrf.mxu0  ;;  %v8352_v45 = vor.u32 %v10765_v34, %v8351_v18  ;;  %v1955_v46 = vsel %vm1952_vm12, %v1954_v2, %v1950_v53  ;;  %v8340_v23 = vor.u32 %v10759_v13, %v8337_v21  ;;  %v10757_v36 = vld [vmem:[#allocation6 + $0x54] sm:$0xf0]  ;;  %v10747_v21 = vld [vmem:[#allocation6 + $0xc] sm:$0xf] }
 0x277   :  { %v1964_v35 = vmul.f32 %v12097_v9, %v1963_v33  ;;  %v2249_v57 = vadd.f32 %v2206_v61, %v11781_v27  ;;  %11369 = vtanh.f32 %v1908_v14  ;;  %2787 = vmatpush.bf16.msrb.mxu2 %v8356_v11  ;;  %v8336_v33 = vor.u32 %v10761_v12, %v8335_v31  ;;  %v8321_v61 = vld [vmem:[#allocation6 + $0x58] sm:$0xf0]  ;;  %v10753_v2 = vld [vmem:[#allocation6 + $0x34] sm:$0xf0]  ;;  %v8287_v31 = vld [vmem:[#allocation6 + $0x8] sm:$0xf] }
 0x278   :  { %2761 = vmatpush.bf16.msrb.mxu0 %v8352_v45  ;;  %v8324_v5 = vor.u32 %v10755_v1, %v8321_v61  ;;  %v10749_v12 = vld [vmem:[#allocation6 + $0x14] sm:$0xf0]  ;;  %v10838_v1 = vld [vmem:[#allocation4 + $0xe4] sm:$0xf]  ;;  %v8652_v61 = vld [vmem:[#allocation4 + $0xf0] sm:$0xf0] }
 0x279   :  { %v1965_v27 = vadd.f32 %v12097_v9, %v1964_v35  ;;  %v8274_v20 = vmul.f32 -1.442695, %v2249_v57  ;;  %v8320_v35 = vor.u32 %v10757_v36, %v8319_v52 }
 0x27a   :  { %v11364_v17 = vpop.eup %11363 }
 0x27b   :  { %v11366_v62 = vpop.eup %11365  ;;  %v12127_v48 = vadd.f32 1.0, %v11364_v17  ;;  %v1969_v56 = vsel %vm1968_vm10, %v12097_v9, %v1965_v27  ;;  %11371 = vpow2.f32 %v8274_v20  ;;  %2788 = vmatpush.bf16.msrb.mxu2 %v8340_v23 }
 0x27c   :  { %v12129_v49 = vpop.eup %11367  ;;  %v1974_v22 = vsel %vm1971_vm11, %v1973_v42, %v1969_v56  ;;  %v12133_v14 = vadd.f32 1.0, %v11366_v62  ;;  %2762 = vmatpush.bf16.msrb.mxu0 %v8336_v33  ;;  %v10751_v42 = vld [vmem:[#allocation6 + $0x2c] sm:$0xf] }
 0x27d   :  { %11373 = vrcp.f32 %v12127_v48  ;;  %v2232_v19 = vpop.f32.mrf.mxu2  ;;  %v11370_v47 = vpop.eup %11369  ;;  %v2278_v6 = vmul.f32 %v12129_v49, %v12094_v54  ;;  %v1996_v9 = vmul.f32 %v1974_v22, %v11995_v15  ;;  %v8303_v15 = vld [vmem:[#allocation6 + $0x28] sm:$0xf]  ;;  %v1992_v11 = vand.u32 2147483648, %v12127_v48 }
 0x27e   :  { %v2208_v3 = vpop.f32.mrf.mxu0  ;;  %v1997_v18 = vmul.f32 %v11370_v47, %v1955_v46  ;;  %11375 = vrcp.f32 %v12133_v14  ;;  %v8304_v62 = vor.u32 %v10753_v2, %v8303_v15  ;;  %v8308_v56 = vor.u32 %v10751_v42, %v8305_v55  ;;  %v8289_v46 = vld [vmem:[#allocation6 + $0x18] sm:$0xf0]  ;;  %v10827_v15 = vld [vmem:[#allocation4 + $0x8c] sm:$0xf] }
 0x27f   :  { %v2279_v45 = vsub.f32 1.0, %v2278_v6  ;;  %2789 = vmatpush.bf16.msrb.mxu2 %v8324_v5  ;;  %v1990_v22 = vand.u32 2147483647, %v12127_v48  ;;  %v8288_v47 = vor.u32 %v10749_v12, %v8287_v31  ;;  %v8292_v6 = vor.u32 %v10747_v21, %v8289_v46  ;;  %v10835_v12 = vld [vmem:[#allocation4 + $0xcc] sm:$0xf] }
 0x280   :  { %v12138_v58 = vadd.f32 %v1997_v18, %v1996_v9  ;;  %2763 = vmatpush.bf16.msrb.mxu0 %v8320_v35  ;;  %vm1986_vm14 = vweird.f32 %v12127_v48  ;;  %vm2283_vm15 = vweird.f32 %v12129_v49  ;;  %v2251_v23 = vadd.f32 %v2232_v19, %v11792_v41  ;;  %v10839_v35 = vld [vmem:[#allocation4 + $0xec] sm:$0xf] }
 0x281   :  { %v11372_v34 = vpop.eup %11371  ;;  %v2280_v53 = vmul.f32 %v12129_v49, %v2279_v45  ;;  %v1993_v36 = vor.u32 1.1754944e-38, %v1992_v11  ;;  %vm1991_vm1 = vcmp.eq.f32.partialorder %v1990_v22, 8.507059e+37  ;;  %v8660_v45 = vld [vmem:[#allocation4 + $0xf8] sm:$0xf0]  ;;  %v2288_v5 = vand.u32 2147483648, %v12094_v54  ;;  %vm12163_vm3 = vmor %vm2282_vm2, %vm2283_vm15 }
 0x282   :  { %v12140_v10 = vadd.f32 1.0, %v11372_v34  ;;  %v2286_v2 = vand.u32 2147483647, %v12094_v54  ;;  %v8655_v42 = vor.u32 %v10838_v1, %v8652_v61  ;;  %v8644_v54 = vld [vmem:[#allocation4 + $0xd8] sm:$0xf0]  ;;  %vm2302_vm10 = vweird.f32 %v12133_v14 }
 0x283   :  { %v11374_v57 = vpop.eup %11373  ;;  %2790 = vmatpush.bf16.msrb.mxu2 %v8308_v56  ;;  %v2281_v52 = vadd.f32 %v12129_v49, %v2280_v53  ;;  %v8636_v53 = vld [vmem:[#allocation4 + $0xd0] sm:$0xf0]  ;;  %v8628_v1 = vld [vmem:[#allocation4 + $0xb8] sm:$0xf0] }
 0x284   :  { %v1982_v17 = vmul.f32 %v11374_v57, %v12127_v48  ;;  %11377 = vrcp.f32 %v12140_v10  ;;  %vm1987_vm13 = vweird.f32 %v11374_v57  ;;  %2764 = vmatpush.bf16.msrb.mxu0 %v8304_v62  ;;  %v12149_v9 = vpop.eup %11375  ;;  %v2269_v55 = vand.u32 2147483648, %v12140_v10  ;;  %v10834_v62 = vld [vmem:[#allocation4 + $0xc4] sm:$0xf] }
 0x285   :  { %v2234_v27 = vpop.f32.mrf.mxu2  ;;  %11379 = vtanh.f32 %v12138_v58  ;;  %vm1988_vm0 = vmor %vm1986_vm14, %vm1987_vm13  ;;  %v2298_v41 = vmul.f32 %v12149_v9, %v12133_v14  ;;  %v2267_v56 = vand.u32 2147483647, %v12140_v10  ;;  %vm2263_vm5 = vweird.f32 %v12140_v10 }
 0x286   :  { %v1983_v20 = vsub.f32 1.0, %v1982_v17  ;;  %v2285_v27 = vsel %vm12163_vm3, %v12129_v49, %v2281_v52  ;;  %11381 = vtanh.f32 %v2251_v23  ;;  %vm2287_vm6 = vcmp.eq.f32.partialorder %v2286_v2, 8.507059e+37  ;;  %v10830_v23 = vld [vmem:[#allocation4 + $0xa4] sm:$0xf]  ;;  %v8620_v52 = vld [vmem:[#allocation4 + $0xb0] sm:$0xf0] }
 0x287   :  { %2791 = vmatpush.bf16.msrb.mxu2 %v8292_v6  ;;  %v2299_v22 = vsub.f32 1.0, %v2298_v41  ;;  %v2270_v46 = vor.u32 1.1754944e-38, %v2269_v55  ;;  %v8639_v6 = vor.u32 %v10834_v62, %v8636_v53  ;;  %vm2268_vm8 = vcmp.eq.f32.partialorder %v2267_v56, 8.507059e+37  ;;  %v10826_v41 = vld [vmem:[#allocation4 + $0x84] sm:$0xf] }
 0x288   :  { %v1984_v13 = vmul.f32 %v11374_v57, %v1983_v20  ;;  %2765 = vmatpush.bf16.msrb.mxu0 %v8288_v47  ;;  %v8663_v20 = vor.u32 %v10839_v35, %v8660_v45  ;;  %vm2303_vm9 = vweird.f32 %v12149_v9  ;;  %v8588_v62 = vld [vmem:[#allocation4 + $0x70] sm:$0xf0]  ;;  %v10823_v53 = vld [vmem:[#allocation4 + $0x6c] sm:$0xf]  ;;  %v10841_v49 = vld [vmem:[#allocation4 + $0xf4] sm:$0xf0] }
 0x289   :  { %vm12194_vm11 = vmor %vm2302_vm10, %vm2303_vm9 }
 0x28a   :  { %v1985_v3 = vadd.f32 %v11374_v57, %v1984_v13  ;;  %v11378_v33 = vpop.eup %11377  ;;  %v2289_v13 = vor.u32 1.1754944e-38, %v2288_v5 }
 0x28b   :  { %v2259_v18 = vmul.f32 %v11378_v33, %v12140_v10  ;;  %v11380_v48 = vpop.eup %11379  ;;  %vm2264_vm4 = vweird.f32 %v11378_v33 }
 0x28c   :  { %v1989_v34 = vsel %vm1988_vm0, %v11374_v57, %v1985_v3  ;;  %vm12178_vm7 = vmor %vm2263_vm5, %vm2264_vm4  ;;  %v2290_v47 = vsel %vm2287_vm6, %v2289_v13, %v2285_v27  ;;  %v8647_v3 = vor.u32 %v10835_v12, %v8644_v54  ;;  %v11382_v61 = vpop.eup %11381  ;;  %v8650_v12 = vld [vmem:[#allocation4 + $0xe0] sm:$0xf]  ;;  %v10840_v54 = vld [vmem:[#allocation4 + $0xec] sm:$0xf0] }
 0x28d   :  { %v1994_v19 = vsel %vm1991_vm1, %v1993_v36, %v1989_v34  ;;  %v2260_v57 = vsub.f32 1.0, %v2259_v18  ;;  %v10831_v36 = vld [vmem:[#allocation4 + $0xac] sm:$0xf]  ;;  %v2300_v18 = vmul.f32 %v12149_v9, %v2299_v22  ;;  %v2312_v35 = vmul.f32 %v2290_v47, %v12041_v38 }
 0x28e   :  { %v2000_v17 = vmul.f32 %v11380_v48, %v1994_v19  ;;  %v8623_v48 = vor.u32 %v10830_v23, %v8620_v52  ;;  %v8631_v5 = vor.u32 %v10831_v36, %v8628_v1  ;;  %v2308_v38 = vand.u32 2147483648, %v12133_v14  ;;  %v10819_v23 = vld [vmem:[#allocation4 + $0x4c] sm:$0xf]  ;;  %v8580_v52 = vld [vmem:[#allocation4 + $0x58] sm:$0xf0] }
 0x28f   :  { %v2261_v11 = vmul.f32 %v11378_v33, %v2260_v57  ;;  %v8612_v57 = vld [vmem:[#allocation4 + $0x98] sm:$0xf0]  ;;  %v2301_v2 = vadd.f32 %v12149_v9, %v2300_v18  ;;  %v8634_v1 = vld [vmem:[#allocation4 + $0xc0] sm:$0xf] }
 0x290   :  { %v12173_v31 = vpack.c.bf16 %v2000_v17, %v2000_v17  ;;  %v2306_v17 = vand.u32 2147483647, %v12133_v14  ;;  %v8615_v27 = vor.u32 %v10827_v15, %v8612_v57  ;;  %v2309_v14 = vor.u32 1.1754944e-38, %v2308_v38  ;;  %v8564_v15 = vld [vmem:[#allocation4 + $0x38] sm:$0xf0] }
 0x291   :  { %v2262_v21 = vadd.f32 %v11378_v33, %v2261_v11  ;;  %v8596_v11 = vld [vmem:[#allocation4 + $0x78] sm:$0xf0]  ;;  %v2305_v56 = vsel %vm12194_vm11, %v12149_v9, %v2301_v2  ;;  %v8651_v9 = vor.u32 %v10840_v54, %v8650_v12  ;;  %v8618_v2 = vld [vmem:[#allocation4 + $0xa0] sm:$0xf] }
 0x292   :  { %2727 = vmatmul.bf16.vlgmr.msrb.gmra.mxu1 %v12173_v31  ;;  %2753 = vmatmul.bf16.vlgmr.msra.gmra.mxu3 %v12173_v31  ;;  %vm2307_vm12 = vcmp.eq.f32.partialorder %v2306_v17, 8.507059e+37  ;;  %v8599_v22 = vor.u32 %v10823_v53, %v8596_v11  ;;  %v10832_v17 = vld [vmem:[#allocation4 + $0xac] sm:$0xf0]  ;;  %v10811_v53 = vld [vmem:[#allocation4 + $0xc] sm:$0xf] }
 0x293   :  { %3083 = vmatpush.bf16.msrb.mxu1 %v8655_v42  ;;  %3109 = vmatpush.bf16.msra.mxu3 %v8663_v20  ;;  %v2266_v10 = vsel %vm12178_vm7, %v11378_v33, %v2262_v21  ;;  %v8604_v33 = vld [vmem:[#allocation4 + $0x90] sm:$0xf0]  ;;  %v10822_v20 = vld [vmem:[#allocation4 + $0x64] sm:$0xf]  ;;  %v8658_v21 = vld [vmem:[#allocation4 + $0xe8] sm:$0xf] }
 0x294   :  { %v2271_v34 = vsel %vm2268_vm8, %v2270_v46, %v2266_v10  ;;  %v8607_v55 = vor.u32 %v10826_v41, %v8604_v33  ;;  %v8591_v13 = vor.u32 %v10822_v20, %v8588_v62  ;;  %v10818_v46 = vld [vmem:[#allocation4 + $0x44] sm:$0xf]  ;;  %v8659_v36 = vor.u32 %v10841_v49, %v8658_v21  ;;  %v8556_v41 = vld [vmem:[#allocation4 + $0x30] sm:$0xf0]  ;;  %v10815_v33 = vld [vmem:[#allocation4 + $0x2c] sm:$0xf] }
 0x295   :  { %v2313_v45 = vmul.f32 %v11382_v61, %v2271_v34  ;;  %v10836_v61 = vld [vmem:[#allocation4 + $0xcc] sm:$0xf0]  ;;  %v8567_v42 = vor.u32 %v10815_v33, %v8564_v15  ;;  %v10810_v20 = vld [vmem:[#allocation4 + $0x4] sm:$0xf]  ;;  %v8540_v62 = vld [vmem:[#allocation4 + $0x10] sm:$0xf0] }
 0x296   :  { %v8548_v11 = vld [vmem:[#allocation4 + $0x18] sm:$0xf0]  ;;  %v8543_v12 = vor.u32 %v10810_v20, %v8540_v62  ;;  %v8610_v21 = vld [vmem:[#allocation4 + $0x88] sm:$0xf]  ;;  %v10829_v49 = vld [vmem:[#allocation4 + $0x94] sm:$0xf0] }
 0x297   :  { %3084 = vmatpush.bf16.msrb.mxu1 %v8639_v6  ;;  %3110 = vmatpush.bf16.msra.mxu3 %v8647_v3  ;;  %v12187_v19 = vadd.f32 %v2313_v45, %v2312_v35  ;;  %v2310_v6 = vsel %vm2307_vm12, %v2309_v14, %v2305_v56  ;;  %v8572_v3 = vld [vmem:[#allocation4 + $0x50] sm:$0xf0]  ;;  %v8583_v35 = vor.u32 %v10819_v23, %v8580_v52  ;;  %v8642_v45 = vld [vmem:[#allocation4 + $0xc8] sm:$0xf]  ;;  %v10825_v52 = vld [vmem:[#allocation4 + $0x74] sm:$0xf0] }
 0x298   :  { %v8575_v34 = vor.u32 %v10818_v46, %v8572_v3  ;;  %v8619_v56 = vor.u32 %v10832_v17, %v8618_v2  ;;  %v8551_v54 = vor.u32 %v10811_v53, %v8548_v11  ;;  %v10824_v3 = vld [vmem:[#allocation4 + $0x6c] sm:$0xf0]  ;;  %v8594_v23 = vld [vmem:[#allocation4 + $0x68] sm:$0xf]  ;;  %v10817_v33 = vld [vmem:[#allocation4 + $0x34] sm:$0xf0] }
 0x299   :  { %11383 = vtanh.f32 %v12187_v19  ;;  %v10812_v2 = vld [vmem:[#allocation4 + $0xc] sm:$0xf0]  ;;  %v8546_v17 = vld [vmem:[#allocation4 + $0x8] sm:$0xf]  ;;  %v10902_v62 = vld [vmem:[#allocation6 + $0x1e4] sm:$0xf] }
 0x29a   :  { %v10904_v20 = vld [vmem:[#allocation6 + $0x1ec] sm:$0xf0]  ;;  %v8911_v11 = vld [vmem:[#allocation6 + $0x1f0] sm:$0xf0] }
 0x29b   :  { %3085 = vmatpush.bf16.msrb.mxu1 %v8623_v48  ;;  %3111 = vmatpush.bf16.msra.mxu3 %v8631_v5  ;;  %v10837_v48 = vld [vmem:[#allocation4 + $0xd4] sm:$0xf0]  ;;  %v10814_v5 = vld [vmem:[#allocation4 + $0x24] sm:$0xf] }
 0x29c   :  { %v8643_v57 = vor.u32 %v10837_v48, %v8642_v45  ;;  %v8559_v38 = vor.u32 %v10814_v5, %v8556_v41  ;;  %v8554_v48 = vld [vmem:[#allocation4 + $0x20] sm:$0xf]  ;;  %v10816_v5 = vld [vmem:[#allocation4 + $0x2c] sm:$0xf0]  ;;  %v8562_v41 = vld [vmem:[#allocation4 + $0x28] sm:$0xf] }
 0x29d   :  { %v8555_v15 = vor.u32 %v10816_v5, %v8554_v48  ;;  %v8847_v5 = vld [vmem:[#allocation6 + $0x170] sm:$0xf0] }
 0x29f   :  { %3086 = vmatpush.bf16.msrb.mxu1 %v8607_v55  ;;  %3112 = vmatpush.bf16.msra.mxu3 %v8615_v27  ;;  %v11384_v47 = vpop.eup %11383  ;;  %v8626_v55 = vld [vmem:[#allocation4 + $0xa8] sm:$0xf]  ;;  %v10833_v27 = vld [vmem:[#allocation4 + $0xb4] sm:$0xf0] }
 0x2a0   :  { %v2316_v10 = vmul.f32 %v11384_v47, %v2310_v6  ;;  %v8627_v14 = vor.u32 %v10833_v27, %v8626_v55  ;;  %v8611_v47 = vor.u32 %v10829_v49, %v8610_v21  ;;  %v8586_v6 = vld [vmem:[#allocation4 + $0x60] sm:$0xf] }
 0x2a1   :  { %v8909_v27 = vld [vmem:[#allocation6 + $0x1e0] sm:$0xf] }
 0x2a2   :  { %2779 = vmatmul.bf16.vlgmr.msra.gmra.mxu1 %v12173_v31  ;;  %2805 = vmatmul.bf16.vlgmr.msrb.gmra.mxu3 %v12173_v31  ;;  %v12203_v18 = vpack.c.bf16 %v2316_v10, %v2316_v10  ;;  %v8635_v31 = vor.u32 %v10836_v61, %v8634_v1  ;;  %v8587_v10 = vor.u32 %v10824_v3, %v8586_v6  ;;  %v10820_v1 = vld [vmem:[#allocation4 + $0x4c] sm:$0xf0]  ;;  %v8578_v61 = vld [vmem:[#allocation4 + $0x48] sm:$0xf]  ;;  %v8877_v49 = vld [vmem:[#allocation6 + $0x1a0] sm:$0xf] }
 0x2a3   :  { %3087 = vmatpush.bf16.msrb.mxu1 %v8591_v13  ;;  %3113 = vmatpush.bf16.msra.mxu3 %v8599_v22  ;;  %v8602_v13 = vld [vmem:[#allocation4 + $0x80] sm:$0xf]  ;;  %v10828_v22 = vld [vmem:[#allocation4 + $0x8c] sm:$0xf0]  ;;  %v8910_v53 = vor.u32 %v10904_v20, %v8909_v27  ;;  %v8879_v6 = vld [vmem:[#allocation6 + $0x1b0] sm:$0xf0] }
 0x2a4   :  { %2714 = vmatmul.bf16.vlgmr.msra.gmra.mxu0 %v12203_v18  ;;  %2740 = vmatmul.bf16.vlgmr.msra.gmra.mxu2 %v12203_v18  ;;  %v8603_v46 = vor.u32 %v10828_v22, %v8602_v13  ;;  %v8895_v22 = vld [vmem:[#allocation6 + $0x1d0] sm:$0xf0] }
 0x2a5   :  { %3070 = vmatpush.bf16.msra.mxu0 %v8651_v9  ;;  %3096 = vmatpush.bf16.msra.mxu2 %v8659_v36  ;;  %v8595_v9 = vor.u32 %v10825_v52, %v8594_v23  ;;  %v8570_v36 = vld [vmem:[#allocation4 + $0x40] sm:$0xf] }
 0x2a6   :  { %v8861_v52 = vld [vmem:[#allocation6 + $0x180] sm:$0xf] }
 0x2a7   :  { %3088 = vmatpush.bf16.msrb.mxu1 %v8575_v34  ;;  %3114 = vmatpush.bf16.msra.mxu3 %v8583_v35  ;;  %v10821_v34 = vld [vmem:[#allocation4 + $0x54] sm:$0xf0]  ;;  %v8571_v35 = vor.u32 %v10820_v1, %v8570_v36  ;;  %v8863_v1 = vld [vmem:[#allocation6 + $0x190] sm:$0xf0] }
 0x2a8   :  { %v8579_v45 = vor.u32 %v10821_v34, %v8578_v61  ;;  %v8845_v34 = vld [vmem:[#allocation6 + $0x160] sm:$0xf] }
 0x2a9   :  { %3071 = vmatpush.bf16.msra.mxu0 %v8635_v31  ;;  %3097 = vmatpush.bf16.msra.mxu2 %v8643_v57  ;;  %v8563_v31 = vor.u32 %v10817_v33, %v8562_v41  ;;  %v8538_v57 = vld [vmem:[#allocation4] sm:$0xf] }
 0x2ab   :  { %3089 = vmatpush.bf16.msrb.mxu1 %v8559_v38  ;;  %3115 = vmatpush.bf16.msra.mxu3 %v8567_v42  ;;  %v10813_v38 = vld [vmem:[#allocation4 + $0x14] sm:$0xf0]  ;;  %v8539_v42 = vor.u32 %v10812_v2, %v8538_v57  ;;  %v10870_v57 = vld [vmem:[#allocation6 + $0xe4] sm:$0xf] }
 0x2ac   :  { %v8547_v55 = vor.u32 %v10813_v38, %v8546_v17  ;;  %v8783_v38 = vld [vmem:[#allocation6 + $0xf0] sm:$0xf0] }
 0x2ad   :  { %3072 = vmatpush.bf16.msra.mxu0 %v8619_v56  ;;  %3098 = vmatpush.bf16.msra.mxu2 %v8627_v14  ;;  %v8914_v56 = vor.u32 %v10902_v62, %v8911_v11  ;;  %v8893_v14 = vld [vmem:[#allocation6 + $0x1c0] sm:$0xf]  ;;  %v8786_v27 = vor.u32 %v10870_v57, %v8783_v38  ;;  %v10882_v62 = vld [vmem:[#allocation6 + $0x144] sm:$0xf]  ;;  %v10905_v57 = vld [vmem:[#allocation6 + $0x1f4] sm:$0xf0] }
 0x2af   :  { %3090 = vmatpush.bf16.msrb.mxu1 %v8543_v12  ;;  %3116 = vmatpush.bf16.msra.mxu3 %v8551_v54  ;;  %v10900_v12 = vld [vmem:[#allocation6 + $0x1cc] sm:$0xf0]  ;;  %v10898_v54 = vld [vmem:[#allocation6 + $0x1c4] sm:$0xf] }
 0x2b0   :  { %v8894_v13 = vor.u32 %v10900_v12, %v8893_v14  ;;  %v8898_v21 = vor.u32 %v10898_v54, %v8895_v22  ;;  %v10868_v14 = vld [vmem:[#allocation6 + $0xcc] sm:$0xf0]  ;;  %v10866_v12 = vld [vmem:[#allocation6 + $0xc4] sm:$0xf]  ;;  %v8813_v22 = vld [vmem:[#allocation6 + $0x120] sm:$0xf] }
 0x2b1   :  { %3073 = vmatpush.bf16.msra.mxu0 %v8603_v46  ;;  %3099 = vmatpush.bf16.msra.mxu2 %v8611_v47  ;;  %v10896_v46 = vld [vmem:[#allocation6 + $0x1ac] sm:$0xf0]  ;;  %v10894_v47 = vld [vmem:[#allocation6 + $0x1a4] sm:$0xf] }
 0x2b2   :  { %3091 = vmatmul.bf16.vlgmr.msrb.gmra.mxu1 %v12203_v18  ;;  %3117 = vmatmul.bf16.vlgmr.msra.gmra.mxu3 %v12203_v18  ;;  %v8882_v3 = vor.u32 %v10894_v47, %v8879_v6  ;;  %v10878_v47 = vld [vmem:[#allocation6 + $0x124] sm:$0xf] }
 0x2b3   :  { %3592 = vmatpush.bf16.msra.mxu1 %v8910_v53  ;;  %3618 = vmatpush.bf16.msrb.mxu3 %v8914_v56  ;;  %v8831_v53 = vld [vmem:[#allocation6 + $0x150] sm:$0xf0]  ;;  %v8765_v56 = vld [vmem:[#allocation6 + $0xc0] sm:$0xf] }
 0x2b4   :  { %2766 = vmatmul.bf16.vlgmr.msrb.gmra.mxu0 %v12203_v18  ;;  %2792 = vmatmul.bf16.vlgmr.msrb.gmra.mxu2 %v12203_v18  ;;  %v8834_v11 = vor.u32 %v10882_v62, %v8831_v53  ;;  %v8766_v54 = vor.u32 %v10868_v14, %v8765_v56  ;;  %v10858_v62 = vld [vmem:[#allocation6 + $0x84] sm:$0xf]  ;;  %v8735_v56 = vld [vmem:[#allocation6 + $0x90] sm:$0xf0] }
 0x2b5   :  { %3074 = vmatpush.bf16.msra.mxu0 %v8587_v10  ;;  %3100 = vmatpush.bf16.msra.mxu2 %v8595_v9  ;;  %v10892_v10 = vld [vmem:[#allocation6 + $0x18c] sm:$0xf0]  ;;  %v10890_v9 = vld [vmem:[#allocation6 + $0x184] sm:$0xf]  ;;  %v8738_v14 = vor.u32 %v10858_v62, %v8735_v56  ;;  %v10893_v62 = vld [vmem:[#allocation6 + $0x194] sm:$0xf0] }
 0x2b6   :  { %v8862_v36 = vor.u32 %v10892_v10, %v8861_v52  ;;  %v8866_v61 = vor.u32 %v10890_v9, %v8863_v1  ;;  %v8749_v52 = vld [vmem:[#allocation6 + $0xa0] sm:$0xf]  ;;  %v10864_v10 = vld [vmem:[#allocation6 + $0xac] sm:$0xf0]  ;;  %v10862_v9 = vld [vmem:[#allocation6 + $0xa4] sm:$0xf] }
 0x2b7   :  { %3593 = vmatpush.bf16.msra.mxu1 %v8894_v13  ;;  %3619 = vmatpush.bf16.msrb.mxu3 %v8898_v21  ;;  %v8767_v13 = vld [vmem:[#allocation6 + $0xd0] sm:$0xf0]  ;;  %v10880_v21 = vld [vmem:[#allocation6 + $0x12c] sm:$0xf0]  ;;  %v8750_v1 = vor.u32 %v10864_v10, %v8749_v52 }
 0x2b9   :  { %3075 = vmatpush.bf16.msra.mxu0 %v8571_v35  ;;  %3101 = vmatpush.bf16.msra.mxu2 %v8579_v45  ;;  %v10888_v35 = vld [vmem:[#allocation6 + $0x16c] sm:$0xf0]  ;;  %v10886_v45 = vld [vmem:[#allocation6 + $0x164] sm:$0xf] }
 0x2ba   :  { %v8846_v48 = vor.u32 %v10888_v35, %v8845_v34  ;;  %v8850_v33 = vor.u32 %v10886_v45, %v8847_v5  ;;  %v8797_v34 = vld [vmem:[#allocation6 + $0x100] sm:$0xf]  ;;  %v10876_v35 = vld [vmem:[#allocation6 + $0x10c] sm:$0xf0]  ;;  %v10874_v5 = vld [vmem:[#allocation6 + $0x104] sm:$0xf] }
 0x2bb   :  { %3620 = vmatpush.bf16.msrb.mxu3 %v8882_v3 }
 0x2bd   :  { %3076 = vmatpush.bf16.msra.mxu0 %v8555_v15  ;;  %3102 = vmatpush.bf16.msra.mxu2 %v8563_v31  ;;  %v8781_v15 = vld [vmem:[#allocation6 + $0xe0] sm:$0xf]  ;;  %v10872_v31 = vld [vmem:[#allocation6 + $0xec] sm:$0xf0] }
 0x2be   :  { %v8782_v17 = vor.u32 %v10872_v31, %v8781_v15  ;;  %v8917_v15 = vld [vmem:[#allocation6 + $0x1e8] sm:$0xf] }
 0x2bf   :  { %3621 = vmatpush.bf16.msrb.mxu3 %v8866_v61  ;;  %v8751_v61 = vld [vmem:[#allocation6 + $0xb0] sm:$0xf0] }
 0x2c0   :  { %v8754_v45 = vor.u32 %v10862_v9, %v8751_v61 }
 0x2c1   :  { %3077 = vmatpush.bf16.msra.mxu0 %v8539_v42  ;;  %3103 = vmatpush.bf16.msra.mxu2 %v8547_v55  ;;  %v8829_v42 = vld [vmem:[#allocation6 + $0x140] sm:$0xf]  ;;  %v10884_v55 = vld [vmem:[#allocation6 + $0x14c] sm:$0xf0] }
 0x2c2   :  { %v8830_v20 = vor.u32 %v10884_v55, %v8829_v42  ;;  %v8918_v42 = vor.u32 %v10905_v57, %v8917_v15  ;;  %v8701_v57 = vld [vmem:[#allocation6 + $0x40] sm:$0xf] }
 0x2c3   :  { %3622 = vmatpush.bf16.msrb.mxu3 %v8850_v33  ;;  %v8799_v33 = vld [vmem:[#allocation6 + $0x110] sm:$0xf0] }
 0x2c4   :  { %3078 = vmatmul.bf16.vlgmr.msra.gmra.mxu0 %v12203_v18  ;;  %3104 = vmatmul.bf16.vlgmr.msra.gmra.mxu2 %v12203_v18  ;;  %v8878_v18 = vor.u32 %v10896_v46, %v8877_v49  ;;  %v8770_v49 = vor.u32 %v10866_v12, %v8767_v13  ;;  %v8814_v46 = vor.u32 %v10880_v21, %v8813_v22  ;;  %v8901_v12 = vld [vmem:[#allocation6 + $0x1c8] sm:$0xf]  ;;  %v10899_v13 = vld [vmem:[#allocation6 + $0x1cc] sm:$0xf] }
 0x2c5   :  { %3579 = vmatpush.bf16.msrb.mxu0 %v8782_v17  ;;  %3605 = vmatpush.bf16.msrb.mxu2 %v8786_v27  ;;  %v8802_v31 = vor.u32 %v10874_v5, %v8799_v33  ;;  %v8919_v17 = vld [vmem:[#allocation6 + $0x1f8] sm:$0xf0]  ;;  %v8733_v27 = vld [vmem:[#allocation6 + $0x80] sm:$0xf] }
 0x2c6   :  { %3594 = vmatpush.bf16.msra.mxu1 %v8878_v18  ;;  %v8815_v18 = vld [vmem:[#allocation6 + $0x130] sm:$0xf0]  ;;  %v8887_v33 = vld [vmem:[#allocation6 + $0x1b8] sm:$0xf0] }
 0x2c7   :  { %3623 = vmatpush.bf16.msrb.mxu3 %v8834_v11  ;;  %v8818_v3 = vor.u32 %v10878_v47, %v8815_v18  ;;  %v8717_v18 = vld [vmem:[#allocation6 + $0x60] sm:$0xf] }
 0x2c9   :  { %3580 = vmatpush.bf16.msrb.mxu0 %v8766_v54  ;;  %3606 = vmatpush.bf16.msrb.mxu2 %v8770_v49  ;;  %v10901_v54 = vld [vmem:[#allocation6 + $0x1d4] sm:$0xf0] }
 0x2ca   :  { %3595 = vmatpush.bf16.msra.mxu1 %v8862_v36  ;;  %v8902_v49 = vor.u32 %v10901_v54, %v8901_v12  ;;  %v8871_v12 = vld [vmem:[#allocation6 + $0x198] sm:$0xf0]  ;;  %v175_v54 = vadd.f32 %v11824_v51, %v11802_v16 }
 0x2cb   :  { %3624 = vmatpush.bf16.msrb.mxu3 %v8818_v3  ;;  %v10854_v3 = vld [vmem:[#allocation6 + $0x64] sm:$0xf] }
 0x2cd   :  { %3581 = vmatpush.bf16.msrb.mxu0 %v8750_v1  ;;  %3607 = vmatpush.bf16.msrb.mxu2 %v8754_v45  ;;  %v8719_v1 = vld [vmem:[#allocation6 + $0x70] sm:$0xf0]  ;;  %v10895_v45 = vld [vmem:[#allocation6 + $0x1ac] sm:$0xf] }
 0x2ce   :  { %3596 = vmatpush.bf16.msra.mxu1 %v8846_v48  ;;  %v8798_v48 = vor.u32 %v10876_v35, %v8797_v34  ;;  %v8722_v34 = vor.u32 %v10854_v3, %v8719_v1  ;;  %v8885_v35 = vld [vmem:[#allocation6 + $0x1a8] sm:$0xf] }
 0x2cf   :  { %3625 = vmatpush.bf16.msrb.mxu3 %v8802_v31  ;;  %v8890_v31 = vor.u32 %v10895_v45, %v8887_v33  ;;  %v8853_v1 = vld [vmem:[#allocation6 + $0x168] sm:$0xf]  ;;  %v10844_v33 = vld [vmem:[#allocation6 + $0xc] sm:$0xf0] }
 0x2d1   :  { %3608 = vmatpush.bf16.msrb.mxu2 %v8738_v14 }
 0x2d2   :  { %3597 = vmatpush.bf16.msra.mxu1 %v8830_v20  ;;  %v10860_v20 = vld [vmem:[#allocation6 + $0x8c] sm:$0xf0] }
 0x2d3   :  { %v8734_v11 = vor.u32 %v10860_v20, %v8733_v27  ;;  %v8869_v20 = vld [vmem:[#allocation6 + $0x188] sm:$0xf] }
 0x2d4   :  { %v8870_v14 = vor.u32 %v10893_v62, %v8869_v20 }
 0x2d5   :  { %3582 = vmatpush.bf16.msrb.mxu0 %v8734_v11  ;;  %3609 = vmatpush.bf16.msrb.mxu2 %v8722_v34  ;;  %v10887_v34 = vld [vmem:[#allocation6 + $0x16c] sm:$0xf] }
 0x2d6   :  { %3598 = vmatpush.bf16.msra.mxu1 %v8814_v46  ;;  %v8903_v46 = vld [vmem:[#allocation6 + $0x1d8] sm:$0xf0] }
 0x2d7   :  { %v8906_v47 = vor.u32 %v10899_v13, %v8903_v46 }
 0x2da   :  { %3599 = vmatpush.bf16.msra.mxu1 %v8798_v48 }
 0x2de   :  { %3644 = vmatpush.bf16.msrb.mxu1 %v8918_v42 }
 0x2e2   :  { %3645 = vmatpush.bf16.msrb.mxu1 %v8902_v49  ;;  %v10846_v49 = vld [vmem:[#allocation6 + $0x24] sm:$0xf] }
 0x30f   :  { %v12213_v23 = vpop.f32.mrf.mxu1 }
 0x315   :  { %v12215_v41 = vpop.f32.mrf.mxu3 }
 0x317   :  { %v2730_v2 = vpop.f32.mrf.mxu1 }
 0x318   :  { %v10903_v2 = vld [vmem:[#allocation6 + $0x1ec] sm:$0xf] }
 0x319   :  { %v8922_v55 = vor.u32 %v10903_v2, %v8919_v17  ;;  %v10852_v2 = vld [vmem:[#allocation6 + $0x4c] sm:$0xf0]  ;;  %v10850_v17 = vld [vmem:[#allocation6 + $0x44] sm:$0xf] }
 0x31a   :  { %v8702_v42 = vor.u32 %v10852_v2, %v8701_v57  ;;  %v8671_v57 = vld [vmem:[#allocation6 + $0x10] sm:$0xf0]  ;;  %v8789_v2 = vld [vmem:[#allocation6 + $0xe8] sm:$0xf] }
 0x31b   :  { %3670 = vmatpush.bf16.msra.mxu3 %v8922_v55  ;;  %v8703_v55 = vld [vmem:[#allocation6 + $0x50] sm:$0xf0] }
 0x31c   :  { %v8706_v27 = vor.u32 %v10850_v17, %v8703_v55  ;;  %v10871_v55 = vld [vmem:[#allocation6 + $0xec] sm:$0xf] }
 0x31d   :  { %v2756_v6 = vpop.f32.mrf.mxu3 }
 0x31e   :  { %v10856_v6 = vld [vmem:[#allocation6 + $0x6c] sm:$0xf0]  ;;  %3610 = vmatpush.bf16.msrb.mxu2 %v8706_v27 }
 0x31f   :  { %v12217_v36 = vpop.f32.mrf.mxu1  ;;  %v8718_v9 = vor.u32 %v10856_v6, %v8717_v18  ;;  %3671 = vmatpush.bf16.msra.mxu3 %v8906_v47  ;;  %v8687_v6 = vld [vmem:[#allocation6 + $0x30] sm:$0xf0] }
 0x321   :  { %v2715_v38 = vpop.f32.mrf.mxu0  ;;  %3583 = vmatpush.bf16.msrb.mxu0 %v8718_v9  ;;  %v8690_v9 = vor.u32 %v10846_v49, %v8687_v6  ;;  %v10869_v6 = vld [vmem:[#allocation6 + $0xd4] sm:$0xf0] }
 0x322   :  { %v2716_v53 = vadd.f32 %v2715_v38, %v11906_v25 }
 0x323   :  { %3672 = vmatpush.bf16.msra.mxu3 %v8890_v31  ;;  %3611 = vmatpush.bf16.msrb.mxu2 %v8690_v9 }
 0x324   :  { %v2729_v22 = vadd.f32 %v12213_v23, %v2716_v53  ;;  %v10897_v23 = vld [vmem:[#allocation6 + $0x1b4] sm:$0xf0]  ;;  %v10891_v53 = vld [vmem:[#allocation6 + $0x18c] sm:$0xf] }
 0x325   :  { %v12221_v21 = vpop.f32.mrf.mxu3  ;;  %v8886_v5 = vor.u32 %v10897_v23, %v8885_v35  ;;  %3584 = vmatpush.bf16.msrb.mxu0 %v8702_v42  ;;  %v8874_v13 = vor.u32 %v10891_v53, %v8871_v12  ;;  %v8855_v35 = vld [vmem:[#allocation6 + $0x178] sm:$0xf0]  ;;  %v10873_v42 = vld [vmem:[#allocation6 + $0xf4] sm:$0xf0] }
 0x326   :  { %v8533_v52 = vmul.f32 -1.442695, %v2729_v22  ;;  %v8685_v22 = vld [vmem:[#allocation6 + $0x20] sm:$0xf]  ;;  %v8790_v62 = vor.u32 %v10873_v42, %v8789_v2  ;;  %v8791_v53 = vld [vmem:[#allocation6 + $0xf8] sm:$0xf0] }
 0x327   :  { %v2782_v10 = vpop.f32.mrf.mxu1  ;;  %v2741_v61 = vpop.f32.mrf.mxu2  ;;  %3646 = vmatpush.bf16.msrb.mxu1 %v8886_v5  ;;  %3673 = vmatpush.bf16.msra.mxu3 %v8874_v13  ;;  %v8858_v5 = vor.u32 %v10887_v34, %v8855_v35  ;;  %v8794_v12 = vor.u32 %v10871_v55, %v8791_v53  ;;  %v10883_v13 = vld [vmem:[#allocation6 + $0x14c] sm:$0xf]  ;;  %v8757_v2 = vld [vmem:[#allocation6 + $0xa8] sm:$0xf] }
 0x328   :  { %11385 = vpow2.f32 %v8533_v52  ;;  %v2742_v48 = vadd.f32 %v2741_v61, %v11910_v28  ;;  %v10889_v61 = vld [vmem:[#allocation6 + $0x174] sm:$0xf0]  ;;  %v10863_v55 = vld [vmem:[#allocation6 + $0xac] sm:$0xf] }
 0x329   :  { %v2717_v15 = vpop.f32.mrf.mxu0  ;;  %v8854_v51 = vor.u32 %v10889_v61, %v8853_v1  ;;  %v8775_v61 = vld [vmem:[#allocation6 + $0xd8] sm:$0xf0] }
 0x32a   :  { %v2755_v38 = vadd.f32 %v12215_v41, %v2742_v48  ;;  %v10848_v41 = vld [vmem:[#allocation6 + $0x2c] sm:$0xf0]  ;;  %v8669_v48 = vld [vmem:[#allocation6] sm:$0xf]  ;;  %v10842_v15 = vld [vmem:[#allocation6 + $0x4] sm:$0xf] }
 0x32b   :  { %v8686_v18 = vor.u32 %v10848_v41, %v8685_v22  ;;  %3647 = vmatpush.bf16.msrb.mxu1 %v8870_v14  ;;  %v8670_v31 = vor.u32 %v10844_v33, %v8669_v48  ;;  %3674 = vmatpush.bf16.msra.mxu3 %v8858_v5  ;;  %v8839_v22 = vld [vmem:[#allocation6 + $0x158] sm:$0xf0]  ;;  %v10881_v48 = vld [vmem:[#allocation6 + $0x134] sm:$0xf0]  ;;  %v10879_v5 = vld [vmem:[#allocation6 + $0x12c] sm:$0xf] }
 0x32c   :  { %v8534_v11 = vmul.f32 -1.442695, %v2755_v38  ;;  %v8674_v38 = vor.u32 %v10842_v15, %v8671_v57  ;;  %v8842_v1 = vor.u32 %v10883_v13, %v8839_v22  ;;  %v8823_v57 = vld [vmem:[#allocation6 + $0x138] sm:$0xf0]  ;;  %v10875_v22 = vld [vmem:[#allocation6 + $0x10c] sm:$0xf] }
 0x32d   :  { %v2808_v56 = vpop.f32.mrf.mxu3  ;;  %3585 = vmatpush.bf16.msrb.mxu0 %v8686_v18 }
 0x32e   :  { %v11386_v46 = vpop.eup %11385  ;;  %11387 = vpow2.f32 %v8534_v11  ;;  %v8837_v11 = vld [vmem:[#allocation6 + $0x148] sm:$0xf]  ;;  %v233_v56 = vadd.f32 %v11806_v0, %v11789_v39  ;;  %3612 = vmatpush.bf16.msrb.mxu2 %v8674_v38 }
 0x32f   :  { %v3092_v47 = vpop.f32.mrf.mxu1  ;;  %v12227_v3 = vadd.f32 1.0, %v11386_v46  ;;  %v2743_v10 = vpop.f32.mrf.mxu2  ;;  %3648 = vmatpush.bf16.msrb.mxu1 %v8854_v51  ;;  %v8773_v0 = vld [vmem:[#allocation6 + $0xc8] sm:$0xf]  ;;  %3675 = vmatpush.bf16.msra.mxu3 %v8842_v1 }
 0x330   :  { %v3123_v52 = vadd.f32 %v3092_v47, %v175_v54  ;;  %v10885_v54 = vld [vmem:[#allocation6 + $0x154] sm:$0xf0]  ;;  %v8821_v51 = vld [vmem:[#allocation6 + $0x128] sm:$0xf]  ;;  %v8774_v33 = vor.u32 %v10869_v6, %v8773_v0  ;;  %v8807_v0 = vld [vmem:[#allocation6 + $0x118] sm:$0xf0] }
 0x331   :  { %11389 = vrcp.f32 %v12227_v3  ;;  %v2767_v45 = vpop.f32.mrf.mxu0  ;;  %3586 = vmatpush.bf16.msrb.mxu0 %v8670_v31  ;;  %v8838_v9 = vor.u32 %v10885_v54, %v8837_v11  ;;  %v8822_v31 = vor.u32 %v10881_v48, %v8821_v51  ;;  %v8743_v48 = vld [vmem:[#allocation6 + $0x98] sm:$0xf0]  ;;  %vm2820_vm15 = vweird.f32 %v12227_v3 }
 0x332   :  { %v8665_v23 = vmul.f32 -1.442695, %v3123_v52  ;;  %3657 = vmatpush.bf16.msra.mxu2 %v8794_v12  ;;  %v10867_v52 = vld [vmem:[#allocation6 + $0xcc] sm:$0xf]  ;;  %v2768_v38 = vadd.f32 %v2767_v45, %v11936_v4  ;;  %v8805_v12 = vld [vmem:[#allocation6 + $0x108] sm:$0xf] }
 0x333   :  { %3649 = vmatpush.bf16.msrb.mxu1 %v8838_v9  ;;  %v8778_v15 = vor.u32 %v10867_v52, %v8775_v61  ;;  %v10877_v45 = vld [vmem:[#allocation6 + $0x114] sm:$0xf0]  ;;  %v8741_v61 = vld [vmem:[#allocation6 + $0x88] sm:$0xf] }
 0x334   :  { %v11388_v17 = vpop.eup %11387  ;;  %11391 = vpow2.f32 %v8665_v23  ;;  %v2781_v52 = vadd.f32 %v12217_v36, %v2768_v38 }
 0x335   :  { %v12230_v27 = vadd.f32 1.0, %v11388_v17  ;;  %v3118_v20 = vpop.f32.mrf.mxu3  ;;  %3631 = vmatpush.bf16.msra.mxu0 %v8790_v62  ;;  %v10865_v17 = vld [vmem:[#allocation6 + $0xb4] sm:$0xf0] }
 0x336   :  { %v3125_v47 = vadd.f32 %v3118_v20, %v233_v56  ;;  %v8759_v20 = vld [vmem:[#allocation6 + $0xb8] sm:$0xf0]  ;;  %3658 = vmatpush.bf16.msra.mxu2 %v8778_v15  ;;  %v8826_v56 = vor.u32 %v10879_v5, %v8823_v57  ;;  %v2826_v5 = vand.u32 2147483648, %v12227_v3  ;;  %v2824_v15 = vand.u32 2147483647, %v12227_v3 }
 0x337   :  { %v3094_v14 = vpop.f32.mrf.mxu1  ;;  %v12234_v41 = vpop.eup %11389  ;;  %11393 = vrcp.f32 %v12230_v27  ;;  %3650 = vmatpush.bf16.msrb.mxu1 %v8822_v31  ;;  %v2845_v9 = vand.u32 2147483648, %v12230_v27  ;;  %vm2839_vm0 = vweird.f32 %v12230_v27 }
 0x338   :  { %v2793_v49 = vpop.f32.mrf.mxu2  ;;  %v2816_v46 = vmul.f32 %v12234_v41, %v12227_v3  ;;  %v8666_v42 = vmul.f32 -1.442695, %v3125_v47  ;;  %v8758_v14 = vor.u32 %v10865_v17, %v8757_v2  ;;  %3676 = vmatpush.bf16.msra.mxu3 %v8826_v56  ;;  %v8762_v47 = vor.u32 %v10863_v55, %v8759_v20 }
 0x339   :  { %v2794_v18 = vadd.f32 %v2793_v49, %v11928_v7  ;;  %v2769_v10 = vpop.f32.mrf.mxu0  ;;  %3632 = vmatpush.bf16.msra.mxu0 %v8774_v33  ;;  %v146_v49 = vadd.f32 %v11794_v43, %v11761_v59  ;;  %vm2821_vm13 = vweird.f32 %v12234_v41  ;;  %v2843_v43 = vand.u32 2147483647, %v12230_v27  ;;  %v8695_v33 = vld [vmem:[#allocation6 + $0x38] sm:$0xf0] }
 0x33a   :  { %v11392_v34 = vpop.eup %11391  ;;  %v2817_v35 = vsub.f32 1.0, %v2816_v46  ;;  %v8810_v10 = vor.u32 %v10875_v22, %v8807_v0  ;;  %3659 = vmatpush.bf16.msra.mxu2 %v8762_v47  ;;  %vm12264_vm1 = vmor %vm2820_vm15, %vm2821_vm13  ;;  %v2846_v17 = vor.u32 1.1754944e-38, %v2845_v9  ;;  %vm2825_vm4 = vcmp.eq.f32.partialorder %v2824_v15, 8.507059e+37  ;;  %v8709_v47 = vld [vmem:[#allocation6 + $0x48] sm:$0xf] }
 0x33b   :  { %v2807_v23 = vadd.f32 %v12221_v21, %v2794_v18  ;;  %v12244_v53 = vadd.f32 1.0, %v11392_v34  ;;  %v8806_v18 = vor.u32 %v10877_v45, %v8805_v12  ;;  %vm2844_vm3 = vcmp.eq.f32.partialorder %v2843_v43, 8.507059e+37  ;;  %v10851_v0 = vld [vmem:[#allocation6 + $0x4c] sm:$0xf]  ;;  %v8711_v9 = vld [vmem:[#allocation6 + $0x58] sm:$0xf0] }
 0x33c   :  { %v2818_v13 = vmul.f32 %v12234_v41, %v2817_v35  ;;  %v10861_v35 = vld [vmem:[#allocation6 + $0x94] sm:$0xf0]  ;;  %3677 = vmatpush.bf16.msra.mxu3 %v8810_v10 }
 0x33d   :  { %v12242_v62 = vpop.eup %11393  ;;  %v8535_v21 = vmul.f32 -1.442695, %v2807_v23  ;;  %v3120_v11 = vpop.f32.mrf.mxu3  ;;  %3633 = vmatpush.bf16.msra.mxu0 %v8758_v14  ;;  %v10859_v23 = vld [vmem:[#allocation6 + $0x8c] sm:$0xf]  ;;  %3651 = vmatpush.bf16.msrb.mxu1 %v8806_v18  ;;  %v8742_v38 = vor.u32 %v10861_v35, %v8741_v61  ;;  %v2827_v14 = vor.u32 1.1754944e-38, %v2826_v5  ;;  %vm3155_vm10 = vweird.f32 %v12244_v53 }
 0x33e   :  { %v2835_v54 = vmul.f32 %v12242_v62, %v12230_v27  ;;  %vm2840_vm14 = vweird.f32 %v12242_v62  ;;  %v2819_v36 = vadd.f32 %v12234_v41, %v2818_v13  ;;  %v10857_v11 = vld [vmem:[#allocation6 + $0x74] sm:$0xf0]  ;;  %v10855_v13 = vld [vmem:[#allocation6 + $0x6c] sm:$0xf] }
 0x33f   :  { %11395 = vpow2.f32 %v8535_v21  ;;  %vm2841_vm2 = vmor %vm2839_vm0, %vm2840_vm14  ;;  %v8725_v21 = vld [vmem:[#allocation6 + $0x68] sm:$0xf]  ;;  %v10853_v18 = vld [vmem:[#allocation6 + $0x54] sm:$0xf0] }
 0x340   :  { %v2795_v46 = vpop.f32.mrf.mxu2  ;;  %v2836_v6 = vsub.f32 1.0, %v2835_v54  ;;  %11397 = vpow2.f32 %v8666_v42  ;;  %v8746_v42 = vor.u32 %v10859_v23, %v8743_v48  ;;  %v2823_v55 = vsel %vm12264_vm1, %v12234_v41, %v2819_v36  ;;  %v8727_v41 = vld [vmem:[#allocation6 + $0x78] sm:$0xf0]  ;;  %v8693_v36 = vld [vmem:[#allocation6 + $0x28] sm:$0xf] }
 0x341   :  { %11399 = vrcp.f32 %v12244_v53  ;;  %v3079_v1 = vpop.f32.mrf.mxu0  ;;  %3634 = vmatpush.bf16.msra.mxu0 %v8742_v38  ;;  %v2828_v45 = vsel %vm2825_vm4, %v2827_v14, %v2823_v55  ;;  %v8726_v22 = vor.u32 %v10857_v11, %v8725_v21  ;;  %v8730_v10 = vor.u32 %v10855_v13, %v8727_v41  ;;  %v10847_v5 = vld [vmem:[#allocation6 + $0x2c] sm:$0xf]  ;;  %v8679_v21 = vld [vmem:[#allocation6 + $0x18] sm:$0xf0] }
 0x342   :  { %v2837_v51 = vmul.f32 %v12242_v62, %v2836_v6  ;;  %v3122_v34 = vadd.f32 %v3079_v1, %v146_v49  ;;  %11401 = vtanh.f32 %v2781_v52  ;;  %3660 = vmatpush.bf16.msra.mxu2 %v8746_v42  ;;  %v8710_v61 = vor.u32 %v10853_v18, %v8709_v47  ;;  %v10845_v42 = vld [vmem:[#allocation6 + $0x14] sm:$0xf0]  ;;  %v10934_v18 = vld [vmem:[#allocation4 + $0xe4] sm:$0xf] }
 0x343   :  { %v8698_v38 = vor.u32 %v10847_v5, %v8695_v33  ;;  %v204_v13 = vadd.f32 %v11804_v63, %v11786_v37 }
 0x344   :  { %v2838_v31 = vadd.f32 %v12242_v62, %v2837_v51  ;;  %v8664_v57 = vmul.f32 -1.442695, %v3122_v34  ;;  %v8714_v51 = vor.u32 %v10851_v0, %v8711_v9  ;;  %v10849_v34 = vld [vmem:[#allocation6 + $0x34] sm:$0xf0]  ;;  %v9042_v0 = vld [vmem:[#allocation4 + $0xf0] sm:$0xf0] }
 0x345   :  { %v11396_v2 = vpop.eup %11395  ;;  %3635 = vmatpush.bf16.msra.mxu0 %v8726_v22  ;;  %v9050_v9 = vld [vmem:[#allocation4 + $0xf8] sm:$0xf0] }
 0x346   :  { %v11398_v27 = vpop.eup %11397  ;;  %v2842_v20 = vsel %vm2841_vm2, %v12242_v62, %v2838_v31  ;;  %v12276_v3 = vadd.f32 1.0, %v11396_v2  ;;  %11403 = vpow2.f32 %v8664_v57  ;;  %3661 = vmatpush.bf16.msra.mxu2 %v8730_v10  ;;  %v8694_v31 = vor.u32 %v10849_v34, %v8693_v36  ;;  %v8677_v2 = vld [vmem:[#allocation6 + $0x8] sm:$0xf]  ;;  %v10935_v10 = vld [vmem:[#allocation4 + $0xec] sm:$0xf] }
 0x347   :  { %v12278_v56 = vpop.eup %11399  ;;  %v2847_v12 = vsel %vm2844_vm3, %v2846_v17, %v2842_v20  ;;  %v12284_v52 = vadd.f32 1.0, %v11398_v27  ;;  %v10843_v20 = vld [vmem:[#allocation6 + $0xc] sm:$0xf]  ;;  %v3159_v36 = vand.u32 2147483647, %v12244_v53  ;;  %v9053_v33 = vor.u32 %v10935_v10, %v9050_v9 }
 0x348   :  { %11405 = vrcp.f32 %v12276_v3  ;;  %v3105_v54 = vpop.f32.mrf.mxu2  ;;  %v3151_v49 = vmul.f32 %v12278_v56, %v12244_v53  ;;  %v2869_v46 = vmul.f32 %v2847_v12, %v12138_v58  ;;  %v11402_v6 = vpop.eup %11401  ;;  %v2865_v55 = vand.u32 2147483648, %v12276_v3  ;;  %v10922_v10 = vld [vmem:[#allocation4 + $0x84] sm:$0xf] }
 0x349   :  { %v3081_v62 = vpop.f32.mrf.mxu0  ;;  %v2870_v43 = vmul.f32 %v11402_v6, %v2828_v45  ;;  %11407 = vrcp.f32 %v12284_v52  ;;  %3636 = vmatpush.bf16.msra.mxu0 %v8710_v61  ;;  %v2863_v14 = vand.u32 2147483647, %v12276_v3  ;;  %v8678_v12 = vor.u32 %v10845_v42, %v8677_v2  ;;  %v8930_v61 = vld [vmem:[#allocation4 + $0x10] sm:$0xf0] }
 0x34a   :  { %v3152_v23 = vsub.f32 1.0, %v3151_v49  ;;  %3662 = vmatpush.bf16.msra.mxu2 %v8714_v51  ;;  %vm2859_vm6 = vweird.f32 %v12276_v3  ;;  %v8682_v62 = vor.u32 %v10843_v20, %v8679_v21  ;;  %vm3156_vm7 = vweird.f32 %v12278_v56 }
 0x34b   :  { %v12286_v48 = vadd.f32 %v2870_v43, %v2869_v46  ;;  %v3124_v49 = vadd.f32 %v3105_v54, %v204_v13  ;;  %v2866_v47 = vor.u32 1.1754944e-38, %v2865_v55  ;;  %vm2864_vm9 = vcmp.eq.f32.partialorder %v2863_v14, 8.507059e+37  ;;  %vm12311_vm11 = vmor %vm3155_vm10, %vm3156_vm7  ;;  %v9010_v13 = vld [vmem:[#allocation4 + $0xb0] sm:$0xf0] }
 0x34c   :  { %v11404_v1 = vpop.eup %11403  ;;  %v3153_v27 = vmul.f32 %v12278_v56, %v3152_v23  ;;  %v3161_v43 = vand.u32 2147483648, %v12244_v53  ;;  %v10931_v53 = vld [vmem:[#allocation4 + $0xcc] sm:$0xf]  ;;  %vm3160_vm14 = vcmp.eq.f32.partialorder %v3159_v36, 8.507059e+37  ;;  %vm3175_vm2 = vweird.f32 %v12284_v52 }
 0x34d   :  { %v12288_v58 = vadd.f32 1.0, %v11404_v1  ;;  %3637 = vmatpush.bf16.msra.mxu0 %v8694_v31  ;;  %v9026_v31 = vld [vmem:[#allocation4 + $0xd0] sm:$0xf0] }
 0x34e   :  { %v11406_v35 = vpop.eup %11405  ;;  %3663 = vmatpush.bf16.msra.mxu2 %v8698_v38  ;;  %v3154_v46 = vadd.f32 %v12278_v56, %v3153_v27  ;;  %v9034_v38 = vld [vmem:[#allocation4 + $0xd8] sm:$0xf0]  ;;  %v3162_v42 = vor.u32 1.1754944e-38, %v3161_v43 }
 0x34f   :  { %v2855_v15 = vmul.f32 %v11406_v35, %v12276_v3  ;;  %11409 = vrcp.f32 %v12288_v58  ;;  %vm2860_vm5 = vweird.f32 %v11406_v35  ;;  %v12299_v41 = vpop.eup %11407  ;;  %v3142_v23 = vand.u32 2147483648, %v12288_v58  ;;  %v9002_v43 = vld [vmem:[#allocation4 + $0x98] sm:$0xf0] }
 0x350   :  { %v3107_v57 = vpop.f32.mrf.mxu2  ;;  %11411 = vtanh.f32 %v12286_v48  ;;  %vm2861_vm8 = vmor %vm2859_vm6, %vm2860_vm5  ;;  %v3171_v54 = vmul.f32 %v12299_v41, %v12284_v52  ;;  %v3158_v5 = vsel %vm12311_vm11, %v12278_v56, %v3154_v46  ;;  %v3140_v2 = vand.u32 2147483647, %v12288_v58  ;;  %v8962_v56 = vld [vmem:[#allocation4 + $0x50] sm:$0xf0] }
 0x351   :  { %v2856_v17 = vsub.f32 1.0, %v2855_v15  ;;  %3638 = vmatpush.bf16.msra.mxu0 %v8678_v12  ;;  %11413 = vtanh.f32 %v3124_v49  ;;  %v10930_v15 = vld [vmem:[#allocation4 + $0xc4] sm:$0xf]  ;;  %vm3136_vm13 = vweird.f32 %v12288_v58  ;;  %v3143_v20 = vor.u32 1.1754944e-38, %v3142_v23  ;;  %v10919_v23 = vld [vmem:[#allocation4 + $0x6c] sm:$0xf] }
 0x352   :  { %3664 = vmatpush.bf16.msra.mxu2 %v8682_v62  ;;  %v3172_v27 = vsub.f32 1.0, %v3171_v54  ;;  %v3163_v21 = vsel %vm3160_vm14, %v3162_v42, %v3158_v5  ;;  %v9037_v14 = vor.u32 %v10931_v53, %v9034_v38  ;;  %v10926_v12 = vld [vmem:[#allocation4 + $0xa4] sm:$0xf]  ;;  %vm3141_vm0 = vcmp.eq.f32.partialorder %v3140_v2, 8.507059e+37  ;;  %v9018_v62 = vld [vmem:[#allocation4 + $0xb8] sm:$0xf0] }
 0x353   :  { %v2857_v11 = vmul.f32 %v11406_v35, %v2856_v17  ;;  %vm3176_vm1 = vweird.f32 %v12299_v41  ;;  %v8986_v5 = vld [vmem:[#allocation4 + $0x78] sm:$0xf0]  ;;  %v9048_v53 = vld [vmem:[#allocation4 + $0xe8] sm:$0xf]  ;;  %v10937_v38 = vld [vmem:[#allocation4 + $0xf4] sm:$0xf0] }
 0x354   :  { %v3173_v46 = vmul.f32 %v12299_v41, %v3172_v27  ;;  %vm12342_vm3 = vmor %vm3175_vm2, %vm3176_vm1  ;;  %v8989_v2 = vor.u32 %v10919_v23, %v8986_v5  ;;  %v10914_v42 = vld [vmem:[#allocation4 + $0x44] sm:$0xf] }
 0x355   :  { %v2858_v45 = vadd.f32 %v11406_v35, %v2857_v11  ;;  %v11410_v22 = vpop.eup %11409  ;;  %v9029_v11 = vor.u32 %v10930_v15, %v9026_v31  ;;  %v9040_v15 = vld [vmem:[#allocation4 + $0xe0] sm:$0xf]  ;;  %v10936_v31 = vld [vmem:[#allocation4 + $0xec] sm:$0xf0] }
 0x356   :  { %v3132_v6 = vmul.f32 %v11410_v22, %v12288_v58  ;;  %v11412_v3 = vpop.eup %11411  ;;  %vm3137_vm12 = vweird.f32 %v11410_v22  ;;  %v3174_v54 = vadd.f32 %v12299_v41, %v3173_v46  ;;  %v10933_v46 = vld [vmem:[#allocation4 + $0xd4] sm:$0xf0] }
 0x357   :  { %v2862_v63 = vsel %vm2861_vm8, %v11406_v35, %v2858_v45  ;;  %v9045_v35 = vor.u32 %v10934_v18, %v9042_v0  ;;  %vm12326_vm15 = vmor %vm3136_vm13, %vm3137_vm12  ;;  %v10927_v45 = vld [vmem:[#allocation4 + $0xac] sm:$0xf]  ;;  %v11414_v49 = vpop.eup %11413  ;;  %v3185_v18 = vmul.f32 %v3163_v21, %v12187_v19  ;;  %v3181_v19 = vand.u32 2147483648, %v12284_v52  ;;  %v8970_v21 = vld [vmem:[#allocation4 + $0x58] sm:$0xf0] }
 0x358   :  { %v2867_v1 = vsel %vm2864_vm9, %v2866_v47, %v2862_v63  ;;  %v3133_v51 = vsub.f32 1.0, %v3132_v6  ;;  %v9013_v6 = vor.u32 %v10926_v12, %v9010_v13  ;;  %v9021_v63 = vor.u32 %v10927_v45, %v9018_v62  ;;  %v9024_v12 = vld [vmem:[#allocation4 + $0xc0] sm:$0xf]  ;;  %v10932_v13 = vld [vmem:[#allocation4 + $0xcc] sm:$0xf0] }
 0x359   :  { %v2873_v34 = vmul.f32 %v11412_v3, %v2867_v1  ;;  %v10923_v3 = vld [vmem:[#allocation4 + $0x8c] sm:$0xf]  ;;  %v3179_v1 = vand.u32 2147483647, %v12284_v52  ;;  %v3182_v52 = vor.u32 1.1754944e-38, %v3181_v19  ;;  %v8965_v45 = vor.u32 %v10914_v42, %v8962_v56 }
 0x35a   :  { %v3134_v57 = vmul.f32 %v11410_v22, %v3133_v51  ;;  %v9005_v36 = vor.u32 %v10923_v3, %v9002_v43  ;;  %v10906_v19 = vld [vmem:[#allocation4 + $0x4] sm:$0xf]  ;;  %v8984_v42 = vld [vmem:[#allocation4 + $0x68] sm:$0xf] }
 0x35b   :  { %v12321_v17 = vpack.c.bf16 %v2873_v34, %v2873_v34  ;;  %v10918_v34 = vld [vmem:[#allocation4 + $0x64] sm:$0xf]  ;;  %vm3180_vm4 = vcmp.eq.f32.partialorder %v3179_v1, 8.507059e+37  ;;  %v10929_v1 = vld [vmem:[#allocation4 + $0xb4] sm:$0xf0]  ;;  %v8933_v23 = vor.u32 %v10906_v19, %v8930_v61 }
 0x35c   :  { %v3135_v55 = vadd.f32 %v11410_v22, %v3134_v57  ;;  %v9283_v61 = vld [vmem:[#allocation6 + $0x1c0] sm:$0xf] }
 0x35d   :  { %3600 = vmatmul.bf16.vlgmr.msra.gmra.mxu1 %v12321_v17  ;;  %3626 = vmatmul.bf16.vlgmr.msrb.gmra.mxu3 %v12321_v17 }
 0x35e   :  { %3956 = vmatpush.bf16.msra.mxu1 %v9045_v35  ;;  %3982 = vmatpush.bf16.msrb.mxu3 %v9053_v33  ;;  %v3139_v58 = vsel %vm12326_vm15, %v11410_v22, %v3135_v55  ;;  %v8994_v22 = vld [vmem:[#allocation4 + $0x90] sm:$0xf0]  ;;  %v3178_v33 = vsel %vm12342_vm3, %v12299_v41, %v3174_v54  ;;  %v9041_v41 = vor.u32 %v10936_v31, %v9040_v15  ;;  %v9016_v54 = vld [vmem:[#allocation4 + $0xa8] sm:$0xf]  ;;  %v10925_v31 = vld [vmem:[#allocation4 + $0x94] sm:$0xf0] }
 0x35f   :  { %v3144_v47 = vsel %vm3141_vm0, %v3143_v20, %v3139_v58  ;;  %v8997_v51 = vor.u32 %v10922_v10, %v8994_v22  ;;  %v8978_v35 = vld [vmem:[#allocation4 + $0x70] sm:$0xf0]  ;;  %v3183_v55 = vsel %vm3180_vm4, %v3182_v52, %v3178_v33  ;;  %v10915_v20 = vld [vmem:[#allocation4 + $0x4c] sm:$0xf]  ;;  %v9008_v10 = vld [vmem:[#allocation4 + $0xa0] sm:$0xf] }
 0x360   :  { %v3186_v0 = vmul.f32 %v11414_v49, %v3144_v47  ;;  %v8981_v57 = vor.u32 %v10918_v34, %v8978_v35  ;;  %v8973_v62 = vor.u32 %v10915_v20, %v8970_v21  ;;  %v9032_v49 = vld [vmem:[#allocation4 + $0xc8] sm:$0xf]  ;;  %v10910_v47 = vld [vmem:[#allocation4 + $0x24] sm:$0xf]  ;;  %v10928_v22 = vld [vmem:[#allocation4 + $0xac] sm:$0xf0]  ;;  %v9017_v35 = vor.u32 %v10929_v1, %v9016_v54 }
 0x361   :  { %v9009_v34 = vor.u32 %v10928_v22, %v9008_v10  ;;  %v8992_v33 = vld [vmem:[#allocation4 + $0x80] sm:$0xf]  ;;  %v10924_v52 = vld [vmem:[#allocation4 + $0x8c] sm:$0xf0]  ;;  %v9000_v15 = vld [vmem:[#allocation4 + $0x88] sm:$0xf] }
 0x362   :  { %3957 = vmatpush.bf16.msra.mxu1 %v9029_v11  ;;  %3983 = vmatpush.bf16.msrb.mxu3 %v9037_v14  ;;  %v12335_v9 = vadd.f32 %v3186_v0, %v3185_v18  ;;  %v9049_v14 = vor.u32 %v10937_v38, %v9048_v53  ;;  %v8946_v18 = vld [vmem:[#allocation4 + $0x30] sm:$0xf0]  ;;  %v10911_v0 = vld [vmem:[#allocation4 + $0x2c] sm:$0xf]  ;;  %v8976_v53 = vld [vmem:[#allocation4 + $0x60] sm:$0xf] }
 0x363   :  { %v8949_v3 = vor.u32 %v10910_v47, %v8946_v18  ;;  %v10920_v38 = vld [vmem:[#allocation4 + $0x6c] sm:$0xf0]  ;;  %v8960_v20 = vld [vmem:[#allocation4 + $0x40] sm:$0xf]  ;;  %v9301_v1 = vld [vmem:[#allocation6 + $0x1f0] sm:$0xf0] }
 0x364   :  { %11415 = vtanh.f32 %v12335_v9  ;;  %v10916_v21 = vld [vmem:[#allocation4 + $0x4c] sm:$0xf0]  ;;  %v8928_v18 = vld [vmem:[#allocation4] sm:$0xf] }
 0x365   :  { %v9299_v22 = vld [vmem:[#allocation6 + $0x1e0] sm:$0xf] }
 0x366   :  { %3958 = vmatpush.bf16.msra.mxu1 %v9013_v6  ;;  %3984 = vmatpush.bf16.msrb.mxu3 %v9021_v63  ;;  %v8954_v6 = vld [vmem:[#allocation4 + $0x38] sm:$0xf0]  ;;  %v9033_v63 = vor.u32 %v10933_v46, %v9032_v49  ;;  %v10913_v49 = vld [vmem:[#allocation4 + $0x34] sm:$0xf0] }
 0x367   :  { %v8957_v43 = vor.u32 %v10911_v0, %v8954_v6  ;;  %v10908_v0 = vld [vmem:[#allocation4 + $0xc] sm:$0xf0]  ;;  %v8936_v6 = vld [vmem:[#allocation4 + $0x8] sm:$0xf] }
 0x36a   :  { %3959 = vmatpush.bf16.msra.mxu1 %v8997_v51  ;;  %3985 = vmatpush.bf16.msrb.mxu3 %v9005_v36  ;;  %v11416_v27 = vpop.eup %11415  ;;  %v10907_v51 = vld [vmem:[#allocation4 + $0xc] sm:$0xf]  ;;  %v8938_v36 = vld [vmem:[#allocation4 + $0x18] sm:$0xf0] }
 0x36b   :  { %v3189_v11 = vmul.f32 %v11416_v27, %v3183_v55  ;;  %v8941_v5 = vor.u32 %v10907_v51, %v8938_v36  ;;  %v10921_v27 = vld [vmem:[#allocation4 + $0x74] sm:$0xf0]  ;;  %v8977_v55 = vor.u32 %v10920_v38, %v8976_v53  ;;  %v10996_v51 = vld [vmem:[#allocation6 + $0x1cc] sm:$0xf0]  ;;  %v10994_v36 = vld [vmem:[#allocation6 + $0x1c4] sm:$0xf] }
 0x36c   :  { %v8985_v56 = vor.u32 %v10921_v27, %v8984_v42  ;;  %v10986_v53 = vld [vmem:[#allocation6 + $0x184] sm:$0xf]  ;;  %v9253_v27 = vld [vmem:[#allocation6 + $0x190] sm:$0xf0] }
 0x36d   :  { %3652 = vmatmul.bf16.vlgmr.msrb.gmra.mxu1 %v12321_v17  ;;  %3678 = vmatmul.bf16.vlgmr.msra.gmra.mxu3 %v12321_v17  ;;  %v12351_v58 = vpack.c.bf16 %v3189_v11, %v3189_v11  ;;  %v9025_v17 = vor.u32 %v10932_v13, %v9024_v12  ;;  %v8968_v11 = vld [vmem:[#allocation4 + $0x48] sm:$0xf]  ;;  %v8944_v13 = vld [vmem:[#allocation4 + $0x20] sm:$0xf] }
 0x36e   :  { %3960 = vmatpush.bf16.msra.mxu1 %v8981_v57  ;;  %3986 = vmatpush.bf16.msrb.mxu3 %v8989_v2  ;;  %v8993_v57 = vor.u32 %v10924_v52, %v8992_v33  ;;  %v9001_v2 = vor.u32 %v10925_v31, %v9000_v15  ;;  %v10992_v33 = vld [vmem:[#allocation6 + $0x1ac] sm:$0xf0]  ;;  %v10990_v52 = vld [vmem:[#allocation6 + $0x1a4] sm:$0xf]  ;;  %v9269_v15 = vld [vmem:[#allocation6 + $0x1b0] sm:$0xf0] }
 0x36f   :  { %3587 = vmatmul.bf16.vlgmr.msrb.gmra.mxu0 %v12351_v58  ;;  %3613 = vmatmul.bf16.vlgmr.msrb.gmra.mxu2 %v12351_v58  ;;  %v9272_v31 = vor.u32 %v10990_v52, %v9269_v15  ;;  %v9139_v52 = vld [vmem:[#allocation6 + $0xa0] sm:$0xf]  ;;  %v10958_v15 = vld [vmem:[#allocation6 + $0xa4] sm:$0xf] }
 0x370   :  { %3943 = vmatpush.bf16.msrb.mxu0 %v9041_v41  ;;  %3969 = vmatpush.bf16.msrb.mxu2 %v9049_v14  ;;  %v10917_v41 = vld [vmem:[#allocation4 + $0x54] sm:$0xf0]  ;;  %v8961_v14 = vor.u32 %v10916_v21, %v8960_v20  ;;  %v10984_v20 = vld [vmem:[#allocation6 + $0x16c] sm:$0xf0]  ;;  %v10982_v21 = vld [vmem:[#allocation6 + $0x164] sm:$0xf] }
 0x371   :  { %v8969_v12 = vor.u32 %v10917_v41, %v8968_v11  ;;  %v9237_v41 = vld [vmem:[#allocation6 + $0x170] sm:$0xf0] }
 0x372   :  { %3961 = vmatpush.bf16.msra.mxu1 %v8965_v45  ;;  %3987 = vmatpush.bf16.msrb.mxu3 %v8973_v62  ;;  %v10912_v45 = vld [vmem:[#allocation4 + $0x2c] sm:$0xf0]  ;;  %v8952_v62 = vld [vmem:[#allocation4 + $0x28] sm:$0xf] }
 0x373   :  { %v8945_v46 = vor.u32 %v10912_v45, %v8944_v13  ;;  %v8953_v47 = vor.u32 %v10913_v49, %v8952_v62  ;;  %v9171_v13 = vld [vmem:[#allocation6 + $0xe0] sm:$0xf]  ;;  %v10968_v45 = vld [vmem:[#allocation6 + $0xec] sm:$0xf0]  ;;  %v10966_v62 = vld [vmem:[#allocation6 + $0xe4] sm:$0xf] }
 0x374   :  { %3944 = vmatpush.bf16.msrb.mxu0 %v9025_v17  ;;  %3970 = vmatpush.bf16.msrb.mxu2 %v9033_v63  ;;  %v10909_v17 = vld [vmem:[#allocation4 + $0x14] sm:$0xf0]  ;;  %v8929_v63 = vor.u32 %v10908_v0, %v8928_v18  ;;  %v9219_v18 = vld [vmem:[#allocation6 + $0x140] sm:$0xf]  ;;  %v10980_v0 = vld [vmem:[#allocation6 + $0x14c] sm:$0xf0] }
 0x375   :  { %v8937_v10 = vor.u32 %v10909_v17, %v8936_v6  ;;  %v9220_v17 = vor.u32 %v10980_v0, %v9219_v18  ;;  %v10954_v18 = vld [vmem:[#allocation6 + $0x84] sm:$0xf] }
 0x376   :  { %3962 = vmatpush.bf16.msra.mxu1 %v8949_v3  ;;  %3988 = vmatpush.bf16.msrb.mxu3 %v8957_v43  ;;  %v11000_v3 = vld [vmem:[#allocation6 + $0x1ec] sm:$0xf0]  ;;  %v10998_v43 = vld [vmem:[#allocation6 + $0x1e4] sm:$0xf] }
 0x377   :  { %v9300_v54 = vor.u32 %v11000_v3, %v9299_v22  ;;  %v9304_v19 = vor.u32 %v10998_v43, %v9301_v1  ;;  %v9155_v3 = vld [vmem:[#allocation6 + $0xc0] sm:$0xf]  ;;  %v10964_v43 = vld [vmem:[#allocation6 + $0xcc] sm:$0xf0] }
 0x378   :  { %3945 = vmatpush.bf16.msrb.mxu0 %v9009_v34  ;;  %3971 = vmatpush.bf16.msrb.mxu2 %v9017_v35  ;;  %v9284_v34 = vor.u32 %v10996_v51, %v9283_v61  ;;  %v9285_v35 = vld [vmem:[#allocation6 + $0x1d0] sm:$0xf0]  ;;  %v9156_v1 = vor.u32 %v10964_v43, %v9155_v3  ;;  %v9203_v61 = vld [vmem:[#allocation6 + $0x120] sm:$0xf]  ;;  %v10976_v51 = vld [vmem:[#allocation6 + $0x12c] sm:$0xf0] }
 0x379   :  { %v10995_v3 = vld [vmem:[#allocation6 + $0x1cc] sm:$0xf] }
 0x37a   :  { %3963 = vmatpush.bf16.msra.mxu1 %v8933_v23  ;;  %3989 = vmatpush.bf16.msrb.mxu3 %v8941_v5  ;;  %v9288_v23 = vor.u32 %v10994_v36, %v9285_v35  ;;  %v9267_v5 = vld [vmem:[#allocation6 + $0x1a0] sm:$0xf]  ;;  %v10974_v35 = vld [vmem:[#allocation6 + $0x124] sm:$0xf] }
 0x37c   :  { %3946 = vmatpush.bf16.msrb.mxu0 %v8993_v57  ;;  %3972 = vmatpush.bf16.msrb.mxu2 %v9001_v2  ;;  %v9251_v57 = vld [vmem:[#allocation6 + $0x180] sm:$0xf]  ;;  %v10988_v2 = vld [vmem:[#allocation6 + $0x18c] sm:$0xf0] }
 0x37d   :  { %3964 = vmatmul.bf16.vlgmr.msra.gmra.mxu1 %v12351_v58  ;;  %3990 = vmatmul.bf16.vlgmr.msrb.gmra.mxu3 %v12351_v58  ;;  %v9252_v42 = vor.u32 %v10988_v2, %v9251_v57  ;;  %v9141_v2 = vld [vmem:[#allocation6 + $0xb0] sm:$0xf0] }
 0x37e   :  { %4465 = vmatpush.bf16.msrb.mxu1 %v9300_v54  ;;  %4491 = vmatpush.bf16.msra.mxu3 %v9304_v19  ;;  %v10962_v54 = vld [vmem:[#allocation6 + $0xc4] sm:$0xf]  ;;  %v9157_v19 = vld [vmem:[#allocation6 + $0xd0] sm:$0xf0] }
 0x37f   :  { %3639 = vmatmul.bf16.vlgmr.msra.gmra.mxu0 %v12351_v58  ;;  %3665 = vmatmul.bf16.vlgmr.msra.gmra.mxu2 %v12351_v58  ;;  %v9160_v36 = vor.u32 %v10962_v54, %v9157_v19  ;;  %v9293_v19 = vld [vmem:[#allocation6 + $0x1d8] sm:$0xf0] }
 0x380   :  { %3947 = vmatpush.bf16.msrb.mxu0 %v8977_v55  ;;  %3973 = vmatpush.bf16.msrb.mxu2 %v8985_v56  ;;  %v9256_v55 = vor.u32 %v10986_v53, %v9253_v27  ;;  %v9235_v56 = vld [vmem:[#allocation6 + $0x160] sm:$0xf]  ;;  %v9144_v27 = vor.u32 %v10958_v15, %v9141_v2  ;;  %v9275_v15 = vld [vmem:[#allocation6 + $0x1a8] sm:$0xf] }
 0x381   :  { %v9236_v11 = vor.u32 %v10984_v20, %v9235_v56  ;;  %v9187_v53 = vld [vmem:[#allocation6 + $0x100] sm:$0xf]  ;;  %v10970_v56 = vld [vmem:[#allocation6 + $0x104] sm:$0xf]  ;;  %v9189_v20 = vld [vmem:[#allocation6 + $0x110] sm:$0xf0] }
 0x382   :  { %4466 = vmatpush.bf16.msrb.mxu1 %v9284_v34  ;;  %4492 = vmatpush.bf16.msra.mxu3 %v9288_v23  ;;  %v9204_v34 = vor.u32 %v10976_v51, %v9203_v61  ;;  %v9205_v23 = vld [vmem:[#allocation6 + $0x130] sm:$0xf0]  ;;  %v9296_v61 = vor.u32 %v10995_v3, %v9293_v19  ;;  %v9107_v51 = vld [vmem:[#allocation6 + $0x60] sm:$0xf] }
 0x384   :  { %3948 = vmatpush.bf16.msrb.mxu0 %v8961_v14  ;;  %3974 = vmatpush.bf16.msrb.mxu2 %v8969_v12  ;;  %v9240_v14 = vor.u32 %v10982_v21, %v9237_v41  ;;  %v9307_v21 = vld [vmem:[#allocation6 + $0x1e8] sm:$0xf]  ;;  %v11001_v41 = vld [vmem:[#allocation6 + $0x1f4] sm:$0xf0] }
 0x386   :  { %4493 = vmatpush.bf16.msra.mxu3 %v9272_v31 }
 0x388   :  { %3949 = vmatpush.bf16.msrb.mxu0 %v8945_v46  ;;  %3975 = vmatpush.bf16.msrb.mxu2 %v8953_v47  ;;  %v9172_v46 = vor.u32 %v10968_v45, %v9171_v13  ;;  %v9173_v47 = vld [vmem:[#allocation6 + $0xf0] sm:$0xf0]  ;;  %v9309_v13 = vld [vmem:[#allocation6 + $0x1f8] sm:$0xf0] }
 0x389   :  { %v9176_v6 = vor.u32 %v10966_v62, %v9173_v47  ;;  %v9308_v62 = vor.u32 %v11001_v41, %v9307_v21  ;;  %v10956_v47 = vld [vmem:[#allocation6 + $0x8c] sm:$0xf0]  ;;  %v10946_v21 = vld [vmem:[#allocation6 + $0x44] sm:$0xf] }
 0x38a   :  { %4494 = vmatpush.bf16.msra.mxu3 %v9256_v55 }
 0x38c   :  { %3950 = vmatpush.bf16.msrb.mxu0 %v8929_v63  ;;  %3976 = vmatpush.bf16.msrb.mxu2 %v8937_v10  ;;  %v10978_v63 = vld [vmem:[#allocation6 + $0x144] sm:$0xf]  ;;  %v9221_v10 = vld [vmem:[#allocation6 + $0x150] sm:$0xf0] }
 0x38d   :  { %v9224_v22 = vor.u32 %v10978_v63, %v9221_v10  ;;  %v9291_v10 = vld [vmem:[#allocation6 + $0x1c8] sm:$0xf] }
 0x38e   :  { %4495 = vmatpush.bf16.msra.mxu3 %v9240_v14  ;;  %v10999_v14 = vld [vmem:[#allocation6 + $0x1ec] sm:$0xf] }
 0x38f   :  { %3951 = vmatmul.bf16.vlgmr.msrb.gmra.mxu0 %v12351_v58  ;;  %3977 = vmatmul.bf16.vlgmr.msrb.gmra.mxu2 %v12351_v58  ;;  %v9268_v58 = vor.u32 %v10992_v33, %v9267_v5  ;;  %v9208_v33 = vor.u32 %v10974_v35, %v9205_v23 }
 0x390   :  { %4452 = vmatpush.bf16.msra.mxu0 %v9172_v46  ;;  %4478 = vmatpush.bf16.msra.mxu2 %v9176_v6  ;;  %v9123_v46 = vld [vmem:[#allocation6 + $0x80] sm:$0xf] }
 0x391   :  { %4467 = vmatpush.bf16.msrb.mxu1 %v9268_v58  ;;  %v10960_v58 = vld [vmem:[#allocation6 + $0xac] sm:$0xf0]  ;;  %v9124_v6 = vor.u32 %v10956_v47, %v9123_v46 }
 0x392   :  { %4496 = vmatpush.bf16.msra.mxu3 %v9224_v22  ;;  %v9140_v57 = vor.u32 %v10960_v58, %v9139_v52  ;;  %v10997_v22 = vld [vmem:[#allocation6 + $0x1d4] sm:$0xf0] }
 0x394   :  { %4453 = vmatpush.bf16.msra.mxu0 %v9156_v1  ;;  %4479 = vmatpush.bf16.msra.mxu2 %v9160_v36  ;;  %v9292_v1 = vor.u32 %v10997_v22, %v9291_v10  ;;  %v10952_v36 = vld [vmem:[#allocation6 + $0x6c] sm:$0xf0]  ;;  %v10942_v10 = vld [vmem:[#allocation6 + $0x24] sm:$0xf] }
 0x395   :  { %4468 = vmatpush.bf16.msrb.mxu1 %v9252_v42  ;;  %v10972_v42 = vld [vmem:[#allocation6 + $0x10c] sm:$0xf0] }
 0x396   :  { %4497 = vmatpush.bf16.msra.mxu3 %v9208_v33  ;;  %v9188_v55 = vor.u32 %v10972_v42, %v9187_v53  ;;  %v9109_v33 = vld [vmem:[#allocation6 + $0x70] sm:$0xf0]  ;;  %v9277_v42 = vld [vmem:[#allocation6 + $0x1b8] sm:$0xf0] }
 0x398   :  { %4454 = vmatpush.bf16.msra.mxu0 %v9140_v57  ;;  %4480 = vmatpush.bf16.msra.mxu2 %v9144_v27  ;;  %v10991_v57 = vld [vmem:[#allocation6 + $0x1ac] sm:$0xf] }
 0x399   :  { %4469 = vmatpush.bf16.msrb.mxu1 %v9236_v11  ;;  %v9192_v11 = vor.u32 %v10970_v56, %v9189_v20  ;;  %v9091_v56 = vld [vmem:[#allocation6 + $0x40] sm:$0xf]  ;;  %v10948_v20 = vld [vmem:[#allocation6 + $0x4c] sm:$0xf0] }
 0x39a   :  { %v9092_v41 = vor.u32 %v10948_v20, %v9091_v56  ;;  %v10967_v56 = vld [vmem:[#allocation6 + $0xec] sm:$0xf] }
 0x39b   :  { %4498 = vmatpush.bf16.msra.mxu3 %v9192_v11 }
 0x39c   :  { %4455 = vmatpush.bf16.msra.mxu0 %v9124_v6 }
 0x39d   :  { %4470 = vmatpush.bf16.msrb.mxu1 %v9220_v17  ;;  %v9125_v17 = vld [vmem:[#allocation6 + $0x90] sm:$0xf0] }
 0x39e   :  { %v9128_v63 = vor.u32 %v10954_v18, %v9125_v17  ;;  %v9075_v17 = vld [vmem:[#allocation6 + $0x20] sm:$0xf] }
 0x3a0   :  { %4481 = vmatpush.bf16.msra.mxu2 %v9128_v63  ;;  %v10944_v63 = vld [vmem:[#allocation6 + $0x2c] sm:$0xf0] }
 0x3a1   :  { %4471 = vmatpush.bf16.msrb.mxu1 %v9204_v34  ;;  %v10950_v34 = vld [vmem:[#allocation6 + $0x64] sm:$0xf]  ;;  %v9076_v3 = vor.u32 %v10944_v63, %v9075_v17  ;;  %v9163_v63 = vld [vmem:[#allocation6 + $0xc8] sm:$0xf] }
 0x3a2   :  { %v9112_v58 = vor.u32 %v10950_v34, %v9109_v33  ;;  %v10985_v34 = vld [vmem:[#allocation6 + $0x174] sm:$0xf0] }
 0x3a4   :  { %4482 = vmatpush.bf16.msra.mxu2 %v9112_v58  ;;  %v9059_v58 = vld [vmem:[#allocation6] sm:$0xf] }
 0x3a5   :  { %4472 = vmatpush.bf16.msrb.mxu1 %v9188_v55  ;;  %v9280_v55 = vor.u32 %v10991_v57, %v9277_v42  ;;  %v10938_v57 = vld [vmem:[#allocation6 + $0x4] sm:$0xf] }
 0x3a9   :  { %4517 = vmatpush.bf16.msra.mxu1 %v9308_v62  ;;  %v10989_v62 = vld [vmem:[#allocation6 + $0x194] sm:$0xf0] }
 0x3ad   :  { %4518 = vmatpush.bf16.msra.mxu1 %v9292_v1 }
 0x3da   :  { %v12361_v38 = vpop.f32.mrf.mxu1 }
 0x3e0   :  { %v12363_v12 = vpop.f32.mrf.mxu3 }
 0x3e2   :  { %v3603_v49 = vpop.f32.mrf.mxu1 }
 0x3e3   :  { %v9312_v49 = vor.u32 %v10999_v14, %v9309_v13  ;;  %v9093_v14 = vld [vmem:[#allocation6 + $0x50] sm:$0xf0] }
 0x3e4   :  { %v9096_v13 = vor.u32 %v10946_v21, %v9093_v14  ;;  %v9227_v14 = vld [vmem:[#allocation6 + $0x148] sm:$0xf] }
 0x3e5   :  { %4543 = vmatpush.bf16.msrb.mxu3 %v9312_v49  ;;  %v10987_v49 = vld [vmem:[#allocation6 + $0x18c] sm:$0xf] }
 0x3e6   :  { %4483 = vmatpush.bf16.msra.mxu2 %v9096_v13 }
 0x3e8   :  { %v3629_v5 = vpop.f32.mrf.mxu3 }
 0x3e9   :  { %v9108_v5 = vor.u32 %v10952_v36, %v9107_v51  ;;  %4544 = vmatpush.bf16.msrb.mxu3 %v9296_v61  ;;  %v9243_v36 = vld [vmem:[#allocation6 + $0x168] sm:$0xf] }
 0x3ea   :  { %v12365_v31 = vpop.f32.mrf.mxu1 }
 0x3eb   :  { %4456 = vmatpush.bf16.msra.mxu0 %v9108_v5  ;;  %v9245_v5 = vld [vmem:[#allocation6 + $0x178] sm:$0xf0] }
 0x3ec   :  { %v3588_v45 = vpop.f32.mrf.mxu0 }
 0x3ed   :  { %v3589_v0 = vadd.f32 %v3588_v45, %v11906_v25  ;;  %4545 = vmatpush.bf16.msrb.mxu3 %v9280_v55  ;;  %v9259_v45 = vld [vmem:[#allocation6 + $0x188] sm:$0xf]  ;;  %v10969_v55 = vld [vmem:[#allocation6 + $0xf4] sm:$0xf0] }
 0x3ee   :  { %v9260_v18 = vor.u32 %v10989_v62, %v9259_v45  ;;  %v10981_v62 = vld [vmem:[#allocation6 + $0x154] sm:$0xf0] }
 0x3ef   :  { %v3602_v43 = vadd.f32 %v12361_v38, %v3589_v0  ;;  %v10993_v38 = vld [vmem:[#allocation6 + $0x1b4] sm:$0xf0]  ;;  %4457 = vmatpush.bf16.msra.mxu0 %v9092_v41  ;;  %v9261_v0 = vld [vmem:[#allocation6 + $0x198] sm:$0xf0] }
 0x3f0   :  { %v12369_v54 = vpop.f32.mrf.mxu3  ;;  %v9276_v53 = vor.u32 %v10993_v38, %v9275_v15  ;;  %v9264_v6 = vor.u32 %v10987_v49, %v9261_v0  ;;  %v10940_v38 = vld [vmem:[#allocation6 + $0xc] sm:$0xf0]  ;;  %v9181_v41 = vld [vmem:[#allocation6 + $0xf8] sm:$0xf0]  ;;  %v10979_v49 = vld [vmem:[#allocation6 + $0x14c] sm:$0xf] }
 0x3f1   :  { %v8923_v35 = vmul.f32 -1.442695, %v3602_v43  ;;  %v9077_v43 = vld [vmem:[#allocation6 + $0x30] sm:$0xf0]  ;;  %v9184_v45 = vor.u32 %v10967_v56, %v9181_v41 }
 0x3f2   :  { %v3655_v23 = vpop.f32.mrf.mxu1  ;;  %v3614_v52 = vpop.f32.mrf.mxu2  ;;  %4519 = vmatpush.bf16.msra.mxu1 %v9276_v53  ;;  %4546 = vmatpush.bf16.msrb.mxu3 %v9264_v6  ;;  %v9080_v51 = vor.u32 %v10942_v10, %v9077_v43  ;;  %v9179_v53 = vld [vmem:[#allocation6 + $0xe8] sm:$0xf]  ;;  %v10965_v10 = vld [vmem:[#allocation6 + $0xd4] sm:$0xf0] }
 0x3f3   :  { %11417 = vpow2.f32 %v8923_v35  ;;  %v3615_v2 = vadd.f32 %v3614_v52, %v11910_v28  ;;  %4458 = vmatpush.bf16.msra.mxu0 %v9076_v3  ;;  %v9244_v35 = vor.u32 %v10985_v34, %v9243_v36  ;;  %v10983_v23 = vld [vmem:[#allocation6 + $0x16c] sm:$0xf]  ;;  %v9228_v3 = vor.u32 %v10981_v62, %v9227_v14 }
 0x3f4   :  { %v3590_v27 = vpop.f32.mrf.mxu0  ;;  %4484 = vmatpush.bf16.msra.mxu2 %v9080_v51  ;;  %v9248_v15 = vor.u32 %v10983_v23, %v9245_v5  ;;  %v10975_v23 = vld [vmem:[#allocation6 + $0x12c] sm:$0xf] }
 0x3f5   :  { %v3628_v11 = vadd.f32 %v12363_v12, %v3615_v2  ;;  %v9061_v2 = vld [vmem:[#allocation6 + $0x10] sm:$0xf0] }
 0x3f6   :  { %4520 = vmatpush.bf16.msra.mxu1 %v9260_v18  ;;  %4547 = vmatpush.bf16.msrb.mxu3 %v9248_v15  ;;  %v9064_v27 = vor.u32 %v10938_v57, %v9061_v2  ;;  %v9147_v15 = vld [vmem:[#allocation6 + $0xa8] sm:$0xf]  ;;  %v10959_v2 = vld [vmem:[#allocation6 + $0xac] sm:$0xf] }
 0x3f7   :  { %v8924_v46 = vmul.f32 -1.442695, %v3628_v11  ;;  %v9180_v11 = vor.u32 %v10969_v55, %v9179_v53  ;;  %v9149_v53 = vld [vmem:[#allocation6 + $0xb8] sm:$0xf0] }
 0x3f8   :  { %v3681_v47 = vpop.f32.mrf.mxu3  ;;  %4485 = vmatpush.bf16.msra.mxu2 %v9064_v27  ;;  %v9152_v62 = vor.u32 %v10959_v2, %v9149_v53 }
 0x3f9   :  { %v11418_v22 = vpop.eup %11417  ;;  %11419 = vpow2.f32 %v8924_v46  ;;  %v9229_v46 = vld [vmem:[#allocation6 + $0x158] sm:$0xf0] }
 0x3fa   :  { %v3965_v12 = vpop.f32.mrf.mxu1  ;;  %v12373_v1 = vadd.f32 1.0, %v11418_v22  ;;  %v3616_v61 = vpop.f32.mrf.mxu2  ;;  %4521 = vmatpush.bf16.msra.mxu1 %v9244_v35  ;;  %v10963_v22 = vld [vmem:[#allocation6 + $0xcc] sm:$0xf]  ;;  %v9232_v43 = vor.u32 %v10979_v49, %v9229_v46  ;;  %v10977_v35 = vld [vmem:[#allocation6 + $0x134] sm:$0xf0] }
 0x3fb   :  { %v3996_v19 = vadd.f32 %v3965_v12, %v11833_v60  ;;  %v9060_v60 = vor.u32 %v10940_v38, %v9059_v58  ;;  %v9211_v61 = vld [vmem:[#allocation6 + $0x128] sm:$0xf]  ;;  %v9213_v58 = vld [vmem:[#allocation6 + $0x138] sm:$0xf0]  ;;  %v10961_v38 = vld [vmem:[#allocation6 + $0xb4] sm:$0xf0] }
 0x3fc   :  { %11421 = vrcp.f32 %v12373_v1  ;;  %v3640_v52 = vpop.f32.mrf.mxu0  ;;  %4530 = vmatpush.bf16.msrb.mxu2 %v9184_v45  ;;  %4548 = vmatpush.bf16.msrb.mxu3 %v9232_v43  ;;  %v9216_v56 = vor.u32 %v10975_v23, %v9213_v58  ;;  %v9197_v46 = vld [vmem:[#allocation6 + $0x118] sm:$0xf0]  ;;  %v10957_v43 = vld [vmem:[#allocation6 + $0x94] sm:$0xf0]  ;;  %vm3693_vm7 = vweird.f32 %v12373_v1 }
 0x3fd   :  { %v9055_v33 = vmul.f32 -1.442695, %v3996_v19  ;;  %4459 = vmatpush.bf16.msra.mxu0 %v9060_v60  ;;  %v9165_v19 = vld [vmem:[#allocation6 + $0xd8] sm:$0xf0]  ;;  %v3641_v57 = vadd.f32 %v3640_v52, %v11936_v4  ;;  %v10973_v52 = vld [vmem:[#allocation6 + $0x114] sm:$0xf0] }
 0x3fe   :  { %4522 = vmatpush.bf16.msra.mxu1 %v9228_v3  ;;  %v9168_v5 = vor.u32 %v10963_v22, %v9165_v19  ;;  %v9131_v22 = vld [vmem:[#allocation6 + $0x88] sm:$0xf]  ;;  %v10955_v19 = vld [vmem:[#allocation6 + $0x8c] sm:$0xf] }
 0x3ff   :  { %v11420_v42 = vpop.eup %11419  ;;  %11423 = vpow2.f32 %v9055_v33  ;;  %v9212_v33 = vor.u32 %v10977_v35, %v9211_v61  ;;  %v9133_v61 = vld [vmem:[#allocation6 + $0x98] sm:$0xf0] }
 0x400   :  { %v12377_v20 = vadd.f32 1.0, %v11420_v42  ;;  %v3991_v21 = vpop.f32.mrf.mxu3  ;;  %4531 = vmatpush.bf16.msrb.mxu2 %v9168_v5  ;;  %4549 = vmatpush.bf16.msrb.mxu3 %v9216_v56  ;;  %v9132_v5 = vor.u32 %v10957_v43, %v9131_v22  ;;  %v9085_v43 = vld [vmem:[#allocation6 + $0x38] sm:$0xf0] }
 0x401   :  { %4504 = vmatpush.bf16.msrb.mxu0 %v9180_v11  ;;  %v3998_v6 = vadd.f32 %v3991_v21, %v11822_v50  ;;  %v9164_v50 = vor.u32 %v10965_v10, %v9163_v63  ;;  %v9148_v21 = vor.u32 %v10961_v38, %v9147_v15  ;;  %v9195_v11 = vld [vmem:[#allocation6 + $0x108] sm:$0xf] }
 0x402   :  { %v3967_v13 = vpop.f32.mrf.mxu1  ;;  %v12379_v47 = vpop.eup %11421  ;;  %11425 = vrcp.f32 %v12377_v20  ;;  %4523 = vmatpush.bf16.msra.mxu1 %v9212_v33  ;;  %v9196_v49 = vor.u32 %v10973_v52, %v9195_v11  ;;  %v3716_v63 = vand.u32 2147483647, %v12377_v20  ;;  %vm3712_vm8 = vweird.f32 %v12377_v20  ;;  %v9115_v38 = vld [vmem:[#allocation6 + $0x68] sm:$0xf]  ;;  %v10949_v52 = vld [vmem:[#allocation6 + $0x54] sm:$0xf0] }
 0x403   :  { %v3666_v18 = vpop.f32.mrf.mxu2  ;;  %v3689_v0 = vmul.f32 %v12379_v47, %v12373_v1  ;;  %v9056_v60 = vmul.f32 -1.442695, %v3998_v6  ;;  %v10971_v13 = vld [vmem:[#allocation6 + $0x10c] sm:$0xf]  ;;  %vm3694_vm5 = vweird.f32 %v12379_v47  ;;  %v9136_v33 = vor.u32 %v10955_v19, %v9133_v61 }
 0x404   :  { %v3667_v17 = vadd.f32 %v3666_v18, %v11928_v7  ;;  %v3642_v12 = vpop.f32.mrf.mxu0  ;;  %v9200_v6 = vor.u32 %v10971_v13, %v9197_v46  ;;  %4532 = vmatpush.bf16.msrb.mxu2 %v9152_v62  ;;  %vm12409_vm9 = vmor %vm3693_vm7, %vm3694_vm5  ;;  %vm3717_vm11 = vcmp.eq.f32.partialorder %v3716_v63, 8.507059e+37  ;;  %v10947_v13 = vld [vmem:[#allocation6 + $0x4c] sm:$0xf]  ;;  %v9101_v46 = vld [vmem:[#allocation6 + $0x58] sm:$0xf0] }
 0x405   :  { %v11424_v51 = vpop.eup %11423  ;;  %v3690_v36 = vsub.f32 1.0, %v3689_v0  ;;  %4505 = vmatpush.bf16.msrb.mxu0 %v9164_v50  ;;  %v3654_v0 = vadd.f32 %v12365_v31, %v3641_v57  ;;  %v10953_v57 = vld [vmem:[#allocation6 + $0x74] sm:$0xf0]  ;;  %v9083_v63 = vld [vmem:[#allocation6 + $0x28] sm:$0xf] }
 0x406   :  { %v3680_v34 = vadd.f32 %v12369_v54, %v3667_v17  ;;  %v12390_v27 = vadd.f32 1.0, %v11424_v51  ;;  %v3718_v17 = vand.u32 2147483648, %v12377_v20  ;;  %v3699_v51 = vand.u32 2147483648, %v12373_v1  ;;  %4524 = vmatpush.bf16.msra.mxu1 %v9196_v49  ;;  %4550 = vmatpush.bf16.msrb.mxu3 %v9200_v6 }
 0x407   :  { %v3691_v14 = vmul.f32 %v12379_v47, %v3690_v36  ;;  %v9067_v36 = vld [vmem:[#allocation6 + $0x8] sm:$0xf] }
 0x408   :  { %v12388_v42 = vpop.eup %11425  ;;  %v8925_v54 = vmul.f32 -1.442695, %v3680_v34  ;;  %v3993_v55 = vpop.f32.mrf.mxu3  ;;  %v3697_v34 = vand.u32 2147483647, %v12373_v1  ;;  %v3719_v50 = vor.u32 1.1754944e-38, %v3718_v17  ;;  %v3700_v2 = vor.u32 1.1754944e-38, %v3699_v51  ;;  %4533 = vmatpush.bf16.msrb.mxu2 %v9136_v33 }
 0x409   :  { %v3708_v41 = vmul.f32 %v12388_v42, %v12377_v20  ;;  %4506 = vmatpush.bf16.msrb.mxu0 %v9148_v21  ;;  %vm3713_vm6 = vweird.f32 %v12388_v42  ;;  %v3692_v31 = vadd.f32 %v12379_v47, %v3691_v14  ;;  %v10951_v55 = vld [vmem:[#allocation6 + $0x6c] sm:$0xf]  ;;  %v9116_v21 = vor.u32 %v10953_v57, %v9115_v38  ;;  %v9099_v14 = vld [vmem:[#allocation6 + $0x48] sm:$0xf]  ;;  %v9069_v33 = vld [vmem:[#allocation6 + $0x18] sm:$0xf0] }
 0x40a   :  { %11427 = vpow2.f32 %v8925_v54  ;;  %vm3714_vm10 = vmor %vm3712_vm8, %vm3713_vm6  ;;  %vm3698_vm12 = vcmp.eq.f32.partialorder %v3697_v34, 8.507059e+37  ;;  %v9100_v6 = vor.u32 %v10949_v52, %v9099_v14  ;;  %v9104_v17 = vor.u32 %v10947_v13, %v9101_v46  ;;  %v11031_v14 = vld [vmem:[#allocation4 + $0xec] sm:$0xf] }
 0x40b   :  { %v3668_v45 = vpop.f32.mrf.mxu2  ;;  %v3709_v18 = vsub.f32 1.0, %v3708_v41  ;;  %11429 = vpow2.f32 %v9056_v60  ;;  %v3696_v58 = vsel %vm12409_vm9, %v12379_v47, %v3692_v31  ;;  %v9117_v47 = vld [vmem:[#allocation6 + $0x78] sm:$0xf0]  ;;  %vm4028_vm2 = vweird.f32 %v12390_v27 }
 0x40c   :  { %11431 = vrcp.f32 %v12390_v27  ;;  %v3952_v10 = vpop.f32.mrf.mxu0  ;;  %v3701_v56 = vsel %vm3698_vm12, %v3700_v2, %v3696_v58  ;;  %v9120_v49 = vor.u32 %v10951_v55, %v9117_v47  ;;  %v4034_v13 = vand.u32 2147483648, %v12390_v27 }
 0x40d   :  { %v3710_v12 = vmul.f32 %v12388_v42, %v3709_v18  ;;  %v3995_v3 = vadd.f32 %v3952_v10, %v11809_v8  ;;  %11433 = vtanh.f32 %v3654_v0  ;;  %4507 = vmatpush.bf16.msrb.mxu0 %v9132_v5  ;;  %v10945_v10 = vld [vmem:[#allocation6 + $0x34] sm:$0xf0]  ;;  %v10939_v5 = vld [vmem:[#allocation6 + $0xc] sm:$0xf]  ;;  %v4032_v46 = vand.u32 2147483647, %v12390_v27 }
 0x40e   :  { %4534 = vmatpush.bf16.msrb.mxu2 %v9120_v49  ;;  %v9084_v61 = vor.u32 %v10945_v10, %v9083_v63  ;;  %v9072_v2 = vor.u32 %v10939_v5, %v9069_v33  ;;  %v11026_v10 = vld [vmem:[#allocation4 + $0xc4] sm:$0xf]  ;;  %v9400_v5 = vld [vmem:[#allocation4 + $0xb0] sm:$0xf0]  ;;  %v11023_v33 = vld [vmem:[#allocation4 + $0xac] sm:$0xf] }
 0x40f   :  { %v3711_v8 = vadd.f32 %v12388_v42, %v3710_v12  ;;  %v9054_v35 = vmul.f32 -1.442695, %v3995_v3  ;;  %v10943_v3 = vld [vmem:[#allocation6 + $0x2c] sm:$0xf]  ;;  %vm4033_vm6 = vcmp.eq.f32.partialorder %v4032_v46, 8.507059e+37 }
 0x410   :  { %v11428_v23 = vpop.eup %11427  ;;  %v9376_v46 = vld [vmem:[#allocation4 + $0x78] sm:$0xf0] }
 0x411   :  { %v11430_v20 = vpop.eup %11429  ;;  %v3715_v15 = vsel %vm3714_vm10, %v12388_v42, %v3711_v8  ;;  %v12421_v1 = vadd.f32 1.0, %v11428_v23  ;;  %11435 = vpow2.f32 %v9054_v35  ;;  %4508 = vmatpush.bf16.msrb.mxu0 %v9116_v21  ;;  %v9088_v8 = vor.u32 %v10943_v3, %v9085_v43  ;;  %v10941_v35 = vld [vmem:[#allocation6 + $0x14] sm:$0xf0]  ;;  %v9432_v21 = vld [vmem:[#allocation4 + $0xf0] sm:$0xf0] }
 0x412   :  { %v12423_v60 = vpop.eup %11431  ;;  %v3720_v53 = vsel %vm3717_vm11, %v3719_v50, %v3715_v15  ;;  %v12429_v62 = vadd.f32 1.0, %v11430_v20  ;;  %4535 = vmatpush.bf16.msrb.mxu2 %v9104_v17  ;;  %v9068_v15 = vor.u32 %v10941_v35, %v9067_v36 }
 0x413   :  { %11437 = vrcp.f32 %v12421_v1  ;;  %v3978_v54 = vpop.f32.mrf.mxu2  ;;  %v4024_v11 = vmul.f32 %v12423_v60, %v12390_v27  ;;  %v3742_v41 = vmul.f32 %v3720_v53, %v12286_v48  ;;  %v11434_v45 = vpop.eup %11433  ;;  %v3738_v50 = vand.u32 2147483648, %v12421_v1  ;;  %v11027_v27 = vld [vmem:[#allocation4 + $0xcc] sm:$0xf] }
 0x414   :  { %v3954_v42 = vpop.f32.mrf.mxu0  ;;  %v3743_v18 = vmul.f32 %v11434_v45, %v3701_v56  ;;  %11439 = vrcp.f32 %v12429_v62  ;;  %v3736_v58 = vand.u32 2147483647, %v12421_v1  ;;  %vm3732_vm14 = vweird.f32 %v12421_v1  ;;  %v9368_v45 = vld [vmem:[#allocation4 + $0x70] sm:$0xf0] }
 0x415   :  { %v4025_v12 = vsub.f32 1.0, %v4024_v11  ;;  %4509 = vmatpush.bf16.msrb.mxu0 %v9100_v6  ;;  %vm4029_vm15 = vweird.f32 %v12423_v60  ;;  %v3997_v55 = vadd.f32 %v3978_v54, %v11817_v40  ;;  %v3739_v56 = vor.u32 1.1754944e-38, %v3738_v50  ;;  %v11030_v42 = vld [vmem:[#allocation4 + $0xe4] sm:$0xf] }
 0x416   :  { %v12431_v31 = vadd.f32 %v3743_v18, %v3742_v41  ;;  %4536 = vmatpush.bf16.msrb.mxu2 %v9088_v8  ;;  %vm3737_vm1 = vcmp.eq.f32.partialorder %v3736_v58, 8.507059e+37  ;;  %vm12455_vm3 = vmor %vm4028_vm2, %vm4029_vm15  ;;  %v11022_v50 = vld [vmem:[#allocation4 + $0xa4] sm:$0xf]  ;;  %vm4048_vm10 = vweird.f32 %v12429_v62 }
 0x417   :  { %v11436_v0 = vpop.eup %11435  ;;  %v4026_v23 = vmul.f32 %v12423_v60, %v4025_v12 }
 0x418   :  { %v12433_v48 = vadd.f32 1.0, %v11436_v0  ;;  %v9435_v0 = vor.u32 %v11030_v42, %v9432_v21  ;;  %v11018_v42 = vld [vmem:[#allocation4 + $0x84] sm:$0xf] }
 0x419   :  { %v11438_v22 = vpop.eup %11437  ;;  %4510 = vmatpush.bf16.msrb.mxu0 %v9084_v61  ;;  %v4027_v47 = vadd.f32 %v12423_v60, %v4026_v23  ;;  %v4035_v61 = vor.u32 1.1754944e-38, %v4034_v13 }
 0x41a   :  { %v3728_v19 = vmul.f32 %v11438_v22, %v12421_v1  ;;  %11441 = vrcp.f32 %v12433_v48  ;;  %vm3733_vm13 = vweird.f32 %v11438_v22  ;;  %v12442_v38 = vpop.eup %11439  ;;  %v9440_v1 = vld [vmem:[#allocation4 + $0xf8] sm:$0xf0]  ;;  %4537 = vmatpush.bf16.msrb.mxu2 %v9072_v2  ;;  %v4015_v6 = vand.u32 2147483648, %v12433_v48 }
 0x41b   :  { %v3980_v51 = vpop.f32.mrf.mxu2  ;;  %11443 = vtanh.f32 %v12431_v31  ;;  %vm3734_vm0 = vmor %vm3732_vm14, %vm3733_vm13  ;;  %v4044_v40 = vmul.f32 %v12442_v38, %v12429_v62  ;;  %v4031_v17 = vsel %vm12455_vm3, %v12423_v60, %v4027_v47  ;;  %v9443_v63 = vor.u32 %v11031_v14, %v9440_v1 }
 0x41c   :  { %v3729_v34 = vsub.f32 1.0, %v3728_v19  ;;  %11445 = vtanh.f32 %v3997_v55  ;;  %v4013_v3 = vand.u32 2147483647, %v12433_v48  ;;  %v9424_v19 = vld [vmem:[#allocation4 + $0xd8] sm:$0xf0]  ;;  %vm4009_vm5 = vweird.f32 %v12433_v48 }
 0x41d   :  { %4511 = vmatpush.bf16.msrb.mxu0 %v9068_v15  ;;  %v4045_v51 = vsub.f32 1.0, %v4044_v40  ;;  %v4036_v8 = vsel %vm4033_vm6, %v4035_v61, %v4031_v17  ;;  %v9427_v23 = vor.u32 %v11027_v27, %v9424_v19  ;;  %v9403_v47 = vor.u32 %v11022_v50, %v9400_v5  ;;  %v9352_v19 = vld [vmem:[#allocation4 + $0x50] sm:$0xf0]  ;;  %v11011_v61 = vld [vmem:[#allocation4 + $0x4c] sm:$0xf] }
 0x41e   :  { %v3730_v20 = vmul.f32 %v11438_v22, %v3729_v34  ;;  %v4016_v34 = vor.u32 1.1754944e-38, %v4015_v6  ;;  %vm4014_vm8 = vcmp.eq.f32.partialorder %v4013_v3, 8.507059e+37  ;;  %v4058_v2 = vmul.f32 %v4036_v8, %v12335_v9  ;;  %v11032_v6 = vld [vmem:[#allocation4 + $0xec] sm:$0xf0]  ;;  %v9422_v5 = vld [vmem:[#allocation4 + $0xc8] sm:$0xf] }
 0x41f   :  { %v4046_v15 = vmul.f32 %v12442_v38, %v4045_v51  ;;  %vm4049_vm9 = vweird.f32 %v12442_v38  ;;  %v4052_v1 = vand.u32 2147483647, %v12429_v62  ;;  %v4054_v9 = vand.u32 2147483648, %v12429_v62  ;;  %v9360_v51 = vld [vmem:[#allocation4 + $0x58] sm:$0xf0] }
 0x420   :  { %v3731_v57 = vadd.f32 %v11438_v22, %v3730_v20  ;;  %v11442_v53 = vpop.eup %11441  ;;  %v9408_v20 = vld [vmem:[#allocation4 + $0xb8] sm:$0xf0]  ;;  %vm12486_vm11 = vmor %vm4048_vm10, %vm4049_vm9  ;;  %v11028_v8 = vld [vmem:[#allocation4 + $0xcc] sm:$0xf0]  ;;  %v9363_v50 = vor.u32 %v11011_v61, %v9360_v51 }
 0x421   :  { %v4005_v11 = vmul.f32 %v11442_v53, %v12433_v48  ;;  %v11444_v52 = vpop.eup %11443  ;;  %vm4010_vm4 = vweird.f32 %v11442_v53  ;;  %v4047_v14 = vadd.f32 %v12442_v38, %v4046_v15  ;;  %vm4053_vm12 = vcmp.eq.f32.partialorder %v4052_v1, 8.507059e+37  ;;  %v9344_v15 = vld [vmem:[#allocation4 + $0x38] sm:$0xf0] }
 0x422   :  { %v3735_v41 = vsel %vm3734_vm0, %v11438_v22, %v3731_v57  ;;  %v9416_v22 = vld [vmem:[#allocation4 + $0xd0] sm:$0xf0]  ;;  %vm12470_vm7 = vmor %vm4009_vm5, %vm4010_vm4  ;;  %v11446_v58 = vpop.eup %11445  ;;  %v4055_v62 = vor.u32 1.1754944e-38, %v4054_v9  ;;  %v9328_v1 = vld [vmem:[#allocation4 + $0x18] sm:$0xf0] }
 0x423   :  { %v3740_v54 = vsel %vm3737_vm1, %v3739_v56, %v3735_v41  ;;  %v4006_v49 = vsub.f32 1.0, %v4005_v11  ;;  %v9419_v35 = vor.u32 %v11026_v10, %v9416_v22  ;;  %v9411_v56 = vor.u32 %v11023_v33, %v9408_v20  ;;  %v11019_v11 = vld [vmem:[#allocation4 + $0x8c] sm:$0xf]  ;;  %v9392_v41 = vld [vmem:[#allocation4 + $0x98] sm:$0xf0] }
 0x424   :  { %v3746_v18 = vmul.f32 %v11444_v52, %v3740_v54  ;;  %v9395_v40 = vor.u32 %v11019_v11, %v9392_v41  ;;  %v11014_v54 = vld [vmem:[#allocation4 + $0x64] sm:$0xf]  ;;  %v9438_v10 = vld [vmem:[#allocation4 + $0xe8] sm:$0xf]  ;;  %v11033_v22 = vld [vmem:[#allocation4 + $0xf4] sm:$0xf0] }
 0x425   :  { %v4007_v12 = vmul.f32 %v11442_v53, %v4006_v49  ;;  %v11015_v49 = vld [vmem:[#allocation4 + $0x6c] sm:$0xf]  ;;  %v9371_v17 = vor.u32 %v11014_v54, %v9368_v45  ;;  %v9439_v60 = vor.u32 %v11033_v22, %v9438_v10  ;;  %v11006_v33 = vld [vmem:[#allocation4 + $0x24] sm:$0xf]  ;;  %v9336_v20 = vld [vmem:[#allocation4 + $0x30] sm:$0xf0] }
 0x426   :  { %v12465_v43 = vpack.c.bf16 %v3746_v18, %v3746_v18  ;;  %v4051_v18 = vsel %vm12486_vm11, %v12442_v38, %v4047_v14  ;;  %v11002_v11 = vld [vmem:[#allocation4 + $0x4] sm:$0xf]  ;;  %v9320_v41 = vld [vmem:[#allocation4 + $0x10] sm:$0xf0]  ;;  %v11003_v14 = vld [vmem:[#allocation4 + $0xc] sm:$0xf] }
 0x427   :  { %v4008_v36 = vadd.f32 %v11442_v53, %v4007_v12  ;;  %v11010_v12 = vld [vmem:[#allocation4 + $0x44] sm:$0xf]  ;;  %v4056_v27 = vsel %vm4053_vm12, %v4055_v62, %v4051_v18  ;;  %v9382_v54 = vld [vmem:[#allocation4 + $0x80] sm:$0xf]  ;;  %v11020_v45 = vld [vmem:[#allocation4 + $0x8c] sm:$0xf0] }
 0x428   :  { %4473 = vmatmul.bf16.vlgmr.msrb.gmra.mxu1 %v12465_v43  ;;  %4499 = vmatmul.bf16.vlgmr.msra.gmra.mxu3 %v12465_v43  ;;  %v9383_v18 = vor.u32 %v11020_v45, %v9382_v54  ;;  %v9641_v54 = vld [vmem:[#allocation6 + $0x180] sm:$0xf]  ;;  %v11084_v45 = vld [vmem:[#allocation6 + $0x18c] sm:$0xf0] }
 0x429   :  { %4829 = vmatpush.bf16.msrb.mxu1 %v9435_v0  ;;  %4855 = vmatpush.bf16.msra.mxu3 %v9443_v63  ;;  %v4012_v48 = vsel %vm12470_vm7, %v11442_v53, %v4008_v36  ;;  %v9384_v53 = vld [vmem:[#allocation4 + $0x90] sm:$0xf0]  ;;  %v9430_v0 = vld [vmem:[#allocation4 + $0xe0] sm:$0xf]  ;;  %v9379_v63 = vor.u32 %v11015_v49, %v9376_v46  ;;  %v9390_v49 = vld [vmem:[#allocation4 + $0x88] sm:$0xf] }
 0x42a   :  { %v4017_v57 = vsel %vm4014_vm8, %v4016_v34, %v4012_v48  ;;  %v9387_v13 = vor.u32 %v11018_v42, %v9384_v53  ;;  %v9431_v38 = vor.u32 %v11032_v6, %v9430_v0  ;;  %v9414_v34 = vld [vmem:[#allocation4 + $0xc0] sm:$0xf]  ;;  %v11029_v48 = vld [vmem:[#allocation4 + $0xd4] sm:$0xf0]  ;;  %v9406_v42 = vld [vmem:[#allocation4 + $0xa8] sm:$0xf] }
 0x42b   :  { %v4059_v55 = vmul.f32 %v11446_v58, %v4017_v57  ;;  %v11007_v58 = vld [vmem:[#allocation4 + $0x2c] sm:$0xf]  ;;  %v9423_v57 = vor.u32 %v11029_v48, %v9422_v5  ;;  %v11025_v53 = vld [vmem:[#allocation4 + $0xb4] sm:$0xf0]  ;;  %v9366_v0 = vld [vmem:[#allocation4 + $0x60] sm:$0xf] }
 0x42c   :  { %v9407_v52 = vor.u32 %v11025_v53, %v9406_v42  ;;  %v11021_v46 = vld [vmem:[#allocation4 + $0x94] sm:$0xf0]  ;;  %v11016_v6 = vld [vmem:[#allocation4 + $0x6c] sm:$0xf0]  ;;  %v9326_v48 = vld [vmem:[#allocation4 + $0x8] sm:$0xf] }
 0x42d   :  { %4830 = vmatpush.bf16.msrb.mxu1 %v9419_v35  ;;  %4856 = vmatpush.bf16.msra.mxu3 %v9427_v23  ;;  %v12479_v21 = vadd.f32 %v4059_v55, %v4058_v2  ;;  %v9355_v23 = vor.u32 %v11010_v12, %v9352_v19  ;;  %v9398_v2 = vld [vmem:[#allocation4 + $0xa0] sm:$0xf]  ;;  %v11024_v55 = vld [vmem:[#allocation4 + $0xac] sm:$0xf0]  ;;  %v9391_v62 = vor.u32 %v11021_v46, %v9390_v49  ;;  %v11013_v19 = vld [vmem:[#allocation4 + $0x54] sm:$0xf0] }
 0x42e   :  { %v9399_v9 = vor.u32 %v11024_v55, %v9398_v2  ;;  %v9367_v10 = vor.u32 %v11016_v6, %v9366_v0  ;;  %v9350_v12 = vld [vmem:[#allocation4 + $0x40] sm:$0xf]  ;;  %v11004_v5 = vld [vmem:[#allocation4 + $0xc] sm:$0xf0]  ;;  %v9691_v55 = vld [vmem:[#allocation6 + $0x1f0] sm:$0xf0] }
 0x42f   :  { %11447 = vtanh.f32 %v12479_v21  ;;  %v11092_v42 = vld [vmem:[#allocation6 + $0x1cc] sm:$0xf0]  ;;  %v11090_v53 = vld [vmem:[#allocation6 + $0x1c4] sm:$0xf]  ;;  %v9625_v6 = vld [vmem:[#allocation6 + $0x160] sm:$0xf] }
 0x430   :  { %v11082_v49 = vld [vmem:[#allocation6 + $0x184] sm:$0xf] }
 0x431   :  { %4831 = vmatpush.bf16.msrb.mxu1 %v9403_v47  ;;  %4857 = vmatpush.bf16.msra.mxu3 %v9411_v56  ;;  %v9339_v47 = vor.u32 %v11006_v33, %v9336_v20  ;;  %v9347_v56 = vor.u32 %v11007_v58, %v9344_v15  ;;  %v11005_v33 = vld [vmem:[#allocation4 + $0x14] sm:$0xf0]  ;;  %v9689_v15 = vld [vmem:[#allocation6 + $0x1e0] sm:$0xf] }
 0x432   :  { %v9327_v58 = vor.u32 %v11005_v33, %v9326_v48  ;;  %v9545_v33 = vld [vmem:[#allocation6 + $0xc0] sm:$0xf] }
 0x435   :  { %4832 = vmatpush.bf16.msrb.mxu1 %v9387_v13  ;;  %4858 = vmatpush.bf16.msra.mxu3 %v9395_v40  ;;  %v11448_v3 = vpop.eup %11447  ;;  %v9323_v13 = vor.u32 %v11002_v11, %v9320_v41  ;;  %v9331_v40 = vor.u32 %v11003_v14, %v9328_v1  ;;  %v9675_v41 = vld [vmem:[#allocation6 + $0x1d0] sm:$0xf0]  ;;  %v9657_v1 = vld [vmem:[#allocation6 + $0x1a0] sm:$0xf] }
 0x436   :  { %v4062_v36 = vmul.f32 %v11448_v3, %v4056_v27  ;;  %v11012_v3 = vld [vmem:[#allocation4 + $0x4c] sm:$0xf0]  ;;  %v9358_v27 = vld [vmem:[#allocation4 + $0x48] sm:$0xf]  ;;  %v9678_v14 = vor.u32 %v11090_v53, %v9675_v41  ;;  %v9529_v41 = vld [vmem:[#allocation6 + $0xa0] sm:$0xf] }
 0x437   :  { %v9351_v61 = vor.u32 %v11012_v3, %v9350_v12  ;;  %v9359_v51 = vor.u32 %v11013_v19, %v9358_v27  ;;  %v9561_v27 = vld [vmem:[#allocation6 + $0xe0] sm:$0xf]  ;;  %v11064_v19 = vld [vmem:[#allocation6 + $0xec] sm:$0xf0] }
 0x438   :  { %4525 = vmatmul.bf16.vlgmr.msra.gmra.mxu1 %v12465_v43  ;;  %4551 = vmatmul.bf16.vlgmr.msrb.gmra.mxu3 %v12465_v43  ;;  %v12495_v35 = vpack.c.bf16 %v4062_v36, %v4062_v36  ;;  %v9415_v43 = vor.u32 %v11028_v8, %v9414_v34  ;;  %v9334_v36 = vld [vmem:[#allocation4 + $0x20] sm:$0xf]  ;;  %v11009_v34 = vld [vmem:[#allocation4 + $0x34] sm:$0xf0] }
 0x439   :  { %4833 = vmatpush.bf16.msrb.mxu1 %v9371_v17  ;;  %4859 = vmatpush.bf16.msra.mxu3 %v9379_v63  ;;  %v9374_v17 = vld [vmem:[#allocation4 + $0x68] sm:$0xf]  ;;  %v11017_v63 = vld [vmem:[#allocation4 + $0x74] sm:$0xf0] }
 0x43a   :  { %4460 = vmatmul.bf16.vlgmr.msra.gmra.mxu0 %v12495_v35  ;;  %4486 = vmatmul.bf16.vlgmr.msra.gmra.mxu2 %v12495_v35  ;;  %v9375_v22 = vor.u32 %v11017_v63, %v9374_v17  ;;  %v11080_v17 = vld [vmem:[#allocation6 + $0x16c] sm:$0xf0]  ;;  %v11078_v63 = vld [vmem:[#allocation6 + $0x164] sm:$0xf] }
 0x43b   :  { %4816 = vmatpush.bf16.msra.mxu0 %v9431_v38  ;;  %4842 = vmatpush.bf16.msra.mxu2 %v9439_v60  ;;  %v11008_v38 = vld [vmem:[#allocation4 + $0x2c] sm:$0xf0]  ;;  %v9342_v60 = vld [vmem:[#allocation4 + $0x28] sm:$0xf] }
 0x43c   :  { %v9335_v8 = vor.u32 %v11008_v38, %v9334_v36  ;;  %v9562_v36 = vor.u32 %v11064_v19, %v9561_v27  ;;  %v9563_v38 = vld [vmem:[#allocation6 + $0xf0] sm:$0xf0]  ;;  %v9513_v27 = vld [vmem:[#allocation6 + $0x80] sm:$0xf]  ;;  %v11052_v19 = vld [vmem:[#allocation6 + $0x8c] sm:$0xf0] }
 0x43d   :  { %4834 = vmatpush.bf16.msrb.mxu1 %v9355_v23  ;;  %4860 = vmatpush.bf16.msra.mxu3 %v9363_v50  ;;  %v9343_v23 = vor.u32 %v11009_v34, %v9342_v60  ;;  %v9318_v50 = vld [vmem:[#allocation4] sm:$0xf]  ;;  %v11076_v34 = vld [vmem:[#allocation6 + $0x14c] sm:$0xf0] }
 0x43e   :  { %v9319_v20 = vor.u32 %v11004_v5, %v9318_v50  ;;  %v9609_v60 = vld [vmem:[#allocation6 + $0x140] sm:$0xf]  ;;  %v11074_v50 = vld [vmem:[#allocation6 + $0x144] sm:$0xf]  ;;  %v9611_v5 = vld [vmem:[#allocation6 + $0x150] sm:$0xf0] }
 0x43f   :  { %4817 = vmatpush.bf16.msra.mxu0 %v9415_v43  ;;  %4843 = vmatpush.bf16.msra.mxu2 %v9423_v57  ;;  %v11096_v43 = vld [vmem:[#allocation6 + $0x1ec] sm:$0xf0]  ;;  %v11094_v57 = vld [vmem:[#allocation6 + $0x1e4] sm:$0xf]  ;;  %v9614_v48 = vor.u32 %v11074_v50, %v9611_v5 }
 0x440   :  { %v9690_v2 = vor.u32 %v11096_v43, %v9689_v15  ;;  %v9547_v43 = vld [vmem:[#allocation6 + $0xd0] sm:$0xf0] }
 0x441   :  { %4835 = vmatpush.bf16.msrb.mxu1 %v9339_v47  ;;  %4861 = vmatpush.bf16.msra.mxu3 %v9347_v56  ;;  %v9694_v47 = vor.u32 %v11094_v57, %v9691_v55  ;;  %v9673_v56 = vld [vmem:[#allocation6 + $0x1c0] sm:$0xf] }
 0x442   :  { %v9674_v11 = vor.u32 %v11092_v42, %v9673_v56  ;;  %v9593_v57 = vld [vmem:[#allocation6 + $0x120] sm:$0xf]  ;;  %v11070_v56 = vld [vmem:[#allocation6 + $0x124] sm:$0xf]  ;;  %v9595_v42 = vld [vmem:[#allocation6 + $0x130] sm:$0xf0] }
 0x443   :  { %4818 = vmatpush.bf16.msra.mxu0 %v9399_v9  ;;  %4844 = vmatpush.bf16.msra.mxu2 %v9407_v52  ;;  %v11088_v9 = vld [vmem:[#allocation6 + $0x1ac] sm:$0xf0]  ;;  %v11086_v52 = vld [vmem:[#allocation6 + $0x1a4] sm:$0xf] }
 0x445   :  { %4836 = vmatpush.bf16.msrb.mxu1 %v9323_v13  ;;  %4862 = vmatpush.bf16.msra.mxu3 %v9331_v40  ;;  %v9659_v13 = vld [vmem:[#allocation6 + $0x1b0] sm:$0xf0] }
 0x446   :  { %v9662_v40 = vor.u32 %v11086_v52, %v9659_v13  ;;  %v9577_v13 = vld [vmem:[#allocation6 + $0x100] sm:$0xf] }
 0x447   :  { %4819 = vmatpush.bf16.msra.mxu0 %v9383_v18  ;;  %4845 = vmatpush.bf16.msra.mxu2 %v9391_v62  ;;  %v9642_v18 = vor.u32 %v11084_v45, %v9641_v54  ;;  %v9643_v62 = vld [vmem:[#allocation6 + $0x190] sm:$0xf0] }
 0x448   :  { %4837 = vmatmul.bf16.vlgmr.msrb.gmra.mxu1 %v12495_v35  ;;  %4863 = vmatmul.bf16.vlgmr.msra.gmra.mxu3 %v12495_v35  ;;  %v9646_v0 = vor.u32 %v11082_v49, %v9643_v62  ;;  %v11066_v49 = vld [vmem:[#allocation6 + $0x104] sm:$0xf]  ;;  %v9697_v62 = vld [vmem:[#allocation6 + $0x1e8] sm:$0xf] }
 0x449   :  { %5338 = vmatpush.bf16.msra.mxu1 %v9690_v2  ;;  %5364 = vmatpush.bf16.msrb.mxu3 %v9694_v47  ;;  %v11072_v2 = vld [vmem:[#allocation6 + $0x12c] sm:$0xf0] }
 0x44a   :  { %4512 = vmatmul.bf16.vlgmr.msrb.gmra.mxu0 %v12495_v35  ;;  %4538 = vmatmul.bf16.vlgmr.msrb.gmra.mxu2 %v12495_v35  ;;  %v9594_v47 = vor.u32 %v11072_v2, %v9593_v57 }
 0x44b   :  { %4820 = vmatpush.bf16.msra.mxu0 %v9367_v10  ;;  %4846 = vmatpush.bf16.msra.mxu2 %v9375_v22  ;;  %v9626_v10 = vor.u32 %v11080_v17, %v9625_v6  ;;  %v9627_v22 = vld [vmem:[#allocation6 + $0x170] sm:$0xf0]  ;;  %v11097_v6 = vld [vmem:[#allocation6 + $0x1f4] sm:$0xf0]  ;;  %v11095_v17 = vld [vmem:[#allocation6 + $0x1ec] sm:$0xf] }
 0x44c   :  { %v9630_v12 = vor.u32 %v11078_v63, %v9627_v22  ;;  %v9699_v63 = vld [vmem:[#allocation6 + $0x1f8] sm:$0xf0]  ;;  %v9698_v22 = vor.u32 %v11097_v6, %v9697_v62  ;;  %v11085_v6 = vld [vmem:[#allocation6 + $0x194] sm:$0xf0] }
 0x44d   :  { %5339 = vmatpush.bf16.msra.mxu1 %v9674_v11  ;;  %5365 = vmatpush.bf16.msrb.mxu3 %v9678_v14  ;;  %v9598_v11 = vor.u32 %v11070_v56, %v9595_v42  ;;  %v11056_v14 = vld [vmem:[#allocation6 + $0xac] sm:$0xf0] }
 0x44e   :  { %v9530_v52 = vor.u32 %v11056_v14, %v9529_v41 }
 0x44f   :  { %4821 = vmatpush.bf16.msra.mxu0 %v9351_v61  ;;  %4847 = vmatpush.bf16.msra.mxu2 %v9359_v51  ;;  %v11062_v61 = vld [vmem:[#allocation6 + $0xe4] sm:$0xf] }
 0x451   :  { %5366 = vmatpush.bf16.msrb.mxu3 %v9662_v40  ;;  %v11068_v40 = vld [vmem:[#allocation6 + $0x10c] sm:$0xf0] }
 0x452   :  { %v9578_v45 = vor.u32 %v11068_v40, %v9577_v13  ;;  %v9481_v13 = vld [vmem:[#allocation6 + $0x40] sm:$0xf]  ;;  %v11044_v40 = vld [vmem:[#allocation6 + $0x4c] sm:$0xf0] }
 0x453   :  { %4822 = vmatpush.bf16.msra.mxu0 %v9335_v8  ;;  %4848 = vmatpush.bf16.msra.mxu2 %v9343_v23  ;;  %v9566_v8 = vor.u32 %v11062_v61, %v9563_v38  ;;  %v9610_v23 = vor.u32 %v11076_v34, %v9609_v60  ;;  %v11050_v61 = vld [vmem:[#allocation6 + $0x84] sm:$0xf]  ;;  %v9515_v38 = vld [vmem:[#allocation6 + $0x90] sm:$0xf0]  ;;  %v9681_v34 = vld [vmem:[#allocation6 + $0x1c8] sm:$0xf] }
 0x454   :  { %v9518_v60 = vor.u32 %v11050_v61, %v9515_v38  ;;  %v9465_v61 = vld [vmem:[#allocation6 + $0x20] sm:$0xf] }
 0x455   :  { %5367 = vmatpush.bf16.msrb.mxu3 %v9646_v0 }
 0x457   :  { %4823 = vmatpush.bf16.msra.mxu0 %v9319_v20  ;;  %4849 = vmatpush.bf16.msra.mxu2 %v9327_v58  ;;  %v11060_v20 = vld [vmem:[#allocation6 + $0xcc] sm:$0xf0]  ;;  %v11058_v58 = vld [vmem:[#allocation6 + $0xc4] sm:$0xf] }
 0x458   :  { %v9546_v15 = vor.u32 %v11060_v20, %v9545_v33  ;;  %v9550_v55 = vor.u32 %v11058_v58, %v9547_v43  ;;  %v9683_v33 = vld [vmem:[#allocation6 + $0x1d8] sm:$0xf0]  ;;  %v9497_v58 = vld [vmem:[#allocation6 + $0x60] sm:$0xf]  ;;  %v11046_v43 = vld [vmem:[#allocation6 + $0x64] sm:$0xf] }
 0x459   :  { %5368 = vmatpush.bf16.msrb.mxu3 %v9630_v12  ;;  %v9702_v12 = vor.u32 %v11095_v17, %v9699_v63  ;;  %v11083_v17 = vld [vmem:[#allocation6 + $0x18c] sm:$0xf] }
 0x45a   :  { %4824 = vmatmul.bf16.vlgmr.msra.gmra.mxu0 %v12495_v35  ;;  %4850 = vmatmul.bf16.vlgmr.msra.gmra.mxu2 %v12495_v35  ;;  %v9658_v35 = vor.u32 %v11088_v9, %v9657_v1  ;;  %v11054_v1 = vld [vmem:[#allocation6 + $0xa4] sm:$0xf] }
 0x45b   :  { %5325 = vmatpush.bf16.msrb.mxu0 %v9562_v36  ;;  %5351 = vmatpush.bf16.msrb.mxu2 %v9566_v8  ;;  %v9514_v36 = vor.u32 %v11052_v19, %v9513_v27  ;;  %v11093_v8 = vld [vmem:[#allocation6 + $0x1d4] sm:$0xf0]  ;;  %v180_v27 = vadd.f32 %v11841_v30, %v11802_v16 }
 0x45c   :  { %5340 = vmatpush.bf16.msra.mxu1 %v9658_v35  ;;  %v9531_v35 = vld [vmem:[#allocation6 + $0xb0] sm:$0xf0] }
 0x45d   :  { %5369 = vmatpush.bf16.msrb.mxu3 %v9614_v48  ;;  %v9534_v54 = vor.u32 %v11054_v1, %v9531_v35  ;;  %v9682_v48 = vor.u32 %v11093_v8, %v9681_v34  ;;  %v9667_v1 = vld [vmem:[#allocation6 + $0x1b8] sm:$0xf0]  ;;  %v9467_v34 = vld [vmem:[#allocation6 + $0x30] sm:$0xf0] }
 0x45f   :  { %5326 = vmatpush.bf16.msrb.mxu0 %v9546_v15  ;;  %5352 = vmatpush.bf16.msrb.mxu2 %v9550_v55  ;;  %v11048_v15 = vld [vmem:[#allocation6 + $0x6c] sm:$0xf0] }
 0x460   :  { %5341 = vmatpush.bf16.msra.mxu1 %v9642_v18  ;;  %v9579_v18 = vld [vmem:[#allocation6 + $0x110] sm:$0xf0]  ;;  %v9498_v55 = vor.u32 %v11048_v15, %v9497_v58  ;;  %v11079_v58 = vld [vmem:[#allocation6 + $0x16c] sm:$0xf]  ;;  %v9635_v15 = vld [vmem:[#allocation6 + $0x178] sm:$0xf0] }
 0x461   :  { %5370 = vmatpush.bf16.msrb.mxu3 %v9598_v11  ;;  %v9582_v0 = vor.u32 %v11066_v49, %v9579_v18  ;;  %v11087_v11 = vld [vmem:[#allocation6 + $0x1ac] sm:$0xf]  ;;  %v9482_v49 = vor.u32 %v11044_v40, %v9481_v13  ;;  %v9483_v18 = vld [vmem:[#allocation6 + $0x50] sm:$0xf0]  ;;  %v9571_v40 = vld [vmem:[#allocation6 + $0xf8] sm:$0xf0] }
 0x462   :  { %v9670_v35 = vor.u32 %v11087_v11, %v9667_v1  ;;  %v11063_v1 = vld [vmem:[#allocation6 + $0xec] sm:$0xf] }
 0x463   :  { %5327 = vmatpush.bf16.msrb.mxu0 %v9530_v52  ;;  %5353 = vmatpush.bf16.msrb.mxu2 %v9534_v54  ;;  %v11042_v54 = vld [vmem:[#allocation6 + $0x44] sm:$0xf] }
 0x464   :  { %5342 = vmatpush.bf16.msra.mxu1 %v9626_v10  ;;  %v9486_v62 = vor.u32 %v11042_v54, %v9483_v18  ;;  %v9617_v54 = vld [vmem:[#allocation6 + $0x148] sm:$0xf]  ;;  %v9574_v18 = vor.u32 %v11063_v1, %v9571_v40  ;;  %v151_v40 = vadd.f32 %v11819_v44, %v11761_v59 }
 0x465   :  { %5371 = vmatpush.bf16.msrb.mxu3 %v9582_v0  ;;  %v9649_v0 = vld [vmem:[#allocation6 + $0x188] sm:$0xf] }
 0x467   :  { %5328 = vmatpush.bf16.msrb.mxu0 %v9514_v36  ;;  %5354 = vmatpush.bf16.msrb.mxu2 %v9518_v60 }
 0x468   :  { %5343 = vmatpush.bf16.msra.mxu1 %v9610_v23  ;;  %v11091_v23 = vld [vmem:[#allocation6 + $0x1cc] sm:$0xf] }
 0x469   :  { %5416 = vmatpush.bf16.msra.mxu3 %v9702_v12  ;;  %v9686_v20 = vor.u32 %v11091_v23, %v9683_v33  ;;  %v9651_v12 = vld [vmem:[#allocation6 + $0x198] sm:$0xf0]  ;;  %v9633_v33 = vld [vmem:[#allocation6 + $0x168] sm:$0xf] }
 0x46a   :  { %v9654_v19 = vor.u32 %v11083_v17, %v9651_v12 }
 0x46b   :  { %5329 = vmatpush.bf16.msrb.mxu0 %v9498_v55  ;;  %v9638_v55 = vor.u32 %v11079_v58, %v9635_v15  ;;  %v9603_v58 = vld [vmem:[#allocation6 + $0x138] sm:$0xf0]  ;;  %v9537_v15 = vld [vmem:[#allocation6 + $0xa8] sm:$0xf] }
 0x46c   :  { %5344 = vmatpush.bf16.msra.mxu1 %v9594_v47  ;;  %v9499_v47 = vld [vmem:[#allocation6 + $0x70] sm:$0xf0] }
 0x46d   :  { %5417 = vmatpush.bf16.msra.mxu3 %v9686_v20  ;;  %v9502_v42 = vor.u32 %v11046_v43, %v9499_v47  ;;  %v11081_v20 = vld [vmem:[#allocation6 + $0x174] sm:$0xf0]  ;;  %v11036_v47 = vld [vmem:[#allocation6 + $0xc] sm:$0xf0] }
 0x46e   :  { %v9634_v30 = vor.u32 %v11081_v20, %v9633_v33 }
 0x46f   :  { %5355 = vmatpush.bf16.msrb.mxu2 %v9502_v42  ;;  %5330 = vmatpush.bf16.msrb.mxu0 %v9482_v49 }
 0x470   :  { %5345 = vmatpush.bf16.msra.mxu1 %v9578_v45 }
 0x471   :  { %5418 = vmatpush.bf16.msra.mxu3 %v9670_v35 }
 0x473   :  { %5356 = vmatpush.bf16.msrb.mxu2 %v9486_v62  ;;  %v11077_v62 = vld [vmem:[#allocation6 + $0x154] sm:$0xf0] }
 0x474   :  { %5390 = vmatpush.bf16.msrb.mxu1 %v9698_v22  ;;  %v9650_v22 = vor.u32 %v11085_v6, %v9649_v0  ;;  %v11075_v0 = vld [vmem:[#allocation6 + $0x14c] sm:$0xf]  ;;  %v9619_v6 = vld [vmem:[#allocation6 + $0x158] sm:$0xf0] }
 0x475   :  { %5419 = vmatpush.bf16.msra.mxu3 %v9654_v19  ;;  %v11059_v19 = vld [vmem:[#allocation6 + $0xcc] sm:$0xf] }
 0x478   :  { %5391 = vmatpush.bf16.msrb.mxu1 %v9682_v48 }
 0x479   :  { %5420 = vmatpush.bf16.msra.mxu3 %v9638_v55 }
 0x4a5   :  { %v12505_v46 = vpop.f32.mrf.mxu1 }
 0x4ab   :  { %v12507_v3 = vpop.f32.mrf.mxu3 }
 0x4ad   :  { %v4476_v51 = vpop.f32.mrf.mxu1 }
 0x4b3   :  { %v4502_v53 = vpop.f32.mrf.mxu3 }
 0x4b4   :  { %v9665_v53 = vld [vmem:[#allocation6 + $0x1a8] sm:$0xf] }
 0x4b5   :  { %v12509_v9 = vpop.f32.mrf.mxu1 }
 0x4b7   :  { %v4461_v10 = vpop.f32.mrf.mxu0 }
 0x4b8   :  { %v4462_v51 = vadd.f32 %v4461_v10, %v11906_v25 }
 0x4ba   :  { %v4475_v50 = vadd.f32 %v12505_v46, %v4462_v51  ;;  %v11089_v46 = vld [vmem:[#allocation6 + $0x1b4] sm:$0xf0]  ;;  %v11038_v51 = vld [vmem:[#allocation6 + $0x24] sm:$0xf] }
 0x4bb   :  { %v12513_v5 = vpop.f32.mrf.mxu3  ;;  %v9666_v14 = vor.u32 %v11089_v46, %v9665_v53  ;;  %v9470_v48 = vor.u32 %v11038_v51, %v9467_v34  ;;  %v9451_v53 = vld [vmem:[#allocation6 + $0x10] sm:$0xf0]  ;;  %v9569_v46 = vld [vmem:[#allocation6 + $0xe8] sm:$0xf]  ;;  %v9622_v51 = vor.u32 %v11075_v0, %v9619_v6 }
 0x4bc   :  { %v9313_v57 = vmul.f32 -1.442695, %v4475_v50 }
 0x4bd   :  { %v4528_v2 = vpop.f32.mrf.mxu1  ;;  %v4487_v56 = vpop.f32.mrf.mxu2  ;;  %5392 = vmatpush.bf16.msrb.mxu1 %v9666_v14  ;;  %5357 = vmatpush.bf16.msrb.mxu2 %v9470_v48  ;;  %v11065_v14 = vld [vmem:[#allocation6 + $0xf4] sm:$0xf0]  ;;  %v11071_v48 = vld [vmem:[#allocation6 + $0x12c] sm:$0xf] }
 0x4be   :  { %11449 = vpow2.f32 %v9313_v57  ;;  %v4488_v41 = vadd.f32 %v4487_v56, %v11910_v28  ;;  %v9449_v2 = vld [vmem:[#allocation6] sm:$0xf]  ;;  %v11034_v56 = vld [vmem:[#allocation6 + $0x4] sm:$0xf]  ;;  %v9570_v13 = vor.u32 %v11065_v14, %v9569_v46  ;;  %5421 = vmatpush.bf16.msra.mxu3 %v9622_v51  ;;  %v9585_v14 = vld [vmem:[#allocation6 + $0x108] sm:$0xf] }
 0x4bf   :  { %v4463_v52 = vpop.f32.mrf.mxu0  ;;  %v9450_v42 = vor.u32 %v11036_v47, %v9449_v2  ;;  %v11055_v47 = vld [vmem:[#allocation6 + $0xac] sm:$0xf] }
 0x4c0   :  { %v4501_v45 = vadd.f32 %v12507_v3, %v4488_v41  ;;  %v11040_v3 = vld [vmem:[#allocation6 + $0x2c] sm:$0xf0]  ;;  %v9454_v41 = vor.u32 %v11034_v56, %v9451_v53  ;;  %v9539_v56 = vld [vmem:[#allocation6 + $0xb8] sm:$0xf0] }
 0x4c1   :  { %v9466_v60 = vor.u32 %v11040_v3, %v9465_v61  ;;  %5393 = vmatpush.bf16.msrb.mxu1 %v9650_v22  ;;  %v9618_v3 = vor.u32 %v11077_v62, %v9617_v54 }
 0x4c2   :  { %v9314_v63 = vmul.f32 -1.442695, %v4501_v45  ;;  %v238_v45 = vadd.f32 %v11830_v26, %v11789_v39  ;;  %5358 = vmatpush.bf16.msrb.mxu2 %v9454_v41  ;;  %v9553_v26 = vld [vmem:[#allocation6 + $0xc8] sm:$0xf] }
 0x4c3   :  { %v4554_v10 = vpop.f32.mrf.mxu3  ;;  %5331 = vmatpush.bf16.msrb.mxu0 %v9466_v60 }
 0x4c4   :  { %v11450_v36 = vpop.eup %11449  ;;  %11451 = vpow2.f32 %v9314_v63 }
 0x4c5   :  { %v4838_v38 = vpop.f32.mrf.mxu1  ;;  %v12519_v8 = vadd.f32 1.0, %v11450_v36  ;;  %v4489_v50 = vpop.f32.mrf.mxu2  ;;  %5394 = vmatpush.bf16.msrb.mxu1 %v9634_v30  ;;  %v9555_v36 = vld [vmem:[#allocation6 + $0xd8] sm:$0xf0] }
 0x4c6   :  { %v4869_v23 = vadd.f32 %v4838_v38, %v180_v27  ;;  %5403 = vmatpush.bf16.msra.mxu2 %v9574_v18  ;;  %v11061_v27 = vld [vmem:[#allocation6 + $0xd4] sm:$0xf0]  ;;  %v9601_v38 = vld [vmem:[#allocation6 + $0x128] sm:$0xf]  ;;  %v9558_v20 = vor.u32 %v11059_v19, %v9555_v36  ;;  %v9587_v18 = vld [vmem:[#allocation6 + $0x118] sm:$0xf0] }
 0x4c7   :  { %11453 = vrcp.f32 %v12519_v8  ;;  %v4513_v57 = vpop.f32.mrf.mxu0  ;;  %5332 = vmatpush.bf16.msrb.mxu0 %v9450_v42  ;;  %v11073_v50 = vld [vmem:[#allocation6 + $0x134] sm:$0xf0]  ;;  %v9554_v33 = vor.u32 %v11061_v27, %v9553_v26  ;;  %v11051_v19 = vld [vmem:[#allocation6 + $0x8c] sm:$0xf]  ;;  %vm4566_vm15 = vweird.f32 %v12519_v8  ;;  %v4570_v36 = vand.u32 2147483647, %v12519_v8 }
 0x4c8   :  { %v9445_v43 = vmul.f32 -1.442695, %v4869_v23  ;;  %v9602_v30 = vor.u32 %v11073_v50, %v9601_v38  ;;  %v4514_v2 = vadd.f32 %v4513_v57, %v11936_v4  ;;  %v11069_v57 = vld [vmem:[#allocation6 + $0x114] sm:$0xf0] }
 0x4c9   :  { %5395 = vmatpush.bf16.msrb.mxu1 %v9618_v3  ;;  %v11053_v27 = vld [vmem:[#allocation6 + $0x94] sm:$0xf0]  ;;  %v4572_v3 = vand.u32 2147483648, %v12519_v8  ;;  %vm4571_vm4 = vcmp.eq.f32.partialorder %v4570_v36, 8.507059e+37 }
 0x4ca   :  { %v11452_v11 = vpop.eup %11451  ;;  %11455 = vpow2.f32 %v9445_v43  ;;  %v11057_v43 = vld [vmem:[#allocation6 + $0xb4] sm:$0xf0]  ;;  %5404 = vmatpush.bf16.msra.mxu2 %v9558_v20  ;;  %v4527_v0 = vadd.f32 %v12509_v9, %v4514_v2 }
 0x4cb   :  { %v12522_v52 = vadd.f32 1.0, %v11452_v11  ;;  %v4864_v35 = vpop.f32.mrf.mxu3  ;;  %5377 = vmatpush.bf16.msra.mxu0 %v9570_v13  ;;  %v9606_v11 = vor.u32 %v11071_v48, %v9603_v58  ;;  %v9538_v41 = vor.u32 %v11057_v43, %v9537_v15  ;;  %v11067_v13 = vld [vmem:[#allocation6 + $0x10c] sm:$0xf]  ;;  %v11049_v58 = vld [vmem:[#allocation6 + $0x74] sm:$0xf0]  ;;  %v4573_v43 = vor.u32 1.1754944e-38, %v4572_v3 }
 0x4cc   :  { %v4871_v22 = vadd.f32 %v4864_v35, %v238_v45  ;;  %v9542_v45 = vor.u32 %v11055_v47, %v9539_v56  ;;  %v9590_v6 = vor.u32 %v11067_v13, %v9587_v18  ;;  %v11047_v47 = vld [vmem:[#allocation6 + $0x6c] sm:$0xf]  ;;  %v11037_v3 = vld [vmem:[#allocation6 + $0x14] sm:$0xf0] }
 0x4cd   :  { %v4840_v49 = vpop.f32.mrf.mxu1  ;;  %v12526_v17 = vpop.eup %11453  ;;  %11457 = vrcp.f32 %v12522_v52  ;;  %5396 = vmatpush.bf16.msrb.mxu1 %v9602_v30  ;;  %5422 = vmatpush.bf16.msra.mxu3 %v9606_v11  ;;  %v4589_v44 = vand.u32 2147483647, %v12522_v52  ;;  %vm4585_vm0 = vweird.f32 %v12522_v52  ;;  %v9505_v30 = vld [vmem:[#allocation6 + $0x68] sm:$0xf] }
 0x4ce   :  { %v4539_v63 = vpop.f32.mrf.mxu2  ;;  %v4562_v10 = vmul.f32 %v12526_v17, %v12519_v8  ;;  %v9446_v55 = vmul.f32 -1.442695, %v4871_v22  ;;  %v9586_v49 = vor.u32 %v11069_v57, %v9585_v14  ;;  %vm4567_vm13 = vweird.f32 %v12526_v17  ;;  %5405 = vmatpush.bf16.msra.mxu2 %v9542_v45  ;;  %v9521_v22 = vld [vmem:[#allocation6 + $0x88] sm:$0xf]  ;;  %v11045_v14 = vld [vmem:[#allocation6 + $0x54] sm:$0xf0] }
 0x4cf   :  { %v4540_v12 = vadd.f32 %v4539_v63, %v11928_v7  ;;  %v4515_v61 = vpop.f32.mrf.mxu0  ;;  %5378 = vmatpush.bf16.msra.mxu0 %v9554_v33  ;;  %v4591_v63 = vand.u32 2147483648, %v12522_v52  ;;  %vm12556_vm1 = vmor %vm4566_vm15, %vm4567_vm13  ;;  %v9522_v50 = vor.u32 %v11053_v27, %v9521_v22  ;;  %vm4590_vm3 = vcmp.eq.f32.partialorder %v4589_v44, 8.507059e+37  ;;  %v9475_v22 = vld [vmem:[#allocation6 + $0x38] sm:$0xf0]  ;;  %v9457_v27 = vld [vmem:[#allocation6 + $0x8] sm:$0xf] }
 0x4d0   :  { %v11456_v60 = vpop.eup %11455  ;;  %v4563_v34 = vsub.f32 1.0, %v4562_v10  ;;  %v9523_v61 = vld [vmem:[#allocation6 + $0x98] sm:$0xf0] }
 0x4d1   :  { %v4553_v23 = vadd.f32 %v12513_v5, %v4540_v12  ;;  %v12536_v53 = vadd.f32 1.0, %v11456_v60  ;;  %5397 = vmatpush.bf16.msrb.mxu1 %v9586_v49  ;;  %5423 = vmatpush.bf16.msra.mxu3 %v9590_v6  ;;  %v9526_v48 = vor.u32 %v11051_v19, %v9523_v61 }
 0x4d2   :  { %v4564_v35 = vmul.f32 %v12526_v17, %v4563_v34 }
 0x4d3   :  { %v12534_v42 = vpop.eup %11457  ;;  %v9315_v5 = vmul.f32 -1.442695, %v4553_v23  ;;  %v4866_v46 = vpop.f32.mrf.mxu3  ;;  %5379 = vmatpush.bf16.msra.mxu0 %v9538_v41  ;;  %v4592_v23 = vor.u32 1.1754944e-38, %v4591_v63  ;;  %5406 = vmatpush.bf16.msra.mxu2 %v9526_v48  ;;  %v9489_v41 = vld [vmem:[#allocation6 + $0x48] sm:$0xf]  ;;  %v209_v48 = vadd.f32 %v11828_v24, %v11786_v37  ;;  %vm4901_vm10 = vweird.f32 %v12536_v53 }
 0x4d4   :  { %v4581_v1 = vmul.f32 %v12534_v42, %v12522_v52  ;;  %vm4586_vm14 = vweird.f32 %v12534_v42  ;;  %v4565_v9 = vadd.f32 %v12526_v17, %v4564_v35  ;;  %v9490_v49 = vor.u32 %v11045_v14, %v9489_v41  ;;  %v9820_v41 = vld [vmem:[#allocation4 + $0xe0] sm:$0xf] }
 0x4d5   :  { %11459 = vpow2.f32 %v9315_v5  ;;  %vm4587_vm2 = vmor %vm4585_vm0, %vm4586_vm14  ;;  %v9506_v5 = vor.u32 %v11049_v58, %v9505_v30 }
 0x4d6   :  { %v4541_v54 = vpop.f32.mrf.mxu2  ;;  %v4582_v62 = vsub.f32 1.0, %v4581_v1  ;;  %11461 = vpow2.f32 %v9446_v55  ;;  %v4569_v33 = vsel %vm12556_vm1, %v12526_v17, %v4565_v9  ;;  %v9507_v17 = vld [vmem:[#allocation6 + $0x78] sm:$0xf0]  ;;  %v11043_v1 = vld [vmem:[#allocation6 + $0x4c] sm:$0xf] }
 0x4d7   :  { %11463 = vrcp.f32 %v12536_v53  ;;  %v4825_v10 = vpop.f32.mrf.mxu0  ;;  %5380 = vmatpush.bf16.msra.mxu0 %v9522_v50  ;;  %v4574_v56 = vsel %vm4571_vm4, %v4573_v43, %v4569_v33  ;;  %v9510_v13 = vor.u32 %v11047_v47, %v9507_v17  ;;  %v9458_v50 = vor.u32 %v11037_v3, %v9457_v27  ;;  %v11126_v47 = vld [vmem:[#allocation4 + $0xe4] sm:$0xf]  ;;  %v9822_v17 = vld [vmem:[#allocation4 + $0xf0] sm:$0xf0] }
 0x4d8   :  { %v4583_v12 = vmul.f32 %v12534_v42, %v4582_v62  ;;  %v4868_v26 = vadd.f32 %v4825_v10, %v151_v40  ;;  %11465 = vtanh.f32 %v4527_v0  ;;  %v9491_v40 = vld [vmem:[#allocation6 + $0x58] sm:$0xf0]  ;;  %v9473_v62 = vld [vmem:[#allocation6 + $0x28] sm:$0xf]  ;;  %v11041_v0 = vld [vmem:[#allocation6 + $0x34] sm:$0xf0] }
 0x4d9   :  { %5407 = vmatpush.bf16.msra.mxu2 %v9510_v13  ;;  %v9494_v18 = vor.u32 %v11043_v1, %v9491_v40  ;;  %v11039_v10 = vld [vmem:[#allocation6 + $0x2c] sm:$0xf]  ;;  %v9474_v9 = vor.u32 %v11041_v0, %v9473_v62  ;;  %v4905_v1 = vand.u32 2147483647, %v12536_v53  ;;  %v9825_v13 = vor.u32 %v11126_v47, %v9822_v17  ;;  %v9790_v3 = vld [vmem:[#allocation4 + $0xb0] sm:$0xf0] }
 0x4da   :  { %v4584_v38 = vadd.f32 %v12534_v42, %v4583_v12  ;;  %v9444_v60 = vmul.f32 -1.442695, %v4868_v26  ;;  %v9478_v61 = vor.u32 %v11039_v10, %v9475_v22 }
 0x4db   :  { %v11460_v34 = vpop.eup %11459  ;;  %5381 = vmatpush.bf16.msra.mxu0 %v9506_v5  ;;  %v9830_v5 = vld [vmem:[#allocation4 + $0xf8] sm:$0xf0]  ;;  %vm4906_vm14 = vcmp.eq.f32.partialorder %v4905_v1, 8.507059e+37 }
 0x4dc   :  { %v11462_v52 = vpop.eup %11461  ;;  %v4588_v20 = vsel %vm4587_vm2, %v12534_v42, %v4584_v38  ;;  %v12568_v8 = vadd.f32 1.0, %v11460_v34  ;;  %11467 = vpow2.f32 %v9444_v60  ;;  %v11035_v38 = vld [vmem:[#allocation6 + $0xc] sm:$0xf]  ;;  %v9459_v60 = vld [vmem:[#allocation6 + $0x18] sm:$0xf0] }
 0x4dd   :  { %v12570_v15 = vpop.eup %11463  ;;  %v4593_v2 = vsel %vm4590_vm3, %v4592_v23, %v4588_v20  ;;  %v12576_v57 = vadd.f32 1.0, %v11462_v52  ;;  %5408 = vmatpush.bf16.msra.mxu2 %v9494_v18  ;;  %v9462_v20 = vor.u32 %v11035_v38, %v9459_v60  ;;  %v9806_v18 = vld [vmem:[#allocation4 + $0xd0] sm:$0xf0] }
 0x4de   :  { %11469 = vrcp.f32 %v12568_v8  ;;  %v4851_v55 = vpop.f32.mrf.mxu2  ;;  %v4897_v46 = vmul.f32 %v12570_v15, %v12536_v53  ;;  %v4615_v11 = vmul.f32 %v4593_v2, %v12431_v31  ;;  %v11466_v35 = vpop.eup %11465  ;;  %v4611_v36 = vand.u32 2147483648, %v12568_v8 }
 0x4df   :  { %v4827_v42 = vpop.f32.mrf.mxu0  ;;  %v4616_v54 = vmul.f32 %v11466_v35, %v4574_v56  ;;  %11471 = vrcp.f32 %v12576_v57  ;;  %5382 = vmatpush.bf16.msra.mxu0 %v9490_v49  ;;  %v4609_v23 = vand.u32 2147483647, %v12568_v8  ;;  %vm4605_vm6 = vweird.f32 %v12568_v8  ;;  %v11122_v49 = vld [vmem:[#allocation4 + $0xc4] sm:$0xf] }
 0x4e0   :  { %v4898_v63 = vsub.f32 1.0, %v4897_v46  ;;  %vm4902_vm7 = vweird.f32 %v12570_v15  ;;  %v4870_v58 = vadd.f32 %v4851_v55, %v209_v48  ;;  %v4612_v2 = vor.u32 1.1754944e-38, %v4611_v36  ;;  %v11127_v42 = vld [vmem:[#allocation4 + $0xec] sm:$0xf]  ;;  %v9798_v36 = vld [vmem:[#allocation4 + $0xb8] sm:$0xf0] }
 0x4e1   :  { %v12578_v44 = vadd.f32 %v4616_v54, %v4615_v11  ;;  %5409 = vmatpush.bf16.msra.mxu2 %v9478_v61  ;;  %vm4610_vm9 = vcmp.eq.f32.partialorder %v4609_v23, 8.507059e+37  ;;  %v4907_v46 = vand.u32 2147483648, %v12536_v53  ;;  %vm12603_vm11 = vmor %vm4901_vm10, %vm4902_vm7  ;;  %v11123_v53 = vld [vmem:[#allocation4 + $0xcc] sm:$0xf]  ;;  %v9809_v27 = vor.u32 %v11122_v49, %v9806_v18  ;;  %v11118_v61 = vld [vmem:[#allocation4 + $0xa4] sm:$0xf] }
 0x4e2   :  { %v11468_v45 = vpop.eup %11467  ;;  %v4899_v51 = vmul.f32 %v12570_v15, %v4898_v63  ;;  %v9814_v63 = vld [vmem:[#allocation4 + $0xd8] sm:$0xf0]  ;;  %v9793_v48 = vor.u32 %v11118_v61, %v9790_v3  ;;  %vm4921_vm2 = vweird.f32 %v12576_v57  ;;  %v4925_v17 = vand.u32 2147483647, %v12576_v57  ;;  %v9742_v18 = vld [vmem:[#allocation4 + $0x50] sm:$0xf0] }
 0x4e3   :  { %v12580_v31 = vadd.f32 1.0, %v11468_v45  ;;  %5383 = vmatpush.bf16.msra.mxu0 %v9474_v9  ;;  %v9833_v45 = vor.u32 %v11127_v42, %v9830_v5  ;;  %v4908_v10 = vor.u32 1.1754944e-38, %v4907_v46  ;;  %v11110_v5 = vld [vmem:[#allocation4 + $0x64] sm:$0xf]  ;;  %v11111_v46 = vld [vmem:[#allocation4 + $0x6c] sm:$0xf] }
 0x4e4   :  { %v11470_v6 = vpop.eup %11469  ;;  %v4900_v43 = vadd.f32 %v12570_v15, %v4899_v51  ;;  %v11119_v51 = vld [vmem:[#allocation4 + $0xac] sm:$0xf]  ;;  %vm4926_vm4 = vcmp.eq.f32.partialorder %v4925_v17, 8.507059e+37  ;;  %v9726_v61 = vld [vmem:[#allocation4 + $0x30] sm:$0xf0] }
 0x4e5   :  { %v4601_v12 = vmul.f32 %v11470_v6, %v12568_v8  ;;  %11473 = vrcp.f32 %v12580_v31  ;;  %vm4606_vm5 = vweird.f32 %v11470_v6  ;;  %v12591_v52 = vpop.eup %11471  ;;  %5410 = vmatpush.bf16.msra.mxu2 %v9462_v20  ;;  %v4888_v40 = vand.u32 2147483648, %v12580_v31  ;;  %v11114_v20 = vld [vmem:[#allocation4 + $0x84] sm:$0xf]  ;;  %v11103_v3 = vld [vmem:[#allocation4 + $0x2c] sm:$0xf] }
 0x4e6   :  { %v4853_v26 = vpop.f32.mrf.mxu2  ;;  %11475 = vtanh.f32 %v12578_v44  ;;  %vm4607_vm8 = vmor %vm4605_vm6, %vm4606_vm5  ;;  %v4917_v55 = vmul.f32 %v12591_v52, %v12576_v57  ;;  %v4904_v54 = vsel %vm12603_vm11, %v12570_v15, %v4900_v43  ;;  %v4886_v0 = vand.u32 2147483647, %v12580_v31  ;;  %v11115_v43 = vld [vmem:[#allocation4 + $0x8c] sm:$0xf] }
 0x4e7   :  { %v4602_v19 = vsub.f32 1.0, %v4601_v12  ;;  %5384 = vmatpush.bf16.msra.mxu0 %v9458_v50  ;;  %11477 = vtanh.f32 %v4870_v58  ;;  %vm4882_vm13 = vweird.f32 %v12580_v31  ;;  %v4889_v9 = vor.u32 1.1754944e-38, %v4888_v40  ;;  %v11129_v40 = vld [vmem:[#allocation4 + $0xf4] sm:$0xf0] }
 0x4e8   :  { %v4918_v22 = vsub.f32 1.0, %v4917_v55  ;;  %v4909_v26 = vsel %vm4906_vm14, %v4908_v10, %v4904_v54  ;;  %vm4887_vm0 = vcmp.eq.f32.partialorder %v4886_v0, 8.507059e+37  ;;  %vm4922_vm1 = vweird.f32 %v12591_v52  ;;  %v9766_v55 = vld [vmem:[#allocation4 + $0x78] sm:$0xf0]  ;;  %v11106_v54 = vld [vmem:[#allocation4 + $0x44] sm:$0xf] }
 0x4e9   :  { %v4603_v34 = vmul.f32 %v11470_v6, %v4602_v19  ;;  %v9817_v19 = vor.u32 %v11123_v53, %v9814_v63  ;;  %v4931_v23 = vmul.f32 %v4909_v26, %v12479_v21  ;;  %v4927_v21 = vand.u32 2147483648, %v12576_v57  ;;  %vm12634_vm3 = vmor %vm4921_vm2, %vm4922_vm1  ;;  %v9750_v0 = vld [vmem:[#allocation4 + $0x58] sm:$0xf0]  ;;  %v9804_v10 = vld [vmem:[#allocation4 + $0xc0] sm:$0xf] }
 0x4ea   :  { %v4919_v60 = vmul.f32 %v12591_v52, %v4918_v22  ;;  %v11124_v22 = vld [vmem:[#allocation4 + $0xcc] sm:$0xf0]  ;;  %v9745_v15 = vor.u32 %v11106_v54, %v9742_v18  ;;  %v9812_v26 = vld [vmem:[#allocation4 + $0xc8] sm:$0xf] }
 0x4eb   :  { %v4604_v33 = vadd.f32 %v11470_v6, %v4603_v34  ;;  %v11474_v30 = vpop.eup %11473  ;;  %v4928_v57 = vor.u32 1.1754944e-38, %v4927_v21  ;;  %v9772_v21 = vld [vmem:[#allocation4 + $0x80] sm:$0xf]  ;;  %v11104_v18 = vld [vmem:[#allocation4 + $0x2c] sm:$0xf0] }
 0x4ec   :  { %v4878_v56 = vmul.f32 %v11474_v30, %v12580_v31  ;;  %v11476_v8 = vpop.eup %11475  ;;  %vm4883_vm12 = vweird.f32 %v11474_v30  ;;  %v4920_v47 = vadd.f32 %v12591_v52, %v4919_v60 }
 0x4ed   :  { %v4608_v24 = vsel %vm4607_vm8, %v11470_v6, %v4604_v33  ;;  %vm12618_vm15 = vmor %vm4882_vm13, %vm4883_vm12  ;;  %v11478_v38 = vpop.eup %11477  ;;  %v9801_v33 = vor.u32 %v11119_v51, %v9798_v36  ;;  %v9788_v36 = vld [vmem:[#allocation4 + $0xa0] sm:$0xf] }
 0x4ee   :  { %v4613_v11 = vsel %vm4610_vm9, %v4612_v2, %v4608_v24  ;;  %v4879_v14 = vsub.f32 1.0, %v4878_v56  ;;  %v9782_v2 = vld [vmem:[#allocation4 + $0x98] sm:$0xf0]  ;;  %v11116_v56 = vld [vmem:[#allocation4 + $0x8c] sm:$0xf0] }
 0x4ef   :  { %v4619_v35 = vmul.f32 %v11476_v8, %v4613_v11  ;;  %v9785_v42 = vor.u32 %v11115_v43, %v9782_v2  ;;  %v9758_v8 = vld [vmem:[#allocation4 + $0x70] sm:$0xf0]  ;;  %v4924_v11 = vsel %vm12634_vm3, %v12591_v52, %v4920_v47 }
 0x4f0   :  { %v4880_v62 = vmul.f32 %v11474_v30, %v4879_v14  ;;  %v11128_v14 = vld [vmem:[#allocation4 + $0xec] sm:$0xf0]  ;;  %v9761_v1 = vor.u32 %v11110_v5, %v9758_v8  ;;  %v4929_v49 = vsel %vm4926_vm4, %v4928_v57, %v4924_v11  ;;  %v9773_v5 = vor.u32 %v11116_v56, %v9772_v21  ;;  %v9764_v11 = vld [vmem:[#allocation4 + $0x68] sm:$0xf]  ;;  %v11113_v57 = vld [vmem:[#allocation4 + $0x74] sm:$0xf0] }
 0x4f1   :  { %v12613_v6 = vpack.c.bf16 %v4619_v35, %v4619_v35  ;;  %v9769_v35 = vor.u32 %v11111_v46, %v9766_v55  ;;  %v9821_v52 = vor.u32 %v11128_v14, %v9820_v41  ;;  %v9756_v46 = vld [vmem:[#allocation4 + $0x60] sm:$0xf]  ;;  %v11112_v55 = vld [vmem:[#allocation4 + $0x6c] sm:$0xf0]  ;;  %v9765_v14 = vor.u32 %v11113_v57, %v9764_v11  ;;  %v10033_v56 = vld [vmem:[#allocation6 + $0x190] sm:$0xf0] }
 0x4f2   :  { %v4881_v12 = vadd.f32 %v11474_v30, %v4880_v62  ;;  %v11107_v62 = vld [vmem:[#allocation4 + $0x4c] sm:$0xf]  ;;  %v9757_v41 = vor.u32 %v11112_v55, %v9756_v46  ;;  %v10017_v55 = vld [vmem:[#allocation6 + $0x170] sm:$0xf0] }
 0x4f3   :  { %5346 = vmatmul.bf16.vlgmr.msra.gmra.mxu1 %v12613_v6  ;;  %5372 = vmatmul.bf16.vlgmr.msrb.gmra.mxu3 %v12613_v6 }
 0x4f4   :  { %5702 = vmatpush.bf16.msra.mxu1 %v9825_v13  ;;  %5728 = vmatpush.bf16.msrb.mxu3 %v9833_v45  ;;  %v4885_v31 = vsel %vm12618_vm15, %v11474_v30, %v4881_v12  ;;  %v9774_v30 = vld [vmem:[#allocation4 + $0x90] sm:$0xf0]  ;;  %v9828_v13 = vld [vmem:[#allocation4 + $0xe8] sm:$0xf] }
 0x4f5   :  { %v4890_v34 = vsel %vm4887_vm0, %v4889_v9, %v4885_v31  ;;  %v9777_v24 = vor.u32 %v11114_v20, %v9774_v30  ;;  %v9829_v63 = vor.u32 %v11129_v40, %v9828_v13  ;;  %v9753_v9 = vor.u32 %v11107_v62, %v9750_v0  ;;  %v9734_v31 = vld [vmem:[#allocation4 + $0x38] sm:$0xf0]  ;;  %v11099_v20 = vld [vmem:[#allocation4 + $0xc] sm:$0xf]  ;;  %v9748_v13 = vld [vmem:[#allocation4 + $0x48] sm:$0xf] }
 0x4f6   :  { %v4932_v50 = vmul.f32 %v11478_v38, %v4890_v34  ;;  %v11120_v38 = vld [vmem:[#allocation4 + $0xac] sm:$0xf0]  ;;  %v9737_v34 = vor.u32 %v11103_v3, %v9734_v31  ;;  %v9718_v30 = vld [vmem:[#allocation4 + $0x18] sm:$0xf0]  ;;  %v11109_v40 = vld [vmem:[#allocation4 + $0x54] sm:$0xf0] }
 0x4f7   :  { %v9789_v43 = vor.u32 %v11120_v38, %v9788_v36  ;;  %v9721_v17 = vor.u32 %v11099_v20, %v9718_v30  ;;  %v9732_v62 = vld [vmem:[#allocation4 + $0x28] sm:$0xf]  ;;  %v11105_v0 = vld [vmem:[#allocation4 + $0x34] sm:$0xf0]  ;;  %v10081_v31 = vld [vmem:[#allocation6 + $0x1f0] sm:$0xf0] }
 0x4f8   :  { %5703 = vmatpush.bf16.msra.mxu1 %v9809_v27  ;;  %5729 = vmatpush.bf16.msrb.mxu3 %v9817_v19  ;;  %v12627_v58 = vadd.f32 %v4932_v50, %v4931_v23  ;;  %v11125_v27 = vld [vmem:[#allocation4 + $0xd4] sm:$0xf0]  ;;  %v11102_v19 = vld [vmem:[#allocation4 + $0x24] sm:$0xf]  ;;  %v9796_v23 = vld [vmem:[#allocation4 + $0xa8] sm:$0xf] }
 0x4f9   :  { %v9813_v51 = vor.u32 %v11125_v27, %v9812_v26  ;;  %v9729_v60 = vor.u32 %v11102_v19, %v9726_v61  ;;  %v11121_v50 = vld [vmem:[#allocation4 + $0xb4] sm:$0xf0]  ;;  %v10079_v27 = vld [vmem:[#allocation6 + $0x1e0] sm:$0xf]  ;;  %v11192_v19 = vld [vmem:[#allocation6 + $0x1ec] sm:$0xf0] }
 0x4fa   :  { %11479 = vtanh.f32 %v12627_v58  ;;  %v9797_v2 = vor.u32 %v11121_v50, %v9796_v23  ;;  %v11190_v61 = vld [vmem:[#allocation6 + $0x1e4] sm:$0xf]  ;;  %v10080_v3 = vor.u32 %v11192_v19, %v10079_v27  ;;  %v11188_v36 = vld [vmem:[#allocation6 + $0x1cc] sm:$0xf0]  ;;  %v10047_v50 = vld [vmem:[#allocation6 + $0x1a0] sm:$0xf] }
 0x4fb   :  { %v11186_v38 = vld [vmem:[#allocation6 + $0x1c4] sm:$0xf]  ;;  %v10049_v20 = vld [vmem:[#allocation6 + $0x1b0] sm:$0xf0] }
 0x4fc   :  { %5704 = vmatpush.bf16.msra.mxu1 %v9793_v48  ;;  %5730 = vmatpush.bf16.msrb.mxu3 %v9801_v33  ;;  %v11098_v48 = vld [vmem:[#allocation4 + $0x4] sm:$0xf]  ;;  %v9710_v33 = vld [vmem:[#allocation4 + $0x10] sm:$0xf0] }
 0x4fd   :  { %v9713_v47 = vor.u32 %v11098_v48, %v9710_v33  ;;  %v11184_v48 = vld [vmem:[#allocation6 + $0x1ac] sm:$0xf0]  ;;  %v11182_v33 = vld [vmem:[#allocation6 + $0x1a4] sm:$0xf] }
 0x4fe   :  { %v10052_v30 = vor.u32 %v11182_v33, %v10049_v20  ;;  %v11162_v20 = vld [vmem:[#allocation6 + $0x104] sm:$0xf] }
 0x500   :  { %5705 = vmatpush.bf16.msra.mxu1 %v9777_v24  ;;  %5731 = vmatpush.bf16.msrb.mxu3 %v9785_v42  ;;  %v11480_v45 = vpop.eup %11479  ;;  %v9780_v24 = vld [vmem:[#allocation4 + $0x88] sm:$0xf]  ;;  %v11117_v42 = vld [vmem:[#allocation4 + $0x94] sm:$0xf0] }
 0x501   :  { %v4935_v53 = vmul.f32 %v11480_v45, %v4929_v49  ;;  %v9781_v8 = vor.u32 %v11117_v42, %v9780_v24  ;;  %v9749_v45 = vor.u32 %v11109_v40, %v9748_v13  ;;  %v9724_v49 = vld [vmem:[#allocation4 + $0x20] sm:$0xf]  ;;  %v9953_v40 = vld [vmem:[#allocation6 + $0xf0] sm:$0xf0] }
 0x502   :  { %v10015_v42 = vld [vmem:[#allocation6 + $0x160] sm:$0xf] }
 0x503   :  { %5398 = vmatmul.bf16.vlgmr.msrb.gmra.mxu1 %v12613_v6  ;;  %5424 = vmatmul.bf16.vlgmr.msra.gmra.mxu3 %v12613_v6  ;;  %v12643_v12 = vpack.c.bf16 %v4935_v53, %v4935_v53  ;;  %v9805_v6 = vor.u32 %v11124_v22, %v9804_v10  ;;  %v9725_v53 = vor.u32 %v11104_v18, %v9724_v49  ;;  %v11100_v10 = vld [vmem:[#allocation4 + $0xc] sm:$0xf0]  ;;  %v9716_v22 = vld [vmem:[#allocation4 + $0x8] sm:$0xf] }
 0x504   :  { %5706 = vmatpush.bf16.msra.mxu1 %v9761_v1  ;;  %5732 = vmatpush.bf16.msrb.mxu3 %v9769_v35  ;;  %v9740_v1 = vld [vmem:[#allocation4 + $0x40] sm:$0xf]  ;;  %v11108_v35 = vld [vmem:[#allocation4 + $0x4c] sm:$0xf0] }
 0x505   :  { %5333 = vmatmul.bf16.vlgmr.msrb.gmra.mxu0 %v12643_v12  ;;  %5359 = vmatmul.bf16.vlgmr.msrb.gmra.mxu2 %v12643_v12  ;;  %v9741_v54 = vor.u32 %v11108_v35, %v9740_v1  ;;  %v11158_v1 = vld [vmem:[#allocation6 + $0xe4] sm:$0xf] }
 0x506   :  { %5689 = vmatpush.bf16.msrb.mxu0 %v9821_v52  ;;  %5715 = vmatpush.bf16.msrb.mxu2 %v9829_v63  ;;  %v9733_v52 = vor.u32 %v11105_v0, %v9732_v62  ;;  %v9708_v63 = vld [vmem:[#allocation4] sm:$0xf]  ;;  %v9956_v49 = vor.u32 %v11158_v1, %v9953_v40  ;;  %v11170_v62 = vld [vmem:[#allocation6 + $0x144] sm:$0xf]  ;;  %v10001_v0 = vld [vmem:[#allocation6 + $0x150] sm:$0xf0] }
 0x507   :  { %v11187_v40 = vld [vmem:[#allocation6 + $0x1cc] sm:$0xf] }
 0x508   :  { %5707 = vmatpush.bf16.msra.mxu1 %v9745_v15  ;;  %5733 = vmatpush.bf16.msrb.mxu3 %v9753_v9  ;;  %v11101_v15 = vld [vmem:[#allocation4 + $0x14] sm:$0xf0]  ;;  %v9709_v9 = vor.u32 %v11100_v10, %v9708_v63  ;;  %v11156_v63 = vld [vmem:[#allocation6 + $0xcc] sm:$0xf0]  ;;  %v11154_v10 = vld [vmem:[#allocation6 + $0xc4] sm:$0xf] }
 0x509   :  { %v9717_v26 = vor.u32 %v11101_v15, %v9716_v22  ;;  %v9937_v15 = vld [vmem:[#allocation6 + $0xd0] sm:$0xf0] }
 0x50a   :  { %5690 = vmatpush.bf16.msrb.mxu0 %v9805_v6  ;;  %5716 = vmatpush.bf16.msrb.mxu2 %v9813_v51  ;;  %v10084_v6 = vor.u32 %v11190_v61, %v10081_v31  ;;  %v10063_v51 = vld [vmem:[#allocation6 + $0x1c0] sm:$0xf]  ;;  %v9940_v27 = vor.u32 %v11154_v10, %v9937_v15  ;;  %v11166_v61 = vld [vmem:[#allocation6 + $0x124] sm:$0xf]  ;;  %v9889_v15 = vld [vmem:[#allocation6 + $0x70] sm:$0xf0] }
 0x50c   :  { %5708 = vmatpush.bf16.msra.mxu1 %v9729_v60  ;;  %5734 = vmatpush.bf16.msrb.mxu3 %v9737_v34  ;;  %v10064_v60 = vor.u32 %v11188_v36, %v10063_v51  ;;  %v10065_v34 = vld [vmem:[#allocation6 + $0x1d0] sm:$0xf0]  ;;  %v9919_v51 = vld [vmem:[#allocation6 + $0xa0] sm:$0xf]  ;;  %v11152_v36 = vld [vmem:[#allocation6 + $0xac] sm:$0xf0] }
 0x50d   :  { %v10068_v23 = vor.u32 %v11186_v38, %v10065_v34  ;;  %v11150_v38 = vld [vmem:[#allocation6 + $0xa4] sm:$0xf]  ;;  %v9920_v34 = vor.u32 %v11152_v36, %v9919_v51  ;;  %v9871_v36 = vld [vmem:[#allocation6 + $0x40] sm:$0xf] }
 0x50e   :  { %5691 = vmatpush.bf16.msrb.mxu0 %v9789_v43  ;;  %5717 = vmatpush.bf16.msrb.mxu2 %v9797_v2  ;;  %v10031_v43 = vld [vmem:[#allocation6 + $0x180] sm:$0xf]  ;;  %v11180_v2 = vld [vmem:[#allocation6 + $0x18c] sm:$0xf0] }
 0x50f   :  { %v10032_v21 = vor.u32 %v11180_v2, %v10031_v43  ;;  %v10087_v43 = vld [vmem:[#allocation6 + $0x1e8] sm:$0xf] }
 0x510   :  { %5709 = vmatpush.bf16.msra.mxu1 %v9713_v47  ;;  %5735 = vmatpush.bf16.msrb.mxu3 %v9721_v17  ;;  %v11178_v47 = vld [vmem:[#allocation6 + $0x184] sm:$0xf] }
 0x511   :  { %v10036_v24 = vor.u32 %v11178_v47, %v10033_v56  ;;  %v11193_v47 = vld [vmem:[#allocation6 + $0x1f4] sm:$0xf0]  ;;  %v10089_v56 = vld [vmem:[#allocation6 + $0x1f8] sm:$0xf0] }
 0x512   :  { %5692 = vmatpush.bf16.msrb.mxu0 %v9773_v5  ;;  %5718 = vmatpush.bf16.msrb.mxu2 %v9781_v8  ;;  %v11176_v5 = vld [vmem:[#allocation6 + $0x16c] sm:$0xf0]  ;;  %v11174_v8 = vld [vmem:[#allocation6 + $0x164] sm:$0xf] }
 0x513   :  { %5710 = vmatmul.bf16.vlgmr.msra.gmra.mxu1 %v12643_v12  ;;  %5736 = vmatmul.bf16.vlgmr.msrb.gmra.mxu3 %v12643_v12  ;;  %v10016_v46 = vor.u32 %v11176_v5, %v10015_v42  ;;  %v10020_v11 = vor.u32 %v11174_v8, %v10017_v55  ;;  %v10088_v42 = vor.u32 %v11193_v47, %v10087_v43  ;;  %v9903_v8 = vld [vmem:[#allocation6 + $0x80] sm:$0xf]  ;;  %v11146_v55 = vld [vmem:[#allocation6 + $0x84] sm:$0xf] }
 0x514   :  { %6211 = vmatpush.bf16.msrb.mxu1 %v10080_v3  ;;  %6237 = vmatpush.bf16.msra.mxu3 %v10084_v6  ;;  %v9985_v3 = vld [vmem:[#allocation6 + $0x130] sm:$0xf0] }
 0x515   :  { %5385 = vmatmul.bf16.vlgmr.msra.gmra.mxu0 %v12643_v12  ;;  %5411 = vmatmul.bf16.vlgmr.msra.gmra.mxu2 %v12643_v12  ;;  %v9988_v6 = vor.u32 %v11166_v61, %v9985_v3 }
 0x516   :  { %5693 = vmatpush.bf16.msrb.mxu0 %v9757_v41  ;;  %5719 = vmatpush.bf16.msrb.mxu2 %v9765_v14  ;;  %v9951_v41 = vld [vmem:[#allocation6 + $0xe0] sm:$0xf]  ;;  %v11160_v14 = vld [vmem:[#allocation6 + $0xec] sm:$0xf0] }
 0x517   :  { %v9952_v13 = vor.u32 %v11160_v14, %v9951_v41  ;;  %v9905_v14 = vld [vmem:[#allocation6 + $0x90] sm:$0xf0] }
 0x518   :  { %6212 = vmatpush.bf16.msrb.mxu1 %v10064_v60  ;;  %6238 = vmatpush.bf16.msra.mxu3 %v10068_v23  ;;  %v9921_v23 = vld [vmem:[#allocation6 + $0xb0] sm:$0xf0]  ;;  %v9908_v1 = vor.u32 %v11146_v55, %v9905_v14 }
 0x519   :  { %v9924_v33 = vor.u32 %v11150_v38, %v9921_v23  ;;  %v11140_v38 = vld [vmem:[#allocation6 + $0x4c] sm:$0xf0]  ;;  %v9857_v55 = vld [vmem:[#allocation6 + $0x30] sm:$0xf0] }
 0x51a   :  { %5694 = vmatpush.bf16.msrb.mxu0 %v9741_v54  ;;  %5720 = vmatpush.bf16.msrb.mxu2 %v9749_v45  ;;  %v9999_v54 = vld [vmem:[#allocation6 + $0x140] sm:$0xf]  ;;  %v11172_v45 = vld [vmem:[#allocation6 + $0x14c] sm:$0xf0] }
 0x51b   :  { %v10000_v18 = vor.u32 %v11172_v45, %v9999_v54 }
 0x51c   :  { %6239 = vmatpush.bf16.msra.mxu3 %v10052_v30  ;;  %v9969_v30 = vld [vmem:[#allocation6 + $0x110] sm:$0xf0] }
 0x51d   :  { %v9972_v2 = vor.u32 %v11162_v20, %v9969_v30  ;;  %v11181_v20 = vld [vmem:[#allocation6 + $0x194] sm:$0xf0]  ;;  %v11179_v30 = vld [vmem:[#allocation6 + $0x18c] sm:$0xf] }
 0x51e   :  { %5695 = vmatpush.bf16.msrb.mxu0 %v9725_v53  ;;  %5721 = vmatpush.bf16.msrb.mxu2 %v9733_v52  ;;  %v10004_v53 = vor.u32 %v11170_v62, %v10001_v0  ;;  %v9935_v52 = vld [vmem:[#allocation6 + $0xc0] sm:$0xf] }
 0x51f   :  { %v9936_v22 = vor.u32 %v11156_v63, %v9935_v52  ;;  %v9887_v0 = vld [vmem:[#allocation6 + $0x60] sm:$0xf]  ;;  %v11142_v52 = vld [vmem:[#allocation6 + $0x64] sm:$0xf] }
 0x520   :  { %6240 = vmatpush.bf16.msra.mxu3 %v10036_v24 }
 0x522   :  { %5696 = vmatpush.bf16.msrb.mxu0 %v9709_v9  ;;  %5722 = vmatpush.bf16.msrb.mxu2 %v9717_v26  ;;  %v9983_v9 = vld [vmem:[#allocation6 + $0x120] sm:$0xf]  ;;  %v11168_v26 = vld [vmem:[#allocation6 + $0x12c] sm:$0xf0] }
 0x523   :  { %v9984_v19 = vor.u32 %v11168_v26, %v9983_v9  ;;  %v9892_v26 = vor.u32 %v11142_v52, %v9889_v15  ;;  %v11132_v52 = vld [vmem:[#allocation6 + $0xc] sm:$0xf0] }
 0x524   :  { %6241 = vmatpush.bf16.msra.mxu3 %v10020_v11 }
 0x525   :  { %5697 = vmatmul.bf16.vlgmr.msrb.gmra.mxu0 %v12643_v12  ;;  %5723 = vmatmul.bf16.vlgmr.msrb.gmra.mxu2 %v12643_v12  ;;  %v10048_v12 = vor.u32 %v11184_v48, %v10047_v50  ;;  %v9967_v50 = vld [vmem:[#allocation6 + $0x100] sm:$0xf]  ;;  %v11164_v48 = vld [vmem:[#allocation6 + $0x10c] sm:$0xf0] }
 0x526   :  { %6198 = vmatpush.bf16.msra.mxu0 %v9952_v13  ;;  %6224 = vmatpush.bf16.msra.mxu2 %v9956_v49  ;;  %v11189_v13 = vld [vmem:[#allocation6 + $0x1d4] sm:$0xf0] }
 0x527   :  { %6213 = vmatpush.bf16.msrb.mxu1 %v10048_v12  ;;  %v9968_v12 = vor.u32 %v11164_v48, %v9967_v50  ;;  %v9872_v50 = vor.u32 %v11140_v38, %v9871_v36  ;;  %v9873_v48 = vld [vmem:[#allocation6 + $0x50] sm:$0xf0]  ;;  %v11173_v36 = vld [vmem:[#allocation6 + $0x154] sm:$0xf0]  ;;  %v11171_v38 = vld [vmem:[#allocation6 + $0x14c] sm:$0xf] }
 0x528   :  { %6242 = vmatpush.bf16.msra.mxu3 %v10004_v53  ;;  %v11144_v53 = vld [vmem:[#allocation6 + $0x6c] sm:$0xf0] }
 0x52a   :  { %6199 = vmatpush.bf16.msra.mxu0 %v9936_v22  ;;  %6225 = vmatpush.bf16.msra.mxu2 %v9940_v27  ;;  %v9888_v22 = vor.u32 %v11144_v53, %v9887_v0  ;;  %v10055_v27 = vld [vmem:[#allocation6 + $0x1a8] sm:$0xf]  ;;  %v9839_v0 = vld [vmem:[#allocation6] sm:$0xf] }
 0x52b   :  { %6214 = vmatpush.bf16.msrb.mxu1 %v10032_v21  ;;  %v11191_v21 = vld [vmem:[#allocation6 + $0x1ec] sm:$0xf] }
 0x52c   :  { %6243 = vmatpush.bf16.msra.mxu3 %v9988_v6  ;;  %v10092_v5 = vor.u32 %v11191_v21, %v10089_v56  ;;  %v10041_v21 = vld [vmem:[#allocation6 + $0x198] sm:$0xf0] }
 0x52d   :  { %v10044_v56 = vor.u32 %v11179_v30, %v10041_v21  ;;  %v11157_v30 = vld [vmem:[#allocation6 + $0xd4] sm:$0xf0] }
 0x52e   :  { %6200 = vmatpush.bf16.msra.mxu0 %v9920_v34  ;;  %6226 = vmatpush.bf16.msra.mxu2 %v9924_v33  ;;  %v11138_v34 = vld [vmem:[#allocation6 + $0x44] sm:$0xf] }
 0x52f   :  { %6215 = vmatpush.bf16.msrb.mxu1 %v10016_v46  ;;  %v11148_v46 = vld [vmem:[#allocation6 + $0x8c] sm:$0xf0]  ;;  %v9876_v33 = vor.u32 %v11138_v34, %v9873_v48  ;;  %v10009_v34 = vld [vmem:[#allocation6 + $0x158] sm:$0xf0] }
 0x530   :  { %6244 = vmatpush.bf16.msra.mxu3 %v9972_v2  ;;  %v9904_v41 = vor.u32 %v11148_v46, %v9903_v8  ;;  %v10012_v21 = vor.u32 %v11171_v38, %v10009_v34  ;;  %v9911_v38 = vld [vmem:[#allocation6 + $0x88] sm:$0xf] }
 0x532   :  { %6201 = vmatpush.bf16.msra.mxu0 %v9904_v41  ;;  %6227 = vmatpush.bf16.msra.mxu2 %v9908_v1 }
 0x533   :  { %6216 = vmatpush.bf16.msrb.mxu1 %v10000_v18  ;;  %v10073_v18 = vld [vmem:[#allocation6 + $0x1d8] sm:$0xf0] }
 0x534   :  { %6289 = vmatpush.bf16.msrb.mxu3 %v10092_v5  ;;  %v10076_v62 = vor.u32 %v11187_v40, %v10073_v18  ;;  %v11134_v5 = vld [vmem:[#allocation6 + $0x24] sm:$0xf] }
 0x535   :  { %v9860_v1 = vor.u32 %v11134_v5, %v9857_v55 }
 0x536   :  { %6202 = vmatpush.bf16.msra.mxu0 %v9888_v22  ;;  %6228 = vmatpush.bf16.msra.mxu2 %v9892_v26  ;;  %v9959_v22 = vld [vmem:[#allocation6 + $0xe8] sm:$0xf]  ;;  %v11161_v26 = vld [vmem:[#allocation6 + $0xf4] sm:$0xf0] }
 0x537   :  { %6217 = vmatpush.bf16.msrb.mxu1 %v9984_v19  ;;  %v11183_v19 = vld [vmem:[#allocation6 + $0x1ac] sm:$0xf] }
 0x538   :  { %6290 = vmatpush.bf16.msrb.mxu3 %v10076_v62 }
 0x53a   :  { %6203 = vmatpush.bf16.msra.mxu0 %v9872_v50  ;;  %6229 = vmatpush.bf16.msra.mxu2 %v9876_v33 }
 0x53b   :  { %6218 = vmatpush.bf16.msrb.mxu1 %v9968_v12  ;;  %v10039_v12 = vld [vmem:[#allocation6 + $0x188] sm:$0xf] }
 0x53c   :  { %v10040_v47 = vor.u32 %v11181_v20, %v10039_v12  ;;  %v9943_v20 = vld [vmem:[#allocation6 + $0xc8] sm:$0xf] }
 0x53e   :  { %6230 = vmatpush.bf16.msra.mxu2 %v9860_v1  ;;  %v9927_v1 = vld [vmem:[#allocation6 + $0xa8] sm:$0xf] }
 0x53f   :  { %6263 = vmatpush.bf16.msra.mxu1 %v10088_v42  ;;  %v11136_v42 = vld [vmem:[#allocation6 + $0x2c] sm:$0xf0] }
 0x570   :  { %v12653_v17 = vpop.f32.mrf.mxu1 }
 0x576   :  { %v12655_v57 = vpop.f32.mrf.mxu3 }
 0x578   :  { %v5349_v35 = vpop.f32.mrf.mxu1 }
 0x579   :  { %v10071_v35 = vld [vmem:[#allocation6 + $0x1c8] sm:$0xf] }
 0x57a   :  { %v10072_v49 = vor.u32 %v11189_v13, %v10071_v35  ;;  %v10023_v35 = vld [vmem:[#allocation6 + $0x168] sm:$0xf]  ;;  %v11177_v13 = vld [vmem:[#allocation6 + $0x174] sm:$0xf0] }
 0x57b   :  { %v10024_v40 = vor.u32 %v11177_v13, %v10023_v35  ;;  %v11153_v35 = vld [vmem:[#allocation6 + $0xb4] sm:$0xf0] }
 0x57c   :  { %6264 = vmatpush.bf16.msra.mxu1 %v10072_v49  ;;  %v10025_v49 = vld [vmem:[#allocation6 + $0x178] sm:$0xf0] }
 0x57e   :  { %v5375_v31 = vpop.f32.mrf.mxu3 }
 0x57f   :  { %v10057_v31 = vld [vmem:[#allocation6 + $0x1b8] sm:$0xf0] }
 0x580   :  { %v12657_v60 = vpop.f32.mrf.mxu1  ;;  %v10060_v51 = vor.u32 %v11183_v19, %v10057_v31  ;;  %v10007_v31 = vld [vmem:[#allocation6 + $0x148] sm:$0xf] }
 0x582   :  { %v5334_v24 = vpop.f32.mrf.mxu0  ;;  %6291 = vmatpush.bf16.msrb.mxu3 %v10060_v51 }
 0x583   :  { %v5335_v11 = vadd.f32 %v5334_v24, %v11906_v25  ;;  %v9855_v24 = vld [vmem:[#allocation6 + $0x20] sm:$0xf] }
 0x584   :  { %v9856_v46 = vor.u32 %v11136_v42, %v9855_v24  ;;  %v9991_v24 = vld [vmem:[#allocation6 + $0x128] sm:$0xf] }
 0x585   :  { %v5348_v54 = vadd.f32 %v12653_v17, %v5335_v11  ;;  %v11185_v17 = vld [vmem:[#allocation6 + $0x1b4] sm:$0xf0] }
 0x586   :  { %v12661_v45 = vpop.f32.mrf.mxu3  ;;  %v10056_v3 = vor.u32 %v11185_v17, %v10055_v27  ;;  %6292 = vmatpush.bf16.msrb.mxu3 %v10044_v56  ;;  %6204 = vmatpush.bf16.msra.mxu0 %v9856_v46  ;;  %v11159_v27 = vld [vmem:[#allocation6 + $0xec] sm:$0xf]  ;;  %v9945_v56 = vld [vmem:[#allocation6 + $0xd8] sm:$0xf0] }
 0x587   :  { %v9703_v63 = vmul.f32 -1.442695, %v5348_v54  ;;  %v11175_v54 = vld [vmem:[#allocation6 + $0x16c] sm:$0xf] }
 0x588   :  { %v5401_v10 = vpop.f32.mrf.mxu1  ;;  %v5360_v9 = vpop.f32.mrf.mxu2  ;;  %6265 = vmatpush.bf16.msra.mxu1 %v10056_v3  ;;  %v10028_v53 = vor.u32 %v11175_v54, %v10025_v49  ;;  %v9961_v3 = vld [vmem:[#allocation6 + $0xf8] sm:$0xf0]  ;;  %v11167_v46 = vld [vmem:[#allocation6 + $0x12c] sm:$0xf] }
 0x589   :  { %11481 = vpow2.f32 %v9703_v63  ;;  %v5361_v61 = vadd.f32 %v5360_v9, %v11910_v28  ;;  %v11130_v63 = vld [vmem:[#allocation6 + $0x4] sm:$0xf]  ;;  %v9841_v10 = vld [vmem:[#allocation6 + $0x10] sm:$0xf0]  ;;  %v9964_v51 = vor.u32 %v11159_v27, %v9961_v3  ;;  %v11151_v54 = vld [vmem:[#allocation6 + $0xac] sm:$0xf] }
 0x58a   :  { %v5336_v6 = vpop.f32.mrf.mxu0  ;;  %6293 = vmatpush.bf16.msrb.mxu3 %v10028_v53  ;;  %v9844_v9 = vor.u32 %v11130_v63, %v9841_v10  ;;  %v9929_v49 = vld [vmem:[#allocation6 + $0xb8] sm:$0xf0]  ;;  %v9928_v63 = vor.u32 %v11153_v35, %v9927_v1  ;;  %v11143_v35 = vld [vmem:[#allocation6 + $0x6c] sm:$0xf] }
 0x58b   :  { %v5374_v23 = vadd.f32 %v12655_v57, %v5361_v61  ;;  %v9960_v61 = vor.u32 %v11161_v26, %v9959_v22  ;;  %v9932_v26 = vor.u32 %v11151_v54, %v9929_v49 }
 0x58c   :  { %6266 = vmatpush.bf16.msra.mxu1 %v10040_v47  ;;  %6231 = vmatpush.bf16.msra.mxu2 %v9844_v9  ;;  %v10008_v47 = vor.u32 %v11173_v36, %v10007_v31 }
 0x58d   :  { %v9704_v43 = vmul.f32 -1.442695, %v5374_v23 }
 0x58e   :  { %v5427_v2 = vpop.f32.mrf.mxu3  ;;  %6294 = vmatpush.bf16.msrb.mxu3 %v10012_v21 }
 0x58f   :  { %v11482_v8 = vpop.eup %11481  ;;  %11483 = vpow2.f32 %v9704_v43  ;;  %v11155_v43 = vld [vmem:[#allocation6 + $0xcc] sm:$0xf] }
 0x590   :  { %v5711_v57 = vpop.f32.mrf.mxu1  ;;  %v12665_v11 = vadd.f32 1.0, %v11482_v8  ;;  %v5362_v14 = vpop.f32.mrf.mxu2  ;;  %6267 = vmatpush.bf16.msra.mxu1 %v10024_v40  ;;  %6276 = vmatpush.bf16.msrb.mxu2 %v9964_v51  ;;  %v9948_v55 = vor.u32 %v11155_v43, %v9945_v56  ;;  %v9849_v43 = vld [vmem:[#allocation6 + $0x18] sm:$0xf0] }
 0x591   :  { %v5742_v41 = vadd.f32 %v5711_v57, %v11851_v32  ;;  %v9840_v32 = vor.u32 %v11132_v52, %v9839_v0  ;;  %v11169_v57 = vld [vmem:[#allocation6 + $0x134] sm:$0xf0]  ;;  %v9993_v14 = vld [vmem:[#allocation6 + $0x138] sm:$0xf0] }
 0x592   :  { %11485 = vrcp.f32 %v12665_v11  ;;  %v5386_v62 = vpop.f32.mrf.mxu0  ;;  %v9996_v52 = vor.u32 %v11167_v46, %v9993_v14  ;;  %vm5439_vm7 = vweird.f32 %v12665_v11  ;;  %v9895_v46 = vld [vmem:[#allocation6 + $0x68] sm:$0xf] }
 0x593   :  { %v9835_v18 = vmul.f32 -1.442695, %v5742_v41  ;;  %6205 = vmatpush.bf16.msra.mxu0 %v9840_v32  ;;  %v9992_v41 = vor.u32 %v11169_v57, %v9991_v24  ;;  %v5387_v13 = vadd.f32 %v5386_v62, %v11936_v4  ;;  %v9975_v32 = vld [vmem:[#allocation6 + $0x108] sm:$0xf]  ;;  %v11165_v62 = vld [vmem:[#allocation6 + $0x114] sm:$0xf0] }
 0x594   :  { %6268 = vmatpush.bf16.msra.mxu1 %v10008_v47  ;;  %6277 = vmatpush.bf16.msrb.mxu2 %v9948_v55  ;;  %v9976_v27 = vor.u32 %v11165_v62, %v9975_v32 }
 0x595   :  { %v11484_v15 = vpop.eup %11483  ;;  %11487 = vpow2.f32 %v9835_v18  ;;  %6295 = vmatpush.bf16.msrb.mxu3 %v9996_v52  ;;  %v5400_v3 = vadd.f32 %v12657_v60, %v5387_v13  ;;  %v11139_v52 = vld [vmem:[#allocation6 + $0x4c] sm:$0xf] }
 0x596   :  { %v12669_v17 = vadd.f32 1.0, %v11484_v15  ;;  %v5737_v19 = vpop.f32.mrf.mxu3  ;;  %v11163_v15 = vld [vmem:[#allocation6 + $0x10c] sm:$0xf] }
 0x597   :  { %6250 = vmatpush.bf16.msrb.mxu0 %v9960_v61  ;;  %v5744_v33 = vadd.f32 %v5737_v19, %v11839_v29  ;;  %v9944_v29 = vor.u32 %v11157_v30, %v9943_v20  ;;  %v9977_v19 = vld [vmem:[#allocation6 + $0x118] sm:$0xf0]  ;;  %v5445_v30 = vand.u32 2147483648, %v12665_v11 }
 0x598   :  { %v5713_v6 = vpop.f32.mrf.mxu1  ;;  %v12671_v23 = vpop.eup %11485  ;;  %11489 = vrcp.f32 %v12669_v17  ;;  %6269 = vmatpush.bf16.msra.mxu1 %v9992_v41  ;;  %v9980_v31 = vor.u32 %v11163_v15, %v9977_v19  ;;  %v5462_v51 = vand.u32 2147483647, %v12669_v17  ;;  %6278 = vmatpush.bf16.msrb.mxu2 %v9932_v26  ;;  %v9913_v20 = vld [vmem:[#allocation6 + $0x98] sm:$0xf0]  ;;  %vm5458_vm8 = vweird.f32 %v12669_v17  ;;  %v11137_v19 = vld [vmem:[#allocation6 + $0x34] sm:$0xf0] }
 0x599   :  { %v5412_v50 = vpop.f32.mrf.mxu2  ;;  %v5435_v48 = vmul.f32 %v12671_v23, %v12665_v11  ;;  %v9836_v40 = vmul.f32 -1.442695, %v5744_v33  ;;  %v5464_v6 = vand.u32 2147483648, %v12669_v17  ;;  %vm5440_vm5 = vweird.f32 %v12671_v23  ;;  %v11149_v33 = vld [vmem:[#allocation6 + $0x94] sm:$0xf0] }
 0x59a   :  { %v5413_v12 = vadd.f32 %v5412_v50, %v11928_v7  ;;  %v5388_v2 = vpop.f32.mrf.mxu0  ;;  %v13015_v50 = vld [vmem:[#allocation10_spill] sm:$0xff]  ;;  %6296 = vmatpush.bf16.msrb.mxu3 %v9980_v31  ;;  %vm12701_vm9 = vmor %vm5439_vm7, %vm5440_vm5  ;;  %vm5463_vm11 = vcmp.eq.f32.partialorder %v5462_v51, 8.507059e+37  ;;  %v5446_v41 = vor.u32 1.1754944e-38, %v5445_v30  ;;  %v9865_v51 = vld [vmem:[#allocation6 + $0x38] sm:$0xf0] }
 0x59b   :  { %v11488_v42 = vpop.eup %11487  ;;  %v5436_v5 = vsub.f32 1.0, %v5435_v48  ;;  %6251 = vmatpush.bf16.msrb.mxu0 %v9944_v29  ;;  %v5443_v2 = vand.u32 2147483647, %v12665_v11  ;;  %v5465_v24 = vor.u32 1.1754944e-38, %v5464_v6  ;;  %v11145_v29 = vld [vmem:[#allocation6 + $0x74] sm:$0xf0] }
 0x59c   :  { %v5426_v8 = vadd.f32 %v12661_v45, %v5413_v12  ;;  %v12682_v0 = vadd.f32 1.0, %v11488_v42  ;;  %v11147_v12 = vld [vmem:[#allocation6 + $0x8c] sm:$0xf]  ;;  %6270 = vmatpush.bf16.msra.mxu1 %v9976_v27  ;;  %v9912_v42 = vor.u32 %v11149_v33, %v9911_v38  ;;  %v9896_v54 = vor.u32 %v11145_v29, %v9895_v46  ;;  %v9863_v27 = vld [vmem:[#allocation6 + $0x28] sm:$0xf] }
 0x59d   :  { %v5437_v22 = vmul.f32 %v12671_v23, %v5436_v5  ;;  %v9916_v5 = vor.u32 %v11147_v12, %v9913_v20  ;;  %vm5444_vm12 = vcmp.eq.f32.partialorder %v5443_v2, 8.507059e+37  ;;  %v11135_v6 = vld [vmem:[#allocation6 + $0x2c] sm:$0xf]  ;;  %v9864_v38 = vor.u32 %v11137_v19, %v9863_v27  ;;  %v11133_v33 = vld [vmem:[#allocation6 + $0x14] sm:$0xf0] }
 0x59e   :  { %v12680_v18 = vpop.eup %11489  ;;  %v9705_v45 = vmul.f32 -1.442695, %v5426_v8  ;;  %v5739_v53 = vpop.f32.mrf.mxu3  ;;  %v11131_v30 = vld [vmem:[#allocation6 + $0xc] sm:$0xf]  ;;  %v11222_v29 = vld [vmem:[#allocation4 + $0xe4] sm:$0xf]  ;;  %vm5774_vm2 = vweird.f32 %v12682_v0 }
 0x59f   :  { %v5454_v10 = vmul.f32 %v12680_v18, %v12669_v17  ;;  %6252 = vmatpush.bf16.msrb.mxu0 %v9928_v63  ;;  %vm5459_vm6 = vweird.f32 %v12680_v18  ;;  %v5438_v60 = vadd.f32 %v12671_v23, %v5437_v22  ;;  %6279 = vmatpush.bf16.msrb.mxu2 %v9916_v5  ;;  %v11141_v53 = vld [vmem:[#allocation6 + $0x54] sm:$0xf0]  ;;  %v9881_v22 = vld [vmem:[#allocation6 + $0x58] sm:$0xf0] }
 0x5a0   :  { %11491 = vpow2.f32 %v9705_v45  ;;  %vm5460_vm10 = vmor %vm5458_vm8, %vm5459_vm6  ;;  %v9879_v45 = vld [vmem:[#allocation6 + $0x48] sm:$0xf]  ;;  %v9884_v26 = vor.u32 %v11139_v52, %v9881_v22  ;;  %v10204_v19 = vld [vmem:[#allocation4 + $0xd8] sm:$0xf0] }
 0x5a1   :  { %v5414_v9 = vpop.f32.mrf.mxu2  ;;  %v5455_v61 = vsub.f32 1.0, %v5454_v10  ;;  %11493 = vpow2.f32 %v9836_v40  ;;  %v5442_v8 = vsel %vm12701_vm9, %v12671_v23, %v5438_v60  ;;  %v9897_v23 = vld [vmem:[#allocation6 + $0x78] sm:$0xf0]  ;;  %v9847_v60 = vld [vmem:[#allocation6 + $0x8] sm:$0xf] }
 0x5a2   :  { %11495 = vrcp.f32 %v12682_v0  ;;  %v5698_v36 = vpop.f32.mrf.mxu0  ;;  %v5447_v13 = vsel %vm5444_vm12, %v5446_v41, %v5442_v8  ;;  %v9900_v10 = vor.u32 %v11143_v35, %v9897_v23  ;;  %v9880_v9 = vor.u32 %v11141_v53, %v9879_v45  ;;  %v10212_v41 = vld [vmem:[#allocation4 + $0xf0] sm:$0xf0]  ;;  %v11223_v23 = vld [vmem:[#allocation4 + $0xec] sm:$0xf] }
 0x5a3   :  { %v5456_v34 = vmul.f32 %v12680_v18, %v5455_v61  ;;  %v5741_v48 = vadd.f32 %v5698_v36, %v13015_v50  ;;  %11497 = vtanh.f32 %v5400_v3  ;;  %6253 = vmatpush.bf16.msrb.mxu0 %v9912_v42  ;;  %v9852_v42 = vor.u32 %v11131_v30, %v9849_v43 }
 0x5a4   :  { %6280 = vmatpush.bf16.msrb.mxu2 %v9900_v10  ;;  %v5778_v45 = vand.u32 2147483647, %v12682_v0  ;;  %v10215_v52 = vor.u32 %v11222_v29, %v10212_v41  ;;  %v11213_v29 = vld [vmem:[#allocation4 + $0x94] sm:$0xf0] }
 0x5a5   :  { %v5457_v47 = vadd.f32 %v12680_v18, %v5456_v34  ;;  %v9834_v21 = vmul.f32 -1.442695, %v5741_v48  ;;  %v9868_v48 = vor.u32 %v11135_v6, %v9865_v51 }
 0x5a6   :  { %v11492_v56 = vpop.eup %11491  ;;  %vm5779_vm6 = vcmp.eq.f32.partialorder %v5778_v45, 8.507059e+37  ;;  %v10218_v45 = vld [vmem:[#allocation4 + $0xe8] sm:$0xf] }
 0x5a7   :  { %v11494_v17 = vpop.eup %11493  ;;  %v5461_v57 = vsel %vm5460_vm10, %v12680_v18, %v5457_v47  ;;  %v12713_v11 = vadd.f32 1.0, %v11492_v56  ;;  %11499 = vpow2.f32 %v9834_v21  ;;  %6254 = vmatpush.bf16.msrb.mxu0 %v9896_v54  ;;  %v9848_v21 = vor.u32 %v11133_v33, %v9847_v60  ;;  %v11214_v60 = vld [vmem:[#allocation4 + $0xa4] sm:$0xf]  ;;  %v10188_v33 = vld [vmem:[#allocation4 + $0xb8] sm:$0xf0] }
 0x5a8   :  { %v12715_v55 = vpop.eup %11495  ;;  %v5466_v14 = vsel %vm5463_vm11, %v5465_v24, %v5461_v57  ;;  %v12721_v32 = vadd.f32 1.0, %v11494_v17  ;;  %6281 = vmatpush.bf16.msrb.mxu2 %v9884_v26  ;;  %v13018_v17 = vld [vmem:[#allocation12_spill] sm:$0xff] }
 0x5a9   :  { %11501 = vrcp.f32 %v12713_v11  ;;  %v5724_v1 = vpop.f32.mrf.mxu2  ;;  %v5770_v49 = vmul.f32 %v12715_v55, %v12682_v0  ;;  %v5488_v18 = vmul.f32 %v5466_v14, %v12578_v44  ;;  %v11498_v63 = vpop.eup %11497  ;;  %v5484_v20 = vand.u32 2147483648, %v12713_v11 }
 0x5aa   :  { %v5700_v40 = vpop.f32.mrf.mxu0  ;;  %v5489_v62 = vmul.f32 %v11498_v63, %v5447_v13  ;;  %11503 = vrcp.f32 %v12721_v32  ;;  %v5482_v47 = vand.u32 2147483647, %v12713_v11  ;;  %vm5478_vm14 = vweird.f32 %v12713_v11 }
 0x5ab   :  { %v5771_v3 = vsub.f32 1.0, %v5770_v49  ;;  %6255 = vmatpush.bf16.msrb.mxu0 %v9880_v9  ;;  %vm5775_vm15 = vweird.f32 %v12715_v55  ;;  %v5743_v8 = vadd.f32 %v5724_v1, %v13018_v17  ;;  %v5485_v46 = vor.u32 1.1754944e-38, %v5484_v20  ;;  %v11211_v17 = vld [vmem:[#allocation4 + $0x8c] sm:$0xf] }
 0x5ac   :  { %v12723_v31 = vadd.f32 %v5489_v62, %v5488_v18  ;;  %6282 = vmatpush.bf16.msrb.mxu2 %v9868_v48  ;;  %vm5483_vm1 = vcmp.eq.f32.partialorder %v5482_v47, 8.507059e+37  ;;  %v5780_v40 = vand.u32 2147483648, %v12682_v0  ;;  %vm12747_vm3 = vmor %vm5774_vm2, %vm5775_vm15  ;;  %v11218_v62 = vld [vmem:[#allocation4 + $0xc4] sm:$0xf]  ;;  %v11219_v0 = vld [vmem:[#allocation4 + $0xcc] sm:$0xf]  ;;  %vm5794_vm10 = vweird.f32 %v12721_v32 }
 0x5ad   :  { %v11500_v15 = vpop.eup %11499  ;;  %v5772_v12 = vmul.f32 %v12715_v55, %v5771_v3  ;;  %v11215_v48 = vld [vmem:[#allocation4 + $0xac] sm:$0xf] }
 0x5ae   :  { %v12725_v44 = vadd.f32 1.0, %v11500_v15  ;;  %v10196_v15 = vld [vmem:[#allocation4 + $0xd0] sm:$0xf0] }
 0x5af   :  { %v11502_v61 = vpop.eup %11501  ;;  %6256 = vmatpush.bf16.msrb.mxu0 %v9864_v38  ;;  %v5773_v57 = vadd.f32 %v12715_v55, %v5772_v12  ;;  %v10199_v38 = vor.u32 %v11218_v62, %v10196_v15  ;;  %v11203_v62 = vld [vmem:[#allocation4 + $0x4c] sm:$0xf]  ;;  %v10140_v15 = vld [vmem:[#allocation4 + $0x58] sm:$0xf0] }
 0x5b0   :  { %v5474_v36 = vmul.f32 %v11502_v61, %v12713_v11  ;;  %11505 = vrcp.f32 %v12725_v44  ;;  %vm5479_vm13 = vweird.f32 %v11502_v61  ;;  %v12734_v56 = vpop.eup %11503  ;;  %v10220_v11 = vld [vmem:[#allocation4 + $0xf8] sm:$0xf0]  ;;  %6283 = vmatpush.bf16.msrb.mxu2 %v9852_v42  ;;  %v5761_v63 = vand.u32 2147483648, %v12725_v44 }
 0x5b1   :  { %v5726_v34 = vpop.f32.mrf.mxu2  ;;  %11507 = vtanh.f32 %v12723_v31  ;;  %vm5480_vm0 = vmor %vm5478_vm14, %vm5479_vm13  ;;  %v5790_v1 = vmul.f32 %v12734_v56, %v12721_v32  ;;  %v5777_v10 = vsel %vm12747_vm3, %v12715_v55, %v5773_v57  ;;  %v10223_v22 = vor.u32 %v11223_v23, %v10220_v11  ;;  %v10148_v23 = vld [vmem:[#allocation4 + $0x70] sm:$0xf0]  ;;  %v11207_v11 = vld [vmem:[#allocation4 + $0x6c] sm:$0xf] }
 0x5b2   :  { %v5475_v50 = vsub.f32 1.0, %v5474_v36  ;;  %11509 = vtanh.f32 %v5743_v8  ;;  %v5759_v26 = vand.u32 2147483647, %v12725_v44  ;;  %vm5755_vm5 = vweird.f32 %v12725_v44  ;;  %v10172_v8 = vld [vmem:[#allocation4 + $0x98] sm:$0xf0] }
 0x5b3   :  { %6257 = vmatpush.bf16.msrb.mxu0 %v9848_v21  ;;  %v5791_v3 = vsub.f32 1.0, %v5790_v1  ;;  %v5762_v51 = vor.u32 1.1754944e-38, %v5761_v63  ;;  %v10207_v34 = vor.u32 %v11219_v0, %v10204_v19  ;;  %v10191_v21 = vor.u32 %v11215_v48, %v10188_v33  ;;  %v10210_v1 = vld [vmem:[#allocation4 + $0xe0] sm:$0xf]  ;;  %v11220_v19 = vld [vmem:[#allocation4 + $0xcc] sm:$0xf0] }
 0x5b4   :  { %v5476_v2 = vmul.f32 %v11502_v61, %v5475_v50  ;;  %v10180_v50 = vld [vmem:[#allocation4 + $0xb0] sm:$0xf0]  ;;  %vm5760_vm8 = vcmp.eq.f32.partialorder %v5759_v26, 8.507059e+37  ;;  %vm5795_vm9 = vweird.f32 %v12734_v56  ;;  %v10194_v0 = vld [vmem:[#allocation4 + $0xc0] sm:$0xf] }
 0x5b5   :  { %v5792_v20 = vmul.f32 %v12734_v56, %v5791_v3  ;;  %v10183_v47 = vor.u32 %v11214_v60, %v10180_v50  ;;  %vm12778_vm11 = vmor %vm5794_vm10, %vm5795_vm9  ;;  %v10202_v55 = vld [vmem:[#allocation4 + $0xc8] sm:$0xf]  ;;  %v10124_v60 = vld [vmem:[#allocation4 + $0x38] sm:$0xf0] }
 0x5b6   :  { %v5477_v24 = vadd.f32 %v11502_v61, %v5476_v2  ;;  %v11506_v5 = vpop.eup %11505  ;;  %v11216_v48 = vld [vmem:[#allocation4 + $0xac] sm:$0xf0] }
 0x5b7   :  { %v5751_v14 = vmul.f32 %v11506_v5, %v12725_v44  ;;  %v11508_v13 = vpop.eup %11507  ;;  %vm5756_vm4 = vweird.f32 %v11506_v5  ;;  %v5793_v57 = vadd.f32 %v12734_v56, %v5792_v20  ;;  %v10186_v20 = vld [vmem:[#allocation4 + $0xa8] sm:$0xf] }
 0x5b8   :  { %v5481_v35 = vsel %vm5480_vm0, %v11502_v61, %v5477_v24  ;;  %v5781_v61 = vor.u32 1.1754944e-38, %v5780_v40  ;;  %vm12762_vm7 = vmor %vm5755_vm5, %vm5756_vm4  ;;  %v11510_v12 = vpop.eup %11509  ;;  %v11210_v24 = vld [vmem:[#allocation4 + $0x84] sm:$0xf] }
 0x5b9   :  { %v5486_v54 = vsel %vm5483_vm1, %v5485_v46, %v5481_v35  ;;  %v5752_v18 = vsub.f32 1.0, %v5751_v14  ;;  %v5798_v46 = vand.u32 2147483647, %v12721_v32  ;;  %v10175_v14 = vor.u32 %v11211_v17, %v10172_v8  ;;  %v11206_v35 = vld [vmem:[#allocation4 + $0x64] sm:$0xf] }
 0x5ba   :  { %v5492_v53 = vmul.f32 %v11508_v13, %v5486_v54  ;;  %v5782_v36 = vsel %vm5779_vm6, %v5781_v61, %v5777_v10  ;;  %v10156_v13 = vld [vmem:[#allocation4 + $0x78] sm:$0xf0]  ;;  %v5797_v40 = vsel %vm12778_vm11, %v12734_v56, %v5793_v57  ;;  %v11224_v54 = vld [vmem:[#allocation4 + $0xec] sm:$0xf0]  ;;  %v10151_v49 = vor.u32 %v11206_v35, %v10148_v23  ;;  %v10162_v57 = vld [vmem:[#allocation4 + $0x80] sm:$0xf] }
 0x5bb   :  { %v5753_v9 = vmul.f32 %v11506_v5, %v5752_v18  ;;  %v5804_v43 = vmul.f32 %v5782_v36, %v12627_v58  ;;  %v5800_v58 = vand.u32 2147483648, %v12721_v32  ;;  %vm5799_vm12 = vcmp.eq.f32.partialorder %v5798_v46, 8.507059e+37  ;;  %v11198_v36 = vld [vmem:[#allocation4 + $0x24] sm:$0xf]  ;;  %v11212_v46 = vld [vmem:[#allocation4 + $0x8c] sm:$0xf0] }
 0x5bc   :  { %v12757_v27 = vpack.c.bf16 %v5492_v53, %v5492_v53  ;;  %v10159_v18 = vor.u32 %v11207_v11, %v10156_v13  ;;  %v11225_v53 = vld [vmem:[#allocation4 + $0xf4] sm:$0xf0]  ;;  %v10211_v56 = vor.u32 %v11224_v54, %v10210_v1  ;;  %v10146_v35 = vld [vmem:[#allocation4 + $0x60] sm:$0xf]  ;;  %v11208_v23 = vld [vmem:[#allocation4 + $0x6c] sm:$0xf0] }
 0x5bd   :  { %v5754_v6 = vadd.f32 %v11506_v5, %v5753_v9  ;;  %v5801_v32 = vor.u32 1.1754944e-38, %v5800_v58  ;;  %v10219_v26 = vor.u32 %v11225_v53, %v10218_v45  ;;  %v10170_v58 = vld [vmem:[#allocation4 + $0x88] sm:$0xf]  ;;  %v11209_v13 = vld [vmem:[#allocation4 + $0x74] sm:$0xf0] }
 0x5be   :  { %6219 = vmatmul.bf16.vlgmr.msrb.gmra.mxu1 %v12757_v27  ;;  %6245 = vmatmul.bf16.vlgmr.msra.gmra.mxu3 %v12757_v27  ;;  %v10154_v11 = vld [vmem:[#allocation4 + $0x68] sm:$0xf]  ;;  %v10130_v1 = vld [vmem:[#allocation4 + $0x40] sm:$0xf]  ;;  %v11204_v54 = vld [vmem:[#allocation4 + $0x4c] sm:$0xf0] }
 0x5bf   :  { %6575 = vmatpush.bf16.msrb.mxu1 %v10215_v52  ;;  %6601 = vmatpush.bf16.msra.mxu3 %v10223_v22  ;;  %v5758_v44 = vsel %vm12762_vm7, %v11506_v5, %v5754_v6  ;;  %v10164_v5 = vld [vmem:[#allocation4 + $0x90] sm:$0xf0]  ;;  %v11202_v52 = vld [vmem:[#allocation4 + $0x44] sm:$0xf]  ;;  %v5802_v10 = vsel %vm5799_vm12, %v5801_v32, %v5797_v40  ;;  %v10143_v6 = vor.u32 %v11203_v62, %v10140_v15 }
 0x5c0   :  { %v5763_v30 = vsel %vm5760_vm8, %v5762_v51, %v5758_v44  ;;  %v10167_v41 = vor.u32 %v11210_v24, %v10164_v5  ;;  %v10132_v22 = vld [vmem:[#allocation4 + $0x50] sm:$0xf0]  ;;  %v11221_v51 = vld [vmem:[#allocation4 + $0xd4] sm:$0xf0]  ;;  %v10178_v44 = vld [vmem:[#allocation4 + $0xa0] sm:$0xf]  ;;  %v10147_v40 = vor.u32 %v11208_v23, %v10146_v35  ;;  %v10155_v32 = vor.u32 %v11209_v13, %v10154_v11 }
 0x5c1   :  { %v5805_v2 = vmul.f32 %v11510_v12, %v5763_v30  ;;  %v10135_v3 = vor.u32 %v11202_v52, %v10132_v22  ;;  %v10203_v50 = vor.u32 %v11221_v51, %v10202_v55  ;;  %v11217_v30 = vld [vmem:[#allocation4 + $0xb4] sm:$0xf0]  ;;  %v10179_v24 = vor.u32 %v11216_v48, %v10178_v44  ;;  %v10114_v52 = vld [vmem:[#allocation4 + $0x20] sm:$0xf]  ;;  %v11288_v51 = vld [vmem:[#allocation6 + $0x1ec] sm:$0xf0] }
 0x5c2   :  { %v10187_v5 = vor.u32 %v11217_v30, %v10186_v20  ;;  %v10131_v45 = vor.u32 %v11204_v54, %v10130_v1  ;;  %v11201_v22 = vld [vmem:[#allocation4 + $0x34] sm:$0xf0]  ;;  %v10469_v55 = vld [vmem:[#allocation6 + $0x1e0] sm:$0xf]  ;;  %v11282_v44 = vld [vmem:[#allocation6 + $0x1c4] sm:$0xf] }
 0x5c3   :  { %6576 = vmatpush.bf16.msrb.mxu1 %v10199_v38  ;;  %6602 = vmatpush.bf16.msra.mxu3 %v10207_v34  ;;  %v12771_v42 = vadd.f32 %v5805_v2, %v5804_v43  ;;  %v10116_v38 = vld [vmem:[#allocation4 + $0x30] sm:$0xf0]  ;;  %v11199_v34 = vld [vmem:[#allocation4 + $0x2c] sm:$0xf]  ;;  %v11194_v43 = vld [vmem:[#allocation4 + $0x4] sm:$0xf] }
 0x5c4   :  { %v10119_v33 = vor.u32 %v11198_v36, %v10116_v38  ;;  %v10127_v12 = vor.u32 %v11199_v34, %v10124_v60  ;;  %v10100_v2 = vld [vmem:[#allocation4 + $0x10] sm:$0xf0]  ;;  %v11286_v36 = vld [vmem:[#allocation6 + $0x1e4] sm:$0xf]  ;;  %v10470_v38 = vor.u32 %v11288_v51, %v10469_v55  ;;  %v11272_v35 = vld [vmem:[#allocation6 + $0x16c] sm:$0xf0] }
 0x5c5   :  { %11511 = vtanh.f32 %v12771_v42  ;;  %v10103_v17 = vor.u32 %v11194_v43, %v10100_v2  ;;  %v10471_v34 = vld [vmem:[#allocation6 + $0x1f0] sm:$0xf0]  ;;  %v11280_v43 = vld [vmem:[#allocation6 + $0x1ac] sm:$0xf0]  ;;  %v11278_v2 = vld [vmem:[#allocation6 + $0x1a4] sm:$0xf] }
 0x5c6   :  { %v10474_v60 = vor.u32 %v11286_v36, %v10471_v34  ;;  %v11270_v23 = vld [vmem:[#allocation6 + $0x164] sm:$0xf]  ;;  %v10407_v13 = vld [vmem:[#allocation6 + $0x170] sm:$0xf0]  ;;  %v10341_v54 = vld [vmem:[#allocation6 + $0xe0] sm:$0xf] }
 0x5c7   :  { %6577 = vmatpush.bf16.msrb.mxu1 %v10183_v47  ;;  %6603 = vmatpush.bf16.msra.mxu3 %v10191_v21  ;;  %v11195_v47 = vld [vmem:[#allocation4 + $0xc] sm:$0xf]  ;;  %v10108_v21 = vld [vmem:[#allocation4 + $0x18] sm:$0xf0]  ;;  %v11252_v55 = vld [vmem:[#allocation6 + $0xcc] sm:$0xf0] }
 0x5c8   :  { %v10111_v8 = vor.u32 %v11195_v47, %v10108_v21  ;;  %v10439_v21 = vld [vmem:[#allocation6 + $0x1b0] sm:$0xf0] }
 0x5c9   :  { %v10327_v34 = vld [vmem:[#allocation6 + $0xd0] sm:$0xf0] }
 0x5cb   :  { %6578 = vmatpush.bf16.msrb.mxu1 %v10167_v41  ;;  %6604 = vmatpush.bf16.msra.mxu3 %v10175_v14  ;;  %v11512_v63 = vpop.eup %11511  ;;  %v10163_v41 = vor.u32 %v11212_v46, %v10162_v57  ;;  %v10171_v14 = vor.u32 %v11213_v29, %v10170_v58  ;;  %v10423_v58 = vld [vmem:[#allocation6 + $0x190] sm:$0xf0] }
 0x5cc   :  { %v5808_v9 = vmul.f32 %v11512_v63, %v5802_v10  ;;  %v11200_v63 = vld [vmem:[#allocation4 + $0x2c] sm:$0xf0]  ;;  %v10122_v10 = vld [vmem:[#allocation4 + $0x28] sm:$0xf] }
 0x5cd   :  { %v10115_v62 = vor.u32 %v11200_v63, %v10114_v52  ;;  %v10123_v15 = vor.u32 %v11201_v22, %v10122_v10  ;;  %v10389_v52 = vld [vmem:[#allocation6 + $0x140] sm:$0xf]  ;;  %v11268_v63 = vld [vmem:[#allocation6 + $0x14c] sm:$0xf0] }
 0x5ce   :  { %6271 = vmatmul.bf16.vlgmr.msra.gmra.mxu1 %v12757_v27  ;;  %6297 = vmatmul.bf16.vlgmr.msrb.gmra.mxu3 %v12757_v27  ;;  %v12787_v61 = vpack.c.bf16 %v5808_v9, %v5808_v9  ;;  %v10195_v27 = vor.u32 %v11220_v19, %v10194_v0  ;;  %v10098_v9 = vld [vmem:[#allocation4] sm:$0xf]  ;;  %v11197_v0 = vld [vmem:[#allocation4 + $0x14] sm:$0xf0] }
 0x5cf   :  { %6579 = vmatpush.bf16.msrb.mxu1 %v10151_v49  ;;  %6605 = vmatpush.bf16.msra.mxu3 %v10159_v18  ;;  %v10138_v49 = vld [vmem:[#allocation4 + $0x48] sm:$0xf]  ;;  %v11205_v18 = vld [vmem:[#allocation4 + $0x54] sm:$0xf0] }
 0x5d0   :  { %6206 = vmatmul.bf16.vlgmr.msra.gmra.mxu0 %v12787_v61  ;;  %6232 = vmatmul.bf16.vlgmr.msra.gmra.mxu2 %v12787_v61  ;;  %v10139_v53 = vor.u32 %v11205_v18, %v10138_v49  ;;  %v11256_v49 = vld [vmem:[#allocation6 + $0xec] sm:$0xf0]  ;;  %v11254_v18 = vld [vmem:[#allocation6 + $0xe4] sm:$0xf] }
 0x5d1   :  { %6562 = vmatpush.bf16.msra.mxu0 %v10211_v56  ;;  %6588 = vmatpush.bf16.msra.mxu2 %v10219_v26  ;;  %v11196_v56 = vld [vmem:[#allocation4 + $0xc] sm:$0xf0]  ;;  %v10106_v26 = vld [vmem:[#allocation4 + $0x8] sm:$0xf] }
 0x5d2   :  { %v10099_v19 = vor.u32 %v11196_v56, %v10098_v9  ;;  %v11266_v9 = vld [vmem:[#allocation6 + $0x144] sm:$0xf]  ;;  %v10391_v56 = vld [vmem:[#allocation6 + $0x150] sm:$0xf0] }
 0x5d3   :  { %6580 = vmatpush.bf16.msrb.mxu1 %v10135_v3  ;;  %6606 = vmatpush.bf16.msra.mxu3 %v10143_v6  ;;  %v10107_v3 = vor.u32 %v11197_v0, %v10106_v26  ;;  %v10394_v26 = vor.u32 %v11266_v9, %v10391_v56  ;;  %v10461_v56 = vld [vmem:[#allocation6 + $0x1c8] sm:$0xf] }
 0x5d5   :  { %6563 = vmatpush.bf16.msra.mxu0 %v10195_v27  ;;  %6589 = vmatpush.bf16.msra.mxu2 %v10203_v50  ;;  %v10453_v27 = vld [vmem:[#allocation6 + $0x1c0] sm:$0xf]  ;;  %v11284_v50 = vld [vmem:[#allocation6 + $0x1cc] sm:$0xf0] }
 0x5d7   :  { %6581 = vmatpush.bf16.msrb.mxu1 %v10119_v33  ;;  %6607 = vmatpush.bf16.msra.mxu3 %v10127_v12  ;;  %v10454_v33 = vor.u32 %v11284_v50, %v10453_v27  ;;  %v10455_v12 = vld [vmem:[#allocation6 + $0x1d0] sm:$0xf0]  ;;  %v11264_v50 = vld [vmem:[#allocation6 + $0x12c] sm:$0xf0] }
 0x5d8   :  { %v10458_v20 = vor.u32 %v11282_v44, %v10455_v12  ;;  %v11262_v44 = vld [vmem:[#allocation6 + $0x124] sm:$0xf] }
 0x5d9   :  { %6564 = vmatpush.bf16.msra.mxu0 %v10179_v24  ;;  %6590 = vmatpush.bf16.msra.mxu2 %v10187_v5  ;;  %v10442_v24 = vor.u32 %v11278_v2, %v10439_v21  ;;  %v10421_v5 = vld [vmem:[#allocation6 + $0x180] sm:$0xf]  ;;  %v11248_v2 = vld [vmem:[#allocation6 + $0xac] sm:$0xf0] }
 0x5db   :  { %6582 = vmatpush.bf16.msrb.mxu1 %v10103_v17  ;;  %6608 = vmatpush.bf16.msra.mxu3 %v10111_v8  ;;  %v11276_v17 = vld [vmem:[#allocation6 + $0x18c] sm:$0xf0]  ;;  %v11274_v8 = vld [vmem:[#allocation6 + $0x184] sm:$0xf] }
 0x5dc   :  { %v10422_v46 = vor.u32 %v11276_v17, %v10421_v5  ;;  %v10426_v29 = vor.u32 %v11274_v8, %v10423_v58  ;;  %v10357_v5 = vld [vmem:[#allocation6 + $0x100] sm:$0xf]  ;;  %v11260_v17 = vld [vmem:[#allocation6 + $0x10c] sm:$0xf0] }
 0x5dd   :  { %6565 = vmatpush.bf16.msra.mxu0 %v10163_v41  ;;  %6591 = vmatpush.bf16.msra.mxu2 %v10171_v14  ;;  %v10405_v14 = vld [vmem:[#allocation6 + $0x160] sm:$0xf]  ;;  %v10358_v58 = vor.u32 %v11260_v17, %v10357_v5 }
 0x5de   :  { %6583 = vmatmul.bf16.vlgmr.msrb.gmra.mxu1 %v12787_v61  ;;  %6609 = vmatmul.bf16.vlgmr.msra.gmra.mxu3 %v12787_v61  ;;  %v10406_v11 = vor.u32 %v11272_v35, %v10405_v14  ;;  %v10359_v14 = vld [vmem:[#allocation6 + $0x110] sm:$0xf0]  ;;  %v13025_v35 = vld [vmem:[#allocation15_spill] sm:$0xff] }
 0x5df   :  { %7084 = vmatpush.bf16.msra.mxu1 %v10470_v38  ;;  %7110 = vmatpush.bf16.msrb.mxu3 %v10474_v60  ;;  %v11250_v38 = vld [vmem:[#allocation6 + $0xc4] sm:$0xf] }
 0x5e0   :  { %6258 = vmatmul.bf16.vlgmr.msrb.gmra.mxu0 %v12787_v61  ;;  %6284 = vmatmul.bf16.vlgmr.msrb.gmra.mxu2 %v12787_v61  ;;  %v10330_v27 = vor.u32 %v11250_v38, %v10327_v34  ;;  %v10277_v38 = vld [vmem:[#allocation6 + $0x60] sm:$0xf]  ;;  %v11240_v34 = vld [vmem:[#allocation6 + $0x6c] sm:$0xf0] }
 0x5e1   :  { %6566 = vmatpush.bf16.msra.mxu0 %v10147_v40  ;;  %6592 = vmatpush.bf16.msra.mxu2 %v10155_v32  ;;  %v10410_v32 = vor.u32 %v11270_v23, %v10407_v13  ;;  %v185_v23 = vadd.f32 %v13025_v35, %v11802_v16  ;;  %v11289_v13 = vld [vmem:[#allocation6 + $0x1f4] sm:$0xf0] }
 0x5e3   :  { %7085 = vmatpush.bf16.msra.mxu1 %v10454_v33  ;;  %7111 = vmatpush.bf16.msrb.mxu3 %v10458_v20  ;;  %v10375_v33 = vld [vmem:[#allocation6 + $0x130] sm:$0xf0] }
 0x5e5   :  { %6567 = vmatpush.bf16.msra.mxu0 %v10131_v45  ;;  %6593 = vmatpush.bf16.msra.mxu2 %v10139_v53  ;;  %v10342_v45 = vor.u32 %v11256_v49, %v10341_v54  ;;  %v10343_v53 = vld [vmem:[#allocation6 + $0xf0] sm:$0xf0]  ;;  %v10479_v49 = vld [vmem:[#allocation6 + $0x1f8] sm:$0xf0] }
 0x5e7   :  { %7112 = vmatpush.bf16.msrb.mxu3 %v10442_v24  ;;  %v10311_v24 = vld [vmem:[#allocation6 + $0xb0] sm:$0xf0] }
 0x5e9   :  { %6568 = vmatpush.bf16.msra.mxu0 %v10115_v62  ;;  %6594 = vmatpush.bf16.msra.mxu2 %v10123_v15  ;;  %v10346_v62 = vor.u32 %v11254_v18, %v10343_v53  ;;  %v10390_v15 = vor.u32 %v11268_v63, %v10389_v52  ;;  %v10293_v18 = vld [vmem:[#allocation6 + $0x80] sm:$0xf] }
 0x5eb   :  { %7113 = vmatpush.bf16.msrb.mxu3 %v10426_v29  ;;  %v11258_v29 = vld [vmem:[#allocation6 + $0x104] sm:$0xf] }
 0x5ed   :  { %6569 = vmatpush.bf16.msra.mxu0 %v10099_v19  ;;  %6595 = vmatpush.bf16.msra.mxu2 %v10107_v3  ;;  %v10325_v3 = vld [vmem:[#allocation6 + $0xc0] sm:$0xf] }
 0x5ee   :  { %v10326_v36 = vor.u32 %v11252_v55, %v10325_v3  ;;  %v10463_v55 = vld [vmem:[#allocation6 + $0x1d8] sm:$0xf0] }
 0x5ef   :  { %7114 = vmatpush.bf16.msrb.mxu3 %v10410_v32 }
 0x5f0   :  { %6570 = vmatmul.bf16.vlgmr.msra.gmra.mxu0 %v12787_v61  ;;  %6596 = vmatmul.bf16.vlgmr.msra.gmra.mxu2 %v12787_v61  ;;  %v10437_v61 = vld [vmem:[#allocation6 + $0x1a0] sm:$0xf] }
 0x5f1   :  { %v10438_v47 = vor.u32 %v11280_v43, %v10437_v61  ;;  %7071 = vmatpush.bf16.msrb.mxu0 %v10342_v45  ;;  %7097 = vmatpush.bf16.msrb.mxu2 %v10346_v62  ;;  %v10309_v43 = vld [vmem:[#allocation6 + $0xa0] sm:$0xf]  ;;  %v11244_v45 = vld [vmem:[#allocation6 + $0x8c] sm:$0xf0]  ;;  %v11242_v62 = vld [vmem:[#allocation6 + $0x84] sm:$0xf] }
 0x5f2   :  { %v10310_v21 = vor.u32 %v11248_v2, %v10309_v43 }
 0x5f3   :  { %7086 = vmatpush.bf16.msra.mxu1 %v10438_v47  ;;  %7115 = vmatpush.bf16.msrb.mxu3 %v10394_v26  ;;  %v11246_v47 = vld [vmem:[#allocation6 + $0xa4] sm:$0xf]  ;;  %v11285_v26 = vld [vmem:[#allocation6 + $0x1d4] sm:$0xf0] }
 0x5f5   :  { %7072 = vmatpush.bf16.msrb.mxu0 %v10326_v36  ;;  %7098 = vmatpush.bf16.msrb.mxu2 %v10330_v27  ;;  %v10279_v27 = vld [vmem:[#allocation6 + $0x70] sm:$0xf0] }
 0x5f7   :  { %7087 = vmatpush.bf16.msra.mxu1 %v10422_v46  ;;  %v10314_v46 = vor.u32 %v11246_v47, %v10311_v24  ;;  %v11279_v47 = vld [vmem:[#allocation6 + $0x1ac] sm:$0xf] }
 0x5f9   :  { %7073 = vmatpush.bf16.msrb.mxu0 %v10310_v21  ;;  %7099 = vmatpush.bf16.msrb.mxu2 %v10314_v46  ;;  %v10447_v21 = vld [vmem:[#allocation6 + $0x1b8] sm:$0xf0]  ;;  %v11234_v46 = vld [vmem:[#allocation6 + $0x44] sm:$0xf] }
 0x5fa   :  { %v10450_v17 = vor.u32 %v11279_v47, %v10447_v21 }
 0x5fb   :  { %7088 = vmatpush.bf16.msra.mxu1 %v10406_v11  ;;  %v10477_v11 = vld [vmem:[#allocation6 + $0x1e8] sm:$0xf] }
 0x5fc   :  { %v10478_v54 = vor.u32 %v11289_v13, %v10477_v11 }
 0x5ff   :  { %7089 = vmatpush.bf16.msra.mxu1 %v10390_v15  ;;  %v10295_v15 = vld [vmem:[#allocation6 + $0x90] sm:$0xf0] }
 0x600   :  { %v10298_v9 = vor.u32 %v11242_v62, %v10295_v15 }
 0x602   :  { %7100 = vmatpush.bf16.msrb.mxu2 %v10298_v9  ;;  %v11230_v9 = vld [vmem:[#allocation6 + $0x24] sm:$0xf] }
 0x63b   :  { %v6220_v6 = vpop.f32.mrf.mxu1 }
 0x641   :  { %v12797_v48 = vpop.f32.mrf.mxu3 }
 0x643   :  { %v6222_v30 = vpop.f32.mrf.mxu1 }
 0x644   :  { %v10378_v30 = vor.u32 %v11262_v44, %v10375_v33  ;;  %v13026_v44 = vld [vmem:[#allocation14_spill] sm:$0xff] }
 0x645   :  { %v243_v33 = vadd.f32 %v13026_v44, %v11789_v39  ;;  %v10229_v44 = vld [vmem:[#allocation6] sm:$0xf] }
 0x646   :  { %7116 = vmatpush.bf16.msrb.mxu3 %v10378_v30  ;;  %v11281_v30 = vld [vmem:[#allocation6 + $0x1b4] sm:$0xf0] }
 0x649   :  { %v6248_v57 = vpop.f32.mrf.mxu3 }
 0x64b   :  { %v12799_v41 = vpop.f32.mrf.mxu1 }
 0x64d   :  { %v6207_v40 = vpop.f32.mrf.mxu0 }
 0x64e   :  { %v6208_v1 = vadd.f32 %v6207_v40, %v11906_v25  ;;  %v11287_v40 = vld [vmem:[#allocation6 + $0x1ec] sm:$0xf] }
 0x64f   :  { %v10482_v16 = vor.u32 %v11287_v40, %v10479_v49  ;;  %v10431_v49 = vld [vmem:[#allocation6 + $0x198] sm:$0xf0] }
 0x650   :  { %v6221_v10 = vadd.f32 %v6220_v6, %v6208_v1  ;;  %v10373_v6 = vld [vmem:[#allocation6 + $0x120] sm:$0xf] }
 0x651   :  { %v12802_v22 = vpop.f32.mrf.mxu3  ;;  %v10374_v20 = vor.u32 %v11264_v50, %v10373_v6  ;;  %v10278_v6 = vor.u32 %v11240_v34, %v10277_v38  ;;  %v11271_v38 = vld [vmem:[#allocation6 + $0x16c] sm:$0xf] }
 0x652   :  { %v10093_v0 = vmul.f32 -1.442695, %v6221_v10  ;;  %v10294_v10 = vor.u32 %v11244_v45, %v10293_v18  ;;  %v13027_v34 = vld [vmem:[#allocation11_spill] sm:$0xff] }
 0x653   :  { %v6274_v19 = vpop.f32.mrf.mxu1  ;;  %v6233_v51 = vpop.f32.mrf.mxu2  ;;  %7090 = vmatpush.bf16.msra.mxu1 %v10374_v20  ;;  %v10445_v20 = vld [vmem:[#allocation6 + $0x1a8] sm:$0xf] }
 0x654   :  { %11513 = vpow2.f32 %v10093_v0  ;;  %v6234_v60 = vadd.f32 %v6233_v51, %v11910_v28  ;;  %v11283_v0 = vld [vmem:[#allocation6 + $0x1cc] sm:$0xf]  ;;  %7074 = vmatpush.bf16.msrb.mxu0 %v10294_v10  ;;  %v10462_v51 = vor.u32 %v11285_v26, %v10461_v56  ;;  %v10446_v2 = vor.u32 %v11281_v30, %v10445_v20  ;;  %v10247_v56 = vld [vmem:[#allocation6 + $0x30] sm:$0xf0] }
 0x655   :  { %v6209_v12 = vpop.f32.mrf.mxu0  ;;  %v10466_v36 = vor.u32 %v11283_v0, %v10463_v55  ;;  %v10413_v0 = vld [vmem:[#allocation6 + $0x168] sm:$0xf] }
 0x656   :  { %v6247_v61 = vadd.f32 %v12797_v48, %v6234_v60  ;;  %v10362_v48 = vor.u32 %v11258_v29, %v10359_v14  ;;  %v11238_v60 = vld [vmem:[#allocation6 + $0x64] sm:$0xf]  ;;  %v10263_v29 = vld [vmem:[#allocation6 + $0x50] sm:$0xf0] }
 0x657   :  { %7091 = vmatpush.bf16.msra.mxu1 %v10358_v58  ;;  %v10282_v12 = vor.u32 %v11238_v60, %v10279_v27 }
 0x658   :  { %v10094_v8 = vmul.f32 -1.442695, %v6247_v61  ;;  %7117 = vmatpush.bf16.msrb.mxu3 %v10362_v48  ;;  %7075 = vmatpush.bf16.msrb.mxu0 %v10278_v6  ;;  %v11277_v48 = vld [vmem:[#allocation6 + $0x194] sm:$0xf0]  ;;  %v156_v6 = vadd.f32 %v13027_v34, %v11761_v59 }
 0x659   :  { %v6300_v57 = vpop.f32.mrf.mxu3  ;;  %7101 = vmatpush.bf16.msrb.mxu2 %v10282_v12 }
 0x65a   :  { %v11514_v32 = vpop.eup %11513  ;;  %11515 = vpow2.f32 %v10094_v8  ;;  %v10261_v8 = vld [vmem:[#allocation6 + $0x40] sm:$0xf]  ;;  %v11236_v57 = vld [vmem:[#allocation6 + $0x4c] sm:$0xf0] }
 0x65b   :  { %v6584_v1 = vpop.f32.mrf.mxu1  ;;  %v12808_v53 = vadd.f32 1.0, %v11514_v32  ;;  %v6235_v63 = vpop.f32.mrf.mxu2  ;;  %7136 = vmatpush.bf16.msrb.mxu1 %v10478_v54  ;;  %v10262_v32 = vor.u32 %v11236_v57, %v10261_v8  ;;  %v11275_v54 = vld [vmem:[#allocation6 + $0x18c] sm:$0xf]  ;;  %v11257_v57 = vld [vmem:[#allocation6 + $0xf4] sm:$0xf0] }
 0x65c   :  { %v6615_v52 = vadd.f32 %v6584_v1, %v185_v23  ;;  %7162 = vmatpush.bf16.msra.mxu3 %v10482_v16  ;;  %v10429_v23 = vld [vmem:[#allocation6 + $0x188] sm:$0xf]  ;;  %v10266_v1 = vor.u32 %v11234_v46, %v10263_v29  ;;  %v10245_v63 = vld [vmem:[#allocation6 + $0x20] sm:$0xf]  ;;  %v11232_v16 = vld [vmem:[#allocation6 + $0x2c] sm:$0xf0]  ;;  %v10434_v62 = vor.u32 %v11275_v54, %v10431_v49 }
 0x65d   :  { %11517 = vrcp.f32 %v12808_v53  ;;  %v6259_v3 = vpop.f32.mrf.mxu0  ;;  %7076 = vmatpush.bf16.msrb.mxu0 %v10262_v32  ;;  %v10430_v10 = vor.u32 %v11277_v48, %v10429_v23  ;;  %v10246_v15 = vor.u32 %v11232_v16, %v10245_v63  ;;  %v6316_v12 = vand.u32 2147483647, %v12808_v53  ;;  %v11255_v46 = vld [vmem:[#allocation6 + $0xec] sm:$0xf]  ;;  %v10351_v23 = vld [vmem:[#allocation6 + $0xf8] sm:$0xf0] }
 0x65e   :  { %v10225_v19 = vmul.f32 -1.442695, %v6615_v52  ;;  %v6260_v45 = vadd.f32 %v6259_v3, %v11936_v4  ;;  %7102 = vmatpush.bf16.msrb.mxu2 %v10266_v1  ;;  %v10397_v48 = vld [vmem:[#allocation6 + $0x148] sm:$0xf]  ;;  %vm6312_vm15 = vweird.f32 %v12808_v53  ;;  %v11267_v32 = vld [vmem:[#allocation6 + $0x14c] sm:$0xf]  ;;  %v10354_v16 = vor.u32 %v11255_v46, %v10351_v23 }
 0x65f   :  { %7137 = vmatpush.bf16.msrb.mxu1 %v10462_v51  ;;  %vm12842_vm0 = vcmp.eq.f32.partialorder %v6316_v12, 8.507059e+37  ;;  %v10399_v1 = vld [vmem:[#allocation6 + $0x158] sm:$0xf0]  ;;  %v10301_v46 = vld [vmem:[#allocation6 + $0x88] sm:$0xf] }
 0x660   :  { %11519 = vpow2.f32 %v10225_v19  ;;  %v11516_v50 = vpop.eup %11515  ;;  %7163 = vmatpush.bf16.msra.mxu3 %v10466_v36  ;;  %v11273_v19 = vld [vmem:[#allocation6 + $0x174] sm:$0xf0]  ;;  %v10383_v12 = vld [vmem:[#allocation6 + $0x138] sm:$0xf0]  ;;  %v11243_v23 = vld [vmem:[#allocation6 + $0x8c] sm:$0xf] }
 0x661   :  { %v12813_v61 = vadd.f32 1.0, %v11516_v50  ;;  %v6610_v43 = vpop.f32.mrf.mxu3  ;;  %v10414_v3 = vor.u32 %v11273_v19, %v10413_v0  ;;  %v10415_v50 = vld [vmem:[#allocation6 + $0x178] sm:$0xf0]  ;;  %7077 = vmatpush.bf16.msrb.mxu0 %v10246_v15  ;;  %v11251_v19 = vld [vmem:[#allocation6 + $0xcc] sm:$0xf] }
 0x662   :  { %v6617_v24 = vadd.f32 %v6610_v43, %v243_v33  ;;  %v6273_v33 = vadd.f32 %v12799_v41, %v6260_v45  ;;  %v10418_v30 = vor.u32 %v11271_v38, %v10415_v50  ;;  %v11228_v43 = vld [vmem:[#allocation6 + $0xc] sm:$0xf0] }
 0x663   :  { %v6586_v5 = vpop.f32.mrf.mxu1  ;;  %v12815_v39 = vpop.eup %11517  ;;  %11521 = vrcp.f32 %v12813_v61  ;;  %7138 = vmatpush.bf16.msrb.mxu1 %v10446_v2  ;;  %v11226_v2 = vld [vmem:[#allocation6 + $0x4] sm:$0xf]  ;;  %v6337_v47 = vand.u32 2147483648, %v12813_v61  ;;  %v10230_v21 = vor.u32 %v11228_v43, %v10229_v44  ;;  %v6335_v41 = vand.u32 2147483647, %v12813_v61 }
 0x664   :  { %v6285_v58 = vpop.f32.mrf.mxu2  ;;  %v6308_v14 = vmul.f32 %v12815_v39, %v12808_v53  ;;  %v10226_v13 = vmul.f32 -1.442695, %v6617_v24  ;;  %7164 = vmatpush.bf16.msra.mxu3 %v10450_v17  ;;  %v10231_v24 = vld [vmem:[#allocation6 + $0x10] sm:$0xf0]  ;;  %v10349_v5 = vld [vmem:[#allocation6 + $0xe8] sm:$0xf]  ;;  %vm6313_vm14 = vweird.f32 %v12815_v39  ;;  %vm6331_vm1 = vweird.f32 %v12813_v61 }
 0x665   :  { %v6286_v35 = vadd.f32 %v6285_v58, %v11928_v7  ;;  %v6261_v40 = vpop.f32.mrf.mxu0  ;;  %v10234_v8 = vor.u32 %v11226_v2, %v10231_v24  ;;  %7078 = vmatpush.bf16.msrb.mxu0 %v10230_v21  ;;  %v6338_v49 = vor.u32 1.1754944e-38, %v6337_v47  ;;  %vm12850_vm2 = vmor %vm6312_vm15, %vm6313_vm14  ;;  %vm6336_vm4 = vcmp.eq.f32.partialorder %v6335_v41, 8.507059e+37  ;;  %v11247_v2 = vld [vmem:[#allocation6 + $0xac] sm:$0xf]  ;;  %v10365_v47 = vld [vmem:[#allocation6 + $0x108] sm:$0xf] }
 0x666   :  { %v11520_v11 = vpop.eup %11519  ;;  %v6309_v18 = vsub.f32 1.0, %v6308_v14  ;;  %11523 = vpow2.f32 %v10226_v13  ;;  %v6318_v40 = vand.u32 2147483648, %v12808_v53  ;;  %v10333_v53 = vld [vmem:[#allocation6 + $0xc8] sm:$0xf]  ;;  %v11261_v24 = vld [vmem:[#allocation6 + $0x114] sm:$0xf0] }
 0x667   :  { %v6299_v52 = vadd.f32 %v12802_v22, %v6286_v35  ;;  %v12823_v26 = vadd.f32 1.0, %v11520_v11  ;;  %7139 = vmatpush.bf16.msrb.mxu1 %v10430_v10  ;;  %v10250_v22 = vor.u32 %v11230_v9, %v10247_v56  ;;  %v10350_v35 = vor.u32 %v11257_v57, %v10349_v5  ;;  %v11269_v11 = vld [vmem:[#allocation6 + $0x154] sm:$0xf0]  ;;  %v11259_v5 = vld [vmem:[#allocation6 + $0x10c] sm:$0xf] }
 0x668   :  { %7165 = vmatpush.bf16.msra.mxu3 %v10434_v62  ;;  %v6310_v27 = vmul.f32 %v12815_v39, %v6309_v18  ;;  %v10398_v10 = vor.u32 %v11269_v11, %v10397_v48  ;;  %v11253_v62 = vld [vmem:[#allocation6 + $0xd4] sm:$0xf0]  ;;  %v10367_v41 = vld [vmem:[#allocation6 + $0x118] sm:$0xf0] }
 0x669   :  { %v12825_v55 = vpop.eup %11521  ;;  %v10095_v51 = vmul.f32 -1.442695, %v6299_v52  ;;  %v6612_v36 = vpop.f32.mrf.mxu3  ;;  %7103 = vmatpush.bf16.msrb.mxu2 %v10250_v22  ;;  %7123 = vmatpush.bf16.msra.mxu0 %v10350_v35  ;;  %v10334_v38 = vor.u32 %v11253_v62, %v10333_v53  ;;  %v10303_v48 = vld [vmem:[#allocation6 + $0x98] sm:$0xf0]  ;;  %v11239_v53 = vld [vmem:[#allocation6 + $0x6c] sm:$0xf]  ;;  %vm6647_vm6 = vweird.f32 %v12823_v26 }
 0x66a   :  { %v6327_v60 = vmul.f32 %v12825_v55, %v12813_v61  ;;  %vm6332_vm13 = vweird.f32 %v12825_v55  ;;  %v6311_v29 = vadd.f32 %v12815_v39, %v6310_v27  ;;  %v10402_v61 = vor.u32 %v11267_v32, %v10399_v1 }
 0x66b   :  { %11525 = vpow2.f32 %v10095_v51  ;;  %7140 = vmatpush.bf16.msrb.mxu1 %v10414_v3  ;;  %vm6333_vm3 = vmor %vm6331_vm1, %vm6332_vm13  ;;  %v10335_v51 = vld [vmem:[#allocation6 + $0xd8] sm:$0xf0]  ;;  %v6319_v36 = vor.u32 1.1754944e-38, %v6318_v40  ;;  %v10366_v40 = vor.u32 %v11261_v24, %v10365_v47  ;;  %v10370_v32 = vor.u32 %v11259_v5, %v10367_v41 }
 0x66c   :  { %v6287_v20 = vpop.f32.mrf.mxu2  ;;  %v6328_v59 = vsub.f32 1.0, %v6327_v60  ;;  %11527 = vrcp.f32 %v12823_v26  ;;  %7166 = vmatpush.bf16.msra.mxu3 %v10418_v30  ;;  %v11524_v54 = vpop.eup %11523  ;;  %v6315_v9 = vsel %vm12850_vm2, %v12815_v39, %v6311_v29  ;;  %v10381_v39 = vld [vmem:[#allocation6 + $0x128] sm:$0xf]  ;;  %v11249_v30 = vld [vmem:[#allocation6 + $0xb4] sm:$0xf0] }
 0x66d   :  { %v6571_v17 = vpop.f32.mrf.mxu0  ;;  %11529 = vtanh.f32 %v6273_v33  ;;  %7104 = vmatpush.bf16.msrb.mxu2 %v10234_v8  ;;  %v12865_v3 = vadd.f32 1.0, %v11524_v54  ;;  %v6320_v50 = vsel %vm12842_vm0, %v6319_v36, %v6315_v9  ;;  %7124 = vmatpush.bf16.msra.mxu0 %v10334_v38  ;;  %v10338_v33 = vor.u32 %v11251_v19, %v10335_v51  ;;  %v10317_v20 = vld [vmem:[#allocation6 + $0xa8] sm:$0xf] }
 0x66e   :  { %v6329_v58 = vmul.f32 %v12825_v55, %v6328_v59  ;;  %v6614_v14 = vadd.f32 %v6571_v17, %v156_v6  ;;  %v11265_v6 = vld [vmem:[#allocation6 + $0x134] sm:$0xf0]  ;;  %v10319_v59 = vld [vmem:[#allocation6 + $0xb8] sm:$0xf0]  ;;  %v10269_v38 = vld [vmem:[#allocation6 + $0x48] sm:$0xf] }
 0x66f   :  { %7141 = vmatpush.bf16.msrb.mxu1 %v10398_v10  ;;  %v10382_v21 = vor.u32 %v11265_v6, %v10381_v39  ;;  %v10322_v35 = vor.u32 %v11247_v2, %v10319_v59  ;;  %v11237_v39 = vld [vmem:[#allocation6 + $0x54] sm:$0xf0]  ;;  %v11235_v6 = vld [vmem:[#allocation6 + $0x4c] sm:$0xf]  ;;  %vm6667_vm2 = vweird.f32 %v12865_v3 }
 0x670   :  { %v6330_v45 = vadd.f32 %v12825_v55, %v6329_v58  ;;  %v10224_v52 = vmul.f32 -1.442695, %v6614_v14  ;;  %7167 = vmatpush.bf16.msra.mxu3 %v10402_v61  ;;  %v11245_v58 = vld [vmem:[#allocation6 + $0x94] sm:$0xf0] }
 0x671   :  { %v11526_v63 = vpop.eup %11525  ;;  %7149 = vmatpush.bf16.msra.mxu2 %v10354_v16  ;;  %v10302_v54 = vor.u32 %v11245_v58, %v10301_v46  ;;  %v13032_v16 = vld [vmem:[#allocation13_spill] sm:$0xff] }
 0x672   :  { %v12857_v15 = vpop.eup %11527  ;;  %v6334_v56 = vsel %vm6333_vm3, %v12825_v55, %v6330_v45  ;;  %v12863_v0 = vadd.f32 1.0, %v11526_v63  ;;  %11531 = vpow2.f32 %v10224_v52  ;;  %v11263_v55 = vld [vmem:[#allocation6 + $0x12c] sm:$0xf]  ;;  %v10306_v45 = vor.u32 %v11243_v23, %v10303_v48  ;;  %v11241_v52 = vld [vmem:[#allocation6 + $0x74] sm:$0xf0] }
 0x673   :  { %v6339_v22 = vsel %vm6336_vm4, %v6338_v49, %v6334_v56  ;;  %v11530_v60 = vpop.eup %11529  ;;  %v6643_v27 = vmul.f32 %v12857_v15, %v12823_v26  ;;  %v10386_v57 = vor.u32 %v11263_v55, %v10383_v12  ;;  %7142 = vmatpush.bf16.msrb.mxu1 %v10382_v21  ;;  %v10285_v49 = vld [vmem:[#allocation6 + $0x68] sm:$0xf]  ;;  %v10287_v63 = vld [vmem:[#allocation6 + $0x78] sm:$0xf0]  ;;  %v214_v10 = vadd.f32 %v13032_v16, %v11786_v37  ;;  %v11233_v59 = vld [vmem:[#allocation6 + $0x34] sm:$0xf0] }
 0x674   :  { %11533 = vrcp.f32 %v12863_v0  ;;  %v12868_v34 = vpop.f32.mrf.mxu2  ;;  %v6361_v43 = vmul.f32 %v6339_v22, %v12723_v31  ;;  %v6362_v8 = vmul.f32 %v11530_v60, %v6320_v50  ;;  %v10318_v31 = vor.u32 %v11249_v30, %v10317_v20  ;;  %v10271_v55 = vld [vmem:[#allocation6 + $0x58] sm:$0xf0] }
 0x675   :  { %v6573_v44 = vpop.f32.mrf.mxu0  ;;  %7150 = vmatpush.bf16.msra.mxu2 %v10338_v33  ;;  %11535 = vrcp.f32 %v12865_v3  ;;  %v6644_v29 = vsub.f32 1.0, %v6643_v27  ;;  %7168 = vmatpush.bf16.msra.mxu3 %v10386_v57  ;;  %v6653_v56 = vand.u32 2147483648, %v12823_v26  ;;  %v6357_v19 = vand.u32 2147483648, %v12863_v0 }
 0x676   :  { %v12878_v13 = vadd.f32 %v6362_v8, %v6361_v43  ;;  %7125 = vmatpush.bf16.msra.mxu0 %v10318_v31  ;;  %v6355_v51 = vand.u32 2147483647, %v12863_v0  ;;  %v10286_v37 = vor.u32 %v11241_v52, %v10285_v49  ;;  %v10290_v22 = vor.u32 %v11239_v53, %v10287_v63  ;;  %v10255_v8 = vld [vmem:[#allocation6 + $0x38] sm:$0xf0] }
 0x677   :  { %v6645_v61 = vmul.f32 %v12857_v15, %v6644_v29  ;;  %7143 = vmatpush.bf16.msrb.mxu1 %v10366_v40  ;;  %vm6648_vm7 = vweird.f32 %v12857_v15  ;;  %vm6351_vm8 = vweird.f32 %v12863_v0  ;;  %v6616_v27 = vadd.f32 %v12868_v34, %v214_v10  ;;  %v10253_v34 = vld [vmem:[#allocation6 + $0x28] sm:$0xf] }
 0x678   :  { %v11532_v17 = vpop.eup %11531  ;;  %v6651_v20 = vand.u32 2147483647, %v12823_v26  ;;  %v6358_v30 = vor.u32 1.1754944e-38, %v6357_v19  ;;  %vm6356_vm10 = vcmp.eq.f32.partialorder %v6355_v51, 8.507059e+37  ;;  %v10274_v2 = vor.u32 %v11235_v6, %v10271_v55  ;;  %vm12905_vm11 = vmor %vm6647_vm6, %vm6648_vm7 }
 0x679   :  { %v12876_v14 = vadd.f32 1.0, %v11532_v17  ;;  %7151 = vmatpush.bf16.msra.mxu2 %v10322_v35  ;;  %7169 = vmatpush.bf16.msra.mxu3 %v10370_v32  ;;  %v6646_v50 = vadd.f32 %v12857_v15, %v6645_v61  ;;  %v6654_v24 = vor.u32 1.1754944e-38, %v6653_v56  ;;  %v11231_v17 = vld [vmem:[#allocation6 + $0x2c] sm:$0xf]  ;;  %v10254_v23 = vor.u32 %v11233_v59, %v10253_v34  ;;  %v11229_v32 = vld [vmem:[#allocation6 + $0x14] sm:$0xf0] }
 0x67a   :  { %v11534_v11 = vpop.eup %11533  ;;  %7126 = vmatpush.bf16.msra.mxu0 %v10302_v54  ;;  %vm6652_vm13 = vcmp.eq.f32.partialorder %v6651_v20, 8.507059e+37  ;;  %v10258_v48 = vor.u32 %v11231_v17, %v10255_v8  ;;  %v6673_v56 = vand.u32 2147483648, %v12865_v3  ;;  %v6671_v19 = vand.u32 2147483647, %v12865_v3 }
 0x67b   :  { %v6347_v1 = vmul.f32 %v11534_v11, %v12863_v0  ;;  %11537 = vrcp.f32 %v12876_v14  ;;  %v12885_v9 = vpop.eup %11535  ;;  %vm6352_vm5 = vweird.f32 %v11534_v11  ;;  %v10270_v0 = vor.u32 %v11237_v39, %v10269_v38 }
 0x67c   :  { %v6599_v18 = vpop.f32.mrf.mxu2  ;;  %11539 = vtanh.f32 %v12878_v13  ;;  %v6663_v33 = vmul.f32 %v12885_v9, %v12865_v3  ;;  %vm6353_vm9 = vmor %vm6351_vm8, %vm6352_vm5  ;;  %v6634_v57 = vand.u32 2147483648, %v12876_v14  ;;  %v6650_v46 = vsel %vm12905_vm11, %v12857_v15, %v6646_v50  ;;  %v10239_v15 = vld [vmem:[#allocation6 + $0x18] sm:$0xf0] }
 0x67d   :  { %v6348_v62 = vsub.f32 1.0, %v6347_v1  ;;  %7152 = vmatpush.bf16.msra.mxu2 %v10306_v45  ;;  %11541 = vtanh.f32 %v6616_v27  ;;  %v6632_v26 = vand.u32 2147483647, %v12876_v14  ;;  %vm6628_vm14 = vweird.f32 %v12876_v14  ;;  %v11227_v1 = vld [vmem:[#allocation6 + $0xc] sm:$0xf] }
 0x67e   :  { %7127 = vmatpush.bf16.msra.mxu0 %v10286_v37  ;;  %v6664_v29 = vsub.f32 1.0, %v6663_v33  ;;  %v6635_v54 = vor.u32 1.1754944e-38, %v6634_v57  ;;  %v6655_v49 = vsel %vm6652_vm13, %v6654_v24, %v6650_v46  ;;  %v10242_v16 = vor.u32 %v11227_v1, %v10239_v15  ;;  %v11293_v57 = vld [vmem:[%s12964_s6 + $0x18] sm:$0xff] }
 0x67f   :  { %v6349_v36 = vmul.f32 %v11534_v11, %v6348_v62  ;;  %vm6633_vm0 = vcmp.eq.f32.partialorder %v6632_v26, 8.507059e+37  ;;  %vm6668_vm1 = vweird.f32 %v12885_v9  ;;  %vm6672_vm4 = vcmp.eq.f32.partialorder %v6671_v19, 8.507059e+37 }
 0x680   :  { %v6665_v18 = vmul.f32 %v12885_v9, %v6664_v29  ;;  %vm6669_vm3 = vmor %vm6667_vm2, %vm6668_vm1 }
 0x681   :  { %v11538_v60 = vpop.eup %11537  ;;  %v6350_v44 = vadd.f32 %v11534_v11, %v6349_v36  ;;  %7153 = vmatpush.bf16.msra.mxu2 %v10290_v22  ;;  %v6674_v36 = vor.u32 1.1754944e-38, %v6673_v56 }
 0x682   :  { %v6624_v12 = vmul.f32 %v11538_v60, %v12876_v14  ;;  %v11540_v47 = vpop.eup %11539  ;;  %vm6629_vm12 = vweird.f32 %v11538_v60  ;;  %7128 = vmatpush.bf16.msra.mxu0 %v10270_v0  ;;  %v6677_v14 = vmul.f32 %v6655_v49, %v12771_v42  ;;  %v6666_v62 = vadd.f32 %v12885_v9, %v6665_v18 }
 0x683   :  { %v6354_v43 = vsel %vm6353_vm9, %v11534_v11, %v6350_v44  ;;  %v10237_v11 = vld [vmem:[#allocation6 + $0x8] sm:$0xf]  ;;  %vm6630_vm15 = vmor %vm6628_vm14, %vm6629_vm12  ;;  %v11542_v52 = vpop.eup %11541 }
 0x684   :  { %v6625_v5 = vsub.f32 1.0, %v6624_v12  ;;  %v6359_v41 = vsel %vm6356_vm10, %v6358_v30, %v6354_v43  ;;  %v10238_v63 = vor.u32 %v11229_v32, %v10237_v11  ;;  %v6670_v51 = vsel %vm6669_vm3, %v12885_v9, %v6666_v62  ;;  %v11297_v43 = vld [vmem:[%s12964_s6 + $0x38] sm:$0xff] }
 0x685   :  { %v6365_v58 = vmul.f32 %v11540_v47, %v6359_v41  ;;  %7154 = vmatpush.bf16.msra.mxu2 %v10274_v2  ;;  %v6675_v37 = vsel %vm6672_vm4, %v6674_v36, %v6670_v51  ;;  %v11294_v41 = vld [vmem:[%s12964_s6 + $0x20] sm:$0xff] }
 0x686   :  { %v6626_v31 = vmul.f32 %v11538_v60, %v6625_v5  ;;  %7129 = vmatpush.bf16.msra.mxu0 %v10254_v23 }
 0x687   :  { %v6686_v35 = vpack.c.bf16 %v6365_v58, %v6365_v58 }
 0x688   :  { %v6627_v40 = vadd.f32 %v11538_v60, %v6626_v31 }
 0x689   :  { %7092 = vmatmul.bf16.vlgmr.msra.gmra.mxu1 %v6686_v35  ;;  %7118 = vmatmul.bf16.vlgmr.msrb.gmra.mxu3 %v6686_v35 }
 0x68a   :  { %v6631_v45 = vsel %vm6630_vm15, %v11538_v60, %v6627_v40  ;;  %7155 = vmatpush.bf16.msra.mxu2 %v10258_v48  ;;  %7130 = vmatpush.bf16.msra.mxu0 %v10238_v63  ;;  %v11292_v48 = vld [vmem:[%s12964_s6 + $0x10] sm:$0xff] }
 0x68b   :  { %v6636_v53 = vsel %vm6633_vm0, %v6635_v54, %v6631_v45 }
 0x68c   :  { %v6678_v10 = vmul.f32 %v11542_v52, %v6636_v53 }
 0x68e   :  { %v6679_v61 = vadd.f32 %v6678_v10, %v6677_v14  ;;  %7156 = vmatpush.bf16.msra.mxu2 %v10242_v16  ;;  %v11290_v16 = vld [vmem:[%s12964_s6] sm:$0xff] }
 0x690   :  { %11543 = vtanh.f32 %v6679_v61 }
 0x696   :  { %v11544_v42 = vpop.eup %11543 }
 0x697   :  { %v6681_v22 = vmul.f32 %v11544_v42, %v6675_v37 }
 0x699   :  { %7144 = vmatmul.bf16.vlgmr.msrb.gmra.mxu1 %v6686_v35  ;;  %7170 = vmatmul.bf16.vlgmr.msra.gmra.mxu3 %v6686_v35  ;;  %v6684_v38 = vpack.c.bf16 %v6681_v22, %v6681_v22 }
 0x69b   :  { %7079 = vmatmul.bf16.vlgmr.msrb.gmra.mxu0 %v6684_v38  ;;  %7105 = vmatmul.bf16.vlgmr.msrb.gmra.mxu2 %v6684_v38 }
 0x69c   :  { %7314 = vmatpush.bf16.msrb.mxu0 %v11297_v43 }
 0x6ab   :  { %7131 = vmatmul.bf16.vlgmr.msra.gmra.mxu0 %v6684_v38  ;;  %7157 = vmatmul.bf16.vlgmr.msra.gmra.mxu2 %v6684_v38 }
 0x706   :  { %v7093_v39 = vpop.f32.mrf.mxu1 }
 0x70c   :  { %v7119_v6 = vpop.f32.mrf.mxu3 }
 0x70e   :  { %v7095_v55 = vpop.f32.mrf.mxu1 }
 0x714   :  { %v7121_v60 = vpop.f32.mrf.mxu3 }
 0x716   :  { %v7145_v3 = vpop.f32.mrf.mxu1 }
 0x718   :  { %v7080_v27 = vpop.f32.mrf.mxu0 }
 0x719   :  { %v7081_v9 = vadd.f32 %v7080_v27, %v11906_v25  ;;  %v11296_v25 = vld [vmem:[%s12964_s6 + $0x30] sm:$0xff] }
 0x71a   :  { %7315 = vmatpush.bf16.msrb.mxu0 %v11296_v25 }
 0x71b   :  { %v7094_v50 = vadd.f32 %v7093_v39, %v7081_v9 }
 0x71c   :  { %v7171_v44 = vpop.f32.mrf.mxu3 }
 0x71d   :  { %v10483_v33 = vmul.f32 -1.442695, %v7094_v50 }
 0x71e   :  { %v7147_v12 = vpop.f32.mrf.mxu1  ;;  %v7106_v20 = vpop.f32.mrf.mxu2 }
 0x71f   :  { %11545 = vpow2.f32 %v10483_v33  ;;  %v7107_v30 = vadd.f32 %v7106_v20, %v11910_v28  ;;  %v11295_v28 = vld [vmem:[%s12964_s6 + $0x28] sm:$0xff] }
 0x720   :  { %v7082_v0 = vpop.f32.mrf.mxu0  ;;  %7316 = vmatpush.bf16.msrb.mxu0 %v11295_v28 }
 0x721   :  { %v7120_v2 = vadd.f32 %v7119_v6, %v7107_v30  ;;  %v11304_v0 = vld [vmem:[%s12965_s7] ss:$0 sm:$0xff] }
 0x723   :  { %v10484_v34 = vmul.f32 -1.442695, %v7120_v2 }
 0x724   :  { %v7173_v59 = vpop.f32.mrf.mxu3  ;;  %7317 = vmatpush.bf16.msrb.mxu0 %v11294_v41 }
 0x725   :  { %v11546_v47 = vpop.eup %11545  ;;  %11547 = vpow2.f32 %v10484_v34 }
 0x726   :  { %v7179_v21 = vadd.f32 1.0, %v11546_v47  ;;  %v7108_v24 = vpop.f32.mrf.mxu2 }
 0x728   :  { %11549 = vrcp.f32 %v7179_v21  ;;  %v7132_v5 = vpop.f32.mrf.mxu0  ;;  %7318 = vmatpush.bf16.msrb.mxu0 %v11293_v57  ;;  %v7191_v63 = vand.u32 2147483648, %v7179_v21  ;;  %vm7185_vm7 = vweird.f32 %v7179_v21  ;;  %v7189_v14 = vand.u32 2147483647, %v7179_v21 }
 0x729   :  { %v7133_v11 = vadd.f32 %v7132_v5, %v11936_v4 }
 0x72a   :  { %v7192_v51 = vor.u32 1.1754944e-38, %v7191_v63  ;;  %vm7190_vm12 = vcmp.eq.f32.partialorder %v7189_v14, 8.507059e+37 }
 0x72b   :  { %v11548_v17 = vpop.eup %11547  ;;  %v7146_v18 = vadd.f32 %v7145_v3, %v7133_v11 }
 0x72c   :  { %v7198_v8 = vadd.f32 1.0, %v11548_v17  ;;  %7319 = vmatpush.bf16.msrb.mxu0 %v11292_v48 }
 0x72e   :  { %v11550_v46 = vpop.eup %11549  ;;  %11551 = vrcp.f32 %v7198_v8  ;;  %v7158_v58 = vpop.f32.mrf.mxu2  ;;  %v7210_v45 = vand.u32 2147483648, %v7198_v8  ;;  %v7208_v4 = vand.u32 2147483647, %v7198_v8  ;;  %vm7204_vm8 = vweird.f32 %v7198_v8 }
 0x72f   :  { %v7181_v29 = vmul.f32 %v11550_v46, %v7179_v21  ;;  %v7159_v31 = vadd.f32 %v7158_v58, %v11928_v7  ;;  %v11291_v7 = vld [vmem:[%s12964_s6 + $0x8] sm:$0xff]  ;;  %vm7186_vm5 = vweird.f32 %v11550_v46 }
 0x730   :  { %v7134_v26 = vpop.f32.mrf.mxu0  ;;  %7320 = vmatpush.bf16.msrb.mxu0 %v11291_v7  ;;  %vm7187_vm9 = vmor %vm7185_vm7, %vm7186_vm5  ;;  %v7211_v62 = vor.u32 1.1754944e-38, %v7210_v45  ;;  %vm7209_vm11 = vcmp.eq.f32.partialorder %v7208_v4, 8.507059e+37 }
 0x731   :  { %v7182_v35 = vsub.f32 1.0, %v7181_v29  ;;  %v7172_v23 = vadd.f32 %v7171_v44, %v7159_v31 }
 0x733   :  { %v10485_v40 = vmul.f32 -1.442695, %v7172_v23  ;;  %v7183_v1 = vmul.f32 %v11550_v46, %v7182_v35 }
 0x734   :  { %v11552_v32 = vpop.eup %11551  ;;  %7321 = vmatpush.bf16.msrb.mxu0 %v11290_v16 }
 0x735   :  { %v7200_v15 = vmul.f32 %v11552_v32, %v7198_v8  ;;  %11553 = vpow2.f32 %v10485_v40  ;;  %v7184_v52 = vadd.f32 %v11550_v46, %v7183_v1  ;;  %vm7205_vm6 = vweird.f32 %v11552_v32 }
 0x736   :  { %v7160_v54 = vpop.f32.mrf.mxu2  ;;  %11555 = vtanh.f32 %v7146_v18  ;;  %vm7206_vm10 = vmor %vm7204_vm8, %vm7205_vm6 }
 0x737   :  { %v7201_v49 = vsub.f32 1.0, %v7200_v15  ;;  %v7188_v56 = vsel %vm7187_vm9, %v11550_v46, %v7184_v52 }
 0x738   :  { %v7193_v37 = vsel %vm7190_vm12, %v7192_v51, %v7188_v56 }
 0x739   :  { %v7202_v53 = vmul.f32 %v11552_v32, %v7201_v49 }
 0x73b   :  { %v11554_v10 = vpop.eup %11553  ;;  %v7203_v61 = vadd.f32 %v11552_v32, %v7202_v53 }
 0x73c   :  { %v7218_v19 = vadd.f32 1.0, %v11554_v10  ;;  %v11556_v38 = vpop.eup %11555 }
 0x73d   :  { %v7207_v36 = vsel %vm7206_vm10, %v11552_v32, %v7203_v61  ;;  %v7235_v39 = vmul.f32 %v11556_v38, %v7193_v37 }
 0x73e   :  { %v7212_v42 = vsel %vm7209_vm11, %v7211_v62, %v7207_v36  ;;  %11557 = vrcp.f32 %v7218_v19  ;;  %v7230_v27 = vand.u32 2147483648, %v7218_v19  ;;  %v7228_v50 = vand.u32 2147483647, %v7218_v19 }
 0x73f   :  { %v7234_v22 = vmul.f32 %v7212_v42, %v12878_v13  ;;  %vm7224_vm14 = vweird.f32 %v7218_v19 }
 0x740   :  { %v7231_v33 = vor.u32 1.1754944e-38, %v7230_v27  ;;  %vm7229_vm0 = vcmp.eq.f32.partialorder %v7228_v50, 8.507059e+37 }
 0x741   :  { %v7236_v55 = vadd.f32 %v7235_v39, %v7234_v22 }
 0x743   :  { %11559 = vtanh.f32 %v7236_v55 }
 0x744   :  { %v11558_v6 = vpop.eup %11557 }
 0x745   :  { %v7220_v60 = vmul.f32 %v11558_v6, %v7218_v19  ;;  %vm7225_vm13 = vweird.f32 %v11558_v6 }
 0x746   :  { %vm7226_vm15 = vmor %vm7224_vm14, %vm7225_vm13 }
 0x747   :  { %v7221_v3 = vsub.f32 1.0, %v7220_v60 }
 0x749   :  { %v7222_v9 = vmul.f32 %v11558_v6, %v7221_v3  ;;  %v11560_v20 = vpop.eup %11559 }
 0x74b   :  { %v7223_v44 = vadd.f32 %v11558_v6, %v7222_v9 }
 0x74d   :  { %v7227_v12 = vsel %vm7226_vm15, %v11558_v6, %v7223_v44 }
 0x74e   :  { %v7232_v30 = vsel %vm7229_vm0, %v7231_v33, %v7227_v12 }
 0x74f   :  { %v7238_v13 = vmul.f32 %v11560_v20, %v7232_v30 }
 0x751   :  { %v7245_v43 = vpack.c.bf16 %v7238_v13, %v7238_v13 }
 0x753   :  { %7322 = vmatmul.bf16.vlgmr.msrb.gmra.mxu0 %v7245_v43 }
 0x7d0   :  { %v7323_v2 = vpop.f32.mrf.mxu0 }
 0x7d1   :  { %v7324_v34 = vadd.f32 %v11304_v0, %v7323_v2 }
 0x7d3   :  { %7327 = vst [vmem:[%s12966_s8] sm:$0xff] %v7324_v34 }
 0x7d8   :  { %v7325_v25 = vpop.f32.mrf.mxu0 }
 0x7d9   :  { %7332 = vsyncpa [#allocation5], 1 }
 0x7da   :  { %7333 = vsyncpa [#allocation7], 1 }

</bundles_post_ra>
